<compile_context>
chip_gen: v5e
topology: v5e:2x2
jax: 0.10.0
libtpu: 0.0.40
codegen_flags: <defaults>
</compile_context>

<pallas_src>
import math

import jax
import jax.numpy as jnp
from jax.experimental import pallas as pl
from jax.experimental.pallas import tpu as pltpu

LANE = 128


def _round_up(n, m):
    return ((n + m - 1) // m) * m


# ------------------------------- wrapper -----------------------------------

def visual_diacritic_attention(features, params, *, tm=128,
                               matmul_dtype=jnp.bfloat16,
                               out_dtype=None, gelu_approx=None):
    """Forward pass of VisualDiacriticAttention. features: (B, S, D) -> (B, S, V)."""
    B, S, D = features.shape
    H = D // 2
    V = params["wf"].shape[1]
    rows = B * S

    f32 = jnp.float32
    md = jnp.dtype(matmul_dtype)
    out_dt = jnp.dtype(out_dtype) if out_dtype is not None else jnp.dtype(features.dtype)
    is_f32_mm = md == jnp.dtype(jnp.float32)
    fast_recip = not is_f32_mm
    # exact erf GELU (PyTorch default) in the f32 parity path; tanh-approx (EUP) in bf16 path
    use_approx_gelu = (not is_f32_mm) if gelu_approx is None else bool(gelu_approx)
    prec = jax.lax.Precision.HIGHEST if is_f32_mm else None

    Hp = _round_up(H, LANE)
    Vp = _round_up(V, LANE)
    P = LANE                       # padded width of the 3-way position head / pw lanes
    Kp = 3 * Hp + P                # packed-slab K of the fused second-layer matmul

    # ---- row tiling (sublane granularity follows the matmul dtype packing) ----
    rg = 8 if md.itemsize >= 4 else (16 if md.itemsize == 2 else 32)
    rows_pg = _round_up(max(rows, 1), rg)
    tm_eff = max(rg, min(_round_up(tm, rg), rows_pg))
    # v7x: give the "parallel" grid axis >= 2 steps so both TensorCores get work.
    if -(-rows_pg // tm_eff) < 2 and rows_pg > rg:
        tm_eff = _round_up(-(-rows_pg // 2), rg)
    rows_pad = _round_up(rows, tm_eff)
    grid = (rows_pad // tm_eff,)

    # ------------------ parameter preprocessing (host side, f32) ------------------
    def pad_cols(a, cols):
        a = jnp.asarray(a, f32)
        return jnp.pad(a, ((0, 0), (0, cols - a.shape[1])))

    # four first-layer projections fused into one (D, 4*Hp) weight; K (= D) is NOT padded
    w1_big = jnp.concatenate([pad_cols(params["wp1"], Hp)]
                             + [pad_cols(params["wr1"][i], Hp) for i in range(3)], axis=1)
    b1_big = jnp.concatenate([pad_cols(params["bp1"], Hp)]
                             + [pad_cols(params["br1"][i], Hp) for i in range(3)], axis=1)
    gamma_big = jnp.concatenate([pad_cols(params["gp"], Hp)]
                                + [pad_cols(params["gr"][i], Hp) for i in range(3)], axis=1)
    beta_big = jnp.concatenate([pad_cols(params["bpln"], Hp)]
                               + [pad_cols(params["brln"][i], Hp) for i in range(3)], axis=1)

    # position head: lane-dense (Hp, 128) matmul; padded bias lanes -1e30 => softmax -> 0
    wp2_pad = jnp.pad(jnp.asarray(params["wp2"], f32), ((0, Hp - H), (0, P - 3)))
    bp2_pad = jnp.full((1, P), -1e30, f32).at[:, :3].set(
        jnp.asarray(params["bp2"], f32).reshape(1, 3))

    # Fold output_fusion into the region second-layer weights (wrf_i = wr2_i @ wf_i) and
    # stack them with 128 "bias rows" (brf_i = br2_i @ wf_i) so the whole weighted region
    # sum is ONE matmul:
    #   out = [pw0*h0 | pw1*h1 | pw2*h2 | pw] @ [wrf0; wrf1; wrf2; brf_pad] + bf
    wf = jnp.asarray(params["wf"], f32)                      # (3V, V)
    wrf_blocks, brf_rows = [], []
    for i in range(3):
        wf_i = wf[i * V:(i + 1) * V, :]                      # (V, V)
        wrf_i = jnp.asarray(params["wr2"][i], f32) @ wf_i    # (H, V)
        brf_i = jnp.asarray(params["br2"][i], f32) @ wf_i    # (1, V)
        wrf_blocks.append(jnp.pad(wrf_i, ((0, Hp - H), (0, Vp - V))))
        brf_rows.append(jnp.pad(brf_i, ((0, 0), (0, Vp - V))))
    brf_pad = jnp.concatenate(brf_rows + [jnp.zeros((P - 3, Vp), f32)], axis=0)  # (P, Vp)
    wrfb = jnp.concatenate(wrf_blocks + [brf_pad], axis=0)                       # (Kp, Vp)
    bf_pad = jnp.pad(jnp.asarray(params["bf"], f32), ((0, 0), (0, Vp - V)))

    # matmul operands in matmul dtype (LN / GELU / softmax stay f32 inside the kernel)
    w1_md = w1_big.astype(md)
    wp2_md = wp2_pad.astype(md)
    wrfb_md = wrfb.astype(md)

    # x: only ROW padding — no lane-padded HBM copy (the block takes the full last dim D)
    x = jnp.asarray(features, f32).reshape(rows, D)
    if rows_pad > rows:
        x = jnp.pad(x, ((0, rows_pad - rows), (0, 0)))
    x = x.astype(md)

    inv_h = 1.0 / float(H)
    eps = 1e-5
    inv_sqrt2 = 1.0 / math.sqrt(2.0)
    tanh_c = math.sqrt(2.0 / math.pi)

    def gelu(t):
        if use_approx_gelu:        # tanh approx -> EUP (its own bundle slot)
            return 0.5 * t * (1.0 + jnp.tanh(tanh_c * (t + 0.044715 * (t * t * t))))
        return 0.5 * t * (1.0 + jax.lax.erf(t * inv_sqrt2))   # exact (PyTorch nn.GELU())

    def kernel(x_ref, w1_ref, b1_ref, g_ref, be_ref,
               wp2_ref, bp2_ref, wrfb_ref, bf_ref, out_ref, hs_ref):
        xv = x_ref[...]                                        # (tm, D) in matmul dtype

        def branch(j):
            # one (tm,D)x(D,Hp) matmul + LayerNorm + GELU; only (tm,Hp) is live at a time
            c0, c1 = j * Hp, (j + 1) * Hp
            h = jnp.dot(xv, w1_ref[:, c0:c1], precision=prec,
                        preferred_element_type=jnp.float32) + b1_ref[:, c0:c1]
            mean = jnp.sum(h, axis=-1, keepdims=True) * inv_h     # padded lanes are 0
            msq = jnp.sum(h * h, axis=-1, keepdims=True) * inv_h
            var = jnp.maximum(msq - mean * mean, 0.0)
            hn = (h - mean) * jax.lax.rsqrt(var + eps)
            hn = hn * g_ref[:, c0:c1] + be_ref[:, c0:c1]          # padded gamma/beta = 0
            return gelu(hn)

        # --- position branch: softmax over the 3 real lanes (padded logits = -1e30 -> 0) ---
        h_pos = branch(0)
        logits = jnp.dot(h_pos.astype(md), wp2_ref[...], precision=prec,
                         preferred_element_type=jnp.float32) + bp2_ref[...]   # (tm, 128)
        mx = jnp.max(logits, axis=-1, keepdims=True)
        e = jnp.exp(logits - mx)                                  # padded lanes -> exactly 0
        pw = e * pl.reciprocal(jnp.sum(e, axis=-1, keepdims=True), approx=fast_recip)

        # pw in the last 128 lanes of the packed slab folds the region biases into the
        # single fused matmul below (padded pw lanes are exactly zero).
        hs_ref[:, 3 * Hp:] = pw.astype(md)

        # --- region branches: scale by pw_r BEFORE the matmul, pack into the K=3*Hp slab ---
        for r in range(3):                                        # static unroll
            h_r = branch(r + 1)
            hs_ref[:, r * Hp:(r + 1) * Hp] = (pw[:, r:r + 1] * h_r).astype(md)

        # single MXU matmul == sum_r pw_r * (h_r @ wrf_r + brf_r)
        acc = jnp.dot(hs_ref[...], wrfb_ref[...], precision=prec,
                      preferred_element_type=jnp.float32)         # (tm, Vp) f32
        out_ref[...] = (acc + bf_ref[...]).astype(out_ref.dtype)

    # ---- VMEM budget, capped by the actual chip (v7x: 64 MiB per TensorCore) ----
    isz = md.itemsize
    osz = out_dt.itemsize
    w_bytes = (isz * (w1_md.size + wp2_md.size + wrfb_md.size)
               + 4 * (b1_big.size + gamma_big.size + beta_big.size
                      + bp2_pad.size + bf_pad.size))
    est = (2 * tm_eff * D * isz                  # x tile, double-buffered
           + 2 * tm_eff * Vp * osz               # out tile, double-buffered
           + 2 * w_bytes                         # conservative even if single-buffered
           + tm_eff * Kp * isz                   # packed slab scratch
           + 6 * tm_eff * Hp * 4)                # live f32 intermediates headroom
    try:
        vmem_cap = int(pltpu.get_tpu_info().vmem_capacity_bytes)
    except Exception:
        vmem_cap = 64 * 2 ** 20                  # smallest per-TC VMEM (v7x)
    vmem_limit = int(min(max(2 * est, 16 * 2 ** 20), (3 * vmem_cap) // 4))

    def run(use_buffered):
        def cspec(shape):
            zeros = (0,) * len(shape)
            if use_buffered:
                # grid-invariant operand: single buffer (no re-DMA between grid steps)
                return pl.BlockSpec(shape, lambda i, _z=zeros: _z,
                                    pipeline_mode=pl.Buffered(1))
            return pl.BlockSpec(shape, lambda i, _z=zeros: _z)

        in_specs = [
            pl.BlockSpec((tm_eff, D), lambda i: (i, 0)),   # x tile (full, un-padded last dim)
            cspec((D, 4 * Hp)),                            # fused first-layer weight
            cspec((1, 4 * Hp)),                            # fused first-layer bias
            cspec((1, 4 * Hp)),                            # LN gamma (4 branches)
            cspec((1, 4 * Hp)),                            # LN beta  (4 branches)
            cspec((Hp, P)),                                # position head weight (padded)
            cspec((1, P)),                                 # position head bias (-1e30 pad)
            cspec((Kp, Vp)),                               # [wrf0; wrf1; wrf2; brf] stacked
            cspec((1, Vp)),                                # fusion bias
        ]
        return pl.pallas_call(
            kernel,
            out_shape=jax.ShapeDtypeStruct((rows_pad, Vp), out_dt),
            grid=grid,
            in_specs=in_specs,
            out_specs=pl.BlockSpec((tm_eff, Vp), lambda i: (i, 0)),  # lane-dense output slab
            scratch_shapes=[pltpu.VMEM((tm_eff, Kp), md)],           # packed pw-scaled slab
            compiler_params=pltpu.CompilerParams(
                dimension_semantics=("parallel",),
                vmem_limit_bytes=vmem_limit),
        )(x, w1_md, b1_big, gamma_big, beta_big, wp2_md, bp2_pad, wrfb_md, bf_pad)

    try:
        out = run(True)
    except Exception:
        # pipeline_mode/Buffered not supported by this JAX build: default double-buffering.
        out = run(False)

    return out[:rows, :V].reshape(B, S, V)


# --------------------------- deterministic params ---------------------------

def init_params(key, feature_dim, diacritic_vocab_size):
    D, V = feature_dim, diacritic_vocab_size
    H = D // 2

    def xavier(k, fan_in, fan_out):
        lim = math.sqrt(6.0 / (fan_in + fan_out))
        return jax.random.uniform(k, (fan_in, fan_out), jnp.float32, -lim, lim)

    keys = jax.random.split(key, 9)
    return dict(
        wp1=xavier(keys[0], D, H),
        bp1=jnp.zeros((1, H), jnp.float32),
        gp=jnp.ones((1, H), jnp.float32),
        bpln=jnp.zeros((1, H), jnp.float32),
        wp2=xavier(keys[1], H, 3),
        bp2=jnp.zeros((1, 3), jnp.float32),
        wr1=jnp.stack([xavier(keys[2 + i], D, H) for i in range(3)]),
        br1=jnp.zeros((3, 1, H), jnp.float32),
        gr=jnp.ones((3, 1, H), jnp.float32),
        brln=jnp.zeros((3, 1, H), jnp.float32),
        wr2=jnp.stack([xavier(keys[5 + i], H, V) for i in range(3)]),
        br2=jnp.zeros((3, 1, V), jnp.float32),
        wf=xavier(keys[8], 3 * V, V),
        bf=jnp.zeros((1, V), jnp.float32),
    )


# ------------------------------ pure-JAX reference ---------------------------

def vda_reference(features, p):
    def ln(h, g, b, eps=1e-5):
        mu = jnp.mean(h, axis=-1, keepdims=True)
        var = jnp.mean((h - mu) ** 2, axis=-1, keepdims=True)
        return (h - mu) / jnp.sqrt(var + eps) * g + b

    def gelu(x):
        return 0.5 * x * (1.0 + jax.lax.erf(x / jnp.sqrt(2.0)))

    h = features @ p["wp1"] + p["bp1"]
    h = gelu(ln(h, p["gp"], p["bpln"]))
    pw = jax.nn.softmax(h @ p["wp2"] + p["bp2"], axis=-1)

    outs = []
    for i in range(3):
        hi = features @ p["wr1"][i] + p["br1"][i]
        hi = gelu(ln(hi, p["gr"][i], p["brln"][i]))
        ri = hi @ p["wr2"][i] + p["br2"][i]
        outs.append(pw[..., i:i + 1] * ri)
    cat = jnp.concatenate(outs, axis=-1)
    return cat @ p["wf"] + p["bf"]


# ----------------------------------- main ------------------------------------

if __name__ == "__main__":
    B, S, D, V = 2, 8, 32, 16   # batch, seq, feature_dim, diacritic_vocab_size

    key = jax.random.PRNGKey(0)
    kx, kp = jax.random.split(key)
    features = jax.random.normal(kx, (B, S, D), dtype=jnp.float32)
    params = init_params(kp, D, V)

    ref = vda_reference(features, params)

    # f32 matmul path: exact-erf GELU, exact reciprocal -> tight parity with the reference.
    out = visual_diacritic_attention(features, params, matmul_dtype=jnp.float32)
    out = jax.block_until_ready(out)
    assert out.shape == (B, S, V), out.shape
    assert jnp.allclose(out, ref, atol=1e-3, rtol=1e-3), float(jnp.max(jnp.abs(out - ref)))

    # bf16 matmul path (recommended on v6e/v7x): f32 accumulation, tanh-GELU, bf16 writeback.
    out_bf16 = visual_diacritic_attention(features, params,
                                          matmul_dtype=jnp.bfloat16,
                                          out_dtype=jnp.bfloat16)
    out_bf16 = jax.block_until_ready(out_bf16)
    assert out_bf16.shape == (B, S, V), out_bf16.shape
    assert jnp.allclose(out_bf16.astype(jnp.float32), ref, atol=5e-2, rtol=5e-2), \
        float(jnp.max(jnp.abs(out_bf16.astype(jnp.float32) - ref)))

    print("KERNEL_OK")
</pallas_src>

<mosaic_0001>
module attributes {stable_mosaic.version = 11 : i64} {
  func.func @kernel(%arg0: i32, %arg1: memref<8x32xf32, #tpu.memory_space<vmem>>, %arg2: memref<32x512xf32, #tpu.memory_space<vmem>>, %arg3: memref<1x512xf32, #tpu.memory_space<vmem>>, %arg4: memref<1x512xf32, #tpu.memory_space<vmem>>, %arg5: memref<1x512xf32, #tpu.memory_space<vmem>>, %arg6: memref<128x128xf32, #tpu.memory_space<vmem>>, %arg7: memref<1x128xf32, #tpu.memory_space<vmem>>, %arg8: memref<512x128xf32, #tpu.memory_space<vmem>>, %arg9: memref<1x128xf32, #tpu.memory_space<vmem>>, %arg10: memref<8x128xf32, #tpu.memory_space<vmem>>, %arg11: memref<8x512xf32, #tpu.memory_space<vmem>>) attributes {dimension_semantics = [#tpu.dimension_semantics<parallel>], iteration_bounds = array<i64: 2>, scalar_prefetch = 0 : i64, scratch_operands = 1 : i64, tpu.core_type = #tpu.core_type<tc>, window_params = [{transform_indices = @transform_0, window_bounds = array<i64: 8, 32>}, {pipeline_mode = #tpu.pipeline_mode<synchronous>, transform_indices = @transform_1, window_bounds = array<i64: 32, 512>}, {pipeline_mode = #tpu.pipeline_mode<synchronous>, transform_indices = @transform_2, window_bounds = array<i64: 1, 512>}, {pipeline_mode = #tpu.pipeline_mode<synchronous>, transform_indices = @transform_3, window_bounds = array<i64: 1, 512>}, {pipeline_mode = #tpu.pipeline_mode<synchronous>, transform_indices = @transform_4, window_bounds = array<i64: 1, 512>}, {pipeline_mode = #tpu.pipeline_mode<synchronous>, transform_indices = @transform_5, window_bounds = array<i64: 128, 128>}, {pipeline_mode = #tpu.pipeline_mode<synchronous>, transform_indices = @transform_6, window_bounds = array<i64: 1, 128>}, {pipeline_mode = #tpu.pipeline_mode<synchronous>, transform_indices = @transform_7, window_bounds = array<i64: 512, 128>}, {pipeline_mode = #tpu.pipeline_mode<synchronous>, transform_indices = @transform_8, window_bounds = array<i64: 1, 128>}, {transform_indices = @transform_9, window_bounds = array<i64: 8, 128>}]} {
    %c0 = arith.constant 0 : index
    %c0_0 = arith.constant 0 : index
    %0 = vector.load %arg1[%c0, %c0_0] : memref<8x32xf32, #tpu.memory_space<vmem>>, vector<8x32xf32>
    %c0_1 = arith.constant 0 : index
    %c0_2 = arith.constant 0 : index
    %1 = vector.load %arg2[%c0_1, %c0_2] : memref<32x512xf32, #tpu.memory_space<vmem>>, vector<32x128xf32>
    %cst = arith.constant dense<0.000000e+00> : vector<8x128xf32>
    %2 = tpu.matmul %0, %1, %cst {dimension_numbers = #tpu.dot_dimension_numbers<[1], [0], [0], [1], [0, 0, 1, 1], [], []>, precision = #tpu.contract_precision<fp32>} : vector<8x32xf32>, vector<32x128xf32>, vector<8x128xf32> -> vector<8x128xf32>
    %c0_3 = arith.constant 0 : index
    %c0_4 = arith.constant 0 : index
    %3 = vector.load %arg3[%c0_3, %c0_4] : memref<1x512xf32, #tpu.memory_space<vmem>>, vector<1x128xf32>
    %4 = vector.broadcast %3 : vector<1x128xf32> to vector<8x128xf32>
    %5 = arith.addf %2, %4 : vector<8x128xf32>
    %cst_5 = arith.constant dense<0.000000e+00> : vector<8xf32>
    %6 = vector.multi_reduction <add>, %5, %cst_5 [1] : vector<8x128xf32> to vector<8xf32>
    %7 = vector.shape_cast %6 : vector<8xf32> to vector<8x1xf32>
    %cst_6 = arith.constant 6.250000e-02 : f32
    %8 = vector.broadcast %cst_6 : f32 to vector<8x1xf32>
    %9 = arith.mulf %7, %8 : vector<8x1xf32>
    %10 = arith.mulf %5, %5 : vector<8x128xf32>
    %cst_7 = arith.constant dense<0.000000e+00> : vector<8xf32>
    %11 = vector.multi_reduction <add>, %10, %cst_7 [1] : vector<8x128xf32> to vector<8xf32>
    %12 = vector.shape_cast %11 : vector<8xf32> to vector<8x1xf32>
    %cst_8 = arith.constant 6.250000e-02 : f32
    %13 = vector.broadcast %cst_8 : f32 to vector<8x1xf32>
    %14 = arith.mulf %12, %13 : vector<8x1xf32>
    %15 = arith.mulf %9, %9 : vector<8x1xf32>
    %16 = arith.subf %14, %15 : vector<8x1xf32>
    %cst_9 = arith.constant 0.000000e+00 : f32
    %17 = vector.broadcast %cst_9 : f32 to vector<8x1xf32>
    %18 = arith.maximumf %16, %17 : vector<8x1xf32>
    %19 = vector.broadcast %9 : vector<8x1xf32> to vector<8x128xf32>
    %20 = arith.subf %5, %19 : vector<8x128xf32>
    %cst_10 = arith.constant 9.99999974E-6 : f32
    %21 = vector.broadcast %cst_10 : f32 to vector<8x1xf32>
    %22 = arith.addf %18, %21 : vector<8x1xf32>
    %23 = math.rsqrt %22 : vector<8x1xf32>
    %24 = vector.broadcast %23 : vector<8x1xf32> to vector<8x128xf32>
    %25 = arith.mulf %20, %24 : vector<8x128xf32>
    %c0_11 = arith.constant 0 : index
    %c0_12 = arith.constant 0 : index
    %26 = vector.load %arg4[%c0_11, %c0_12] : memref<1x512xf32, #tpu.memory_space<vmem>>, vector<1x128xf32>
    %27 = vector.broadcast %26 : vector<1x128xf32> to vector<8x128xf32>
    %28 = arith.mulf %25, %27 : vector<8x128xf32>
    %c0_13 = arith.constant 0 : index
    %c0_14 = arith.constant 0 : index
    %29 = vector.load %arg5[%c0_13, %c0_14] : memref<1x512xf32, #tpu.memory_space<vmem>>, vector<1x128xf32>
    %30 = vector.broadcast %29 : vector<1x128xf32> to vector<8x128xf32>
    %31 = arith.addf %28, %30 : vector<8x128xf32>
    %cst_15 = arith.constant 5.000000e-01 : f32
    %32 = vector.broadcast %cst_15 : f32 to vector<8x128xf32>
    %33 = arith.mulf %32, %31 : vector<8x128xf32>
    %cst_16 = arith.constant 0.707106769 : f32
    %34 = vector.broadcast %cst_16 : f32 to vector<8x128xf32>
    %35 = arith.mulf %31, %34 : vector<8x128xf32>
    %36 = math.erf %35 : vector<8x128xf32>
    %cst_17 = arith.constant 1.000000e+00 : f32
    %37 = vector.broadcast %cst_17 : f32 to vector<8x128xf32>
    %38 = arith.addf %37, %36 : vector<8x128xf32>
    %39 = arith.mulf %33, %38 : vector<8x128xf32>
    %c0_18 = arith.constant 0 : index
    %c0_19 = arith.constant 0 : index
    %40 = vector.load %arg6[%c0_18, %c0_19] : memref<128x128xf32, #tpu.memory_space<vmem>>, vector<128x128xf32>
    %cst_20 = arith.constant dense<0.000000e+00> : vector<8x128xf32>
    %41 = tpu.matmul %39, %40, %cst_20 {dimension_numbers = #tpu.dot_dimension_numbers<[1], [0], [0], [1], [0, 0, 1, 1], [], []>, precision = #tpu.contract_precision<fp32>} : vector<8x128xf32>, vector<128x128xf32>, vector<8x128xf32> -> vector<8x128xf32>
    %c0_21 = arith.constant 0 : index
    %c0_22 = arith.constant 0 : index
    %42 = vector.load %arg7[%c0_21, %c0_22] : memref<1x128xf32, #tpu.memory_space<vmem>>, vector<1x128xf32>
    %43 = vector.broadcast %42 : vector<1x128xf32> to vector<8x128xf32>
    %44 = arith.addf %41, %43 : vector<8x128xf32>
    %cst_23 = arith.constant dense<0xFF800000> : vector<8xf32>
    %45 = vector.multi_reduction <maximumf>, %44, %cst_23 [1] : vector<8x128xf32> to vector<8xf32>
    %46 = vector.shape_cast %45 : vector<8xf32> to vector<8x1xf32>
    %47 = vector.broadcast %46 : vector<8x1xf32> to vector<8x128xf32>
    %48 = arith.subf %44, %47 : vector<8x128xf32>
    %49 = math.exp %48 : vector<8x128xf32>
    %cst_24 = arith.constant dense<0.000000e+00> : vector<8xf32>
    %50 = vector.multi_reduction <add>, %49, %cst_24 [1] : vector<8x128xf32> to vector<8xf32>
    %51 = vector.shape_cast %50 : vector<8xf32> to vector<8x1xf32>
    %52 = tpu.reciprocal %51 : vector<8x1xf32> -> vector<8x1xf32>
    %53 = vector.broadcast %52 : vector<8x1xf32> to vector<8x128xf32>
    %54 = arith.mulf %49, %53 : vector<8x128xf32>
    %c0_25 = arith.constant 0 : index
    %c384 = arith.constant 384 : index
    %55 = vector.load %arg11[%c0_25, %c384] : memref<8x512xf32, #tpu.memory_space<vmem>>, vector<8x128xf32>
    tpu.vector_store %arg11[%c0_25, %c384], %54 {strides = array<i32>} : memref<8x512xf32, #tpu.memory_space<vmem>>, vector<8x128xf32>,
    %c0_26 = arith.constant 0 : index
    %c128 = arith.constant 128 : index
    %56 = vector.load %arg2[%c0_26, %c128] : memref<32x512xf32, #tpu.memory_space<vmem>>, vector<32x128xf32>
    %cst_27 = arith.constant dense<0.000000e+00> : vector<8x128xf32>
    %57 = tpu.matmul %0, %56, %cst_27 {dimension_numbers = #tpu.dot_dimension_numbers<[1], [0], [0], [1], [0, 0, 1, 1], [], []>, precision = #tpu.contract_precision<fp32>} : vector<8x32xf32>, vector<32x128xf32>, vector<8x128xf32> -> vector<8x128xf32>
    %c0_28 = arith.constant 0 : index
    %c128_29 = arith.constant 128 : index
    %58 = vector.load %arg3[%c0_28, %c128_29] : memref<1x512xf32, #tpu.memory_space<vmem>>, vector<1x128xf32>
    %59 = vector.broadcast %58 : vector<1x128xf32> to vector<8x128xf32>
    %60 = arith.addf %57, %59 : vector<8x128xf32>
    %cst_30 = arith.constant dense<0.000000e+00> : vector<8xf32>
    %61 = vector.multi_reduction <add>, %60, %cst_30 [1] : vector<8x128xf32> to vector<8xf32>
    %62 = vector.shape_cast %61 : vector<8xf32> to vector<8x1xf32>
    %cst_31 = arith.constant 6.250000e-02 : f32
    %63 = vector.broadcast %cst_31 : f32 to vector<8x1xf32>
    %64 = arith.mulf %62, %63 : vector<8x1xf32>
    %65 = arith.mulf %60, %60 : vector<8x128xf32>
    %cst_32 = arith.constant dense<0.000000e+00> : vector<8xf32>
    %66 = vector.multi_reduction <add>, %65, %cst_32 [1] : vector<8x128xf32> to vector<8xf32>
    %67 = vector.shape_cast %66 : vector<8xf32> to vector<8x1xf32>
    %cst_33 = arith.constant 6.250000e-02 : f32
    %68 = vector.broadcast %cst_33 : f32 to vector<8x1xf32>
    %69 = arith.mulf %67, %68 : vector<8x1xf32>
    %70 = arith.mulf %64, %64 : vector<8x1xf32>
    %71 = arith.subf %69, %70 : vector<8x1xf32>
    %cst_34 = arith.constant 0.000000e+00 : f32
    %72 = vector.broadcast %cst_34 : f32 to vector<8x1xf32>
    %73 = arith.maximumf %71, %72 : vector<8x1xf32>
    %74 = vector.broadcast %64 : vector<8x1xf32> to vector<8x128xf32>
    %75 = arith.subf %60, %74 : vector<8x128xf32>
    %cst_35 = arith.constant 9.99999974E-6 : f32
    %76 = vector.broadcast %cst_35 : f32 to vector<8x1xf32>
    %77 = arith.addf %73, %76 : vector<8x1xf32>
    %78 = math.rsqrt %77 : vector<8x1xf32>
    %79 = vector.broadcast %78 : vector<8x1xf32> to vector<8x128xf32>
    %80 = arith.mulf %75, %79 : vector<8x128xf32>
    %c0_36 = arith.constant 0 : index
    %c128_37 = arith.constant 128 : index
    %81 = vector.load %arg4[%c0_36, %c128_37] : memref<1x512xf32, #tpu.memory_space<vmem>>, vector<1x128xf32>
    %82 = vector.broadcast %81 : vector<1x128xf32> to vector<8x128xf32>
    %83 = arith.mulf %80, %82 : vector<8x128xf32>
    %c0_38 = arith.constant 0 : index
    %c128_39 = arith.constant 128 : index
    %84 = vector.load %arg5[%c0_38, %c128_39] : memref<1x512xf32, #tpu.memory_space<vmem>>, vector<1x128xf32>
    %85 = vector.broadcast %84 : vector<1x128xf32> to vector<8x128xf32>
    %86 = arith.addf %83, %85 : vector<8x128xf32>
    %cst_40 = arith.constant 5.000000e-01 : f32
    %87 = vector.broadcast %cst_40 : f32 to vector<8x128xf32>
    %88 = arith.mulf %87, %86 : vector<8x128xf32>
    %cst_41 = arith.constant 0.707106769 : f32
    %89 = vector.broadcast %cst_41 : f32 to vector<8x128xf32>
    %90 = arith.mulf %86, %89 : vector<8x128xf32>
    %91 = math.erf %90 : vector<8x128xf32>
    %cst_42 = arith.constant 1.000000e+00 : f32
    %92 = vector.broadcast %cst_42 : f32 to vector<8x128xf32>
    %93 = arith.addf %92, %91 : vector<8x128xf32>
    %94 = arith.mulf %88, %93 : vector<8x128xf32>
    %95 = vector.extract_strided_slice %54 {offsets = [0, 0], sizes = [8, 1], strides = [1, 1]} : vector<8x128xf32> to vector<8x1xf32>
    %96 = vector.broadcast %95 : vector<8x1xf32> to vector<8x128xf32>
    %97 = arith.mulf %96, %94 : vector<8x128xf32>
    %c0_43 = arith.constant 0 : index
    %c0_44 = arith.constant 0 : index
    %98 = vector.load %arg11[%c0_43, %c0_44] : memref<8x512xf32, #tpu.memory_space<vmem>>, vector<8x128xf32>
    tpu.vector_store %arg11[%c0_43, %c0_44], %97 {strides = array<i32>} : memref<8x512xf32, #tpu.memory_space<vmem>>, vector<8x128xf32>,
    %c0_45 = arith.constant 0 : index
    %c256 = arith.constant 256 : index
    %99 = vector.load %arg2[%c0_45, %c256] : memref<32x512xf32, #tpu.memory_space<vmem>>, vector<32x128xf32>
    %cst_46 = arith.constant dense<0.000000e+00> : vector<8x128xf32>
    %100 = tpu.matmul %0, %99, %cst_46 {dimension_numbers = #tpu.dot_dimension_numbers<[1], [0], [0], [1], [0, 0, 1, 1], [], []>, precision = #tpu.contract_precision<fp32>} : vector<8x32xf32>, vector<32x128xf32>, vector<8x128xf32> -> vector<8x128xf32>
    %c0_47 = arith.constant 0 : index
    %c256_48 = arith.constant 256 : index
    %101 = vector.load %arg3[%c0_47, %c256_48] : memref<1x512xf32, #tpu.memory_space<vmem>>, vector<1x128xf32>
    %102 = vector.broadcast %101 : vector<1x128xf32> to vector<8x128xf32>
    %103 = arith.addf %100, %102 : vector<8x128xf32>
    %cst_49 = arith.constant dense<0.000000e+00> : vector<8xf32>
    %104 = vector.multi_reduction <add>, %103, %cst_49 [1] : vector<8x128xf32> to vector<8xf32>
    %105 = vector.shape_cast %104 : vector<8xf32> to vector<8x1xf32>
    %cst_50 = arith.constant 6.250000e-02 : f32
    %106 = vector.broadcast %cst_50 : f32 to vector<8x1xf32>
    %107 = arith.mulf %105, %106 : vector<8x1xf32>
    %108 = arith.mulf %103, %103 : vector<8x128xf32>
    %cst_51 = arith.constant dense<0.000000e+00> : vector<8xf32>
    %109 = vector.multi_reduction <add>, %108, %cst_51 [1] : vector<8x128xf32> to vector<8xf32>
    %110 = vector.shape_cast %109 : vector<8xf32> to vector<8x1xf32>
    %cst_52 = arith.constant 6.250000e-02 : f32
    %111 = vector.broadcast %cst_52 : f32 to vector<8x1xf32>
    %112 = arith.mulf %110, %111 : vector<8x1xf32>
    %113 = arith.mulf %107, %107 : vector<8x1xf32>
    %114 = arith.subf %112, %113 : vector<8x1xf32>
    %cst_53 = arith.constant 0.000000e+00 : f32
    %115 = vector.broadcast %cst_53 : f32 to vector<8x1xf32>
    %116 = arith.maximumf %114, %115 : vector<8x1xf32>
    %117 = vector.broadcast %107 : vector<8x1xf32> to vector<8x128xf32>
    %118 = arith.subf %103, %117 : vector<8x128xf32>
    %cst_54 = arith.constant 9.99999974E-6 : f32
    %119 = vector.broadcast %cst_54 : f32 to vector<8x1xf32>
    %120 = arith.addf %116, %119 : vector<8x1xf32>
    %121 = math.rsqrt %120 : vector<8x1xf32>
    %122 = vector.broadcast %121 : vector<8x1xf32> to vector<8x128xf32>
    %123 = arith.mulf %118, %122 : vector<8x128xf32>
    %c0_55 = arith.constant 0 : index
    %c256_56 = arith.constant 256 : index
    %124 = vector.load %arg4[%c0_55, %c256_56] : memref<1x512xf32, #tpu.memory_space<vmem>>, vector<1x128xf32>
    %125 = vector.broadcast %124 : vector<1x128xf32> to vector<8x128xf32>
    %126 = arith.mulf %123, %125 : vector<8x128xf32>
    %c0_57 = arith.constant 0 : index
    %c256_58 = arith.constant 256 : index
    %127 = vector.load %arg5[%c0_57, %c256_58] : memref<1x512xf32, #tpu.memory_space<vmem>>, vector<1x128xf32>
    %128 = vector.broadcast %127 : vector<1x128xf32> to vector<8x128xf32>
    %129 = arith.addf %126, %128 : vector<8x128xf32>
    %cst_59 = arith.constant 5.000000e-01 : f32
    %130 = vector.broadcast %cst_59 : f32 to vector<8x128xf32>
    %131 = arith.mulf %130, %129 : vector<8x128xf32>
    %cst_60 = arith.constant 0.707106769 : f32
    %132 = vector.broadcast %cst_60 : f32 to vector<8x128xf32>
    %133 = arith.mulf %129, %132 : vector<8x128xf32>
    %134 = math.erf %133 : vector<8x128xf32>
    %cst_61 = arith.constant 1.000000e+00 : f32
    %135 = vector.broadcast %cst_61 : f32 to vector<8x128xf32>
    %136 = arith.addf %135, %134 : vector<8x128xf32>
    %137 = arith.mulf %131, %136 : vector<8x128xf32>
    %138 = vector.extract_strided_slice %54 {offsets = [0, 1], sizes = [8, 1], strides = [1, 1]} : vector<8x128xf32> to vector<8x1xf32>
    %139 = vector.broadcast %138 : vector<8x1xf32> to vector<8x128xf32>
    %140 = arith.mulf %139, %137 : vector<8x128xf32>
    %c0_62 = arith.constant 0 : index
    %c128_63 = arith.constant 128 : index
    %141 = vector.load %arg11[%c0_62, %c128_63] : memref<8x512xf32, #tpu.memory_space<vmem>>, vector<8x128xf32>
    tpu.vector_store %arg11[%c0_62, %c128_63], %140 {strides = array<i32>} : memref<8x512xf32, #tpu.memory_space<vmem>>, vector<8x128xf32>,
    %c0_64 = arith.constant 0 : index
    %c384_65 = arith.constant 384 : index
    %142 = vector.load %arg2[%c0_64, %c384_65] : memref<32x512xf32, #tpu.memory_space<vmem>>, vector<32x128xf32>
    %cst_66 = arith.constant dense<0.000000e+00> : vector<8x128xf32>
    %143 = tpu.matmul %0, %142, %cst_66 {dimension_numbers = #tpu.dot_dimension_numbers<[1], [0], [0], [1], [0, 0, 1, 1], [], []>, precision = #tpu.contract_precision<fp32>} : vector<8x32xf32>, vector<32x128xf32>, vector<8x128xf32> -> vector<8x128xf32>
    %c0_67 = arith.constant 0 : index
    %c384_68 = arith.constant 384 : index
    %144 = vector.load %arg3[%c0_67, %c384_68] : memref<1x512xf32, #tpu.memory_space<vmem>>, vector<1x128xf32>
    %145 = vector.broadcast %144 : vector<1x128xf32> to vector<8x128xf32>
    %146 = arith.addf %143, %145 : vector<8x128xf32>
    %cst_69 = arith.constant dense<0.000000e+00> : vector<8xf32>
    %147 = vector.multi_reduction <add>, %146, %cst_69 [1] : vector<8x128xf32> to vector<8xf32>
    %148 = vector.shape_cast %147 : vector<8xf32> to vector<8x1xf32>
    %cst_70 = arith.constant 6.250000e-02 : f32
    %149 = vector.broadcast %cst_70 : f32 to vector<8x1xf32>
    %150 = arith.mulf %148, %149 : vector<8x1xf32>
    %151 = arith.mulf %146, %146 : vector<8x128xf32>
    %cst_71 = arith.constant dense<0.000000e+00> : vector<8xf32>
    %152 = vector.multi_reduction <add>, %151, %cst_71 [1] : vector<8x128xf32> to vector<8xf32>
    %153 = vector.shape_cast %152 : vector<8xf32> to vector<8x1xf32>
    %cst_72 = arith.constant 6.250000e-02 : f32
    %154 = vector.broadcast %cst_72 : f32 to vector<8x1xf32>
    %155 = arith.mulf %153, %154 : vector<8x1xf32>
    %156 = arith.mulf %150, %150 : vector<8x1xf32>
    %157 = arith.subf %155, %156 : vector<8x1xf32>
    %cst_73 = arith.constant 0.000000e+00 : f32
    %158 = vector.broadcast %cst_73 : f32 to vector<8x1xf32>
    %159 = arith.maximumf %157, %158 : vector<8x1xf32>
    %160 = vector.broadcast %150 : vector<8x1xf32> to vector<8x128xf32>
    %161 = arith.subf %146, %160 : vector<8x128xf32>
    %cst_74 = arith.constant 9.99999974E-6 : f32
    %162 = vector.broadcast %cst_74 : f32 to vector<8x1xf32>
    %163 = arith.addf %159, %162 : vector<8x1xf32>
    %164 = math.rsqrt %163 : vector<8x1xf32>
    %165 = vector.broadcast %164 : vector<8x1xf32> to vector<8x128xf32>
    %166 = arith.mulf %161, %165 : vector<8x128xf32>
    %c0_75 = arith.constant 0 : index
    %c384_76 = arith.constant 384 : index
    %167 = vector.load %arg4[%c0_75, %c384_76] : memref<1x512xf32, #tpu.memory_space<vmem>>, vector<1x128xf32>
    %168 = vector.broadcast %167 : vector<1x128xf32> to vector<8x128xf32>
    %169 = arith.mulf %166, %168 : vector<8x128xf32>
    %c0_77 = arith.constant 0 : index
    %c384_78 = arith.constant 384 : index
    %170 = vector.load %arg5[%c0_77, %c384_78] : memref<1x512xf32, #tpu.memory_space<vmem>>, vector<1x128xf32>
    %171 = vector.broadcast %170 : vector<1x128xf32> to vector<8x128xf32>
    %172 = arith.addf %169, %171 : vector<8x128xf32>
    %cst_79 = arith.constant 5.000000e-01 : f32
    %173 = vector.broadcast %cst_79 : f32 to vector<8x128xf32>
    %174 = arith.mulf %173, %172 : vector<8x128xf32>
    %cst_80 = arith.constant 0.707106769 : f32
    %175 = vector.broadcast %cst_80 : f32 to vector<8x128xf32>
    %176 = arith.mulf %172, %175 : vector<8x128xf32>
    %177 = math.erf %176 : vector<8x128xf32>
    %cst_81 = arith.constant 1.000000e+00 : f32
    %178 = vector.broadcast %cst_81 : f32 to vector<8x128xf32>
    %179 = arith.addf %178, %177 : vector<8x128xf32>
    %180 = arith.mulf %174, %179 : vector<8x128xf32>
    %181 = vector.extract_strided_slice %54 {offsets = [0, 2], sizes = [8, 1], strides = [1, 1]} : vector<8x128xf32> to vector<8x1xf32>
    %182 = vector.broadcast %181 : vector<8x1xf32> to vector<8x128xf32>
    %183 = arith.mulf %182, %180 : vector<8x128xf32>
    %c0_82 = arith.constant 0 : index
    %c256_83 = arith.constant 256 : index
    %184 = vector.load %arg11[%c0_82, %c256_83] : memref<8x512xf32, #tpu.memory_space<vmem>>, vector<8x128xf32>
    tpu.vector_store %arg11[%c0_82, %c256_83], %183 {strides = array<i32>} : memref<8x512xf32, #tpu.memory_space<vmem>>, vector<8x128xf32>,
    %c0_84 = arith.constant 0 : index
    %c0_85 = arith.constant 0 : index
    %185 = vector.load %arg11[%c0_84, %c0_85] : memref<8x512xf32, #tpu.memory_space<vmem>>, vector<8x512xf32>
    %c0_86 = arith.constant 0 : index
    %c0_87 = arith.constant 0 : index
    %186 = vector.load %arg8[%c0_86, %c0_87] : memref<512x128xf32, #tpu.memory_space<vmem>>, vector<512x128xf32>
    %cst_88 = arith.constant dense<0.000000e+00> : vector<8x128xf32>
    %187 = tpu.matmul %185, %186, %cst_88 {dimension_numbers = #tpu.dot_dimension_numbers<[1], [0], [0], [1], [0, 0, 1, 1], [], []>, precision = #tpu.contract_precision<fp32>} : vector<8x512xf32>, vector<512x128xf32>, vector<8x128xf32> -> vector<8x128xf32>
    %c0_89 = arith.constant 0 : index
    %c0_90 = arith.constant 0 : index
    %188 = vector.load %arg9[%c0_89, %c0_90] : memref<1x128xf32, #tpu.memory_space<vmem>>, vector<1x128xf32>
    %189 = vector.broadcast %188 : vector<1x128xf32> to vector<8x128xf32>
    %190 = arith.addf %187, %189 : vector<8x128xf32>
    %c0_91 = arith.constant 0 : index
    %c0_92 = arith.constant 0 : index
    %191 = vector.load %arg10[%c0_91, %c0_92] : memref<8x128xf32, #tpu.memory_space<vmem>>, vector<8x128xf32>
    tpu.vector_store %arg10[%c0_91, %c0_92], %190 {strides = array<i32>} : memref<8x128xf32, #tpu.memory_space<vmem>>, vector<8x128xf32>,
    return
  }
  func.func @transform_0(%arg0: i32) -> (i32, i32) {
    %c0_i32 = arith.constant 0 : i32
    %c0_i32_0 = arith.constant 0 : i32
    return %arg0, %c0_i32 : i32, i32
  }
  func.func @transform_1(%arg0: i32) -> (i32, i32) {
    %c0_i32 = arith.constant 0 : i32
    %c0_i32_0 = arith.constant 0 : i32
    %c0_i32_1 = arith.constant 0 : i32
    return %c0_i32, %c0_i32_0 : i32, i32
  }
  func.func @transform_2(%arg0: i32) -> (i32, i32) {
    %c0_i32 = arith.constant 0 : i32
    %c0_i32_0 = arith.constant 0 : i32
    %c0_i32_1 = arith.constant 0 : i32
    return %c0_i32, %c0_i32_0 : i32, i32
  }
  func.func @transform_3(%arg0: i32) -> (i32, i32) {
    %c0_i32 = arith.constant 0 : i32
    %c0_i32_0 = arith.constant 0 : i32
    %c0_i32_1 = arith.constant 0 : i32
    return %c0_i32, %c0_i32_0 : i32, i32
  }
  func.func @transform_4(%arg0: i32) -> (i32, i32) {
    %c0_i32 = arith.constant 0 : i32
    %c0_i32_0 = arith.constant 0 : i32
    %c0_i32_1 = arith.constant 0 : i32
    return %c0_i32, %c0_i32_0 : i32, i32
  }
  func.func @transform_5(%arg0: i32) -> (i32, i32) {
    %c0_i32 = arith.constant 0 : i32
    %c0_i32_0 = arith.constant 0 : i32
    %c0_i32_1 = arith.constant 0 : i32
    return %c0_i32, %c0_i32_0 : i32, i32
  }
  func.func @transform_6(%arg0: i32) -> (i32, i32) {
    %c0_i32 = arith.constant 0 : i32
    %c0_i32_0 = arith.constant 0 : i32
    %c0_i32_1 = arith.constant 0 : i32
    return %c0_i32, %c0_i32_0 : i32, i32
  }
  func.func @transform_7(%arg0: i32) -> (i32, i32) {
    %c0_i32 = arith.constant 0 : i32
    %c0_i32_0 = arith.constant 0 : i32
    %c0_i32_1 = arith.constant 0 : i32
    return %c0_i32, %c0_i32_0 : i32, i32
  }
  func.func @transform_8(%arg0: i32) -> (i32, i32) {
    %c0_i32 = arith.constant 0 : i32
    %c0_i32_0 = arith.constant 0 : i32
    %c0_i32_1 = arith.constant 0 : i32
    return %c0_i32, %c0_i32_0 : i32, i32
  }
  func.func @transform_9(%arg0: i32) -> (i32, i32) {
    %c0_i32 = arith.constant 0 : i32
    %c0_i32_0 = arith.constant 0 : i32
    return %arg0, %c0_i32 : i32, i32
  }
}

module attributes {stable_mosaic.version = 11 : i64} {
  func.func @kernel(%arg0: i32, %arg1: memref<8x32xf32, #tpu.memory_space<vmem>>, %arg2: memref<32x512xf32, #tpu.memory_space<vmem>>, %arg3: memref<1x512xf32, #tpu.memory_space<vmem>>, %arg4: memref<1x512xf32, #tpu.memory_space<vmem>>, %arg5: memref<1x512xf32, #tpu.memory_space<vmem>>, %arg6: memref<128x128xf32, #tpu.memory_space<vmem>>, %arg7: memref<1x128xf32, #tpu.memory_space<vmem>>, %arg8: memref<512x128xf32, #tpu.memory_space<vmem>>, %arg9: memref<1x128xf32, #tpu.memory_space<vmem>>, %arg10: memref<8x128xf32, #tpu.memory_space<vmem>>, %arg11: memref<8x512xf32, #tpu.memory_space<vmem>>) attributes {dimension_semantics = [#tpu.dimension_semantics<parallel>], iteration_bounds = array<i64: 2>, scalar_prefetch = 0 : i64, scratch_operands = 1 : i64, tpu.core_type = #tpu.core_type<tc>, window_params = [{transform_indices = @transform_0, window_bounds = array<i64: 8, 32>}, {pipeline_mode = #tpu.pipeline_mode<synchronous>, transform_indices = @transform_1, window_bounds = array<i64: 32, 512>}, {pipeline_mode = #tpu.pipeline_mode<synchronous>, transform_indices = @transform_2, window_bounds = array<i64: 1, 512>}, {pipeline_mode = #tpu.pipeline_mode<synchronous>, transform_indices = @transform_3, window_bounds = array<i64: 1, 512>}, {pipeline_mode = #tpu.pipeline_mode<synchronous>, transform_indices = @transform_4, window_bounds = array<i64: 1, 512>}, {pipeline_mode = #tpu.pipeline_mode<synchronous>, transform_indices = @transform_5, window_bounds = array<i64: 128, 128>}, {pipeline_mode = #tpu.pipeline_mode<synchronous>, transform_indices = @transform_6, window_bounds = array<i64: 1, 128>}, {pipeline_mode = #tpu.pipeline_mode<synchronous>, transform_indices = @transform_7, window_bounds = array<i64: 512, 128>}, {pipeline_mode = #tpu.pipeline_mode<synchronous>, transform_indices = @transform_8, window_bounds = array<i64: 1, 128>}, {transform_indices = @transform_9, window_bounds = array<i64: 8, 128>}]} {
    %c0 = arith.constant 0 : index
    %c0_0 = arith.constant 0 : index
    %0 = vector.load %arg1[%c0, %c0_0] : memref<8x32xf32, #tpu.memory_space<vmem>>, vector<8x32xf32>
    %c0_1 = arith.constant 0 : index
    %c0_2 = arith.constant 0 : index
    %1 = vector.load %arg2[%c0_1, %c0_2] : memref<32x512xf32, #tpu.memory_space<vmem>>, vector<32x128xf32>
    %cst = arith.constant dense<0.000000e+00> : vector<8x128xf32>
    %2 = tpu.matmul %0, %1, %cst {dimension_numbers = #tpu.dot_dimension_numbers<[1], [0], [0], [1], [0, 0, 1, 1], [], []>, precision = #tpu.contract_precision<fp32>} : vector<8x32xf32>, vector<32x128xf32>, vector<8x128xf32> -> vector<8x128xf32>
    %c0_3 = arith.constant 0 : index
    %c0_4 = arith.constant 0 : index
    %3 = vector.load %arg3[%c0_3, %c0_4] : memref<1x512xf32, #tpu.memory_space<vmem>>, vector<1x128xf32>
    %4 = vector.broadcast %3 : vector<1x128xf32> to vector<8x128xf32>
    %5 = arith.addf %2, %4 : vector<8x128xf32>
    %cst_5 = arith.constant dense<0.000000e+00> : vector<8xf32>
    %6 = vector.multi_reduction <add>, %5, %cst_5 [1] : vector<8x128xf32> to vector<8xf32>
    %7 = vector.shape_cast %6 : vector<8xf32> to vector<8x1xf32>
    %cst_6 = arith.constant 6.250000e-02 : f32
    %8 = vector.broadcast %cst_6 : f32 to vector<8x1xf32>
    %9 = arith.mulf %7, %8 : vector<8x1xf32>
    %10 = arith.mulf %5, %5 : vector<8x128xf32>
    %cst_7 = arith.constant dense<0.000000e+00> : vector<8xf32>
    %11 = vector.multi_reduction <add>, %10, %cst_7 [1] : vector<8x128xf32> to vector<8xf32>
    %12 = vector.shape_cast %11 : vector<8xf32> to vector<8x1xf32>
    %cst_8 = arith.constant 6.250000e-02 : f32
    %13 = vector.broadcast %cst_8 : f32 to vector<8x1xf32>
    %14 = arith.mulf %12, %13 : vector<8x1xf32>
    %15 = arith.mulf %9, %9 : vector<8x1xf32>
    %16 = arith.subf %14, %15 : vector<8x1xf32>
    %cst_9 = arith.constant 0.000000e+00 : f32
    %17 = vector.broadcast %cst_9 : f32 to vector<8x1xf32>
    %18 = arith.maximumf %16, %17 : vector<8x1xf32>
    %19 = vector.broadcast %9 : vector<8x1xf32> to vector<8x128xf32>
    %20 = arith.subf %5, %19 : vector<8x128xf32>
    %cst_10 = arith.constant 9.99999974E-6 : f32
    %21 = vector.broadcast %cst_10 : f32 to vector<8x1xf32>
    %22 = arith.addf %18, %21 : vector<8x1xf32>
    %23 = math.rsqrt %22 : vector<8x1xf32>
    %24 = vector.broadcast %23 : vector<8x1xf32> to vector<8x128xf32>
    %25 = arith.mulf %20, %24 : vector<8x128xf32>
    %c0_11 = arith.constant 0 : index
    %c0_12 = arith.constant 0 : index
    %26 = vector.load %arg4[%c0_11, %c0_12] : memref<1x512xf32, #tpu.memory_space<vmem>>, vector<1x128xf32>
    %27 = vector.broadcast %26 : vector<1x128xf32> to vector<8x128xf32>
    %28 = arith.mulf %25, %27 : vector<8x128xf32>
    %c0_13 = arith.constant 0 : index
    %c0_14 = arith.constant 0 : index
    %29 = vector.load %arg5[%c0_13, %c0_14] : memref<1x512xf32, #tpu.memory_space<vmem>>, vector<1x128xf32>
    %30 = vector.broadcast %29 : vector<1x128xf32> to vector<8x128xf32>
    %31 = arith.addf %28, %30 : vector<8x128xf32>
    %cst_15 = arith.constant 5.000000e-01 : f32
    %32 = vector.broadcast %cst_15 : f32 to vector<8x128xf32>
    %33 = arith.mulf %32, %31 : vector<8x128xf32>
    %cst_16 = arith.constant 0.707106769 : f32
    %34 = vector.broadcast %cst_16 : f32 to vector<8x128xf32>
    %35 = arith.mulf %31, %34 : vector<8x128xf32>
    %36 = math.erf %35 : vector<8x128xf32>
    %cst_17 = arith.constant 1.000000e+00 : f32
    %37 = vector.broadcast %cst_17 : f32 to vector<8x128xf32>
    %38 = arith.addf %37, %36 : vector<8x128xf32>
    %39 = arith.mulf %33, %38 : vector<8x128xf32>
    %c0_18 = arith.constant 0 : index
    %c0_19 = arith.constant 0 : index
    %40 = vector.load %arg6[%c0_18, %c0_19] : memref<128x128xf32, #tpu.memory_space<vmem>>, vector<128x128xf32>
    %cst_20 = arith.constant dense<0.000000e+00> : vector<8x128xf32>
    %41 = tpu.matmul %39, %40, %cst_20 {dimension_numbers = #tpu.dot_dimension_numbers<[1], [0], [0], [1], [0, 0, 1, 1], [], []>, precision = #tpu.contract_precision<fp32>} : vector<8x128xf32>, vector<128x128xf32>, vector<8x128xf32> -> vector<8x128xf32>
    %c0_21 = arith.constant 0 : index
    %c0_22 = arith.constant 0 : index
    %42 = vector.load %arg7[%c0_21, %c0_22] : memref<1x128xf32, #tpu.memory_space<vmem>>, vector<1x128xf32>
    %43 = vector.broadcast %42 : vector<1x128xf32> to vector<8x128xf32>
    %44 = arith.addf %41, %43 : vector<8x128xf32>
    %cst_23 = arith.constant dense<0xFF800000> : vector<8xf32>
    %45 = vector.multi_reduction <maximumf>, %44, %cst_23 [1] : vector<8x128xf32> to vector<8xf32>
    %46 = vector.shape_cast %45 : vector<8xf32> to vector<8x1xf32>
    %47 = vector.broadcast %46 : vector<8x1xf32> to vector<8x128xf32>
    %48 = arith.subf %44, %47 : vector<8x128xf32>
    %49 = math.exp %48 : vector<8x128xf32>
    %cst_24 = arith.constant dense<0.000000e+00> : vector<8xf32>
    %50 = vector.multi_reduction <add>, %49, %cst_24 [1] : vector<8x128xf32> to vector<8xf32>
    %51 = vector.shape_cast %50 : vector<8xf32> to vector<8x1xf32>
    %52 = tpu.reciprocal %51 : vector<8x1xf32> -> vector<8x1xf32>
    %53 = vector.broadcast %52 : vector<8x1xf32> to vector<8x128xf32>
    %54 = arith.mulf %49, %53 : vector<8x128xf32>
    %c0_25 = arith.constant 0 : index
    %c384 = arith.constant 384 : index
    %55 = vector.load %arg11[%c0_25, %c384] : memref<8x512xf32, #tpu.memory_space<vmem>>, vector<8x128xf32>
    tpu.vector_store %arg11[%c0_25, %c384], %54 {strides = array<i32>} : memref<8x512xf32, #tpu.memory_space<vmem>>, vector<8x128xf32>,
    %c0_26 = arith.constant 0 : index
    %c128 = arith.constant 128 : index
    %56 = vector.load %arg2[%c0_26, %c128] : memref<32x512xf32, #tpu.memory_space<vmem>>, vector<32x128xf32>
    %cst_27 = arith.constant dense<0.000000e+00> : vector<8x128xf32>
    %57 = tpu.matmul %0, %56, %cst_27 {dimension_numbers = #tpu.dot_dimension_numbers<[1], [0], [0], [1], [0, 0, 1, 1], [], []>, precision = #tpu.contract_precision<fp32>} : vector<8x32xf32>, vector<32x128xf32>, vector<8x128xf32> -> vector<8x128xf32>
    %c0_28 = arith.constant 0 : index
    %c128_29 = arith.constant 128 : index
    %58 = vector.load %arg3[%c0_28, %c128_29] : memref<1x512xf32, #tpu.memory_space<vmem>>, vector<1x128xf32>
    %59 = vector.broadcast %58 : vector<1x128xf32> to vector<8x128xf32>
    %60 = arith.addf %57, %59 : vector<8x128xf32>
    %cst_30 = arith.constant dense<0.000000e+00> : vector<8xf32>
    %61 = vector.multi_reduction <add>, %60, %cst_30 [1] : vector<8x128xf32> to vector<8xf32>
    %62 = vector.shape_cast %61 : vector<8xf32> to vector<8x1xf32>
    %cst_31 = arith.constant 6.250000e-02 : f32
    %63 = vector.broadcast %cst_31 : f32 to vector<8x1xf32>
    %64 = arith.mulf %62, %63 : vector<8x1xf32>
    %65 = arith.mulf %60, %60 : vector<8x128xf32>
    %cst_32 = arith.constant dense<0.000000e+00> : vector<8xf32>
    %66 = vector.multi_reduction <add>, %65, %cst_32 [1] : vector<8x128xf32> to vector<8xf32>
    %67 = vector.shape_cast %66 : vector<8xf32> to vector<8x1xf32>
    %cst_33 = arith.constant 6.250000e-02 : f32
    %68 = vector.broadcast %cst_33 : f32 to vector<8x1xf32>
    %69 = arith.mulf %67, %68 : vector<8x1xf32>
    %70 = arith.mulf %64, %64 : vector<8x1xf32>
    %71 = arith.subf %69, %70 : vector<8x1xf32>
    %cst_34 = arith.constant 0.000000e+00 : f32
    %72 = vector.broadcast %cst_34 : f32 to vector<8x1xf32>
    %73 = arith.maximumf %71, %72 : vector<8x1xf32>
    %74 = vector.broadcast %64 : vector<8x1xf32> to vector<8x128xf32>
    %75 = arith.subf %60, %74 : vector<8x128xf32>
    %cst_35 = arith.constant 9.99999974E-6 : f32
    %76 = vector.broadcast %cst_35 : f32 to vector<8x1xf32>
    %77 = arith.addf %73, %76 : vector<8x1xf32>
    %78 = math.rsqrt %77 : vector<8x1xf32>
    %79 = vector.broadcast %78 : vector<8x1xf32> to vector<8x128xf32>
    %80 = arith.mulf %75, %79 : vector<8x128xf32>
    %c0_36 = arith.constant 0 : index
    %c128_37 = arith.constant 128 : index
    %81 = vector.load %arg4[%c0_36, %c128_37] : memref<1x512xf32, #tpu.memory_space<vmem>>, vector<1x128xf32>
    %82 = vector.broadcast %81 : vector<1x128xf32> to vector<8x128xf32>
    %83 = arith.mulf %80, %82 : vector<8x128xf32>
    %c0_38 = arith.constant 0 : index
    %c128_39 = arith.constant 128 : index
    %84 = vector.load %arg5[%c0_38, %c128_39] : memref<1x512xf32, #tpu.memory_space<vmem>>, vector<1x128xf32>
    %85 = vector.broadcast %84 : vector<1x128xf32> to vector<8x128xf32>
    %86 = arith.addf %83, %85 : vector<8x128xf32>
    %cst_40 = arith.constant 5.000000e-01 : f32
    %87 = vector.broadcast %cst_40 : f32 to vector<8x128xf32>
    %88 = arith.mulf %87, %86 : vector<8x128xf32>
    %cst_41 = arith.constant 0.707106769 : f32
    %89 = vector.broadcast %cst_41 : f32 to vector<8x128xf32>
    %90 = arith.mulf %86, %89 : vector<8x128xf32>
    %91 = math.erf %90 : vector<8x128xf32>
    %cst_42 = arith.constant 1.000000e+00 : f32
    %92 = vector.broadcast %cst_42 : f32 to vector<8x128xf32>
    %93 = arith.addf %92, %91 : vector<8x128xf32>
    %94 = arith.mulf %88, %93 : vector<8x128xf32>
    %95 = vector.extract_strided_slice %54 {offsets = [0, 0], sizes = [8, 1], strides = [1, 1]} : vector<8x128xf32> to vector<8x1xf32>
    %96 = vector.broadcast %95 : vector<8x1xf32> to vector<8x128xf32>
    %97 = arith.mulf %96, %94 : vector<8x128xf32>
    %c0_43 = arith.constant 0 : index
    %c0_44 = arith.constant 0 : index
    %98 = vector.load %arg11[%c0_43, %c0_44] : memref<8x512xf32, #tpu.memory_space<vmem>>, vector<8x128xf32>
    tpu.vector_store %arg11[%c0_43, %c0_44], %97 {strides = array<i32>} : memref<8x512xf32, #tpu.memory_space<vmem>>, vector<8x128xf32>,
    %c0_45 = arith.constant 0 : index
    %c256 = arith.constant 256 : index
    %99 = vector.load %arg2[%c0_45, %c256] : memref<32x512xf32, #tpu.memory_space<vmem>>, vector<32x128xf32>
    %cst_46 = arith.constant dense<0.000000e+00> : vector<8x128xf32>
    %100 = tpu.matmul %0, %99, %cst_46 {dimension_numbers = #tpu.dot_dimension_numbers<[1], [0], [0], [1], [0, 0, 1, 1], [], []>, precision = #tpu.contract_precision<fp32>} : vector<8x32xf32>, vector<32x128xf32>, vector<8x128xf32> -> vector<8x128xf32>
    %c0_47 = arith.constant 0 : index
    %c256_48 = arith.constant 256 : index
    %101 = vector.load %arg3[%c0_47, %c256_48] : memref<1x512xf32, #tpu.memory_space<vmem>>, vector<1x128xf32>
    %102 = vector.broadcast %101 : vector<1x128xf32> to vector<8x128xf32>
    %103 = arith.addf %100, %102 : vector<8x128xf32>
    %cst_49 = arith.constant dense<0.000000e+00> : vector<8xf32>
    %104 = vector.multi_reduction <add>, %103, %cst_49 [1] : vector<8x128xf32> to vector<8xf32>
    %105 = vector.shape_cast %104 : vector<8xf32> to vector<8x1xf32>
    %cst_50 = arith.constant 6.250000e-02 : f32
    %106 = vector.broadcast %cst_50 : f32 to vector<8x1xf32>
    %107 = arith.mulf %105, %106 : vector<8x1xf32>
    %108 = arith.mulf %103, %103 : vector<8x128xf32>
    %cst_51 = arith.constant dense<0.000000e+00> : vector<8xf32>
    %109 = vector.multi_reduction <add>, %108, %cst_51 [1] : vector<8x128xf32> to vector<8xf32>
    %110 = vector.shape_cast %109 : vector<8xf32> to vector<8x1xf32>
    %cst_52 = arith.constant 6.250000e-02 : f32
    %111 = vector.broadcast %cst_52 : f32 to vector<8x1xf32>
    %112 = arith.mulf %110, %111 : vector<8x1xf32>
    %113 = arith.mulf %107, %107 : vector<8x1xf32>
    %114 = arith.subf %112, %113 : vector<8x1xf32>
    %cst_53 = arith.constant 0.000000e+00 : f32
    %115 = vector.broadcast %cst_53 : f32 to vector<8x1xf32>
    %116 = arith.maximumf %114, %115 : vector<8x1xf32>
    %117 = vector.broadcast %107 : vector<8x1xf32> to vector<8x128xf32>
    %118 = arith.subf %103, %117 : vector<8x128xf32>
    %cst_54 = arith.constant 9.99999974E-6 : f32
    %119 = vector.broadcast %cst_54 : f32 to vector<8x1xf32>
    %120 = arith.addf %116, %119 : vector<8x1xf32>
    %121 = math.rsqrt %120 : vector<8x1xf32>
    %122 = vector.broadcast %121 : vector<8x1xf32> to vector<8x128xf32>
    %123 = arith.mulf %118, %122 : vector<8x128xf32>
    %c0_55 = arith.constant 0 : index
    %c256_56 = arith.constant 256 : index
    %124 = vector.load %arg4[%c0_55, %c256_56] : memref<1x512xf32, #tpu.memory_space<vmem>>, vector<1x128xf32>
    %125 = vector.broadcast %124 : vector<1x128xf32> to vector<8x128xf32>
    %126 = arith.mulf %123, %125 : vector<8x128xf32>
    %c0_57 = arith.constant 0 : index
    %c256_58 = arith.constant 256 : index
    %127 = vector.load %arg5[%c0_57, %c256_58] : memref<1x512xf32, #tpu.memory_space<vmem>>, vector<1x128xf32>
    %128 = vector.broadcast %127 : vector<1x128xf32> to vector<8x128xf32>
    %129 = arith.addf %126, %128 : vector<8x128xf32>
    %cst_59 = arith.constant 5.000000e-01 : f32
    %130 = vector.broadcast %cst_59 : f32 to vector<8x128xf32>
    %131 = arith.mulf %130, %129 : vector<8x128xf32>
    %cst_60 = arith.constant 0.707106769 : f32
    %132 = vector.broadcast %cst_60 : f32 to vector<8x128xf32>
    %133 = arith.mulf %129, %132 : vector<8x128xf32>
    %134 = math.erf %133 : vector<8x128xf32>
    %cst_61 = arith.constant 1.000000e+00 : f32
    %135 = vector.broadcast %cst_61 : f32 to vector<8x128xf32>
    %136 = arith.addf %135, %134 : vector<8x128xf32>
    %137 = arith.mulf %131, %136 : vector<8x128xf32>
    %138 = vector.extract_strided_slice %54 {offsets = [0, 1], sizes = [8, 1], strides = [1, 1]} : vector<8x128xf32> to vector<8x1xf32>
    %139 = vector.broadcast %138 : vector<8x1xf32> to vector<8x128xf32>
    %140 = arith.mulf %139, %137 : vector<8x128xf32>
    %c0_62 = arith.constant 0 : index
    %c128_63 = arith.constant 128 : index
    %141 = vector.load %arg11[%c0_62, %c128_63] : memref<8x512xf32, #tpu.memory_space<vmem>>, vector<8x128xf32>
    tpu.vector_store %arg11[%c0_62, %c128_63], %140 {strides = array<i32>} : memref<8x512xf32, #tpu.memory_space<vmem>>, vector<8x128xf32>,
    %c0_64 = arith.constant 0 : index
    %c384_65 = arith.constant 384 : index
    %142 = vector.load %arg2[%c0_64, %c384_65] : memref<32x512xf32, #tpu.memory_space<vmem>>, vector<32x128xf32>
    %cst_66 = arith.constant dense<0.000000e+00> : vector<8x128xf32>
    %143 = tpu.matmul %0, %142, %cst_66 {dimension_numbers = #tpu.dot_dimension_numbers<[1], [0], [0], [1], [0, 0, 1, 1], [], []>, precision = #tpu.contract_precision<fp32>} : vector<8x32xf32>, vector<32x128xf32>, vector<8x128xf32> -> vector<8x128xf32>
    %c0_67 = arith.constant 0 : index
    %c384_68 = arith.constant 384 : index
    %144 = vector.load %arg3[%c0_67, %c384_68] : memref<1x512xf32, #tpu.memory_space<vmem>>, vector<1x128xf32>
    %145 = vector.broadcast %144 : vector<1x128xf32> to vector<8x128xf32>
    %146 = arith.addf %143, %145 : vector<8x128xf32>
    %cst_69 = arith.constant dense<0.000000e+00> : vector<8xf32>
    %147 = vector.multi_reduction <add>, %146, %cst_69 [1] : vector<8x128xf32> to vector<8xf32>
    %148 = vector.shape_cast %147 : vector<8xf32> to vector<8x1xf32>
    %cst_70 = arith.constant 6.250000e-02 : f32
    %149 = vector.broadcast %cst_70 : f32 to vector<8x1xf32>
    %150 = arith.mulf %148, %149 : vector<8x1xf32>
    %151 = arith.mulf %146, %146 : vector<8x128xf32>
    %cst_71 = arith.constant dense<0.000000e+00> : vector<8xf32>
    %152 = vector.multi_reduction <add>, %151, %cst_71 [1] : vector<8x128xf32> to vector<8xf32>
    %153 = vector.shape_cast %152 : vector<8xf32> to vector<8x1xf32>
    %cst_72 = arith.constant 6.250000e-02 : f32
    %154 = vector.broadcast %cst_72 : f32 to vector<8x1xf32>
    %155 = arith.mulf %153, %154 : vector<8x1xf32>
    %156 = arith.mulf %150, %150 : vector<8x1xf32>
    %157 = arith.subf %155, %156 : vector<8x1xf32>
    %cst_73 = arith.constant 0.000000e+00 : f32
    %158 = vector.broadcast %cst_73 : f32 to vector<8x1xf32>
    %159 = arith.maximumf %157, %158 : vector<8x1xf32>
    %160 = vector.broadcast %150 : vector<8x1xf32> to vector<8x128xf32>
    %161 = arith.subf %146, %160 : vector<8x128xf32>
    %cst_74 = arith.constant 9.99999974E-6 : f32
    %162 = vector.broadcast %cst_74 : f32 to vector<8x1xf32>
    %163 = arith.addf %159, %162 : vector<8x1xf32>
    %164 = math.rsqrt %163 : vector<8x1xf32>
    %165 = vector.broadcast %164 : vector<8x1xf32> to vector<8x128xf32>
    %166 = arith.mulf %161, %165 : vector<8x128xf32>
    %c0_75 = arith.constant 0 : index
    %c384_76 = arith.constant 384 : index
    %167 = vector.load %arg4[%c0_75, %c384_76] : memref<1x512xf32, #tpu.memory_space<vmem>>, vector<1x128xf32>
    %168 = vector.broadcast %167 : vector<1x128xf32> to vector<8x128xf32>
    %169 = arith.mulf %166, %168 : vector<8x128xf32>
    %c0_77 = arith.constant 0 : index
    %c384_78 = arith.constant 384 : index
    %170 = vector.load %arg5[%c0_77, %c384_78] : memref<1x512xf32, #tpu.memory_space<vmem>>, vector<1x128xf32>
    %171 = vector.broadcast %170 : vector<1x128xf32> to vector<8x128xf32>
    %172 = arith.addf %169, %171 : vector<8x128xf32>
    %cst_79 = arith.constant 5.000000e-01 : f32
    %173 = vector.broadcast %cst_79 : f32 to vector<8x128xf32>
    %174 = arith.mulf %173, %172 : vector<8x128xf32>
    %cst_80 = arith.constant 0.707106769 : f32
    %175 = vector.broadcast %cst_80 : f32 to vector<8x128xf32>
    %176 = arith.mulf %172, %175 : vector<8x128xf32>
    %177 = math.erf %176 : vector<8x128xf32>
    %cst_81 = arith.constant 1.000000e+00 : f32
    %178 = vector.broadcast %cst_81 : f32 to vector<8x128xf32>
    %179 = arith.addf %178, %177 : vector<8x128xf32>
    %180 = arith.mulf %174, %179 : vector<8x128xf32>
    %181 = vector.extract_strided_slice %54 {offsets = [0, 2], sizes = [8, 1], strides = [1, 1]} : vector<8x128xf32> to vector<8x1xf32>
    %182 = vector.broadcast %181 : vector<8x1xf32> to vector<8x128xf32>
    %183 = arith.mulf %182, %180 : vector<8x128xf32>
    %c0_82 = arith.constant 0 : index
    %c256_83 = arith.constant 256 : index
    %184 = vector.load %arg11[%c0_82, %c256_83] : memref<8x512xf32, #tpu.memory_space<vmem>>, vector<8x128xf32>
    tpu.vector_store %arg11[%c0_82, %c256_83], %183 {strides = array<i32>} : memref<8x512xf32, #tpu.memory_space<vmem>>, vector<8x128xf32>,
    %c0_84 = arith.constant 0 : index
    %c0_85 = arith.constant 0 : index
    %185 = vector.load %arg11[%c0_84, %c0_85] : memref<8x512xf32, #tpu.memory_space<vmem>>, vector<8x512xf32>
    %c0_86 = arith.constant 0 : index
    %c0_87 = arith.constant 0 : index
    %186 = vector.load %arg8[%c0_86, %c0_87] : memref<512x128xf32, #tpu.memory_space<vmem>>, vector<512x128xf32>
    %cst_88 = arith.constant dense<0.000000e+00> : vector<8x128xf32>
    %187 = tpu.matmul %185, %186, %cst_88 {dimension_numbers = #tpu.dot_dimension_numbers<[1], [0], [0], [1], [0, 0, 1, 1], [], []>, precision = #tpu.contract_precision<fp32>} : vector<8x512xf32>, vector<512x128xf32>, vector<8x128xf32> -> vector<8x128xf32>
    %c0_89 = arith.constant 0 : index
    %c0_90 = arith.constant 0 : index
    %188 = vector.load %arg9[%c0_89, %c0_90] : memref<1x128xf32, #tpu.memory_space<vmem>>, vector<1x128xf32>
    %189 = vector.broadcast %188 : vector<1x128xf32> to vector<8x128xf32>
    %190 = arith.addf %187, %189 : vector<8x128xf32>
    %c0_91 = arith.constant 0 : index
    %c0_92 = arith.constant 0 : index
    %191 = vector.load %arg10[%c0_91, %c0_92] : memref<8x128xf32, #tpu.memory_space<vmem>>, vector<8x128xf32>
    tpu.vector_store %arg10[%c0_91, %c0_92], %190 {strides = array<i32>} : memref<8x128xf32, #tpu.memory_space<vmem>>, vector<8x128xf32>,
    return
  }
  func.func @transform_0(%arg0: i32) -> (i32, i32) {
    %c0_i32 = arith.constant 0 : i32
    %c0_i32_0 = arith.constant 0 : i32
    return %arg0, %c0_i32 : i32, i32
  }
  func.func @transform_1(%arg0: i32) -> (i32, i32) {
    %c0_i32 = arith.constant 0 : i32
    %c0_i32_0 = arith.constant 0 : i32
    %c0_i32_1 = arith.constant 0 : i32
    return %c0_i32, %c0_i32_0 : i32, i32
  }
  func.func @transform_2(%arg0: i32) -> (i32, i32) {
    %c0_i32 = arith.constant 0 : i32
    %c0_i32_0 = arith.constant 0 : i32
    %c0_i32_1 = arith.constant 0 : i32
    return %c0_i32, %c0_i32_0 : i32, i32
  }
  func.func @transform_3(%arg0: i32) -> (i32, i32) {
    %c0_i32 = arith.constant 0 : i32
    %c0_i32_0 = arith.constant 0 : i32
    %c0_i32_1 = arith.constant 0 : i32
    return %c0_i32, %c0_i32_0 : i32, i32
  }
  func.func @transform_4(%arg0: i32) -> (i32, i32) {
    %c0_i32 = arith.constant 0 : i32
    %c0_i32_0 = arith.constant 0 : i32
    %c0_i32_1 = arith.constant 0 : i32
    return %c0_i32, %c0_i32_0 : i32, i32
  }
  func.func @transform_5(%arg0: i32) -> (i32, i32) {
    %c0_i32 = arith.constant 0 : i32
    %c0_i32_0 = arith.constant 0 : i32
    %c0_i32_1 = arith.constant 0 : i32
    return %c0_i32, %c0_i32_0 : i32, i32
  }
  func.func @transform_6(%arg0: i32) -> (i32, i32) {
    %c0_i32 = arith.constant 0 : i32
    %c0_i32_0 = arith.constant 0 : i32
    %c0_i32_1 = arith.constant 0 : i32
    return %c0_i32, %c0_i32_0 : i32, i32
  }
  func.func @transform_7(%arg0: i32) -> (i32, i32) {
    %c0_i32 = arith.constant 0 : i32
    %c0_i32_0 = arith.constant 0 : i32
    %c0_i32_1 = arith.constant 0 : i32
    return %c0_i32, %c0_i32_0 : i32, i32
  }
  func.func @transform_8(%arg0: i32) -> (i32, i32) {
    %c0_i32 = arith.constant 0 : i32
    %c0_i32_0 = arith.constant 0 : i32
    %c0_i32_1 = arith.constant 0 : i32
    return %c0_i32, %c0_i32_0 : i32, i32
  }
  func.func @transform_9(%arg0: i32) -> (i32, i32) {
    %c0_i32 = arith.constant 0 : i32
    %c0_i32_0 = arith.constant 0 : i32
    return %arg0, %c0_i32 : i32, i32
  }
}

</mosaic_0001>

<bundles_post_ra>
// kernel: tpu_custom_call.1
= control target key start
LH: loop header
LB: loop body
LE: loop exit
PB: predicated region body
PF: predicated region fallthrough
CT: control target
= control target key end

     0   :  { %s5948_s0 = inlined_call_operand.hbm [shape: f32[16,32], index: 0, kind: input, shape index: {}]   ;;  %s5949_s1 = inlined_call_operand.hbm [shape: f32[32,512], index: 1, kind: input, shape index: {}]   ;;  %s5950_s2 = inlined_call_operand.hbm [shape: f32[1,512], index: 2, kind: input, shape index: {}]   ;;  %s5951_s3 = inlined_call_operand.hbm [shape: f32[1,512], index: 3, kind: input, shape index: {}]   ;;  %s5952_s4 = inlined_call_operand.hbm [shape: f32[1,512], index: 4, kind: input, shape index: {}]   ;;  %s5953_s5 = inlined_call_operand.hbm [shape: f32[128,128], index: 5, kind: input, shape index: {}]   ;;  %s5954_s6 = inlined_call_operand.vmem [shape: f32[1,128], index: 6, kind: input, shape index: {}]   ;;  %s5955_s7 = inlined_call_operand.hbm [shape: f32[512,128], index: 7, kind: input, shape index: {}]   ;;  %s5956_s8 = inlined_call_operand.vmem [shape: f32[1,128], index: 8, kind: input, shape index: {}]   ;;  %s5957_s9 = inlined_call_operand.hbm [shape: f32[16,128], index: 9, kind: output, shape index: {}]  }
   0x1   :  { %6009 = sst [smem:[#allocation24_spill]] %s5949_s1 }
   0x2   :  { %6010 = sst [smem:[#allocation25_spill]] %s5950_s2 }
   0x3   :  { %6011 = sst [smem:[#allocation26_spill]] %s5951_s3 }
   0x4   :  { %6012 = sst [smem:[#allocation27_spill]] %s5952_s4 }
   0x5   :  { %14 = vsyncpa [#allocation4], 0 }
   0x6   :  { %16 = vsyncpa [#allocation4 + $0x1], 0 }
   0x7   :  { %17 = vsyncpa [#allocation7], 0 }
   0x8   :  { %18 = vsyncpa [#allocation10], 0 }
   0x9   :  { %19 = vsyncpa [#allocation13], 0 }
   0xa   :  { %20 = vsyncpa [#allocation5], 0 }
   0xb   :  { %22 = vsyncpa [#allocation5 + $0x1], 0  ;;  %s4043_s30 = smov 0   ;;  %s4045_s10 = smov 0  }
   0xc   :  { %s4047_s11 = smov 0   ;;  %s4049_s12 = smov 0  }
   0xd LB: > { %s6013_s1 = sld [smem:[#allocation24_spill]]  ;;  %s4067_s16 = sadd.s32 4294967295, %s3978_s12   ;;  %s3978_s12 = sphi %s4049_s12, %s6101_s12   ;;  %s3974_s11 = sphi %s4047_s11, %s6100_s11   ;;  %s3970_s10 = sphi %s4045_s10, %s6099_s10   ;;  %s3966_s30 = sphi %s4043_s30, %s6098_s30  }
   0xe   : > { %p3512_p0 = scmp.ge.s32.totalorder %s3978_s12, 1  ;;  %p49_p1 = scmp.eq.s32.totalorder %s4067_s16, 0 }
   0xf   : > { %p253_p2 = scmp.lt.s32.totalorder %s3978_s12, 3  ;;  %s3980_s18 = smov [#allocation6]  }
  0x10   : > { %s266_s19 = sshll.u32 %s3980_s18, 4  ;;  %s6015_s3 = sld [smem:[#allocation26_spill]]  ;;  %s267_s19 = int_to_ptr.vmem [resolvable:$true] %s266_s19 }
  0x11   : > { %p4072_p3 = pnand %p3512_p0, %p253_p2  ;;  %s314_s26 = sshll.u32 %s5953_s5, 4  ;;  %s315_s26 = int_to_ptr.hbm [resolvable:$true] %s314_s26 }
  0x12   : > { %s3981_s27 = smov [#allocation9]   ;;  %s3982_s29 = smov 512  }
  0x13   : > { %s264_s15 = sshll.u32 %s6013_s1, 4  ;;  %p3567_p4 = pneg %p4072_p3  ;;  %s265_s15 = int_to_ptr.hbm [resolvable:$true] %s264_s15 }
  0x14   : > { %s293_s28 = sshll.u32 %s3981_s27, 4  ;;  %s3983_s13 = smov 32   ;;  %s294_s28 = int_to_ptr.vmem [resolvable:$true] %s293_s28 }
  0x15   : > { %p4084_p6 = pnand %p3567_p4, %p49_p1  ;;  %s3984_s14 = smov [#allocation12]  }
  0x16   : > { %s291_s22 = sshll.u32 %s6015_s3, 4  ;;  %s316_s18 = sshll.u32 %s3984_s14, 4  ;;  %s292_s22 = int_to_ptr.hbm [resolvable:$true] %s291_s22  ;;  %s317_s18 = int_to_ptr.vmem [resolvable:$true] %s316_s18 }
  0x17   : > { %3570 = dma.hbm_to_vmem [thread:$0]  (!%p4084_p6), %s265_s15, 2048, %s267_s19, [#allocation7], %s3982_s29, %s3982_s29, %s3983_s13  }
  0x18   : > { %3576 = dma.hbm_to_vmem [thread:$0]  (!%p4084_p6), %s292_s22, 64, %s294_s28, [#allocation10]  }
  0x19   : > { %s6017_s2 = sld [smem:[#allocation25_spill]]  ;;  %s3985_s25 = smov 128  }
  0x1a   : > { %s3986_s1 = smov 8   ;;  %s3987_s15 = smov [#allocation8]  }
  0x1b   : > { %3582 = dma.hbm_to_vmem [thread:$0]  (!%p4084_p6), %s315_s26, 2048, %s317_s18, [#allocation13], %s3985_s25, %s3985_s25, %s3986_s1  }
  0x1c   : > { %s281_s19 = sshll.u32 %s3987_s15, 4  ;;  %s6018_s4 = sld [smem:[#allocation27_spill]]  ;;  %s282_s19 = int_to_ptr.vmem [resolvable:$true] %s281_s19 }
  0x1d   : > { %s331_s26 = sshll.u32 %s5955_s7, 4  ;;  %s3988_s14 = smov [#allocation11]   ;;  %s332_s26 = int_to_ptr.hbm [resolvable:$true] %s331_s26 }
  0x1e   : > { %s305_s18 = sshll.u32 %s3988_s14, 4  ;;  %s3989_s20 = smov [#allocation14]   ;;  %s306_s18 = int_to_ptr.vmem [resolvable:$true] %s305_s18 }
  0x1f   : > { %s279_s24 = sshll.u32 %s6017_s2, 4  ;;  %s333_s21 = sshll.u32 %s3989_s20, 4  ;;  %s280_s24 = int_to_ptr.hbm [resolvable:$true] %s279_s24  ;;  %s334_s21 = int_to_ptr.vmem [resolvable:$true] %s333_s21 }
  0x20   : > { %3573 = dma.hbm_to_vmem [thread:$0]  (!%p4084_p6), %s280_s24, 64, %s282_s19, [#allocation7]  }
  0x21   : > { %3585 = dma.hbm_to_vmem [thread:$0]  (!%p4084_p6), %s332_s26, 8192, %s334_s21, [#allocation13], %s3985_s25, %s3985_s25, %s3986_s1  }
  0x22   : > { %s303_s22 = sshll.u32 %s6018_s4, 4  ;;  %s3511_s24 = sadd.s32 4294967294, %s3978_s12   ;;  %s304_s22 = int_to_ptr.hbm [resolvable:$true] %s303_s22 }
  0x23   : > { %3579 = dma.hbm_to_vmem [thread:$0]  (!%p4084_p6), %s304_s22, 64, %s306_s18, [#allocation10]  }
  0x24   : > { %s4114_s15 = sadd.s32 1, %s3978_s12   ;;  %s35_s27 = sadd.s32 1, %s3974_s11 }
  0x25   : > { %s32_s19 = ssub.s32 %s3978_s12, %s4114_s15  ;;  %p42_p8 = scmp.ne.s32.totalorder %s3974_s11, %s3970_s10 }
  0x26   : > { %p33_p7 = scmp.eq.s32.totalorder %s32_s19, 0  ;;  %p43_p9 = scmp.eq.s32.totalorder %s3978_s12, 0 }
  0x27   : > { %p48_p10 = scmp.ne.s32.totalorder %s3970_s10, %s3966_s30  ;;  %p240_p13 = scmp.eq.s32.totalorder %s4067_s16, 1 }
  0x28   : > { %s4125_s29 = scalar_select %p33_p7, %s3974_s11, %s35_s27  }
  0x29   : > { %p4127_p11 = por %p43_p9, %p42_p8  ;;  %p4133_p12 = por %p49_p1, %p48_p10 }
  0x2a   : > { %p246_p0 = scmp.eq.s32.totalorder %s3511_s24, 1  ;;  %p3600_p2 = scmp.lt.s32.totalorder %s3978_s12, 2 }
  0x2b   : > { %s350_s23 = sand.u32 1, %s3974_s11   ;;  %p4140_p4 = por %p240_p13, %p42_p8 }
  0x2c   : > { %p4144_p6 = por %p246_p0, %p48_p10  ;;  %s3520_s13 = sshll.u32 %s350_s23, 3 }
  0x2d   : > { %s3521_s26 = sshll.u32 %s3978_s12, 3  ;;  %s354_s21 = scalar_lea.vmem [#allocation3], %s3520_s13 }
  0x2e   : > { %s358_s20 = scalar_lea.hbm %s5948_s0, %s3521_s26  ;;  %s362_s19 = sshll.u32 %s354_s21, 4  ;;  %s363_s19 = int_to_ptr.vmem [resolvable:$true] %s362_s19 }
  0x2f   : > { %s360_s27 = sshll.u32 %s358_s20, 4  ;;  %p4154_p7 = pnand %p3600_p2, %p4127_p11  ;;  %s361_s27 = int_to_ptr.hbm [resolvable:$true] %s360_s27 }
  0x30   : > { %s351_s2 = scalar_lea.sflag [#allocation4], %s350_s23  ;;  %s3870_s3 = sshra.s32 %s361_s27, 4  ;;  %s3871_s3 = int_to_ptr.hbm [resolvable:$true] %s3870_s3 }
  0x31   : > { %s3872_s4 = scalar_lea.hbm %s3871_s3, 8  ;;  %p3874_p9 = pneg %p4154_p7 }
  0x32   : > { %p3873_p8 = scmp.ne.s32.totalorder %s3871_s3, %s3872_s4  ;;  %s3877_s14 = scalar_lea.hbm %s5948_s0, 16 }
  0x33   : > { %p3878_p11 = scmp.lt.s32.totalorder %s3871_s3, %s5948_s0  ;;  %p3879_p0 = scmp.lt.s32.totalorder %s3877_s14, %s3872_s4 }
  0x34   : > { %p3875_p10 = pnand %p3874_p9, %p3873_p8 }
  0x35   : > { %p3880_p2 = por %p3879_p0, %p3878_p11 }
  0x36   : > { %p3876_p13 = pneg %p3875_p10 }
  0x38   : > { %p3881_p5 = pnand %p3880_p2, %p3876_p13 }
  0x3a   : > { %3884 = shalt.err (!%p3881_p5)
}
  0x3b   : > { %3589 = dma.hbm_to_vmem [thread:$0]  (!%p4154_p7), %s361_s27, 128, %s363_s19, %s351_s2  }
  0x3c   : > { %371 = sbr.rel (%p4072_p3) target bundleno = 1254 (0x4e6), region = 56 }
  0x41   : > { %s4171_s23 = sand.u32 1, %s3970_s10  }
  0x42   : > { %s3523_s20 = sshll.u32 %s4171_s23, 3  ;;  %s374_s21 = scalar_lea.sflag [#allocation4], %s4171_s23 }
  0x43   : > { %s377_s3 = scalar_lea.vmem [#allocation3], %s3523_s20 }
  0x44   : > { %3945 = dma.done.wait (%p4133_p12), %s374_s21, 128  }
  0x45   : > { %3947 = vsyncadd (%p4133_p12), %s374_s21, 4294967168 }
  0x46   : > { %3949 = dma.done.wait (%p49_p1), [#allocation7], 2112  }
  0x47   : > { %3951 = vsyncadd (%p49_p1), [#allocation7], 4294965184 }
  0x48   : > { %3953 = dma.done.wait (%p49_p1), [#allocation10], 128  }
  0x49   : > { %3955 = vsyncadd (%p49_p1), [#allocation10], 4294967168 }
  0x4a   : > { %3957 = dma.done.wait (%p49_p1), [#allocation13], 10240  }
  0x4b   : > { %3959 = vsyncadd (%p49_p1), [#allocation13], 4294957056  ;;  %vm452_vm0 = vcmask 261120   ;;  %v447_v0 = vld [vmem:[#allocation6 + $0x60] sm:$0xff]  ;;  %v443_v7 = vld [vmem:[%s377_s3] sm:$0xff]  ;;  %s3536_s19 = sshll.u32 %s4067_s16, 3 }
  0x4c   : > { %v446_v1 = vld [vmem:[#allocation6 + $0x40] sm:$0xff]  ;;  %v468_v3 = vand.u32 4294901760, %v447_v0  ;;  %v454_v9 = vsel %vm452_vm0, %v443_v7, 0  ;;  %v731_v52 = vld [vmem:[#allocation12 + $0x68] sm:$0xff]  ;;  %v730_v56 = vld [vmem:[#allocation12 + $0x60] sm:$0xff]  ;;  %s3379_s13 = scalar_lea.hbm %s5957_s9, %s3536_s19  ;;  %s442_s26 = scalar_lea.vmem [#allocation15], %s3523_s20 }
  0x4d   : > { %v445_v2 = vld [vmem:[#allocation6 + $0x20] sm:$0xff]  ;;  %v470_v4 = vand.u32 4294901760, %v446_v1  ;;  %v4193_v13 = vand.u32 4294901760, %v454_v9  ;;  %v4231_v55 = vand.u32 4294901760, %v731_v52  ;;  %v4243_v60 = vand.u32 4294901760, %v730_v56  ;;  %s3381_s14 = sshll.u32 %s442_s26, 4  ;;  %s3382_s14 = int_to_ptr.vmem [resolvable:$true] %s3381_s14 }
  0x4e   : > { %v472_v5 = vand.u32 4294901760, %v445_v2  ;;  %v444_v6 = vld [vmem:[#allocation6] sm:$0xff]  ;;  %v498_v10 = vsub.f32 %v447_v0, %v468_v3  ;;  %469 = vmatpush.msra.mxu0 %v468_v3  ;;  %569 = vmatpush.msra.mxu3 %v468_v3  ;;  %v727_v0 = vld [vmem:[#allocation12 + $0x48] sm:$0xff]  ;;  %s3383_s18 = sshll.u32 %s3379_s13, 4  ;;  %s3369_s16 = scalar_lea.sflag [#allocation5], %s4171_s23  ;;  %s3384_s18 = int_to_ptr.hbm [resolvable:$true] %s3383_s18 }
  0x4f   : > { %v474_v8 = vand.u32 4294901760, %v444_v6  ;;  %v504_v11 = vsub.f32 %v446_v1, %v470_v4  ;;  %v4196_v17 = vsub.f32 %v454_v9, %v4193_v13  ;;  %v3656_v31 = vld [vmem:[#allocation8] ss:$0 sm:$0xff]  ;;  %v733_v45 = vld [vmem:[#allocation12 + $0x78] sm:$0xff]  ;;  %v4241_v59 = vsub.f32 %v731_v52, %v4231_v55  ;;  %s3914_s22 = sshra.s32 %s3384_s18, 4  ;;  %s3920_s20 = scalar_lea.hbm %s5957_s9, 16  ;;  %s3915_s22 = int_to_ptr.hbm [resolvable:$true] %s3914_s22 }
  0x50   : > { %v510_v12 = vsub.f32 %v445_v2, %v472_v5  ;;  %540 = vmatpush.msra.mxu2 %v498_v10  ;;  %471 = vmatpush.msra.mxu0 %v470_v4  ;;  %v499_v15 = vand.u32 4294901760, %v498_v10  ;;  %v4216_v46 = vand.u32 4294901760, %v733_v45  ;;  %v732_v47 = vld [vmem:[#allocation12 + $0x70] sm:$0xff]  ;;  %v729_v62 = vld [vmem:[#allocation12 + $0x58] sm:$0xff]  ;;  %v4263_v9 = vand.u32 4294901760, %v727_v0  ;;  %s3916_s21 = scalar_lea.hbm %s3915_s22, 8  ;;  %p3921_p12 = scmp.lt.s32.totalorder %s3915_s22, %s5957_s9 }
  0x51   : > { %v516_v14 = vsub.f32 %v444_v6, %v474_v8  ;;  %v505_v16 = vand.u32 4294901760, %v504_v11  ;;  %571 = vmatpush.msra.mxu3 %v470_v4  ;;  %v4199_v23 = vand.u32 4294901760, %v4196_v17  ;;  %v4221_v50 = vand.u32 4294901760, %v732_v47  ;;  %v728_v63 = vld [vmem:[#allocation12 + $0x50] sm:$0xff]  ;;  %v725_v6 = vld [vmem:[#allocation12 + $0x38] sm:$0xff]  ;;  %p3917_p1 = scmp.ne.s32.totalorder %s3915_s22, %s3916_s21  ;;  %p3922_p7 = scmp.lt.s32.totalorder %s3920_s20, %s3916_s21 }
  0x52   : > { %v511_v18 = vand.u32 4294901760, %v510_v12  ;;  %543 = vmatpush.msra.mxu2 %v504_v11  ;;  %v500_v20 = vsub.f32 %v498_v10, %v499_v15  ;;  %473 = vmatpush.msra.mxu0 %v472_v5  ;;  %v4219_v49 = vsub.f32 %v733_v45, %v4216_v46  ;;  %v4259_v7 = vand.u32 4294901760, %v729_v62 }
  0x53   : > { %v517_v19 = vand.u32 4294901760, %v516_v14  ;;  %v506_v21 = vsub.f32 %v504_v11, %v505_v16  ;;  %573 = vmatpush.msra.mxu3 %v472_v5  ;;  %v479_v26 = vsub.f32 %v4196_v17, %v4199_v23  ;;  %v4229_v54 = vsub.f32 %v732_v47, %v4221_v50  ;;  %v722_v47 = vld [vmem:[#allocation12 + $0x20] sm:$0xff]  ;;  %p3918_p3 = pnand %p3917_p1, %p4140_p4  ;;  %p3923_p8 = por %p3922_p7, %p3921_p12 }
  0x54   : > { %v512_v22 = vsub.f32 %v510_v12, %v511_v18  ;;  %v501_v24 = vand.u32 4294901760, %v500_v20  ;;  %546 = vmatpush.msra.mxu2 %v510_v12  ;;  %475 = vmatpush.msra.mxu0 %v474_v8  ;;  %v781_v53 = vand.u32 4294901760, %v4219_v49 }
  0x55   : > { %v507_v25 = vand.u32 4294901760, %v506_v21  ;;  %v518_v27 = vsub.f32 %v516_v14, %v517_v19  ;;  %575 = vmatpush.msra.mxu3 %v474_v8  ;;  %v4203_v29 = vand.u32 4294901760, %v479_v26  ;;  %v787_v58 = vand.u32 4294901760, %v4229_v54  ;;  %p3919_p5 = pneg %p3918_p3 }
  0x56   : > { %598 = vmatpush.msrb.mxu0 %v499_v15  ;;  %502 = vmatpush.msra.mxu1 %v501_v24  ;;  %v513_v28 = vand.u32 4294901760, %v512_v22  ;;  %v782_v57 = vsub.f32 %v4219_v49, %v781_v53  ;;  %v4282_v21 = vsub.f32 %v727_v0, %v4263_v9  ;;  %v724_v22 = vld [vmem:[#allocation12 + $0x30] sm:$0xff] }
  0x57   : > { %549 = vmatpush.msra.mxu2 %v516_v14  ;;  %579 = vmatmul.f32.vlgmr.msra.gmra.mxu3 %v4199_v23  ;;  %v519_v30 = vand.u32 4294901760, %v518_v27  ;;  %v788_v2 = vsub.f32 %v4229_v54, %v787_v58  ;;  %p3924_p9 = pnand %p3923_p8, %p3919_p5 }
  0x58   : > { %552 = vmatmul.f32.vlgmr.msra.gmra.mxu2 %v4196_v17  ;;  %508 = vmatpush.msra.mxu1 %v507_v25  ;;  %v783_v1 = vand.u32 4294901760, %v782_v57 }
  0x59   : > { %481 = vmatmul.f32.vlgmr.msra.gmra.mxu0 %v4203_v29  ;;  %739 = vmatpush.msrb.mxu2 %v4216_v46  ;;  %v789_v12 = vand.u32 4294901760, %v788_v2  ;;  %v718_v2 = vld [vmem:[#allocation12] sm:$0xff] }
  0x5a   : > { %602 = vmatpush.msrb.mxu0 %v505_v16  ;;  %514 = vmatpush.msra.mxu1 %v513_v28  ;;  %v4272_v16 = vand.u32 4294901760, %v725_v6 }
  0x5b   : > { %741 = vmatpush.msrb.mxu2 %v4221_v50  ;;  %784 = vmatpush.msrb.mxu3 %v783_v1 }
  0x5c   : > { %606 = vmatpush.msrb.mxu0 %v511_v18  ;;  %520 = vmatpush.msra.mxu1 %v519_v30  ;;  %v4293_v27 = vsub.f32 %v725_v6, %v4272_v16  ;;  %v4338_v6 = vand.u32 4294901760, %v722_v47 }
  0x5d   : > { %522 = vmatmul.f32.vlgmr.msra.gmra.mxu1 %v4193_v13  ;;  %743 = vmatpush.msrb.mxu2 %v4231_v55 }
  0x5e   : > { %610 = vmatpush.msrb.mxu0 %v517_v19  ;;  %629 = vmatpush.msrb.mxu1 %v468_v3  ;;  %v793_v3 = vand.u32 4294901760, %v4241_v59  ;;  %v4276_v19 = vsub.f32 %v729_v62, %v4259_v7  ;;  %v719_v62 = vld [vmem:[#allocation12 + $0x8] sm:$0xff] }
  0x5f   : > { %745 = vmatpush.msrb.mxu2 %v4243_v60  ;;  %790 = vmatpush.msrb.mxu3 %v789_v12 }
  0x60   : > { %631 = vmatpush.msrb.mxu1 %v470_v4  ;;  %882 = vmatpush.msra.mxu0 %v4219_v49  ;;  %v4255_v4 = vsub.f32 %v730_v56, %v4243_v60  ;;  %v794_v14 = vsub.f32 %v4241_v59, %v793_v3  ;;  %v805_v30 = vand.u32 4294901760, %v4276_v19 }
  0x61   : > { %612 = vmatmul.f32.vlgmr.msrb.gmra.mxu0 %v4193_v13  ;;  %747 = vmatpush.msrb.mxu2 %v4259_v7 }
  0x62   : > { %633 = vmatpush.msrb.mxu1 %v472_v5  ;;  %885 = vmatpush.msra.mxu0 %v4229_v54  ;;  %v726_v5 = vld [vmem:[#allocation12 + $0x40] sm:$0xff]  ;;  %v799_v15 = vand.u32 4294901760, %v4255_v4  ;;  %v795_v24 = vand.u32 4294901760, %v794_v14 }
  0x63   : > { %v4265_v10 = vand.u32 4294901760, %v726_v5 }
  0x64   : > { %635 = vmatpush.msrb.mxu1 %v474_v8  ;;  %888 = vmatpush.msra.mxu0 %v4241_v59  ;;  %v4261_v8 = vand.u32 4294901760, %v728_v63  ;;  %v800_v25 = vsub.f32 %v4255_v4, %v799_v15 }
  0x65   : > { %637 = vmatmul.f32.vlgmr.msrb.gmra.mxu1 %v4193_v13  ;;  %v4290_v26 = vsub.f32 %v726_v5, %v4265_v10  ;;  %796 = vmatpush.msrb.mxu3 %v795_v24 }
  0x66   : > { %935 = vmatpush.msra.mxu1 %v4216_v46  ;;  %891 = vmatpush.msra.mxu0 %v4255_v4  ;;  %v4279_v20 = vsub.f32 %v728_v63, %v4261_v8 }
  0x67   : > { %749 = vmatpush.msrb.mxu2 %v4261_v8 }
  0x68   : > { %937 = vmatpush.msra.mxu1 %v4221_v50  ;;  %894 = vmatpush.msra.mxu0 %v4276_v19 }
  0x69   : > { %751 = vmatpush.msrb.mxu2 %v4263_v9 }
  0x6a   : > { %939 = vmatpush.msra.mxu1 %v4231_v55  ;;  %897 = vmatpush.msra.mxu0 %v4279_v20 }
  0x6b   : > { %753 = vmatpush.msrb.mxu2 %v4265_v10 }
  0x6c   : > { %941 = vmatpush.msra.mxu1 %v4243_v60  ;;  %900 = vmatpush.msra.mxu0 %v4282_v21 }
  0x6d   : > { %755 = vmatpush.msrb.mxu2 %v4272_v16 }
  0x6e   : > { %943 = vmatpush.msra.mxu1 %v4259_v7  ;;  %903 = vmatpush.msra.mxu0 %v4290_v26 }
  0x70   : > { %945 = vmatpush.msra.mxu1 %v4261_v8  ;;  %906 = vmatpush.msra.mxu0 %v4293_v27 }
  0x72   : > { %947 = vmatpush.msra.mxu1 %v4263_v9 }
  0x74   : > { %949 = vmatpush.msra.mxu1 %v4265_v10 }
  0x76   : > { %951 = vmatpush.msra.mxu1 %v4272_v16 }
  0xd6   : > { %v482_v32 = vpop.f32.mrf.mxu0 }
  0xd7   : > { %v483_v33 = vadd.f32 %v3656_v31, %v482_v32  ;;  %v811_v31 = vand.u32 4294901760, %v4279_v20  ;;  %v817_v32 = vand.u32 4294901760, %v4282_v21 }
  0xda   : > { %v523_v34 = vpop.f32.mrf.mxu1  ;;  %v580_v37 = vpop.f32.mrf.mxu3 }
  0xdb   : > { %v553_v35 = vpop.f32.mrf.mxu2  ;;  %v524_v36 = vadd.f32 %v523_v34, %v483_v33  ;;  %v723_v33 = vld [vmem:[#allocation12 + $0x28] sm:$0xff]  ;;  %v801_v34 = vand.u32 4294901760, %v800_v25  ;;  %v4354_v25 = vsub.f32 %v722_v47, %v4338_v6 }
  0xdc   : > { %v4322_v45 = vand.u32 4294901760, %v723_v33 }
  0xdd   : > { %v554_v38 = vadd.f32 %v553_v35, %v524_v36  ;;  %v823_v35 = vand.u32 4294901760, %v4290_v26  ;;  %v829_v36 = vand.u32 4294901760, %v4293_v27  ;;  %802 = vmatpush.msrb.mxu3 %v801_v34 }
  0xde   : > { %v613_v39 = vpop.f32.mrf.mxu0  ;;  %v4334_v1 = vsub.f32 %v723_v33, %v4322_v45  ;;  %v4360_v33 = vand.u32 4294901760, %v718_v2 }
  0xdf   : > { %v581_v40 = vadd.f32 %v580_v37, %v554_v38  ;;  %v4302_v37 = vand.u32 4294901760, %v724_v22  ;;  %v830_v63 = vsub.f32 %v4293_v27, %v829_v36 }
  0xe0   : > { %v841_v14 = vand.u32 4294901760, %v4334_v1 }
  0xe1   : > { %v614_v41 = vadd.f32 %v613_v39, %v581_v40  ;;  %v806_v39 = vsub.f32 %v4276_v19, %v805_v30  ;;  %v812_v40 = vsub.f32 %v4279_v20, %v811_v31  ;;  %757 = vmatpush.msrb.mxu2 %v4302_v37  ;;  %v831_v34 = vand.u32 4294901760, %v830_v63  ;;  %953 = vmatpush.msra.mxu1 %v4302_v37 }
  0xe2   : > { %v638_v42 = vpop.f32.mrf.mxu1 }
  0xe3   : > { %v4211_v43 = vadd.f32 %v638_v42, %v614_v41  ;;  %v818_v41 = vsub.f32 %v4282_v21, %v817_v32  ;;  %v824_v42 = vsub.f32 %v4290_v26, %v823_v35  ;;  %v807_v56 = vand.u32 4294901760, %v806_v39  ;;  %759 = vmatpush.msrb.mxu2 %v4322_v45  ;;  %955 = vmatpush.msra.mxu1 %v4322_v45  ;;  %v1105_v21 = vld [vmem:[#allocation6 + $0x68] sm:$0xff] }
  0xe4   : > { %v813_v57 = vand.u32 4294901760, %v812_v40  ;;  %v842_v39 = vsub.f32 %v4334_v1, %v841_v14  ;;  %v847_v40 = vand.u32 4294901760, %v4354_v25  ;;  %v4470_v26 = vand.u32 4294901760, %v1105_v21 }
  0xe5   : > { %641 = vadd.xlane.f32.xlu0 %v4211_v43  ;;  %v644_v44 = vmul.f32 %v4211_v43, %v4211_v43  ;;  %808 = vmatpush.msrb.mxu3 %v807_v56  ;;  %v819_v5 = vand.u32 4294901760, %v818_v41  ;;  %v825_v12 = vand.u32 4294901760, %v824_v42 }
  0xe6   : > { %v848_v56 = vsub.f32 %v4354_v25, %v847_v40  ;;  %761 = vmatpush.msrb.mxu2 %v4338_v6  ;;  %957 = vmatpush.msra.mxu1 %v4338_v6  ;;  %v843_v63 = vand.u32 4294901760, %v842_v39 }
  0xe7   : > { %814 = vmatpush.msrb.mxu3 %v813_v57 }
  0xe9   : > { %820 = vmatpush.msrb.mxu3 %v819_v5 }
  0xeb   : > { %826 = vmatpush.msrb.mxu3 %v825_v12 }
  0xed   : > { %645 = vadd.xlane.f32.xlu0 %v644_v44  ;;  %v4320_v44 = vsub.f32 %v724_v22, %v4302_v37  ;;  %v4346_v22 = vand.u32 4294901760, %v719_v62  ;;  %832 = vmatpush.msrb.mxu3 %v831_v34 }
  0xef   : > { %v835_v0 = vand.u32 4294901760, %v4320_v44  ;;  %v4374_v42 = vsub.f32 %v719_v62, %v4346_v22  ;;  %909 = vmatpush.msra.mxu0 %v4320_v44 }
  0xf1   : > { %v836_v24 = vsub.f32 %v4320_v44, %v835_v0  ;;  %912 = vmatpush.msra.mxu0 %v4334_v1  ;;  %v865_v12 = vand.u32 4294901760, %v4374_v42  ;;  %v1102_v1 = vld [vmem:[#allocation6 + $0x8] sm:$0xff] }
  0xf3   : > { %915 = vmatpush.msra.mxu0 %v4354_v25  ;;  %v4501_v25 = vand.u32 4294901760, %v1102_v1 }
 0x158   : > { %v642_v48 = vpop.xlane.xlu0 %641 }
 0x159   : > { %v4225_v51 = vmul.f32 0.0625, %v642_v48  ;;  %v721_v48 = vld [vmem:[#allocation12 + $0x18] sm:$0xff] }
 0x15b   : > { %v648_v61 = vmul.f32 %v4225_v51, %v4225_v51 }
 0x160   : > { %v646_v11 = vpop.xlane.xlu0 %645 }
 0x161   : > { %v647_v18 = vmul.f32 0.0625, %v646_v11  ;;  %v4341_v11 = vand.u32 4294901760, %v721_v48 }
 0x163   : > { %v649_v28 = vsub.f32 %v647_v18, %v648_v61  ;;  %v720_v61 = vld [vmem:[#allocation12 + $0x10] sm:$0xff]  ;;  %763 = vmatpush.msrb.mxu2 %v4341_v11  ;;  %959 = vmatpush.msra.mxu1 %v4341_v11 }
 0x164   : > { %v4344_v18 = vand.u32 4294901760, %v720_v61 }
 0x165   : > { %v650_v38 = vmax.f32 %v649_v28, 0.0  ;;  %v4357_v28 = vsub.f32 %v721_v48, %v4341_v11  ;;  %v837_v48 = vand.u32 4294901760, %v836_v24 }
 0x166   : > { %765 = vmatpush.msrb.mxu2 %v4344_v18  ;;  %961 = vmatpush.msra.mxu1 %v4344_v18 }
 0x167   : > { %v4325_v52 = vadd.f32 1e-05, %v650_v38  ;;  %v4363_v38 = vsub.f32 %v720_v61, %v4344_v18  ;;  %v5958_v41 = vand.u32 4294901760, %v4357_v28  ;;  %v4384_v61 = vsub.f32 %v718_v2, %v4360_v33  ;;  %838 = vmatpush.msrb.mxu3 %v837_v48  ;;  %918 = vmatpush.msra.mxu0 %v4357_v28 }
 0x168   : > { %v849_v2 = vand.u32 4294901760, %v848_v56  ;;  %v866_v48 = vsub.f32 %v4374_v42, %v865_v12  ;;  %767 = vmatpush.msrb.mxu2 %v4346_v22  ;;  %963 = vmatpush.msra.mxu1 %v4346_v22  ;;  %v6024_v19 = vand.u32 4294901760, %v4357_v28 }
 0x169   : > { %3670 = vrsqrt.f32 %v4325_v52  ;;  %v5959_v57 = vand.u32 4294901760, %v4363_v38  ;;  %v854_v5 = vsub.f32 %v4357_v28, %v5958_v41  ;;  %v871_v39 = vand.u32 4294901760, %v4384_v61  ;;  %844 = vmatpush.msrb.mxu3 %v843_v63  ;;  %921 = vmatpush.msra.mxu0 %v4363_v38 }
 0x16a   : > { %769 = vmatpush.msrb.mxu2 %v4360_v33  ;;  %vm659_vm2 = vweird.f32 %v4325_v52  ;;  %965 = vmatpush.msra.mxu1 %v4360_v33 }
 0x16b   : > { %v860_v34 = vsub.f32 %v4363_v38, %v5959_v57  ;;  %850 = vmatpush.msrb.mxu3 %v849_v2  ;;  %v872_v57 = vsub.f32 %v4384_v61, %v871_v39  ;;  %924 = vmatpush.msra.mxu0 %v4374_v42  ;;  %v867_v2 = vand.u32 4294901760, %v866_v48 }
 0x16c   : > { %976 = vmatpush.msra.mxu2 %v781_v53  ;;  %v3658_v53 = vld [vmem:[#allocation11] ss:$0 sm:$0xff] }
 0x16d   : > { %927 = vmatpush.msra.mxu0 %v4384_v61  ;;  %v873_v49 = vand.u32 4294901760, %v872_v57  ;;  %v4514_v57 = vsub.f32 %v1102_v1, %v4501_v25 }
 0x16e   : > { %980 = vmatpush.msra.mxu2 %v787_v58 }
 0x16f   : > { %v3671_v47 = vpop.eup %3670  ;;  %1123 = vmatpush.msrb.mxu0 %v4470_v26 }
 0x170   : > { %v654_v62 = vmul.f32 %v3671_v47, %v4325_v52  ;;  %vm660_vm1 = vweird.f32 %v3671_v47  ;;  %984 = vmatpush.msra.mxu2 %v793_v3 }
 0x171   : > { %vm661_vm3 = vmor %vm659_vm2, %vm660_vm1 }
 0x172   : > { %v655_v24 = vmul.f32 %v3671_v47, %v654_v62  ;;  %v855_v62 = vand.u32 4294901760, %v854_v5  ;;  %v3657_v5 = vld [vmem:[#allocation9] ss:$0 sm:$0xff]  ;;  %988 = vmatpush.msra.mxu2 %v799_v15 }
 0x174   : > { %v656_v41 = vmul.f32 0.5, %v655_v24  ;;  %v861_v24 = vand.u32 4294901760, %v860_v34  ;;  %856 = vmatpush.msrb.mxu3 %v855_v62  ;;  %992 = vmatpush.msra.mxu2 %v805_v30  ;;  %v1104_v30 = vld [vmem:[#allocation6 + $0x48] sm:$0xff] }
 0x176   : > { %v657_v56 = vsub.f32 1.5, %v656_v41  ;;  %v651_v41 = vsub.f32 %v4211_v43, %v4225_v51  ;;  %862 = vmatpush.msrb.mxu3 %v861_v24  ;;  %996 = vmatpush.msra.mxu2 %v811_v31  ;;  %v4480_v31 = vand.u32 4294901760, %v1104_v30 }
 0x178   : > { %v658_v63 = vmul.f32 %v3671_v47, %v657_v56  ;;  %868 = vmatpush.msrb.mxu3 %v867_v2  ;;  %1000 = vmatpush.msra.mxu2 %v817_v32 }
 0x179   : > { %1125 = vmatpush.msrb.mxu0 %v4480_v31 }
 0x17a   : > { %v662_v34 = vsel %vm661_vm3, %v3671_v47, %v658_v63  ;;  %874 = vmatpush.msrb.mxu3 %v873_v49  ;;  %1004 = vmatpush.msra.mxu2 %v823_v35 }
 0x17b   : > { %v663_v52 = vmul.f32 %v662_v34, %v651_v41 }
 0x17c   : > { %1043 = vmatpush.msra.mxu3 %v4216_v46  ;;  %1008 = vmatpush.msra.mxu2 %v829_v36  ;;  %v1103_v36 = vld [vmem:[#allocation6 + $0x28] sm:$0xff] }
 0x17d   : > { %v668_v43 = vmul.f32 %v3657_v5, %v663_v52  ;;  %v4487_v44 = vand.u32 4294901760, %v1103_v36 }
 0x17e   : > { %1045 = vmatpush.msra.mxu3 %v4221_v50  ;;  %1012 = vmatpush.msra.mxu2 %v835_v0 }
 0x17f   : > { %v4427_v51 = vadd.f32 %v3658_v53, %v668_v43  ;;  %1127 = vmatpush.msrb.mxu0 %v4487_v44  ;;  %v4504_v28 = vsub.f32 %v1103_v36, %v4487_v44 }
 0x180   : > { %1047 = vmatpush.msra.mxu3 %v4231_v55  ;;  %1016 = vmatpush.msra.mxu2 %v841_v14 }
 0x181   : > { %v4433_v54 = vmul.f32 0.70710677, %v4427_v51  ;;  %1129 = vmatpush.msrb.mxu0 %v4501_v25  ;;  %v1165_v47 = vand.u32 4294901760, %v4504_v28 }
 0x182   : > { %1049 = vmatpush.msra.mxu3 %v4243_v60  ;;  %1020 = vmatpush.msra.mxu2 %v847_v40 }
 0x183   : > { %v676_v58 = vmul.f32 %v4433_v54, %v4433_v54 }
 0x184   : > { %1051 = vmatpush.msra.mxu3 %v4259_v7  ;;  %1024 = vmatpush.msra.mxu2 %v6024_v19 }
 0x185   : > { %v4443_v46 = vmin.f32 %v676_v58, 16.0 }
 0x186   : > { %1053 = vmatpush.msra.mxu3 %v4261_v8 }
 0x187   : > { %v678_v50 = vmul.f32 2.1237322e-06, %v4443_v46  ;;  %v689_v59 = vmul.f32 3.8918573e-05, %v4443_v46 }
 0x188   : > { %1055 = vmatpush.msra.mxu3 %v4263_v9 }
 0x189   : > { %v679_v55 = vadd.f32 0.00028619796, %v678_v50  ;;  %v690_v3 = vadd.f32 0.001143296, %v689_v59 }
 0x18a   : > { %1057 = vmatpush.msra.mxu3 %v4265_v10  ;;  %v6025_v10 = vand.u32 4294901760, %v4363_v38 }
 0x18b   : > { %v680_v60 = vmul.f32 %v679_v55, %v4443_v46  ;;  %v691_v4 = vmul.f32 %v690_v3, %v4443_v46 }
 0x18c   : > { %1059 = vmatpush.msra.mxu3 %v4272_v16  ;;  %1028 = vmatpush.msra.mxu2 %v6025_v10  ;;  %v4478_v16 = vsub.f32 %v1105_v21, %v4470_v26  ;;  %v1379_v10 = vld [vmem:[#allocation6 + $0x10] sm:$0xff] }
 0x18d   : > { %v681_v7 = vadd.f32 0.0036580483, %v680_v60  ;;  %v692_v15 = vadd.f32 0.014752088, %v691_v4  ;;  %v1382_v60 = vld [vmem:[#allocation6 + $0x70] sm:$0xff] }
 0x18e   : > { %1061 = vmatpush.msra.mxu3 %v4302_v37  ;;  %1032 = vmatpush.msra.mxu2 %v865_v12  ;;  %v1153_v37 = vand.u32 4294901760, %v4478_v16  ;;  %v1171_v12 = vand.u32 4294901760, %v4514_v57 }
 0x18f   : > { %v693_v8 = vmul.f32 %v692_v15, %v4443_v46  ;;  %v682_v20 = vmul.f32 %v681_v7, %v4443_v46  ;;  %v1381_v7 = vld [vmem:[#allocation6 + $0x50] sm:$0xff]  ;;  %v4528_v15 = vand.u32 4294901760, %v1382_v60 }
 0x190   : > { %1063 = vmatpush.msra.mxu3 %v4322_v45  ;;  %v4490_v45 = vsub.f32 %v1104_v30, %v4480_v31  ;;  %1036 = vmatpush.msra.mxu2 %v871_v39  ;;  %v1172_v48 = vsub.f32 %v4514_v57, %v1171_v12  ;;  %v4530_v19 = vand.u32 4294901760, %v1381_v7 }
 0x191   : > { %v694_v9 = vadd.f32 0.112945676, %v693_v8  ;;  %v683_v32 = vadd.f32 0.05243302, %v682_v20 }
 0x192   : > { %1065 = vmatpush.msra.mxu3 %v4338_v6  ;;  %v1154_v6 = vsub.f32 %v4478_v16, %v1153_v37  ;;  %v1159_v14 = vand.u32 4294901760, %v4490_v45  ;;  %v1173_v56 = vand.u32 4294901760, %v1172_v48  ;;  %v4543_v30 = vsub.f32 %v1381_v7, %v4530_v19 }
 0x193   : > { %v695_v27 = vmul.f32 %v694_v9, %v4443_v46  ;;  %v684_v38 = vmul.f32 %v683_v32, %v4443_v46  ;;  %v4536_v9 = vsub.f32 %v1382_v60, %v4528_v15  ;;  %v4548_v32 = vand.u32 4294901760, %v1379_v10 }
 0x194   : > { %1067 = vmatpush.msra.mxu3 %v4341_v11  ;;  %v1155_v42 = vand.u32 4294901760, %v1154_v6  ;;  %v1160_v11 = vsub.f32 %v4490_v45, %v1159_v14 }
 0x195   : > { %v696_v35 = vadd.f32 0.4994258, %v695_v27  ;;  %v685_v39 = vadd.f32 0.18741608, %v684_v38  ;;  %v4563_v1 = vsub.f32 %v1379_v10, %v4548_v32  ;;  %v1658_v38 = vld [vmem:[#allocation6 + $0x78] sm:$0xff] }
 0x196   : > { %1069 = vmatpush.msra.mxu3 %v4344_v18  ;;  %1156 = vmatpush.msrb.mxu1 %v1155_v42  ;;  %v1161_v61 = vand.u32 4294901760, %v1160_v11  ;;  %v1166_v18 = vsub.f32 %v4504_v28, %v1165_v47  ;;  %v1656_v42 = vld [vmem:[#allocation6 + $0x38] sm:$0xff] }
 0x197   : > { %v697_v0 = vmul.f32 %v696_v35, %v4443_v46  ;;  %v686_v24 = vmul.f32 %v685_v39, %v4443_v46  ;;  %v674_v46 = vmul.f32 0.5, %v4427_v51  ;;  %v1430_v35 = vand.u32 4294901760, %v4536_v9 }
 0x198   : > { %1071 = vmatpush.msra.mxu3 %v4346_v22  ;;  %1162 = vmatpush.msrb.mxu1 %v1161_v61  ;;  %v1167_v62 = vand.u32 4294901760, %v1166_v18  ;;  %v4578_v61 = vand.u32 4294901760, %v1656_v42  ;;  %v1655_v18 = vld [vmem:[#allocation6 + $0x18] sm:$0xff] }
 0x199   : > { %v698_v40 = vadd.f32 1.0, %v697_v0  ;;  %v687_v2 = vadd.f32 1.1283791, %v686_v24  ;;  %v1436_v0 = vand.u32 4294901760, %v4543_v30  ;;  %v1431_v6 = vsub.f32 %v4536_v9, %v1430_v35 }
 0x19a   : > { %1073 = vmatpush.msra.mxu3 %v4360_v33  ;;  %1168 = vmatpush.msrb.mxu1 %v1167_v62  ;;  %v4596_v48 = vsub.f32 %v1656_v42, %v4578_v61 }
 0x19b   : > { %3672 = vrcp.f32 %v698_v40  ;;  %v710_v5 = vand.u32 2147483648, %v698_v40  ;;  %v708_v52 = vand.u32 2147483647, %v698_v40  ;;  %vm704_vm5 = vweird.f32 %v698_v40 }
 0x19c   : > { %1174 = vmatpush.msrb.mxu1 %v1173_v56  ;;  %v688_v53 = vmul.f32 %v687_v2, %v4433_v54  ;;  %v1380_v54 = vld [vmem:[#allocation6 + $0x30] sm:$0xff]  ;;  %v1437_v39 = vsub.f32 %v4543_v30, %v1436_v0  ;;  %v1718_v24 = vand.u32 4294901760, %v4596_v48 }
 0x19d   : > { %v711_v49 = vor.u32 1.1754944e-38, %v710_v5  ;;  %vm709_vm7 = vcmp.eq.f32.partialorder %v708_v52, 8.507059e+37  ;;  %v4538_v21 = vand.u32 4294901760, %v1380_v54 }
 0x19f   : > { %v4554_v36 = vsub.f32 %v1380_v54, %v4538_v21 }
 0x1a1   : > { %v3673_v22 = vpop.eup %3672 }
 0x1a2   : > { %v700_v63 = vmul.f32 %v3673_v22, %v698_v40  ;;  %vm705_vm4 = vweird.f32 %v3673_v22  ;;  %v1657_v40 = vld [vmem:[#allocation6 + $0x58] sm:$0xff] }
 0x1a3   : > { %vm706_vm6 = vmor %vm704_vm5, %vm705_vm4  ;;  %v4576_v11 = vand.u32 4294901760, %v1657_v40 }
 0x1a4   : > { %v701_v41 = vsub.f32 1.0, %v700_v63 }
 0x1a5   : > { %v4593_v62 = vsub.f32 %v1657_v40, %v4576_v11 }
 0x1a6   : > { %v702_v34 = vmul.f32 %v3673_v22, %v701_v41 }
 0x1a8   : > { %v703_v33 = vadd.f32 %v3673_v22, %v702_v34 }
 0x1aa   : > { %v707_v43 = vsel %vm706_vm6, %v3673_v22, %v703_v33  ;;  %v1712_v22 = vand.u32 4294901760, %v4593_v62 }
 0x1ab   : > { %v712_v58 = vsel %vm709_vm7, %v711_v49, %v707_v43 }
 0x1ac   : > { %v713_v50 = vmul.f32 %v712_v58, %v688_v53  ;;  %v1713_v63 = vsub.f32 %v4593_v62, %v1712_v22  ;;  %v3659_v58 = vld [vmem:[#allocation8 + $0x1] ss:$0 sm:$0xff] }
 0x1ae   : > { %v3531_v59 = vclamps-f32 %v713_v50, 1.0  ;;  %v1714_v52 = vand.u32 4294901760, %v1713_v63 }
 0x1b0   : > { %v716_v55 = vadd.f32 1.0, %v3531_v59 }
 0x1b2   : > { %v717_v3 = vmul.f32 %v716_v55, %v674_v46  ;;  %v3660_v46 = vld [vmem:[%s5954_s6] ss:$0 sm:$0xff] }
 0x1b4   : > { %v770_v4 = vand.u32 4294901760, %v717_v3 }
 0x1b6   : > { %876 = vmatmul.f32.vlgmr.msrb.gmra.mxu3 %v770_v4  ;;  %v771_v8 = vsub.f32 %v717_v3, %v770_v4 }
 0x1b7   : > { %1500 = vmatpush.msrb.mxu3 %v4528_v15 }
 0x1b8   : > { %930 = vmatmul.f32.vlgmr.msra.gmra.mxu0 %v771_v8  ;;  %v772_v20 = vand.u32 4294901760, %v771_v8 }
 0x1b9   : > { %1194 = vmatpush.msra.mxu0 %v4478_v16  ;;  %1502 = vmatpush.msrb.mxu3 %v4530_v19  ;;  %v1442_v16 = vand.u32 4294901760, %v4554_v36 }
 0x1ba   : > { %969 = vmatmul.f32.vlgmr.msra.gmra.mxu1 %v772_v20  ;;  %v773_v51 = vsub.f32 %v771_v8, %v772_v20 }
 0x1bb   : > { %1197 = vmatpush.msra.mxu0 %v4490_v45  ;;  %1223 = vmatpush.msra.mxu1 %v4470_v26  ;;  %v4585_v45 = vand.u32 4294901760, %v1655_v18 }
 0x1bc   : > { %v774_v27 = vand.u32 4294901760, %v773_v51  ;;  %1504 = vmatpush.msrb.mxu3 %v4538_v21 }
 0x1bd   : > { %1200 = vmatpush.msra.mxu0 %v4504_v28  ;;  %1225 = vmatpush.msra.mxu1 %v4480_v31  ;;  %v4600_v56 = vsub.f32 %v1655_v18, %v4585_v45  ;;  %v1443_v28 = vsub.f32 %v4554_v36, %v1442_v16 }
 0x1be   : > { %775 = vmatmul.f32.vlgmr.msrb.gmra.mxu2 %v774_v27  ;;  %1075 = vmatmul.f32.vlgmr.msra.gmra.mxu3 %v770_v4 }
 0x1bf   : > { %1203 = vmatpush.msra.mxu0 %v4514_v57  ;;  %1227 = vmatpush.msra.mxu1 %v4487_v44  ;;  %v1438_v57 = vand.u32 4294901760, %v1437_v39  ;;  %v1724_v41 = vand.u32 4294901760, %v4600_v56  ;;  %v1444_v5 = vand.u32 4294901760, %v1443_v28 }
 0x1c0   : > { %1135 = vmatmul.f32.vlgmr.msrb.gmra.mxu0 %v4203_v29  ;;  %1471 = vmatpush.msrb.mxu2 %v4536_v9 }
 0x1c1   : > { %1229 = vmatpush.msra.mxu1 %v4501_v25  ;;  %1252 = vmatpush.msrb.mxu0 %v1153_v37  ;;  %v4574_v37 = vand.u32 4294901760, %v1658_v38  ;;  %v1725_v33 = vsub.f32 %v4600_v56, %v1724_v41 }
 0x1c2   : > { %1176 = vmatmul.f32.vlgmr.msrb.gmra.mxu1 %v4193_v13  ;;  %1474 = vmatpush.msrb.mxu2 %v4543_v30 }
 0x1c3   : > { %1256 = vmatpush.msrb.mxu0 %v1159_v14  ;;  %1283 = vmatpush.msrb.mxu1 %v4470_v26  ;;  %v1448_v26 = vand.u32 4294901760, %v4563_v1  ;;  %v1705_v14 = vsub.f32 %v1658_v38, %v4574_v37  ;;  %v1726_v53 = vand.u32 4294901760, %v1725_v33 }
 0x1c4   : > { %1477 = vmatpush.msrb.mxu2 %v4554_v36  ;;  %1506 = vmatpush.msrb.mxu3 %v4548_v32 }
 0x1c5   : > { %1260 = vmatpush.msrb.mxu0 %v1165_v47  ;;  %1285 = vmatpush.msrb.mxu1 %v4480_v31  ;;  %v1432_v31 = vand.u32 4294901760, %v1431_v6  ;;  %v1706_v47 = vand.u32 4294901760, %v1705_v14 }
 0x1c6   : > { %1038 = vmatmul.f32.vlgmr.msra.gmra.mxu2 %v770_v4  ;;  %1510 = vmatmul.f32.vlgmr.msrb.gmra.mxu3 %v4199_v23 }
 0x1c7   : > { %1264 = vmatpush.msrb.mxu0 %v1171_v12  ;;  %1287 = vmatpush.msrb.mxu1 %v4487_v44  ;;  %v1449_v12 = vsub.f32 %v4563_v1, %v1448_v26  ;;  %v1707_v44 = vsub.f32 %v1705_v14, %v1706_v47 }
 0x1c8   : > { %1206 = vmatmul.f32.vlgmr.msra.gmra.mxu0 %v4196_v17  ;;  %1480 = vmatpush.msrb.mxu2 %v4563_v1 }
 0x1c9   : > { %1289 = vmatpush.msrb.mxu1 %v4501_v25  ;;  %1400 = vmatpush.msra.mxu0 %v4528_v15  ;;  %v1708_v2 = vand.u32 4294901760, %v1707_v44  ;;  %v1719_v25 = vsub.f32 %v4596_v48, %v1718_v24  ;;  %v1450_v34 = vand.u32 4294901760, %v1449_v12 }
 0x1ca   : > { %1233 = vmatmul.f32.vlgmr.msra.gmra.mxu1 %v4199_v23  ;;  %1676 = vmatpush.msra.mxu2 %v4574_v37 }
 0x1cb   : > { %1402 = vmatpush.msra.mxu0 %v4530_v19  ;;  %1433 = vmatpush.msra.mxu1 %v1432_v31  ;;  %v1720_v49 = vand.u32 4294901760, %v1719_v25 }
 0x1cc   : > { %1678 = vmatpush.msra.mxu2 %v4576_v11  ;;  %1709 = vmatpush.msra.mxu3 %v1708_v2 }
 0x1cd   : > { %1404 = vmatpush.msra.mxu0 %v4538_v21  ;;  %1439 = vmatpush.msra.mxu1 %v1438_v57 }
 0x1ce   : > { %1483 = vmatmul.f32.vlgmr.msrb.gmra.mxu2 %v4196_v17  ;;  %1715 = vmatpush.msra.mxu3 %v1714_v52 }
 0x1cf   : > { %1406 = vmatpush.msra.mxu0 %v4548_v32  ;;  %1445 = vmatpush.msra.mxu1 %v1444_v5 }
 0x1d0   : > { %1266 = vmatmul.f32.vlgmr.msrb.gmra.mxu0 %v4193_v13  ;;  %1680 = vmatpush.msra.mxu2 %v4578_v61 }
 0x1d1   : > { %1451 = vmatpush.msra.mxu1 %v1450_v34  ;;  %1529 = vmatpush.msrb.mxu0 %v1430_v35  ;;  %v3661_v35 = vld [vmem:[#allocation8 + $0x2] ss:$0 sm:$0xff] }
 0x1d2   : > { %1291 = vmatmul.f32.vlgmr.msrb.gmra.mxu1 %v4193_v13  ;;  %1682 = vmatpush.msra.mxu2 %v4585_v45 }
 0x1d3   : > { %1533 = vmatpush.msrb.mxu0 %v1436_v0  ;;  %1560 = vmatpush.msrb.mxu1 %v4528_v15 }
 0x1d4   : > { %1721 = vmatpush.msra.mxu3 %v1720_v49  ;;  %1805 = vmatpush.msrb.mxu2 %v1706_v47 }
 0x1d5   : > { %1537 = vmatpush.msrb.mxu0 %v1442_v16  ;;  %1562 = vmatpush.msrb.mxu1 %v4530_v19 }
 0x1d6   : > { %1688 = vmatmul.f32.vlgmr.msra.gmra.mxu2 %v4203_v29  ;;  %1727 = vmatpush.msra.mxu3 %v1726_v53 }
 0x1d7   : > { %1541 = vmatpush.msrb.mxu0 %v1448_v26  ;;  %1564 = vmatpush.msrb.mxu1 %v4538_v21 }
 0x1d8   : > { %1412 = vmatmul.f32.vlgmr.msra.gmra.mxu0 %v4203_v29  ;;  %1729 = vmatmul.f32.vlgmr.msra.gmra.mxu3 %v4193_v13 }
 0x1d9   : > { %1566 = vmatpush.msrb.mxu1 %v4548_v32  ;;  %1747 = vmatpush.msra.mxu0 %v1705_v14 }
 0x1da   : > { %1453 = vmatmul.f32.vlgmr.msra.gmra.mxu1 %v4193_v13  ;;  %1809 = vmatpush.msrb.mxu2 %v1712_v22 }
 0x1db   : > { %1836 = vmatpush.msrb.mxu3 %v4574_v37  ;;  %1750 = vmatpush.msra.mxu0 %v4593_v62 }
 0x1dc   : > { %1776 = vmatpush.msra.mxu1 %v4574_v37  ;;  %1813 = vmatpush.msrb.mxu2 %v1718_v24  ;;  %v3662_v37 = vld [vmem:[#allocation8 + $0x3] ss:$0 sm:$0xff] }
 0x1dd   : > { %1838 = vmatpush.msrb.mxu3 %v4576_v11  ;;  %1753 = vmatpush.msra.mxu0 %v4596_v48 }
 0x1de   : > { %1778 = vmatpush.msra.mxu1 %v4576_v11  ;;  %1817 = vmatpush.msrb.mxu2 %v1724_v41 }
 0x1df   : > { %1840 = vmatpush.msrb.mxu3 %v4578_v61  ;;  %1819 = vmatmul.f32.vlgmr.msrb.gmra.mxu2 %v4193_v13 }
 0x1e0   : > { %1543 = vmatmul.f32.vlgmr.msrb.gmra.mxu0 %v4193_v13  ;;  %1780 = vmatpush.msra.mxu1 %v4578_v61 }
 0x1e1   : > { %1756 = vmatpush.msra.mxu0 %v4600_v56  ;;  %1842 = vmatpush.msrb.mxu3 %v4585_v45 }
 0x1e2   : > { %1568 = vmatmul.f32.vlgmr.msrb.gmra.mxu1 %v4193_v13  ;;  %1844 = vmatmul.f32.vlgmr.msrb.gmra.mxu3 %v4193_v13 }
 0x1e3   : > { %1782 = vmatpush.msra.mxu1 %v4585_v45 }
 0x1e8   : > { %1759 = vmatmul.f32.vlgmr.msra.gmra.mxu0 %v4196_v17 }
 0x1ea   : > { %1786 = vmatmul.f32.vlgmr.msra.gmra.mxu1 %v4199_v23 }
 0x235   : > { %v931_v29 = vpop.f32.mrf.mxu0 }
 0x237   : > { %v970_v43 = vpop.f32.mrf.mxu1 }
 0x239   : > { %v877_v3 = vpop.f32.mrf.mxu3 }
 0x23d   : > { %v1136_v50 = vpop.f32.mrf.mxu0 }
 0x23e   : > { %v1137_v59 = vadd.f32 %v3659_v58, %v1136_v50 }
 0x23f   : > { %v1177_v55 = vpop.f32.mrf.mxu1 }
 0x240   : > { %v1178_v4 = vadd.f32 %v1177_v55, %v1137_v59 }
 0x241   : > { %v776_v60 = vpop.f32.mrf.mxu2  ;;  %v1076_v9 = vpop.f32.mrf.mxu3 }
 0x242   : > { %v777_v13 = vadd.f32 %v3660_v46, %v776_v60 }
 0x244   : > { %v878_v7 = vadd.f32 %v877_v3, %v777_v13 }
 0x245   : > { %v1207_v15 = vpop.f32.mrf.mxu0 }
 0x246   : > { %v1208_v8 = vadd.f32 %v1207_v15, %v1178_v4  ;;  %v932_v17 = vadd.f32 %v931_v29, %v878_v7  ;;  %v3990_v7 = vmov 2   ;;  %v3991_v15 = vmov 1  }
 0x247   : > { %v1234_v19 = vpop.f32.mrf.mxu1  ;;  %3655 = vset.pattern.permute.xlu0 %v3990_v7  ;;  %3654 = vset.pattern.permute.xlu2 %v3991_v15 }
 0x248   : > { %v971_v23 = vadd.f32 %v970_v43, %v932_v17  ;;  %v1235_v20 = vadd.f32 %v1234_v19, %v1208_v8  ;;  %v3992_v8 = vmov 0   ;;  %v1950_v17 = vld [vmem:[#allocation14 + $0x78] sm:$0xff]  ;;  %v1949_v19 = vld [vmem:[#allocation14 + $0x70] sm:$0xff] }
 0x249   : > { %v1039_v54 = vpop.f32.mrf.mxu2  ;;  %v1511_v40 = vpop.f32.mrf.mxu3  ;;  %3653 = vset.pattern.permute.xlu1 %v3992_v8 }
 0x24a   : > { %v1040_v51 = vadd.f32 %v1039_v54, %v971_v23  ;;  %v1948_v23 = vld [vmem:[#allocation14 + $0x68] sm:$0xff] }
 0x24c   : > { %v1077_v21 = vadd.f32 %v1076_v9, %v1040_v51  ;;  %v4696_v51 = vand.u32 4294901760, %v1949_v19  ;;  %v4698_v9 = vand.u32 4294901760, %v1948_v23 }
 0x24d   : > { %v1267_v10 = vpop.f32.mrf.mxu0 }
 0x24e   : > { %v1268_v27 = vadd.f32 %v1267_v10, %v1235_v20  ;;  %1079 = vmax.xlane.f32.xlu1 %v1077_v21  ;;  %v4694_v20 = vand.u32 4294901760, %v1950_v17  ;;  %v1946_v10 = vld [vmem:[#allocation14 + $0x58] sm:$0xff] }
 0x24f   : > { %v1292_v30 = vpop.f32.mrf.mxu1 }
 0x250   : > { %v4660_v32 = vadd.f32 %v1292_v30, %v1268_v27  ;;  %v1945_v27 = vld [vmem:[#allocation14 + $0x50] sm:$0xff]  ;;  %2200 = vmatpush.msra.mxu3 %v4694_v20  ;;  %2004 = vmatpush.msrb.mxu0 %v4694_v20 }
 0x251   : > { %v1484_v0 = vpop.f32.mrf.mxu2 }
 0x252   : > { %v1298_v36 = vmul.f32 %v4660_v32, %v4660_v32  ;;  %2202 = vmatpush.msra.mxu3 %v4696_v51  ;;  %2006 = vmatpush.msrb.mxu0 %v4696_v51 }
 0x254   : > { %1299 = vadd.xlane.f32.xlu2 %v1298_v36  ;;  %v4704_v36 = vand.u32 4294901760, %v1945_v27  ;;  %2204 = vmatpush.msra.mxu3 %v4698_v9 }
 0x255   : > { %v1413_v1 = vpop.f32.mrf.mxu0  ;;  %2008 = vmatpush.msrb.mxu0 %v4698_v9 }
 0x256   : > { %v1414_v6 = vadd.f32 %v3661_v35, %v1413_v1  ;;  %1295 = vadd.xlane.f32.xlu1 %v4660_v32  ;;  %v4702_v35 = vand.u32 4294901760, %v1946_v10  ;;  %v1943_v1 = vld [vmem:[#allocation14 + $0x40] sm:$0xff] }
 0x257   : > { %v1454_v38 = vpop.f32.mrf.mxu1 }
 0x258   : > { %v1455_v42 = vadd.f32 %v1454_v38, %v1414_v6  ;;  %v4709_v38 = vsub.f32 %v1950_v17, %v4694_v20 }
 0x259   : > { %v1689_v11 = vpop.f32.mrf.mxu2 }
 0x25a   : > { %v1485_v16 = vadd.f32 %v1484_v0, %v1455_v42  ;;  %v1690_v45 = vadd.f32 %v3662_v37, %v1689_v11  ;;  %v1944_v0 = vld [vmem:[#allocation14 + $0x48] sm:$0xff]  ;;  %v4715_v42 = vsub.f32 %v1948_v23, %v4698_v9  ;;  %2147 = vmatpush.msra.mxu2 %v4709_v38 }
 0x25b   : > { %v1730_v14 = vpop.f32.mrf.mxu3 }
 0x25c   : > { %v1512_v61 = vadd.f32 %v1511_v40, %v1485_v16  ;;  %v1731_v56 = vadd.f32 %v1730_v14, %v1690_v45  ;;  %v4712_v40 = vsub.f32 %v1949_v19, %v4696_v51  ;;  %v4719_v16 = vand.u32 4294901760, %v1944_v0 }
 0x25d   : > { %v1544_v18 = vpop.f32.mrf.mxu0  ;;  %v4737_v14 = vand.u32 4294901760, %v1943_v1 }
 0x25e   : > { %v1545_v39 = vadd.f32 %v1544_v18, %v1512_v61  ;;  %v4727_v61 = vsub.f32 %v1946_v10, %v4702_v35  ;;  %v4730_v18 = vsub.f32 %v1945_v27, %v4704_v36  ;;  %v2052_v45 = vand.u32 4294901760, %v4712_v40  ;;  %2150 = vmatpush.msra.mxu2 %v4712_v40 }
 0x25f   : > { %v1569_v26 = vpop.f32.mrf.mxu1 }
 0x260   : > { %v4665_v62 = vadd.f32 %v1569_v26, %v1545_v39  ;;  %v2046_v39 = vand.u32 4294901760, %v4709_v38  ;;  %v2058_v26 = vand.u32 4294901760, %v4715_v42  ;;  %2153 = vmatpush.msra.mxu2 %v4715_v42 }
 0x262   : > { %1572 = vadd.xlane.f32.xlu2 %v4665_v62  ;;  %v1575_v48 = vmul.f32 %v4665_v62, %v4665_v62  ;;  %v1820_v22 = vpop.f32.mrf.mxu2 }
 0x264   : > { %1576 = vadd.xlane.f32.xlu0 %v1575_v48 }
 0x265   : > { %v1760_v31 = vpop.f32.mrf.mxu0  ;;  %v1845_v57 = vpop.f32.mrf.mxu3 }
 0x266   : > { %v1761_v28 = vadd.f32 %v1760_v31, %v1731_v56  ;;  %v4744_v31 = vsub.f32 %v1944_v0, %v4719_v16 }
 0x267   : > { %v1787_v47 = vpop.f32.mrf.mxu1 }
 0x268   : > { %v1788_v24 = vadd.f32 %v1787_v47, %v1761_v28  ;;  %v2047_v28 = vsub.f32 %v4709_v38, %v2046_v39  ;;  %v2053_v47 = vsub.f32 %v4712_v40, %v2052_v45  ;;  %v6031_v40 = vand.u32 4294901760, %v4727_v61 }
 0x26a   : > { %v1821_v12 = vadd.f32 %v1820_v22, %v1788_v24  ;;  %v2059_v22 = vsub.f32 %v4715_v42, %v2058_v26  ;;  %v5965_v24 = vand.u32 4294901760, %v4727_v61 }
 0x26c   : > { %v4670_v44 = vadd.f32 %v1845_v57, %v1821_v12  ;;  %v5963_v12 = vand.u32 4294901760, %v4730_v18 }
 0x26e   : > { %1848 = vadd.xlane.f32.xlu2 %v4670_v44  ;;  %v1851_v63 = vmul.f32 %v4670_v44, %v4670_v44  ;;  %v2077_v7 = vsub.f32 %v4730_v18, %v5963_v12 }
 0x270   : > { %1852 = vadd.xlane.f32.xlu0 %v1851_v63  ;;  %v1942_v63 = vld [vmem:[#allocation14 + $0x38] sm:$0xff] }
 0x2c1   : > { %v1080_v41 = vpop.xlane.xlu1 %1079 }
 0x2c2   : > { %v1081_v5 = vsub.f32 %v1077_v21, %v1080_v41  ;;  %v1947_v21 = vld [vmem:[#allocation14 + $0x60] sm:$0xff]  ;;  %v1941_v41 = vld [vmem:[#allocation14 + $0x30] sm:$0xff] }
 0x2c3   : > { %v4700_v30 = vand.u32 4294901760, %v1947_v21 }
 0x2c4   : > { %v1082_v2 = vmul.f32 1.442695, %v1081_v5  ;;  %v2048_v5 = vand.u32 4294901760, %v2047_v28 }
 0x2c5   : > { %v4724_v11 = vsub.f32 %v1947_v21, %v4700_v30  ;;  %2206 = vmatpush.msra.mxu3 %v4700_v30  ;;  %2010 = vmatpush.msrb.mxu0 %v4700_v30  ;;  %v1938_v21 = vld [vmem:[#allocation14 + $0x18] sm:$0xff] }
 0x2c6   : > { %3674 = vpow2.f32 %v1082_v2  ;;  %v2054_v2 = vand.u32 4294901760, %v2053_v47  ;;  %2049 = vmatpush.msrb.mxu1 %v2048_v5  ;;  %v4814_v47 = vand.u32 4294901760, %v1938_v21  ;;  %v1936_v5 = vld [vmem:[#allocation14 + $0x8] sm:$0xff] }
 0x2c7   : > { %v1300_v34 = vpop.xlane.xlu2 %1299  ;;  %v5967_v56 = vand.u32 4294901760, %v4724_v11  ;;  %2156 = vmatpush.msra.mxu2 %v4724_v11  ;;  %2208 = vmatpush.msra.mxu3 %v4702_v35 }
 0x2c8   : > { %v1301_v59 = vmul.f32 0.0625, %v1300_v34  ;;  %2012 = vmatpush.msrb.mxu0 %v4702_v35  ;;  %2055 = vmatpush.msrb.mxu1 %v2054_v2 }
 0x2c9   : > { %v1296_v33 = vpop.xlane.xlu1 %1295  ;;  %v2065_v34 = vsub.f32 %v4724_v11, %v5967_v56  ;;  %2159 = vmatpush.msra.mxu2 %v4727_v61  ;;  %2210 = vmatpush.msra.mxu3 %v4704_v36 }
 0x2ca   : > { %v4680_v29 = vmul.f32 0.0625, %v1296_v33  ;;  %v1940_v33 = vld [vmem:[#allocation14 + $0x28] sm:$0xff]  ;;  %2014 = vmatpush.msrb.mxu0 %v4704_v36 }
 0x2cb   : > { %v4788_v15 = vand.u32 4294901760, %v1940_v33  ;;  %v2066_v8 = vand.u32 4294901760, %v2065_v34  ;;  %2162 = vmatpush.msra.mxu2 %v4730_v18  ;;  %2212 = vmatpush.msra.mxu3 %v4719_v16 }
 0x2cc   : > { %v4675_v25 = vpop.eup %3674  ;;  %v1302_v50 = vmul.f32 %v4680_v29, %v4680_v29  ;;  %2016 = vmatpush.msrb.mxu0 %v4719_v16 }
 0x2cd   : > { %1084 = vadd.xlane.f32.xlu1 %v4675_v25  ;;  %v4812_v28 = vsub.f32 %v1940_v33, %v4788_v15  ;;  %2165 = vmatpush.msra.mxu2 %v4744_v31 }
 0x2ce   : > { %v1303_v55 = vsub.f32 %v1301_v59, %v1302_v50  ;;  %v2060_v50 = vand.u32 4294901760, %v2059_v22  ;;  %v2071_v59 = vsub.f32 %v4727_v61, %v5965_v24  ;;  %2214 = vmatpush.msra.mxu3 %v4737_v14  ;;  %2018 = vmatpush.msrb.mxu0 %v4737_v14 }
 0x2d0   : > { %v1304_v60 = vmax.f32 %v1303_v55, 0.0  ;;  %v4780_v55 = vand.u32 4294901760, %v1941_v41  ;;  %2061 = vmatpush.msrb.mxu1 %v2060_v50  ;;  %v2072_v0 = vand.u32 4294901760, %v2071_v59 }
 0x2d2   : > { %v4688_v13 = vadd.f32 1e-05, %v1304_v60  ;;  %v4796_v23 = vsub.f32 %v1941_v41, %v4780_v55  ;;  %2067 = vmatpush.msrb.mxu1 %v2066_v8  ;;  %v4844_v8 = vsub.f32 %v1938_v21, %v4814_v47 }
 0x2d4   : > { %v5964_v41 = vand.u32 4294901760, %v4796_v23  ;;  %vm1313_vm8 = vweird.f32 %v4688_v13  ;;  %2073 = vmatpush.msrb.mxu1 %v2072_v0 }
 0x2d5   : > { %v1573_v52 = vpop.xlane.xlu2 %1572 }
 0x2d6   : > { %v4678_v49 = vmul.f32 0.0625, %v1573_v52  ;;  %v4767_v52 = vsub.f32 %v1943_v1, %v4737_v14 }
 0x2d7   : > { %v1577_v53 = vpop.xlane.xlu0 %1576 }
 0x2d8   : > { %v1579_v43 = vmul.f32 %v4678_v49, %v4678_v49  ;;  %v1578_v58 = vmul.f32 0.0625, %v1577_v53  ;;  %v5961_v17 = vand.u32 4294901760, %v4767_v52  ;;  %2168 = vmatpush.msra.mxu2 %v4767_v52 }
 0x2da   : > { %v1580_v46 = vsub.f32 %v1578_v58, %v1579_v43  ;;  %v5962_v43 = vand.u32 4294901760, %v4744_v31 }
 0x2dc   : > { %v1581_v3 = vmax.f32 %v1580_v46, 0.0  ;;  %v4778_v46 = vand.u32 4294901760, %v1942_v63  ;;  %v2083_v1 = vsub.f32 %v4744_v31, %v5962_v43 }
 0x2de   : > { %v4686_v4 = vadd.f32 1e-05, %v1581_v3  ;;  %v1939_v3 = vld [vmem:[#allocation14 + $0x20] sm:$0xff]  ;;  %v4793_v19 = vsub.f32 %v1942_v63, %v4778_v46  ;;  %v2089_v63 = vsub.f32 %v4767_v52, %v5961_v17  ;;  %v2084_v59 = vand.u32 4294901760, %v2083_v1  ;;  %2216 = vmatpush.msra.mxu3 %v4778_v46  ;;  %2020 = vmatpush.msrb.mxu0 %v4778_v46 }
 0x2df   : > { %v4800_v10 = vand.u32 4294901760, %v1939_v3  ;;  %v2101_v17 = vsub.f32 %v4796_v23, %v5964_v41  ;;  %v2118_v41 = vand.u32 4294901760, %v4844_v8 }
 0x2e0   : > { %3676 = vrsqrt.f32 %v4686_v4  ;;  %vm1590_vm9 = vweird.f32 %v4686_v4  ;;  %2171 = vmatpush.msra.mxu2 %v4793_v19  ;;  %2218 = vmatpush.msra.mxu3 %v4780_v55 }
 0x2e1   : > { %3678 = vrsqrt.f32 %v4688_v13  ;;  %v4828_v34 = vsub.f32 %v1939_v3, %v4800_v10  ;;  %v5966_v3 = vand.u32 4294901760, %v4812_v28  ;;  %2022 = vmatpush.msrb.mxu0 %v4780_v55  ;;  %v2102_v24 = vand.u32 4294901760, %v2101_v17 }
 0x2e2   : > { %2174 = vmatpush.msra.mxu2 %v4796_v23  ;;  %2220 = vmatpush.msra.mxu3 %v4788_v15 }
 0x2e3   : > { %v5968_v12 = vand.u32 4294901760, %v4828_v34  ;;  %2024 = vmatpush.msrb.mxu0 %v4788_v15 }
 0x2e4   : > { %2177 = vmatpush.msra.mxu2 %v4812_v28  ;;  %2222 = vmatpush.msra.mxu3 %v4800_v10 }
 0x2e5   : > { %v2113_v56 = vsub.f32 %v4828_v34, %v5968_v12  ;;  %2026 = vmatpush.msrb.mxu0 %v4800_v10 }
 0x2e6   : > { %v4692_v54 = vpop.eup %3676  ;;  %2180 = vmatpush.msra.mxu2 %v4828_v34  ;;  %2224 = vmatpush.msra.mxu3 %v4814_v47 }
 0x2e7   : > { %v4706_v6 = vpop.eup %3678  ;;  %v1585_v37 = vmul.f32 %v4692_v54, %v4686_v4  ;;  %vm1591_vm10 = vweird.f32 %v4692_v54  ;;  %2028 = vmatpush.msrb.mxu0 %v4814_v47 }
 0x2e8   : > { %v1308_v48 = vmul.f32 %v4706_v6, %v4688_v13  ;;  %vm1314_vm12 = vweird.f32 %v4706_v6  ;;  %vm4873_vm13 = vmor %vm1590_vm9, %vm1591_vm10  ;;  %2183 = vmatpush.msra.mxu2 %v4844_v8 }
 0x2e9   : > { %v1586_v57 = vmul.f32 %v4692_v54, %v1585_v37  ;;  %v5960_v37 = vand.u32 4294901760, %v4793_v19  ;;  %vm4905_vm0 = vmor %vm1313_vm8, %vm1314_vm12 }
 0x2ea   : > { %v1309_v53 = vmul.f32 %v4706_v6, %v1308_v48  ;;  %v1937_v48 = vld [vmem:[#allocation14 + $0x10] sm:$0xff] }
 0x2eb   : > { %v1587_v60 = vmul.f32 0.5, %v1586_v57  ;;  %v2078_v57 = vand.u32 4294901760, %v2077_v7  ;;  %v4830_v33 = vand.u32 4294901760, %v1937_v48  ;;  %v1935_v7 = vld [vmem:[#allocation14] sm:$0xff] }
 0x2ec   : > { %v4802_v27 = vmul.f32 0.5, %v1309_v53 }
 0x2ed   : > { %v1588_v22 = vsub.f32 1.5, %v1587_v60  ;;  %v2095_v60 = vsub.f32 %v4793_v19, %v5960_v37  ;;  %2079 = vmatpush.msrb.mxu1 %v2078_v57  ;;  %v2090_v37 = vand.u32 4294901760, %v2089_v63  ;;  %v4860_v21 = vsub.f32 %v1937_v48, %v4830_v33  ;;  %2226 = vmatpush.msra.mxu3 %v4830_v33 }
 0x2ee   : > { %v1311_v53 = vsub.f32 1.5, %v4802_v27  ;;  %v4846_v27 = vand.u32 4294901760, %v1936_v5  ;;  %2030 = vmatpush.msrb.mxu0 %v4830_v33 }
 0x2ef   : > { %v4849_v0 = vmul.f32 %v4692_v54, %v1588_v22  ;;  %v4862_v22 = vand.u32 4294901760, %v1935_v7  ;;  %2085 = vmatpush.msrb.mxu1 %v2084_v59  ;;  %2186 = vmatpush.msra.mxu2 %v4860_v21 }
 0x2f0   : > { %v4884_v59 = vsub.f32 %v1936_v5, %v4846_v27  ;;  %v2124_v5 = vand.u32 4294901760, %v4860_v21  ;;  %2228 = vmatpush.msra.mxu3 %v4846_v27  ;;  %2032 = vmatpush.msrb.mxu0 %v4846_v27 }
 0x2f1   : > { %2091 = vmatpush.msrb.mxu1 %v2090_v37  ;;  %v1593_v37 = vsel %vm4873_vm13, %v4692_v54, %v4849_v0  ;;  %v2114_v54 = vand.u32 4294901760, %v2113_v56 }
 0x2f2   : > { %v2130_v12 = vand.u32 4294901760, %v4884_v59  ;;  %2189 = vmatpush.msra.mxu2 %v4884_v59  ;;  %2230 = vmatpush.msra.mxu3 %v4862_v22 }
 0x2f3   : > { %2034 = vmatpush.msrb.mxu0 %v4862_v22 }
 0x2f4   : > { %v2131_v0 = vsub.f32 %v4884_v59, %v2130_v12 }
 0x2f5   : > { %2241 = vmatpush.msra.mxu0 %v2046_v39  ;;  %v1853_v39 = vpop.xlane.xlu0 %1852 }
 0x2f7   : > { %2245 = vmatpush.msra.mxu0 %v2052_v45 }
 0x2f9   : > { %2249 = vmatpush.msra.mxu0 %v2058_v26  ;;  %v1854_v26 = vmul.f32 0.0625, %v1853_v39 }
 0x340   : > { %v4772_v58 = vpop.xlane.xlu1 %1084 }
 0x341   : > { %3680 = vrcp.f32 %v4772_v58  ;;  %v1097_v43 = vand.u32 2147483648, %v4772_v58  ;;  %v1095_v63 = vand.u32 2147483647, %v4772_v58  ;;  %vm1091_vm14 = vweird.f32 %v4772_v58 }
 0x343   : > { %vm1096_vm1 = vcmp.eq.f32.partialorder %v1095_v63, 8.507059e+37  ;;  %v4946_v63 = vld [vmem:[#allocation14 + $0xf8] sm:$0xff] }
 0x344   : > { %v4955_v17 = vand.u32 4294901760, %v4946_v63 }
 0x347   : > { %v4821_v2 = vpop.eup %3680 }
 0x348   : > { %v1087_v50 = vmul.f32 %v4821_v2, %v4772_v58  ;;  %vm1092_vm11 = vweird.f32 %v4821_v2  ;;  %v4899_v58 = vsub.f32 %v1935_v7, %v4862_v22 }
 0x349   : > { %vm1093_vm15 = vmor %vm1091_vm14, %vm1092_vm11 }
 0x34a   : > { %v1088_v1 = vsub.f32 1.0, %v1087_v50  ;;  %v2096_v50 = vand.u32 4294901760, %v2095_v60  ;;  %v1312_v60 = vmul.f32 %v4706_v6, %v1311_v53  ;;  %2192 = vmatpush.msra.mxu2 %v4899_v58 }
 0x34c   : > { %v1089_v57 = vmul.f32 %v4821_v2, %v1088_v1  ;;  %v2107_v1 = vsub.f32 %v4812_v28, %v5966_v3  ;;  %v1098_v3 = vor.u32 1.1754944e-38, %v1097_v43  ;;  %v1582_v43 = vsub.f32 %v4665_v62, %v4678_v49  ;;  %2097 = vmatpush.msrb.mxu1 %v2096_v50  ;;  %2345 = vmatpush.msrb.mxu2 %v4955_v17 }
 0x34d   : > { %v1316_v49 = vsel %vm4905_vm0, %v4706_v6, %v1312_v60  ;;  %v3663_v6 = vld [vmem:[#allocation9 + $0x2] ss:$0 sm:$0xff]  ;;  %v3664_v60 = vld [vmem:[#allocation11 + $0x2] ss:$0 sm:$0xff] }
 0x34e   : > { %v1090_v4 = vadd.f32 %v4821_v2, %v1089_v57  ;;  %v2108_v13 = vand.u32 4294901760, %v2107_v1  ;;  %v2119_v57 = vsub.f32 %v4844_v8, %v2118_v41  ;;  %2103 = vmatpush.msrb.mxu1 %v2102_v24  ;;  %v1594_v24 = vmul.f32 %v1593_v37, %v1582_v43  ;;  %v3668_v37 = vld [vmem:[#allocation11 + $0x1] ss:$0 sm:$0xff] }
 0x350   : > { %v1094_v53 = vsel %vm1093_vm15, %v4821_v2, %v1090_v4  ;;  %v2125_v2 = vsub.f32 %v4860_v21, %v2124_v5  ;;  %2109 = vmatpush.msrb.mxu1 %v2108_v13  ;;  %v2120_v56 = vand.u32 4294901760, %v2119_v57  ;;  %v1599_v1 = vmul.f32 %v3663_v6, %v1594_v24 }
 0x351   : > { %v1099_v7 = vsel %vm1096_vm1, %v1098_v3, %v1094_v53  ;;  %v2136_v3 = vand.u32 4294901760, %v4899_v58  ;;  %v2132_v4 = vand.u32 4294901760, %v2131_v0  ;;  %v6034_v24 = vand.u32 4294901760, %v4767_v52  ;;  %v1965_v0 = vld [vmem:[#allocation14 + $0xf0] sm:$0xff] }
 0x352   : > { %v4924_v62 = vmul.f32 %v4675_v25, %v1099_v7  ;;  %v1305_v25 = vsub.f32 %v4660_v32, %v4680_v29  ;;  %v3667_v29 = vld [vmem:[#allocation9 + $0x1] ss:$0 sm:$0xff]  ;;  %2115 = vmatpush.msrb.mxu1 %v2114_v54  ;;  %v2126_v50 = vand.u32 4294901760, %v2125_v2  ;;  %v1849_v7 = vpop.xlane.xlu2 %1848  ;;  %v4962_v13 = vadd.f32 %v3664_v60, %v1599_v1 }
 0x353   : > { %v2137_v48 = vsub.f32 %v4899_v58, %v2136_v3  ;;  %v4970_v38 = vmul.f32 0.0625, %v1849_v7  ;;  %v6030_v54 = vand.u32 4294901760, %v4724_v11  ;;  %v6032_v11 = vand.u32 4294901760, %v4730_v18 }
 0x354   : > { %1926 = vperm.xlu0 %3655, %v4924_v62   ;;  %1650 = vperm.xlu2 %3654, %v4924_v62   ;;  %v1317_v32 = vmul.f32 %v1316_v49, %v1305_v25  ;;  %v4974_v49 = vmul.f32 0.70710677, %v4962_v13  ;;  %v6036_v6 = vand.u32 4294901760, %v4796_v23  ;;  %v6037_v52 = vand.u32 4294901760, %v4812_v28 }
 0x355   : > { %1374 = vperm.xlu1 %3653, %v4924_v62   ;;  %2121 = vmatpush.msrb.mxu1 %v2120_v56  ;;  %v2138_v53 = vand.u32 4294901760, %v2137_v48  ;;  %v1855_v45 = vmul.f32 %v4970_v38, %v4970_v38  ;;  %v6038_v56 = vand.u32 4294901760, %v4828_v34  ;;  %v5045_v58 = vsub.f32 %v4946_v63, %v4955_v17 }
 0x356   : > { %v1322_v43 = vmul.f32 %v3667_v29, %v1317_v32  ;;  %2253 = vmatpush.msra.mxu0 %v6030_v54  ;;  %v1964_v29 = vld [vmem:[#allocation14 + $0xe8] sm:$0xff] }
 0x357   : > { %2127 = vmatpush.msrb.mxu1 %v2126_v50  ;;  %v1856_v2 = vsub.f32 %v1854_v26, %v1855_v45  ;;  %v2387_v1 = vand.u32 4294901760, %v5045_v58  ;;  %v5054_v63 = vand.u32 4294901760, %v1964_v29  ;;  %v1962_v26 = vld [vmem:[#allocation14 + $0xd8] sm:$0xff] }
 0x358   : > { %v4968_v57 = vadd.f32 %v3668_v37, %v1322_v43  ;;  %2257 = vmatpush.msra.mxu0 %v6031_v40  ;;  %v1963_v37 = vld [vmem:[#allocation14 + $0xe0] sm:$0xff] }
 0x359   : > { %2133 = vmatpush.msrb.mxu1 %v2132_v4  ;;  %v1857_v18 = vmax.f32 %v1856_v2, 0.0  ;;  %v2388_v7 = vsub.f32 %v5045_v58, %v2387_v1  ;;  %v5070_v54 = vand.u32 4294901760, %v1963_v37  ;;  %v5073_v40 = vsub.f32 %v1964_v29, %v5054_v63 }
 0x35a   : > { %v4982_v42 = vmul.f32 0.70710677, %v4968_v57  ;;  %2261 = vmatpush.msra.mxu0 %v6032_v11 }
 0x35b   : > { %2139 = vmatpush.msrb.mxu1 %v2138_v53  ;;  %v5980_v2 = vand.u32 4294901760, %v5073_v40 }
 0x35c   : > { %v1330_v61 = vmul.f32 %v4982_v42, %v4982_v42 }
 0x35d   : > { %2308 = vmatpush.msra.mxu1 %v4694_v20  ;;  %v1607_v20 = vmul.f32 %v4974_v49, %v4974_v49 }
 0x35f   : > { %2310 = vmatpush.msra.mxu1 %v4696_v51  ;;  %v6033_v51 = vand.u32 4294901760, %v4744_v31  ;;  %v4996_v25 = vmin.f32 %v1607_v20, 16.0 }
 0x361   : > { %2312 = vmatpush.msra.mxu1 %v4698_v9  ;;  %2265 = vmatpush.msra.mxu0 %v6033_v51  ;;  %v6035_v9 = vand.u32 4294901760, %v4793_v19  ;;  %v1620_v31 = vmul.f32 3.8918573e-05, %v4996_v25  ;;  %v1609_v34 = vmul.f32 2.1237322e-06, %v4996_v25  ;;  %v2389_v51 = vand.u32 4294901760, %v2388_v7 }
 0x363   : > { %2314 = vmatpush.msra.mxu1 %v4700_v30  ;;  %2269 = vmatpush.msra.mxu0 %v6034_v24  ;;  %v5004_v30 = vmin.f32 %v1330_v61, 16.0  ;;  %v1621_v19 = vadd.f32 0.001143296, %v1620_v31  ;;  %v1610_v59 = vadd.f32 0.00028619796, %v1609_v34  ;;  %v5081_v24 = vand.u32 4294901760, %v1962_v26 }
 0x364   : > { %2390 = vmatpush.msrb.mxu3 %v2389_v51 }
 0x365   : > { %2316 = vmatpush.msra.mxu1 %v4702_v35  ;;  %2273 = vmatpush.msra.mxu0 %v6035_v9  ;;  %v1343_v35 = vmul.f32 3.8918573e-05, %v5004_v30  ;;  %v1611_v32 = vmul.f32 %v1610_v59, %v4996_v25  ;;  %v1332_v50 = vmul.f32 2.1237322e-06, %v5004_v30  ;;  %v1858_v9 = vsub.f32 %v4670_v44, %v4970_v38 }
 0x366   : > { %v5100_v44 = vsub.f32 %v1962_v26, %v5081_v24 }
 0x367   : > { %2318 = vmatpush.msra.mxu1 %v4704_v36  ;;  %2277 = vmatpush.msra.mxu0 %v6036_v6  ;;  %v1859_v36 = vadd.f32 1e-05, %v1857_v18  ;;  %v1612_v45 = vadd.f32 0.0036580483, %v1611_v32  ;;  %v1333_v20 = vadd.f32 0.00028619796, %v1332_v50  ;;  %v5091_v6 = vsub.f32 %v1963_v37, %v5070_v54 }
 0x369   : > { %2320 = vmatpush.msra.mxu1 %v4719_v16  ;;  %2281 = vmatpush.msra.mxu0 %v6037_v52  ;;  %v1344_v16 = vadd.f32 0.001143296, %v1343_v35  ;;  %3682 = vrsqrt.f32 %v1859_v36  ;;  %vm1866_vm2 = vweird.f32 %v1859_v36  ;;  %v1961_v35 = vld [vmem:[#allocation14 + $0xd0] sm:$0xff]  ;;  %v1613_v38 = vmul.f32 %v1612_v45, %v4996_v25 }
 0x36b   : > { %2322 = vmatpush.msra.mxu1 %v4737_v14  ;;  %2285 = vmatpush.msra.mxu0 %v6038_v56  ;;  %v1622_v14 = vmul.f32 %v1621_v19, %v4996_v25  ;;  %v5097_v19 = vand.u32 4294901760, %v1961_v35  ;;  %v5978_v56 = vand.u32 4294901760, %v5091_v6  ;;  %v1614_v59 = vadd.f32 0.05243302, %v1613_v38 }
 0x36d   : > { %2324 = vmatpush.msra.mxu1 %v4778_v46  ;;  %2289 = vmatpush.msra.mxu0 %v2118_v41  ;;  %v1345_v46 = vmul.f32 %v1344_v16, %v5004_v30  ;;  %v1960_v16 = vld [vmem:[#allocation14 + $0xc8] sm:$0xff] }
 0x36f   : > { %2326 = vmatpush.msra.mxu1 %v4780_v55  ;;  %2293 = vmatpush.msra.mxu0 %v2124_v5  ;;  %v1623_v55 = vadd.f32 0.014752088, %v1622_v14  ;;  %v5031_v23 = vpop.eup %3682  ;;  %v1334_v14 = vmul.f32 %v1333_v20, %v5004_v30 }
 0x370   : > { %v1861_v28 = vmul.f32 %v5031_v23, %v1859_v36  ;;  %vm1867_vm3 = vweird.f32 %v5031_v23  ;;  %v2400_v36 = vsub.f32 %v5073_v40, %v5980_v2 }
 0x371   : > { %2328 = vmatpush.msra.mxu1 %v4788_v15  ;;  %2297 = vmatpush.msra.mxu0 %v2130_v12  ;;  %v1346_v15 = vadd.f32 0.014752088, %v1345_v46  ;;  %vm5061_vm4 = vmor %vm1866_vm2, %vm1867_vm3 }
 0x372   : > { %v1862_v12 = vmul.f32 %v5031_v23, %v1861_v28  ;;  %v5112_v28 = vsub.f32 %v1961_v35, %v5097_v19 }
 0x373   : > { %2330 = vmatpush.msra.mxu1 %v4800_v10  ;;  %2301 = vmatpush.msra.mxu0 %v2136_v3  ;;  %v1624_v10 = vmul.f32 %v1623_v55, %v4996_v25  ;;  %v1347_v41 = vmul.f32 %v1346_v15, %v5004_v30  ;;  %v2401_v55 = vand.u32 4294901760, %v2400_v36  ;;  %v5109_v15 = vand.u32 4294901760, %v1960_v16 }
 0x374   : > { %v1863_v21 = vmul.f32 0.5, %v1862_v12  ;;  %v5976_v34 = vand.u32 4294901760, %v5112_v28 }
 0x375   : > { %2332 = vmatpush.msra.mxu1 %v4814_v47  ;;  %v1625_v47 = vadd.f32 0.112945676, %v1624_v10  ;;  %v1348_v8 = vadd.f32 0.112945676, %v1347_v41  ;;  %v2406_v10 = vsub.f32 %v5091_v6, %v5978_v56  ;;  %v1959_v41 = vld [vmem:[#allocation14 + $0xc0] sm:$0xff] }
 0x376   : > { %v2418_v32 = vsub.f32 %v5112_v28, %v5976_v34 }
 0x377   : > { %2334 = vmatpush.msra.mxu1 %v4830_v33  ;;  %v1626_v33 = vmul.f32 %v1625_v47, %v4996_v25  ;;  %v1349_v5 = vmul.f32 %v1348_v8, %v5004_v30  ;;  %v5123_v8 = vand.u32 4294901760, %v1959_v41 }
 0x378   : > { %v2419_v26 = vand.u32 4294901760, %v2418_v32 }
 0x379   : > { %2336 = vmatpush.msra.mxu1 %v4846_v27  ;;  %v1864_v27 = vsub.f32 1.5, %v1863_v21  ;;  %v1627_v3 = vadd.f32 0.4994258, %v1626_v33  ;;  %v1350_v48 = vadd.f32 0.4994258, %v1349_v5  ;;  %v5126_v21 = vsub.f32 %v1960_v16, %v5109_v15 }
 0x37a   : > { %v3665_v33 = vld [vmem:[#allocation9 + $0x3] ss:$0 sm:$0xff]  ;;  %v2407_v5 = vand.u32 4294901760, %v2406_v10  ;;  %v5137_v37 = vsub.f32 %v1959_v41, %v5123_v8 }
 0x37b   : > { %2338 = vmatpush.msra.mxu1 %v4862_v22  ;;  %v5047_v22 = vand.u32 4294901760, %v1965_v0  ;;  %v1865_v4 = vmul.f32 %v5031_v23, %v1864_v27  ;;  %v1628_v43 = vmul.f32 %v1627_v3, %v4996_v25  ;;  %v1351_v11 = vmul.f32 %v1350_v48, %v5004_v30  ;;  %v1958_v27 = vld [vmem:[#allocation14 + $0xb8] sm:$0xff]  ;;  %v1957_v48 = vld [vmem:[#allocation14 + $0xb0] sm:$0xff] }
 0x37c   : > { %v1335_v3 = vadd.f32 0.0036580483, %v1334_v14  ;;  %v5974_v29 = vand.u32 4294901760, %v5126_v21  ;;  %v5134_v50 = vand.u32 4294901760, %v1958_v27  ;;  %v5139_v53 = vand.u32 4294901760, %v1957_v48  ;;  %v1954_v14 = vld [vmem:[#allocation14 + $0x98] sm:$0xff] }
 0x37d   : > { %2347 = vmatpush.msrb.mxu2 %v5047_v22  ;;  %v5057_v60 = vsub.f32 %v1965_v0, %v5047_v22  ;;  %v1869_v18 = vsel %vm5061_vm4, %v5031_v23, %v1865_v4  ;;  %v5088_v31 = vadd.f32 1.0, %v1628_v43  ;;  %v5105_v46 = vadd.f32 1.0, %v1351_v11  ;;  %v1956_v4 = vld [vmem:[#allocation14 + $0xa8] sm:$0xff]  ;;  %v1955_v43 = vld [vmem:[#allocation14 + $0xa0] sm:$0xff] }
 0x37e   : > { %v5977_v23 = vand.u32 4294901760, %v5100_v44  ;;  %v1870_v12 = vmul.f32 %v1869_v18, %v1858_v9  ;;  %v5141_v7 = vand.u32 4294901760, %v1956_v4  ;;  %v5143_v45 = vand.u32 4294901760, %v1955_v43 }
 0x37f   : > { %2349 = vmatpush.msrb.mxu2 %v5054_v63  ;;  %v5981_v39 = vand.u32 4294901760, %v5057_v60  ;;  %3684 = vrcp.f32 %v5088_v31  ;;  %v2424_v20 = vsub.f32 %v5126_v21, %v5974_v29  ;;  %v5150_v11 = vsub.f32 %v1958_v27, %v5134_v50 }
 0x380   : > { %v2412_v47 = vsub.f32 %v5100_v44, %v5977_v23  ;;  %3686 = vrcp.f32 %v5105_v46  ;;  %v1875_v51 = vmul.f32 %v3665_v33, %v1870_v12  ;;  %v5973_v18 = vand.u32 4294901760, %v5137_v37 }
 0x381   : > { %v2394_v61 = vsub.f32 %v5057_v60, %v5981_v39  ;;  %2351 = vmatpush.msrb.mxu2 %v5070_v54  ;;  %v5156_v35 = vsub.f32 %v1957_v48, %v5139_v53  ;;  %v5162_v36 = vsub.f32 %v1955_v43, %v5143_v45  ;;  %v2425_v38 = vand.u32 4294901760, %v2424_v20 }
 0x382   : > { %v2413_v0 = vand.u32 4294901760, %v2412_v47  ;;  %v5972_v16 = vand.u32 4294901760, %v5150_v11  ;;  %v2430_v41 = vsub.f32 %v5137_v37, %v5973_v18  ;;  %vm1635_vm5 = vweird.f32 %v5088_v31 }
 0x383   : > { %v2395_v52 = vand.u32 4294901760, %v2394_v61  ;;  %2353 = vmatpush.msrb.mxu2 %v5081_v24  ;;  %v3666_v61 = vld [vmem:[#allocation11 + $0x3] ss:$0 sm:$0xff]  ;;  %v5970_v12 = vand.u32 4294901760, %v5156_v35  ;;  %v5971_v33 = vand.u32 4294901760, %v5162_v36  ;;  %vm1358_vm10 = vweird.f32 %v5105_v46 }
 0x384   : > { %v2431_v32 = vand.u32 4294901760, %v2430_v41  ;;  %v1639_v23 = vand.u32 2147483647, %v5088_v31  ;;  %v1362_v56 = vand.u32 2147483647, %v5105_v46 }
 0x385   : > { %2396 = vmatpush.msrb.mxu3 %v2395_v52  ;;  %2355 = vmatpush.msrb.mxu2 %v5097_v19  ;;  %v5152_v9 = vpop.eup %3684  ;;  %v5159_v52 = vsub.f32 %v1956_v4, %v5141_v7  ;;  %v2442_v48 = vsub.f32 %v5156_v35, %v5970_v12  ;;  %v5190_v4 = vand.u32 4294901760, %v1954_v14  ;;  %v2454_v20 = vsub.f32 %v5162_v36, %v5971_v33  ;;  %v1952_v33 = vld [vmem:[#allocation14 + $0x88] sm:$0xff] }
 0x386   : > { %v5167_v10 = vpop.eup %3686  ;;  %v1631_v27 = vmul.f32 %v5152_v9, %v5088_v31  ;;  %vm1636_vm6 = vweird.f32 %v5152_v9  ;;  %vm1640_vm8 = vcmp.eq.f32.partialorder %v1639_v23, 8.507059e+37  ;;  %vm1363_vm12 = vcmp.eq.f32.partialorder %v1362_v56, 8.507059e+37 }
 0x387   : > { %2402 = vmatpush.msrb.mxu3 %v2401_v55  ;;  %2357 = vmatpush.msrb.mxu2 %v5109_v15  ;;  %v1336_v55 = vmul.f32 %v1335_v3, %v5004_v30  ;;  %v5969_v47 = vand.u32 4294901760, %v5159_v52  ;;  %v2436_v3 = vsub.f32 %v5150_v11, %v5972_v16  ;;  %vm5242_vm7 = vmor %vm1635_vm5, %vm1636_vm6  ;;  %vm1359_vm9 = vweird.f32 %v5167_v10 }
 0x388   : > { %vm1360_vm11 = vmor %vm1358_vm10, %vm1359_vm9 }
 0x389   : > { %2359 = vmatpush.msrb.mxu2 %v5123_v8  ;;  %2408 = vmatpush.msrb.mxu3 %v2407_v5  ;;  %v1615_v5 = vmul.f32 %v1614_v59, %v4996_v25  ;;  %v2448_v59 = vsub.f32 %v5159_v52, %v5969_v47  ;;  %v2437_v43 = vand.u32 4294901760, %v2436_v3  ;;  %v1953_v47 = vld [vmem:[#allocation14 + $0x90] sm:$0xff] }
 0x38a   : > { %v5200_v3 = vand.u32 4294901760, %v1953_v47 }
 0x38b   : > { %2361 = vmatpush.msrb.mxu2 %v5134_v50  ;;  %2414 = vmatpush.msrb.mxu3 %v2413_v0  ;;  %v5182_v0 = vadd.f32 %v3666_v61, %v1875_v51  ;;  %v1337_v51 = vadd.f32 0.05243302, %v1336_v55  ;;  %v1616_v61 = vadd.f32 0.18741608, %v1615_v5  ;;  %v2449_v12 = vand.u32 4294901760, %v2448_v59 }
 0x38c   : > { %v2455_v55 = vand.u32 4294901760, %v2454_v20 }
 0x38d   : > { %2363 = vmatpush.msrb.mxu2 %v5139_v53  ;;  %2420 = vmatpush.msrb.mxu3 %v2419_v26  ;;  %v2443_v26 = vand.u32 4294901760, %v2442_v48  ;;  %v5198_v41 = vmul.f32 0.70710677, %v5182_v0  ;;  %v1354_v48 = vmul.f32 %v5167_v10, %v5105_v46  ;;  %v1617_v59 = vmul.f32 %v1616_v61, %v4996_v25 }
 0x38e   : > { %v1338_v18 = vmul.f32 %v1337_v51, %v5004_v30  ;;  %v1641_v51 = vand.u32 2147483648, %v5088_v31 }
 0x38f   : > { %2365 = vmatpush.msrb.mxu2 %v5141_v7  ;;  %2426 = vmatpush.msrb.mxu3 %v2425_v38  ;;  %v1632_v38 = vsub.f32 1.0, %v1631_v27  ;;  %v5209_v27 = vand.u32 4294901760, %v1952_v33  ;;  %v1883_v16 = vmul.f32 %v5198_v41, %v5198_v41 }
 0x390   : > { %v1339_v2 = vadd.f32 0.18741608, %v1338_v18  ;;  %v1642_v39 = vor.u32 1.1754944e-38, %v1641_v51 }
 0x391   : > { %2367 = vmatpush.msrb.mxu2 %v5143_v45  ;;  %2432 = vmatpush.msrb.mxu3 %v2431_v32  ;;  %v5203_v32 = vsub.f32 %v1954_v14, %v5190_v4  ;;  %v1633_v14 = vmul.f32 %v5152_v9, %v1632_v38  ;;  %v5227_v25 = vsub.f32 %v1952_v33, %v5209_v27 }
 0x392   : > { %v1340_v51 = vmul.f32 %v1339_v2, %v5004_v30 }
 0x393   : > { %2369 = vmatpush.msrb.mxu2 %v5190_v4  ;;  %2438 = vmatpush.msrb.mxu3 %v2437_v43  ;;  %v5975_v5 = vand.u32 4294901760, %v5203_v32  ;;  %v5212_v43 = vsub.f32 %v1953_v47, %v5200_v3  ;;  %v1634_v34 = vadd.f32 %v5152_v9, %v1633_v14 }
 0x395   : > { %2444 = vmatpush.msrb.mxu3 %v2443_v26  ;;  %2371 = vmatpush.msrb.mxu2 %v5200_v3  ;;  %v1951_v26 = vld [vmem:[#allocation14 + $0x80] sm:$0xff]  ;;  %v2460_v20 = vsub.f32 %v5203_v32, %v5975_v5  ;;  %v5979_v47 = vand.u32 4294901760, %v5212_v43  ;;  %v5982_v5 = vand.u32 4294901760, %v5227_v25 }
 0x396   : > { %v5224_v29 = vand.u32 4294901760, %v1951_v26 }
 0x397   : > { %2450 = vmatpush.msrb.mxu3 %v2449_v12  ;;  %2373 = vmatpush.msrb.mxu2 %v5209_v27  ;;  %v1355_v12 = vsub.f32 1.0, %v1354_v48  ;;  %v2461_v61 = vand.u32 4294901760, %v2460_v20  ;;  %v2466_v38 = vsub.f32 %v5212_v43, %v5979_v47  ;;  %v5246_v48 = vmin.f32 %v1883_v16, 16.0 }
 0x398   : > { %v5238_v33 = vsub.f32 %v1951_v26, %v5224_v29  ;;  %v2472_v20 = vsub.f32 %v5227_v25, %v5982_v5  ;;  %v1618_v26 = vadd.f32 1.1283791, %v1617_v59 }
 0x399   : > { %2456 = vmatpush.msrb.mxu3 %v2455_v55  ;;  %2375 = vmatpush.msrb.mxu2 %v5224_v29  ;;  %v2467_v55 = vand.u32 4294901760, %v2466_v38  ;;  %v1356_v14 = vmul.f32 %v5167_v10, %v1355_v12  ;;  %v1896_v38 = vmul.f32 3.8918573e-05, %v5246_v48 }
 0x39a   : > { %v2477_v47 = vand.u32 4294901760, %v5238_v33  ;;  %v2473_v31 = vand.u32 4294901760, %v2472_v20  ;;  %v1619_v18 = vmul.f32 %v1618_v26, %v4974_v49 }
 0x39b   : > { %2462 = vmatpush.msrb.mxu3 %v2461_v61  ;;  %v1638_v61 = vsel %vm5242_vm7, %v5152_v9, %v1634_v34  ;;  %v1357_v12 = vadd.f32 %v5167_v10, %v1356_v14  ;;  %v1897_v20 = vadd.f32 0.001143296, %v1896_v38  ;;  %v1341_v34 = vadd.f32 1.1283791, %v1340_v51 }
 0x39c   : > { %v2478_v16 = vsub.f32 %v5238_v33, %v2477_v47  ;;  %v1643_v59 = vsel %vm1640_vm8, %v1642_v39, %v1638_v61 }
 0x39d   : > { %2468 = vmatpush.msrb.mxu3 %v2467_v55  ;;  %v1364_v55 = vand.u32 2147483648, %v5105_v46  ;;  %v1644_v23 = vmul.f32 %v1643_v59, %v1619_v18  ;;  %v1361_v49 = vsel %vm1360_vm11, %v5167_v10, %v1357_v12  ;;  %v1898_v30 = vmul.f32 %v1897_v20, %v5246_v48 }
 0x39e   : > { %v2479_v5 = vand.u32 4294901760, %v2478_v16  ;;  %v1605_v16 = vmul.f32 0.5, %v4962_v13  ;;  %v1328_v12 = vmul.f32 0.5, %v4968_v57  ;;  %v1885_v13 = vmul.f32 2.1237322e-06, %v5246_v48 }
 0x39f   : > { %2474 = vmatpush.msrb.mxu3 %v2473_v31  ;;  %v1365_v39 = vor.u32 1.1754944e-38, %v1364_v55  ;;  %v3533_v2 = vclamps-f32 %v1644_v23, 1.0  ;;  %v1899_v26 = vadd.f32 0.014752088, %v1898_v30 }
 0x3a0   : > { %v1886_v57 = vadd.f32 0.00028619796, %v1885_v13  ;;  %v6050_v13 = vand.u32 4294901760, %v5150_v11 }
 0x3a1   : > { %2480 = vmatpush.msrb.mxu3 %v2479_v5  ;;  %v1366_v9 = vsel %vm1363_vm12, %v1365_v39, %v1361_v49  ;;  %v1342_v5 = vmul.f32 %v1341_v34, %v4982_v42  ;;  %v1647_v31 = vadd.f32 1.0, %v3533_v2  ;;  %v1900_v46 = vmul.f32 %v1899_v26, %v5246_v48 }
 0x3a3   : > { %v1367_v14 = vmul.f32 %v1366_v9, %v1342_v5  ;;  %v1648_v18 = vmul.f32 %v1647_v31, %v1605_v16  ;;  %v1901_v10 = vadd.f32 0.112945676, %v1900_v46  ;;  %v6043_v31 = vand.u32 4294901760, %v5057_v60 }
 0x3a4   : > { %v1887_v16 = vmul.f32 %v1886_v57, %v5246_v48 }
 0x3a5   : > { %v3532_v38 = vclamps-f32 %v1367_v14, 1.0  ;;  %v1902_v20 = vmul.f32 %v1901_v10, %v5246_v48 }
 0x3a7   : > { %v1370_v51 = vadd.f32 1.0, %v3532_v38  ;;  %v1903_v49 = vadd.f32 0.4994258, %v1902_v20 }
 0x3a9   : > { %v1371_v42 = vmul.f32 %v1370_v51, %v1328_v12  ;;  %v1904_v9 = vmul.f32 %v1903_v49, %v5246_v48  ;;  %v6048_v51 = vand.u32 4294901760, %v5126_v21 }
 0x3ae   : > { %v1651_v61 = vpop.permute.xlu2 %1650 }
 0x3af   : > { %v1653_v59 = vmul.f32 %v1651_v61, %v1648_v18  ;;  %v5293_v61 = vadd.f32 1.0, %v1904_v9  ;;  %v1888_v18 = vadd.f32 0.0036580483, %v1887_v16  ;;  %v1977_v9 = vld [vmem:[#allocation14 + $0x150] sm:$0xff]  ;;  %v1975_v16 = vld [vmem:[#allocation14 + $0x140] sm:$0xff] }
 0x3b1   : > { %v5273_v55 = vand.u32 4294901760, %v1653_v59  ;;  %3688 = vrcp.f32 %v5293_v61  ;;  %vm1911_vm13 = vweird.f32 %v5293_v61 }
 0x3b3   : > { %v5277_v34 = vsub.f32 %v1653_v59, %v5273_v55  ;;  %v1889_v59 = vmul.f32 %v1888_v18, %v5246_v48  ;;  %v6054_v18 = vand.u32 4294901760, %v5203_v32 }
 0x3b5   : > { %v2378_v2 = vand.u32 4294901760, %v5277_v34  ;;  %v1890_v12 = vadd.f32 0.05243302, %v1889_v59  ;;  %v1974_v59 = vld [vmem:[#allocation14 + $0x138] sm:$0xff] }
 0x3b7   : > { %v2379_v14 = vsub.f32 %v5277_v34, %v2378_v2  ;;  %v5317_v10 = vpop.eup %3688 }
 0x3b8   : > { %vm1912_vm14 = vweird.f32 %v5317_v10 }
 0x3b9   : > { %v2380_v38 = vand.u32 4294901760, %v2379_v14  ;;  %vm5425_vm15 = vmor %vm1911_vm13, %vm1912_vm14 }
 0x3c7   : > { %v1375_v56 = vpop.permute.xlu1 %1374 }
 0x3c8   : > { %v1377_v23 = vmul.f32 %v1375_v56, %v1371_v42  ;;  %v1907_v42 = vmul.f32 %v5317_v10, %v5293_v61 }
 0x3ca   : > { %v2035_v39 = vand.u32 4294901760, %v1377_v23 }
 0x3cc   : > { %v2036_v30 = vsub.f32 %v1377_v23, %v2035_v39  ;;  %2141 = vmatmul.f32.vlgmr.msrb.gmra.mxu1 %v2035_v39  ;;  %v1978_v23 = vld [vmem:[#allocation14 + $0x158] sm:$0xff] }
 0x3cd   : > { %2541 = vmatpush.msrb.mxu1 %v4955_v17 }
 0x3ce   : > { %v2037_v5 = vand.u32 4294901760, %v2036_v30  ;;  %2195 = vmatmul.f32.vlgmr.msra.gmra.mxu2 %v2036_v30 }
 0x3cf   : > { %2543 = vmatpush.msrb.mxu1 %v5047_v22  ;;  %2582 = vmatpush.msra.mxu2 %v2387_v1  ;;  %v6044_v1 = vand.u32 4294901760, %v5073_v40 }
 0x3d0   : > { %v2038_v26 = vsub.f32 %v2036_v30, %v2037_v5  ;;  %2234 = vmatmul.f32.vlgmr.msra.gmra.mxu3 %v2037_v5 }
 0x3d1   : > { %2545 = vmatpush.msrb.mxu1 %v5054_v63  ;;  %2586 = vmatpush.msra.mxu2 %v6043_v31 }
 0x3d2   : > { %2649 = vmatpush.msra.mxu3 %v4955_v17  ;;  %v2039_v46 = vand.u32 4294901760, %v2038_v26  ;;  %v6045_v17 = vand.u32 4294901760, %v5091_v6  ;;  %v6052_v26 = vand.u32 4294901760, %v5159_v52 }
 0x3d3   : > { %2547 = vmatpush.msrb.mxu1 %v5070_v54  ;;  %2590 = vmatpush.msra.mxu2 %v6044_v1 }
 0x3d4   : > { %2651 = vmatpush.msra.mxu3 %v5047_v22  ;;  %2040 = vmatmul.f32.vlgmr.msrb.gmra.mxu0 %v2039_v46  ;;  %v6046_v22 = vand.u32 4294901760, %v5100_v44  ;;  %v6053_v46 = vand.u32 4294901760, %v5162_v36 }
 0x3d5   : > { %2340 = vmatmul.f32.vlgmr.msra.gmra.mxu1 %v2035_v39  ;;  %2488 = vmatpush.msrb.mxu0 %v5045_v58  ;;  %v1982_v58 = vld [vmem:[#allocation14 + $0x178] sm:$0xff] }
 0x3d6   : > { %2549 = vmatpush.msrb.mxu1 %v5081_v24  ;;  %2594 = vmatpush.msra.mxu2 %v6045_v17 }
 0x3d7   : > { %2653 = vmatpush.msra.mxu3 %v5054_v63  ;;  %2381 = vmatmul.f32.vlgmr.msrb.gmra.mxu2 %v2380_v38  ;;  %v6047_v63 = vand.u32 4294901760, %v5112_v28 }
 0x3d8   : > { %2491 = vmatpush.msrb.mxu0 %v5057_v60  ;;  %2551 = vmatpush.msrb.mxu1 %v5097_v19  ;;  %v1981_v60 = vld [vmem:[#allocation14 + $0x170] sm:$0xff] }
 0x3d9   : > { %2598 = vmatpush.msra.mxu2 %v6046_v22  ;;  %2655 = vmatpush.msra.mxu3 %v5070_v54  ;;  %v5321_v54 = vand.u32 4294901760, %v1982_v58  ;;  %v5327_v20 = vand.u32 4294901760, %v1981_v60 }
 0x3da   : > { %2482 = vmatmul.f32.vlgmr.msrb.gmra.mxu3 %v5273_v55  ;;  %2494 = vmatpush.msrb.mxu0 %v5073_v40  ;;  %v1980_v40 = vld [vmem:[#allocation14 + $0x168] sm:$0xff] }
 0x3db   : > { %2553 = vmatpush.msrb.mxu1 %v5109_v15  ;;  %2602 = vmatpush.msra.mxu2 %v6047_v63  ;;  %v5337_v56 = vsub.f32 %v1982_v58, %v5321_v54  ;;  %v5348_v49 = vsub.f32 %v1981_v60, %v5327_v20  ;;  %v5401_v58 = vand.u32 4294901760, %v1975_v16  ;;  %v1915_v63 = vand.u32 2147483647, %v5293_v61 }
 0x3dc   : > { %2657 = vmatpush.msra.mxu3 %v5081_v24  ;;  %2497 = vmatpush.msrb.mxu0 %v5091_v6  ;;  %v1979_v24 = vld [vmem:[#allocation14 + $0x160] sm:$0xff]  ;;  %v6049_v6 = vand.u32 4294901760, %v5137_v37  ;;  %v6055_v60 = vand.u32 4294901760, %v5212_v43 }
 0x3dd   : > { %2555 = vmatpush.msrb.mxu1 %v5123_v8  ;;  %2606 = vmatpush.msra.mxu2 %v6048_v51  ;;  %v6000_v30 = vand.u32 4294901760, %v5337_v56  ;;  %vm5442_vm0 = vcmp.eq.f32.partialorder %v1915_v63, 8.507059e+37 }
 0x3de   : > { %2659 = vmatpush.msra.mxu3 %v5097_v19  ;;  %2303 = vmatmul.f32.vlgmr.msra.gmra.mxu0 %v2035_v39  ;;  %v5339_v19 = vand.u32 4294901760, %v1980_v40  ;;  %v1908_v39 = vsub.f32 1.0, %v1907_v42 }
 0x3df   : > { %2500 = vmatpush.msrb.mxu0 %v5100_v44  ;;  %2557 = vmatpush.msrb.mxu1 %v5134_v50  ;;  %v1891_v44 = vmul.f32 %v1890_v12, %v5246_v48 }
 0x3e0   : > { %2610 = vmatpush.msra.mxu2 %v6049_v6  ;;  %2661 = vmatpush.msra.mxu3 %v5109_v15  ;;  %v5350_v15 = vand.u32 4294901760, %v1979_v24  ;;  %v5359_v57 = vsub.f32 %v1980_v40, %v5339_v19  ;;  %v1909_v31 = vmul.f32 %v5317_v10, %v1908_v39  ;;  %v1972_v39 = vld [vmem:[#allocation14 + $0x128] sm:$0xff] }
 0x3e1   : > { %2503 = vmatpush.msrb.mxu0 %v5112_v28  ;;  %2559 = vmatpush.msrb.mxu1 %v5139_v53  ;;  %v6051_v28 = vand.u32 4294901760, %v5156_v35  ;;  %v1892_v5 = vadd.f32 0.18741608, %v1891_v44 }
 0x3e2   : > { %2614 = vmatpush.msra.mxu2 %v6050_v13  ;;  %2663 = vmatpush.msra.mxu3 %v5123_v8  ;;  %v5361_v8 = vand.u32 4294901760, %v1978_v23  ;;  %v5370_v14 = vsub.f32 %v1979_v24, %v5350_v15  ;;  %v5997_v1 = vand.u32 4294901760, %v5359_v57  ;;  %v5440_v13 = vsub.f32 %v1975_v16, %v5401_v58 }
 0x3e3   : > { %2506 = vmatpush.msrb.mxu0 %v5126_v21  ;;  %2561 = vmatpush.msrb.mxu1 %v5141_v7  ;;  %v1976_v21 = vld [vmem:[#allocation14 + $0x148] sm:$0xff] }
 0x3e4   : > { %2618 = vmatpush.msra.mxu2 %v6051_v28  ;;  %2665 = vmatpush.msra.mxu3 %v5134_v50  ;;  %v5999_v50 = vand.u32 4294901760, %v5348_v49  ;;  %v5385_v38 = vsub.f32 %v1978_v23, %v5361_v8  ;;  %v5996_v22 = vand.u32 4294901760, %v5370_v14  ;;  %v2741_v40 = vsub.f32 %v5359_v57, %v5997_v1  ;;  %v1989_v1 = vld [vmem:[#allocation14 + $0x1b0] sm:$0xff] }
 0x3e5   : > { %2509 = vmatpush.msrb.mxu0 %v5137_v37  ;;  %2563 = vmatpush.msrb.mxu1 %v5143_v45  ;;  %v5375_v37 = vand.u32 4294901760, %v1977_v9  ;;  %v6058_v23 = vand.u32 4294901760, %v5227_v25 }
 0x3e6   : > { %2622 = vmatpush.msra.mxu2 %v6052_v26  ;;  %2667 = vmatpush.msra.mxu3 %v5139_v53  ;;  %v2729_v53 = vsub.f32 %v5337_v56, %v6000_v30  ;;  %v2735_v17 = vsub.f32 %v5348_v49, %v5999_v50  ;;  %v5995_v12 = vand.u32 4294901760, %v5385_v38  ;;  %v1987_v30 = vld [vmem:[#allocation14 + $0x1a0] sm:$0xff] }
 0x3e7   : > { %2512 = vmatpush.msrb.mxu0 %v5150_v11  ;;  %2565 = vmatpush.msrb.mxu1 %v5190_v4  ;;  %v5387_v11 = vand.u32 4294901760, %v1976_v21 }
 0x3e8   : > { %2626 = vmatpush.msra.mxu2 %v6053_v46  ;;  %2669 = vmatpush.msra.mxu3 %v5141_v7  ;;  %v1893_v7 = vmul.f32 %v1892_v5, %v5246_v48  ;;  %v1917_v48 = vand.u32 2147483648, %v5293_v61  ;;  %v2730_v51 = vand.u32 4294901760, %v2729_v53  ;;  %v2736_v44 = vand.u32 4294901760, %v2735_v17  ;;  %v1970_v53 = vld [vmem:[#allocation14 + $0x118] sm:$0xff] }
 0x3e9   : > { %2515 = vmatpush.msrb.mxu0 %v5156_v35  ;;  %2567 = vmatpush.msrb.mxu1 %v5200_v3  ;;  %v1910_v35 = vadd.f32 %v5317_v10, %v1909_v31  ;;  %v5419_v42 = vsub.f32 %v1976_v21, %v5387_v11  ;;  %v2747_v61 = vsub.f32 %v5370_v14, %v5996_v22  ;;  %v2742_v5 = vand.u32 4294901760, %v2741_v40 }
 0x3ea   : > { %2630 = vmatpush.msra.mxu2 %v6054_v18  ;;  %2671 = vmatpush.msra.mxu3 %v5143_v45  ;;  %v5409_v45 = vsub.f32 %v1977_v9, %v5375_v37  ;;  %v1894_v6 = vadd.f32 1.1283791, %v1893_v7  ;;  %v1918_v28 = vor.u32 1.1754944e-38, %v1917_v48  ;;  %v2753_v26 = vsub.f32 %v5385_v38, %v5995_v12 }
 0x3eb   : > { %2518 = vmatpush.msrb.mxu0 %v5159_v52  ;;  %2569 = vmatpush.msrb.mxu1 %v5209_v27  ;;  %v1973_v52 = vld [vmem:[#allocation14 + $0x130] sm:$0xff]  ;;  %v1914_v21 = vsel %vm5425_vm15, %v5317_v10, %v1910_v35  ;;  %v5466_v10 = vand.u32 4294901760, %v1972_v39  ;;  %v5991_v46 = vand.u32 4294901760, %v5440_v13  ;;  %v5493_v63 = vand.u32 4294901760, %v1970_v53 }
 0x3ec   : > { %2634 = vmatpush.msra.mxu2 %v6055_v60  ;;  %2673 = vmatpush.msra.mxu3 %v5190_v4  ;;  %v5431_v4 = vand.u32 4294901760, %v1974_v59  ;;  %v5450_v9 = vand.u32 4294901760, %v1973_v52  ;;  %v1895_v16 = vmul.f32 %v1894_v6, %v5198_v41  ;;  %v1919_v7 = vsel %vm5442_vm0, %v1918_v28, %v1914_v21  ;;  %v1968_v60 = vld [vmem:[#allocation14 + $0x108] sm:$0xff]  ;;  %v1967_v6 = vld [vmem:[#allocation14 + $0x100] sm:$0xff] }
 0x3ed   : > { %2521 = vmatpush.msrb.mxu0 %v5162_v36  ;;  %2571 = vmatpush.msrb.mxu1 %v5224_v29  ;;  %v2754_v17 = vand.u32 4294901760, %v2753_v26  ;;  %v5491_v35 = vsub.f32 %v1972_v39, %v5466_v10  ;;  %v5517_v39 = vand.u32 4294901760, %v1968_v60  ;;  %v5665_v22 = vand.u32 4294901760, %v1989_v1 }
 0x3ee   : > { %2638 = vmatpush.msra.mxu2 %v6058_v23  ;;  %2675 = vmatpush.msra.mxu3 %v5200_v3  ;;  %v5994_v3 = vand.u32 4294901760, %v5409_v45  ;;  %v5464_v31 = vsub.f32 %v1974_v59, %v5431_v4  ;;  %v5479_v41 = vsub.f32 %v1973_v52, %v5450_v9  ;;  %v1920_v48 = vmul.f32 %v1919_v7, %v1895_v16 }
 0x3ef   : > { %2575 = vmatmul.f32.vlgmr.msrb.gmra.mxu1 %v2378_v2  ;;  %2524 = vmatpush.msrb.mxu0 %v5203_v32  ;;  %v5993_v2 = vand.u32 4294901760, %v5419_v42  ;;  %v1971_v32 = vld [vmem:[#allocation14 + $0x120] sm:$0xff] }
 0x3f0   : > { %2731 = vmatpush.msra.mxu1 %v2730_v51  ;;  %2642 = vmatpush.msra.mxu2 %v2477_v47  ;;  %v2748_v47 = vand.u32 4294901760, %v2747_v61  ;;  %v5481_v18 = vand.u32 4294901760, %v1971_v32  ;;  %v5989_v40 = vand.u32 4294901760, %v5479_v41  ;;  %v5515_v61 = vsub.f32 %v1970_v53, %v5493_v63 }
 0x3f1   : > { %2677 = vmatpush.msra.mxu3 %v5209_v27  ;;  %2644 = vmatmul.f32.vlgmr.msra.gmra.mxu2 %v5273_v55  ;;  %v2759_v27 = vsub.f32 %v5409_v45, %v5994_v3  ;;  %v2765_v59 = vsub.f32 %v5419_v42, %v5993_v2  ;;  %v3534_v36 = vclamps-f32 %v1920_v48, 1.0  ;;  %v1881_v53 = vmul.f32 0.5, %v5182_v0  ;;  %v1998_v0 = vld [vmem:[#allocation14 + $0x1f8] sm:$0xff] }
 0x3f2   : > { %2737 = vmatpush.msra.mxu1 %v2736_v44  ;;  %2829 = vmatpush.msrb.mxu2 %v5337_v56  ;;  %v5503_v52 = vsub.f32 %v1971_v32, %v5481_v18  ;;  %v5988_v44 = vand.u32 4294901760, %v5491_v35  ;;  %v5986_v16 = vand.u32 4294901760, %v5515_v61 }
 0x3f3   : > { %2527 = vmatpush.msrb.mxu0 %v5212_v43  ;;  %2679 = vmatpush.msra.mxu3 %v5224_v29  ;;  %v1969_v43 = vld [vmem:[#allocation14 + $0x110] sm:$0xff]  ;;  %v5990_v29 = vand.u32 4294901760, %v5464_v31  ;;  %v2760_v51 = vand.u32 4294901760, %v2759_v27  ;;  %v1923_v7 = vadd.f32 1.0, %v3534_v36 }
 0x3f4   : > { %2681 = vmatmul.f32.vlgmr.msra.gmra.mxu3 %v5273_v55  ;;  %2743 = vmatpush.msra.mxu1 %v2742_v5  ;;  %v2771_v55 = vsub.f32 %v5440_v13, %v5991_v46  ;;  %v5505_v24 = vand.u32 4294901760, %v1969_v43  ;;  %v5987_v28 = vand.u32 4294901760, %v5503_v52  ;;  %v5529_v5 = vand.u32 4294901760, %v1967_v6 }
 0x3f5   : > { %2832 = vmatpush.msrb.mxu2 %v5348_v49  ;;  %2882 = vmatpush.msrb.mxu3 %v5321_v54  ;;  %v2777_v23 = vsub.f32 %v5464_v31, %v5990_v29  ;;  %v2789_v32 = vsub.f32 %v5491_v35, %v5988_v44 }
 0x3f6   : > { %2530 = vmatpush.msrb.mxu0 %v5227_v25  ;;  %2749 = vmatpush.msra.mxu1 %v2748_v47  ;;  %v2766_v25 = vand.u32 4294901760, %v2765_v59  ;;  %v5527_v21 = vsub.f32 %v1969_v43, %v5505_v24  ;;  %v5539_v47 = vsub.f32 %v1968_v60, %v5517_v39  ;;  %v5550_v43 = vsub.f32 %v1967_v6, %v5529_v5  ;;  %v1997_v6 = vld [vmem:[#allocation14 + $0x1f0] sm:$0xff] }
 0x3f7   : > { %2835 = vmatpush.msrb.mxu2 %v5359_v57  ;;  %2884 = vmatpush.msrb.mxu3 %v5327_v20  ;;  %v2778_v26 = vand.u32 4294901760, %v2777_v23  ;;  %v2790_v48 = vand.u32 4294901760, %v2789_v32 }
 0x3f8   : > { %2533 = vmatpush.msrb.mxu0 %v5238_v33  ;;  %2755 = vmatpush.msra.mxu1 %v2754_v17  ;;  %v2772_v33 = vand.u32 4294901760, %v2771_v55  ;;  %v2795_v17 = vsub.f32 %v5503_v52, %v5987_v28  ;;  %v5984_v59 = vand.u32 4294901760, %v5527_v21  ;;  %v2801_v55 = vsub.f32 %v5515_v61, %v5986_v16 }
 0x3f9   : > { %2536 = vmatmul.f32.vlgmr.msrb.gmra.mxu0 %v5277_v34  ;;  %2838 = vmatpush.msrb.mxu2 %v5370_v14  ;;  %v2783_v34 = vsub.f32 %v5479_v41, %v5989_v40  ;;  %v5983_v60 = vand.u32 4294901760, %v5539_v47 }
 0x3fa   : > { %2686 = vmatpush.msra.mxu0 %v5321_v54  ;;  %2886 = vmatpush.msrb.mxu3 %v5339_v19  ;;  %v2796_v23 = vand.u32 4294901760, %v2795_v17  ;;  %v2807_v36 = vsub.f32 %v5527_v21, %v5984_v59  ;;  %v2802_v32 = vand.u32 4294901760, %v2801_v55 }
 0x3fb   : > { %2761 = vmatpush.msra.mxu1 %v2760_v51  ;;  %2841 = vmatpush.msrb.mxu2 %v5385_v38  ;;  %v2784_v27 = vand.u32 4294901760, %v2783_v34  ;;  %v1924_v51 = vmul.f32 %v1923_v7, %v1881_v53  ;;  %v5566_v34 = vand.u32 4294901760, %v1998_v0  ;;  %v2813_v53 = vsub.f32 %v5539_v47, %v5983_v60  ;;  %v1994_v60 = vld [vmem:[#allocation14 + $0x1d8] sm:$0xff] }
 0x3fc   : > { %2688 = vmatpush.msra.mxu0 %v5327_v20  ;;  %2888 = vmatpush.msrb.mxu3 %v5350_v15  ;;  %v5574_v7 = vand.u32 4294901760, %v1997_v6  ;;  %v2808_v17 = vand.u32 4294901760, %v2807_v36 }
 0x3fd   : > { %2767 = vmatpush.msra.mxu1 %v2766_v25  ;;  %2844 = vmatpush.msrb.mxu2 %v5409_v45  ;;  %v1927_v25 = vpop.permute.xlu0 %1926  ;;  %v5583_v55 = vsub.f32 %v1998_v0, %v5566_v34 }
 0x3fe   : > { %2690 = vmatpush.msra.mxu0 %v5339_v19  ;;  %2890 = vmatpush.msrb.mxu3 %v5361_v8  ;;  %v5593_v36 = vsub.f32 %v1997_v6, %v5574_v7 }
 0x3ff   : > { %2773 = vmatpush.msra.mxu1 %v2772_v33  ;;  %2847 = vmatpush.msrb.mxu2 %v5419_v42  ;;  %v5985_v33 = vand.u32 4294901760, %v5550_v43  ;;  %v5992_v28 = vand.u32 4294901760, %v5583_v55 }
 0x400   : > { %2692 = vmatpush.msra.mxu0 %v5350_v15  ;;  %2892 = vmatpush.msrb.mxu3 %v5375_v37 }
 0x401   : > { %2779 = vmatpush.msra.mxu1 %v2778_v26  ;;  %2850 = vmatpush.msrb.mxu2 %v5440_v13  ;;  %v1929_v26 = vmul.f32 %v1927_v25, %v1924_v51  ;;  %v1995_v51 = vld [vmem:[#allocation14 + $0x1e0] sm:$0xff] }
 0x402   : > { %2694 = vmatpush.msra.mxu0 %v5361_v8  ;;  %2894 = vmatpush.msrb.mxu3 %v5387_v11  ;;  %v5597_v0 = vand.u32 4294901760, %v1995_v51 }
 0x403   : > { %2785 = vmatpush.msra.mxu1 %v2784_v27  ;;  %2853 = vmatpush.msrb.mxu2 %v5464_v31  ;;  %v1996_v27 = vld [vmem:[#allocation14 + $0x1e8] sm:$0xff]  ;;  %v5589_v59 = vand.u32 4294901760, %v1929_v26 }
 0x404   : > { %2696 = vmatpush.msra.mxu0 %v5375_v37  ;;  %2896 = vmatpush.msrb.mxu3 %v5401_v58  ;;  %v5587_v25 = vand.u32 4294901760, %v1996_v27  ;;  %v5616_v40 = vsub.f32 %v1995_v51, %v5597_v0 }
 0x405   : > { %2791 = vmatpush.msra.mxu1 %v2790_v48  ;;  %2856 = vmatpush.msrb.mxu2 %v5479_v41  ;;  %v2819_v48 = vsub.f32 %v5550_v43, %v5985_v33  ;;  %v1993_v33 = vld [vmem:[#allocation14 + $0x1d0] sm:$0xff] }
 0x406   : > { %2698 = vmatpush.msra.mxu0 %v5387_v11  ;;  %2898 = vmatpush.msrb.mxu3 %v5431_v4  ;;  %v5606_v6 = vsub.f32 %v1996_v27, %v5587_v25  ;;  %v5611_v44 = vand.u32 4294901760, %v1993_v33  ;;  %6061 = vst [vmem:[#allocation21_spill] sm:$0xff] %v5616_v40  ;;  %v6002_v2 = vand.u32 4294901760, %v5616_v40 }
 0x407   : > { %2797 = vmatpush.msra.mxu1 %v2796_v23  ;;  %2859 = vmatpush.msrb.mxu2 %v5491_v35  ;;  %v2814_v23 = vand.u32 4294901760, %v2813_v53  ;;  %v2820_v16 = vand.u32 4294901760, %v2819_v48  ;;  %v2718_v53 = vsub.f32 %v1929_v26, %v5589_v59  ;;  %v1992_v48 = vld [vmem:[#allocation14 + $0x1c8] sm:$0xff]  ;;  %v3070_v26 = vsub.f32 %v5583_v55, %v5992_v28  ;;  %v1990_v28 = vld [vmem:[#allocation14 + $0x1b8] sm:$0xff] }
 0x408   : > { %2700 = vmatpush.msra.mxu0 %v5401_v58  ;;  %2900 = vmatpush.msrb.mxu3 %v5450_v9  ;;  %v6001_v29 = vand.u32 4294901760, %v5606_v6  ;;  %v5628_v46 = vand.u32 4294901760, %v1992_v48 }
 0x409   : > { %2803 = vmatpush.msra.mxu1 %v2802_v32  ;;  %2862 = vmatpush.msrb.mxu2 %v5503_v52  ;;  %v5601_v32 = vand.u32 4294901760, %v1994_v60  ;;  %v2719_v51 = vand.u32 4294901760, %v2718_v53  ;;  %v3071_v12 = vand.u32 4294901760, %v3070_v26 }
 0x40a   : > { %2702 = vmatpush.msra.mxu0 %v5431_v4  ;;  %2902 = vmatpush.msrb.mxu3 %v5466_v10 }
 0x40b   : > { %2809 = vmatpush.msra.mxu1 %v2808_v17  ;;  %2865 = vmatpush.msrb.mxu2 %v5515_v61  ;;  %v5998_v17 = vand.u32 4294901760, %v5593_v36  ;;  %v5623_v27 = vsub.f32 %v1994_v60, %v5601_v32  ;;  %v5636_v60 = vsub.f32 %v1993_v33, %v5611_v44  ;;  %v5651_v33 = vsub.f32 %v1992_v48, %v5628_v46 }
 0x40c   : > { %2704 = vmatpush.msra.mxu0 %v5450_v9  ;;  %2904 = vmatpush.msrb.mxu3 %v5481_v18  ;;  %v2720_v50 = vsub.f32 %v2718_v53, %v2719_v51 }
 0x40d   : > { %2815 = vmatpush.msra.mxu1 %v2814_v23  ;;  %2868 = vmatpush.msrb.mxu2 %v5527_v21  ;;  %6062 = vst [vmem:[#allocation22_spill] sm:$0xff] %v5623_v27  ;;  %v1991_v23 = vld [vmem:[#allocation14 + $0x1c0] sm:$0xff] }
 0x40e   : > { %2706 = vmatpush.msra.mxu0 %v5466_v10  ;;  %2906 = vmatpush.msrb.mxu3 %v5493_v63  ;;  %6063 = vst [vmem:[#allocation23_spill] sm:$0xff] %v5636_v60  ;;  %v5641_v3 = vand.u32 4294901760, %v1991_v23 }
 0x40f   : > { %2821 = vmatpush.msra.mxu1 %v2820_v16  ;;  %2871 = vmatpush.msrb.mxu2 %v5539_v47  ;;  %v3076_v16 = vsub.f32 %v5593_v36, %v5998_v17  ;;  %v5653_v17 = vand.u32 4294901760, %v1990_v28 }
 0x410   : > { %2708 = vmatpush.msra.mxu0 %v5481_v18  ;;  %2908 = vmatpush.msrb.mxu3 %v5505_v24  ;;  %v5663_v48 = vsub.f32 %v1991_v23, %v5641_v3 }
 0x411   : > { %2823 = vmatmul.f32.vlgmr.msra.gmra.mxu1 %v5589_v59  ;;  %2874 = vmatpush.msrb.mxu2 %v5550_v43  ;;  %v3077_v26 = vand.u32 4294901760, %v3076_v16  ;;  %v5675_v23 = vsub.f32 %v1990_v28, %v5653_v17  ;;  %v5687_v28 = vsub.f32 %v1989_v1, %v5665_v22 }
 0x412   : > { %2990 = vmatpush.msrb.mxu1 %v5321_v54  ;;  %2710 = vmatpush.msra.mxu0 %v5493_v63  ;;  %v3082_v54 = vsub.f32 %v5606_v6, %v6001_v29  ;;  %v3088_v29 = vsub.f32 %v5616_v40, %v6002_v2  ;;  %v6065_v40 = vand.u32 4294901760, %v5636_v60 }
 0x413   : > { %2910 = vmatpush.msrb.mxu3 %v5517_v39  ;;  %2877 = vmatmul.f32.vlgmr.msrb.gmra.mxu2 %v2718_v53  ;;  %v6064_v53 = vand.u32 4294901760, %v5623_v27 }
 0x414   : > { %2992 = vmatpush.msrb.mxu1 %v5327_v20  ;;  %3027 = vmatpush.msra.mxu2 %v5566_v34  ;;  %v1988_v20 = vld [vmem:[#allocation14 + $0x1a8] sm:$0xff] }
 0x415   : > { %2712 = vmatpush.msra.mxu0 %v5505_v24  ;;  %2912 = vmatpush.msrb.mxu3 %v5529_v5  ;;  %v3094_v16 = vsub.f32 %v5623_v27, %v6064_v53  ;;  %v5677_v2 = vand.u32 4294901760, %v1988_v20  ;;  %v3100_v53 = vsub.f32 %v5636_v60, %v6065_v40  ;;  %v1986_v27 = vld [vmem:[#allocation14 + $0x198] sm:$0xff]  ;;  %v6066_v40 = vand.u32 4294901760, %v5337_v56 }
 0x416   : > { %2916 = vmatmul.f32.vlgmr.msrb.gmra.mxu3 %v2719_v51  ;;  %2994 = vmatpush.msrb.mxu1 %v5339_v19  ;;  %v3083_v19 = vand.u32 4294901760, %v3082_v54  ;;  %v5689_v51 = vand.u32 4294901760, %v1987_v30  ;;  %v6067_v60 = vand.u32 4294901760, %v5651_v33  ;;  %v5701_v54 = vand.u32 4294901760, %v1986_v27 }
 0x417   : > { %3029 = vmatpush.msra.mxu2 %v5574_v7  ;;  %3072 = vmatpush.msra.mxu3 %v3071_v12  ;;  %v2721_v12 = vand.u32 4294901760, %v2720_v50  ;;  %v3095_v50 = vand.u32 4294901760, %v3094_v16  ;;  %v5699_v1 = vsub.f32 %v1988_v20, %v5677_v2  ;;  %v3101_v16 = vand.u32 4294901760, %v3100_v53 }
 0x418   : > { %2714 = vmatpush.msra.mxu0 %v5517_v39  ;;  %2996 = vmatpush.msrb.mxu1 %v5350_v15  ;;  %v3089_v15 = vand.u32 4294901760, %v3088_v29  ;;  %v6068_v56 = vand.u32 4294901760, %v5348_v49  ;;  %v5712_v20 = vsub.f32 %v1987_v30, %v5689_v51  ;;  %v1984_v29 = vld [vmem:[#allocation14 + $0x188] sm:$0xff]  ;;  %v6070_v49 = vand.u32 4294901760, %v5359_v57 }
 0x419   : > { %3031 = vmatpush.msra.mxu2 %v5587_v25  ;;  %3078 = vmatpush.msra.mxu3 %v3077_v26  ;;  %v1985_v26 = vld [vmem:[#allocation14 + $0x190] sm:$0xff]  ;;  %v6071_v53 = vand.u32 4294901760, %v5675_v23  ;;  %v5725_v30 = vsub.f32 %v1986_v27, %v5701_v54  ;;  %v6072_v57 = vand.u32 4294901760, %v5370_v14  ;;  %v5745_v14 = vand.u32 4294901760, %v4924_v62 }
 0x41a   : > { %2716 = vmatpush.msra.mxu0 %v5529_v5  ;;  %2998 = vmatpush.msrb.mxu1 %v5361_v8  ;;  %v3106_v8 = vsub.f32 %v5651_v33, %v6067_v60 }
 0x41b   : > { %2722 = vmatmul.f32.vlgmr.msra.gmra.mxu0 %v2721_v12  ;;  %3033 = vmatpush.msra.mxu2 %v5597_v0  ;;  %v3123_v12 = vand.u32 4294901760, %v5687_v28 }
 0x41c   : > { %2923 = vmatpush.msrb.mxu0 %v6066_v40  ;;  %3084 = vmatpush.msra.mxu3 %v3083_v19  ;;  %v6069_v19 = vand.u32 4294901760, %v5663_v48  ;;  %v5714_v40 = vand.u32 4294901760, %v1985_v26 }
 0x41d   : > { %3000 = vmatpush.msrb.mxu1 %v5375_v37  ;;  %3035 = vmatpush.msra.mxu2 %v5601_v32  ;;  %v3107_v37 = vand.u32 4294901760, %v3106_v8  ;;  %v3124_v8 = vsub.f32 %v5687_v28, %v3123_v12 }
 0x41e   : > { %2927 = vmatpush.msrb.mxu0 %v6068_v56  ;;  %3090 = vmatpush.msra.mxu3 %v3089_v15  ;;  %v3112_v60 = vsub.f32 %v5663_v48, %v6069_v19  ;;  %v3118_v15 = vsub.f32 %v5675_v23, %v6071_v53  ;;  %v3129_v56 = vand.u32 4294901760, %v5699_v1  ;;  %v1983_v19 = vld [vmem:[#allocation14 + $0x180] sm:$0xff]  ;;  %v5738_v27 = vsub.f32 %v1985_v26, %v5714_v40 }
 0x41f   : > { %3002 = vmatpush.msrb.mxu1 %v5387_v11  ;;  %3037 = vmatpush.msra.mxu2 %v5611_v44  ;;  %v5729_v11 = vand.u32 4294901760, %v1984_v29  ;;  %v3141_v26 = vand.u32 4294901760, %v5725_v30 }
 0x420   : > { %2931 = vmatpush.msrb.mxu0 %v6070_v49  ;;  %3096 = vmatpush.msra.mxu3 %v3095_v50  ;;  %v3113_v50 = vand.u32 4294901760, %v3112_v60  ;;  %v3135_v49 = vand.u32 4294901760, %v5712_v20  ;;  %v3119_v60 = vand.u32 4294901760, %v3118_v15  ;;  %v3130_v53 = vsub.f32 %v5699_v1, %v3129_v56 }
 0x421   : > { %3004 = vmatpush.msrb.mxu1 %v5401_v58  ;;  %3039 = vmatpush.msra.mxu2 %v5628_v46  ;;  %v5742_v58 = vand.u32 4294901760, %v1983_v19  ;;  %v3147_v15 = vand.u32 4294901760, %v5738_v27 }
 0x422   : > { %2935 = vmatpush.msrb.mxu0 %v6072_v57  ;;  %3102 = vmatpush.msra.mxu3 %v3101_v16  ;;  %v6073_v16 = vand.u32 4294901760, %v5385_v38  ;;  %v6074_v57 = vand.u32 4294901760, %v5409_v45  ;;  %v3125_v38 = vand.u32 4294901760, %v3124_v8  ;;  %v6075_v45 = vand.u32 4294901760, %v5419_v42 }
 0x423   : > { %3006 = vmatpush.msrb.mxu1 %v5431_v4  ;;  %3041 = vmatpush.msra.mxu2 %v5641_v3  ;;  %v5756_v4 = vsub.f32 %v1984_v29, %v5729_v11  ;;  %v5771_v29 = vsub.f32 %v1983_v19, %v5742_v58  ;;  %v3142_v8 = vsub.f32 %v5725_v30, %v3141_v26 }
 0x424   : > { %2939 = vmatpush.msrb.mxu0 %v6073_v16  ;;  %3108 = vmatpush.msra.mxu3 %v3107_v37  ;;  %v3136_v37 = vsub.f32 %v5712_v20, %v3135_v49  ;;  %v3148_v42 = vsub.f32 %v5738_v27, %v3147_v15 }
 0x425   : > { %3008 = vmatpush.msrb.mxu1 %v5450_v9  ;;  %3043 = vmatpush.msra.mxu2 %v5653_v17  ;;  %v5768_v9 = vsub.f32 %v4924_v62, %v5745_v14  ;;  %v6076_v62 = vand.u32 4294901760, %v5440_v13  ;;  %v3143_v13 = vand.u32 4294901760, %v3142_v8  ;;  %v6086_v8 = vand.u32 4294901760, %v5606_v6 }
 0x426   : > { %2943 = vmatpush.msrb.mxu0 %v6074_v57  ;;  %3114 = vmatpush.msra.mxu3 %v3113_v50  ;;  %v3131_v50 = vand.u32 4294901760, %v3130_v53  ;;  %v3137_v19 = vand.u32 4294901760, %v3136_v37  ;;  %v3149_v57 = vand.u32 4294901760, %v3148_v42 }
 0x427   : > { %3010 = vmatpush.msrb.mxu1 %v5466_v10  ;;  %3045 = vmatpush.msra.mxu2 %v5665_v22  ;;  %v3153_v10 = vand.u32 4294901760, %v5756_v4  ;;  %v3060_v16 = vand.u32 4294901760, %v5768_v9 }
 0x428   : > { %2947 = vmatpush.msrb.mxu0 %v6075_v45  ;;  %3120 = vmatpush.msra.mxu3 %v3119_v60  ;;  %v6077_v60 = vand.u32 4294901760, %v5464_v31 }
 0x429   : > { %3012 = vmatpush.msrb.mxu1 %v5481_v18  ;;  %3047 = vmatpush.msra.mxu2 %v5677_v2  ;;  %v3159_v18 = vand.u32 4294901760, %v5771_v29  ;;  %v3154_v53 = vsub.f32 %v5756_v4, %v3153_v10  ;;  %v3061_v31 = vsub.f32 %v5768_v9, %v3060_v16 }
 0x42a   : > { %2951 = vmatpush.msrb.mxu0 %v6076_v62  ;;  %3126 = vmatpush.msra.mxu3 %v3125_v38  ;;  %v6079_v38 = vand.u32 4294901760, %v5491_v35  ;;  %v6081_v35 = vand.u32 4294901760, %v5515_v61  ;;  %v6085_v61 = vand.u32 4294901760, %v5539_v47  ;;  %v6088_v62 = vld [vmem:[#allocation21_spill] sm:$0xff]  ;;  %v6090_v47 = vld [vmem:[#allocation22_spill] sm:$0xff] }
 0x42b   : > { %3014 = vmatpush.msrb.mxu1 %v5493_v63  ;;  %3049 = vmatpush.msra.mxu2 %v5689_v51  ;;  %v6078_v63 = vand.u32 4294901760, %v5479_v41  ;;  %v3155_v41 = vand.u32 4294901760, %v3154_v53  ;;  %v3062_v37 = vand.u32 4294901760, %v3061_v31 }
 0x42c   : > { %2955 = vmatpush.msrb.mxu0 %v6077_v60  ;;  %3132 = vmatpush.msra.mxu3 %v3131_v50  ;;  %v6084_v50 = vand.u32 4294901760, %v5593_v36 }
 0x42d   : > { %3016 = vmatpush.msrb.mxu1 %v5505_v24  ;;  %3051 = vmatpush.msra.mxu2 %v5701_v54  ;;  %v3160_v24 = vsub.f32 %v5771_v29, %v3159_v18 }
 0x42e   : > { %2959 = vmatpush.msrb.mxu0 %v6078_v63  ;;  %3138 = vmatpush.msra.mxu3 %v3137_v19  ;;  %v6089_v19 = vand.u32 4294901760, %v6088_v62 }
 0x42f   : > { %3018 = vmatpush.msrb.mxu1 %v5517_v39  ;;  %3053 = vmatpush.msra.mxu2 %v5714_v40  ;;  %v6080_v39 = vand.u32 4294901760, %v5503_v52  ;;  %v3161_v45 = vand.u32 4294901760, %v3160_v24  ;;  %v6083_v52 = vand.u32 4294901760, %v5527_v21  ;;  %v6087_v21 = vand.u32 4294901760, %v5550_v43  ;;  %v6092_v43 = vld [vmem:[#allocation23_spill] sm:$0xff] }
 0x430   : > { %2963 = vmatpush.msrb.mxu0 %v6079_v38  ;;  %3144 = vmatpush.msra.mxu3 %v3143_v13 }
 0x431   : > { %3020 = vmatpush.msrb.mxu1 %v5529_v5  ;;  %3055 = vmatpush.msra.mxu2 %v5729_v11  ;;  %v6082_v5 = vand.u32 4294901760, %v5583_v55 }
 0x432   : > { %2967 = vmatpush.msrb.mxu0 %v6080_v39  ;;  %3150 = vmatpush.msra.mxu3 %v3149_v57 }
 0x433   : > { %3022 = vmatmul.f32.vlgmr.msrb.gmra.mxu1 %v5589_v59  ;;  %3057 = vmatpush.msra.mxu2 %v5742_v58 }
 0x434   : > { %3223 = vmatpush.msra.mxu1 %v5566_v34  ;;  %2971 = vmatpush.msrb.mxu0 %v6081_v35 }
 0x435   : > { %3156 = vmatpush.msra.mxu3 %v3155_v41  ;;  %3063 = vmatmul.f32.vlgmr.msra.gmra.mxu2 %v3062_v37 }
 0x436   : > { %3225 = vmatpush.msra.mxu1 %v5574_v7  ;;  %3264 = vmatpush.msrb.mxu2 %v6082_v5 }
 0x437   : > { %2975 = vmatpush.msrb.mxu0 %v6083_v52  ;;  %3162 = vmatpush.msra.mxu3 %v3161_v45 }
 0x438   : > { %3164 = vmatmul.f32.vlgmr.msra.gmra.mxu3 %v5745_v14  ;;  %3227 = vmatpush.msra.mxu1 %v5587_v25 }
 0x439   : > { %3268 = vmatpush.msrb.mxu2 %v6084_v50  ;;  %3331 = vmatpush.msrb.mxu3 %v5566_v34  ;;  %v6091_v34 = vand.u32 4294901760, %v6090_v47 }
 0x43a   : > { %2979 = vmatpush.msrb.mxu0 %v6085_v61  ;;  %3229 = vmatpush.msra.mxu1 %v5597_v0 }
 0x43b   : > { %3272 = vmatpush.msrb.mxu2 %v6086_v8  ;;  %3333 = vmatpush.msrb.mxu3 %v5574_v7  ;;  %v6094_v7 = vand.u32 4294901760, %v5651_v33 }
 0x43c   : > { %2983 = vmatpush.msrb.mxu0 %v6087_v21  ;;  %3231 = vmatpush.msra.mxu1 %v5601_v32 }
 0x43d   : > { %2985 = vmatmul.f32.vlgmr.msrb.gmra.mxu0 %v5589_v59  ;;  %3276 = vmatpush.msrb.mxu2 %v6089_v19  ;;  %v6093_v59 = vand.u32 4294901760, %v6092_v43 }
 0x43e   : > { %3170 = vmatpush.msra.mxu0 %v5583_v55  ;;  %3335 = vmatpush.msrb.mxu3 %v5587_v25  ;;  %v6095_v55 = vand.u32 4294901760, %v5663_v48  ;;  %v6096_v25 = vand.u32 4294901760, %v5675_v23 }
 0x43f   : > { %3233 = vmatpush.msra.mxu1 %v5611_v44  ;;  %3280 = vmatpush.msrb.mxu2 %v6091_v34 }
 0x440   : > { %3173 = vmatpush.msra.mxu0 %v5593_v36  ;;  %3337 = vmatpush.msrb.mxu3 %v5597_v0 }
 0x441   : > { %3235 = vmatpush.msra.mxu1 %v5628_v46  ;;  %3284 = vmatpush.msrb.mxu2 %v6093_v59 }
 0x442   : > { %3176 = vmatpush.msra.mxu0 %v5606_v6  ;;  %3339 = vmatpush.msrb.mxu3 %v5601_v32 }
 0x443   : > { %3237 = vmatpush.msra.mxu1 %v5641_v3  ;;  %3288 = vmatpush.msrb.mxu2 %v6094_v7 }
 0x444   : > { %3179 = vmatpush.msra.mxu0 %v6088_v62  ;;  %3341 = vmatpush.msrb.mxu3 %v5611_v44 }
 0x445   : > { %3239 = vmatpush.msra.mxu1 %v5653_v17  ;;  %3292 = vmatpush.msrb.mxu2 %v6095_v55 }
 0x446   : > { %3182 = vmatpush.msra.mxu0 %v6090_v47  ;;  %3343 = vmatpush.msrb.mxu3 %v5628_v46 }
 0x447   : > { %3241 = vmatpush.msra.mxu1 %v5665_v22  ;;  %3296 = vmatpush.msrb.mxu2 %v6096_v25 }
 0x448   : > { %3185 = vmatpush.msra.mxu0 %v6092_v43  ;;  %3345 = vmatpush.msrb.mxu3 %v5641_v3 }
 0x449   : > { %3243 = vmatpush.msra.mxu1 %v5677_v2  ;;  %3300 = vmatpush.msrb.mxu2 %v3123_v12  ;;  %v2142_v46 = vpop.f32.mrf.mxu1 }
 0x44a   : > { %3188 = vmatpush.msra.mxu0 %v5651_v33  ;;  %3347 = vmatpush.msrb.mxu3 %v5653_v17 }
 0x44b   : > { %3245 = vmatpush.msra.mxu1 %v5689_v51  ;;  %3304 = vmatpush.msrb.mxu2 %v3129_v56 }
 0x44c   : > { %3191 = vmatpush.msra.mxu0 %v5663_v48  ;;  %3349 = vmatpush.msrb.mxu3 %v5665_v22  ;;  %v3669_v22 = vld [vmem:[%s5956_s8] ss:$0 sm:$0xff] }
 0x44d   : > { %3247 = vmatpush.msra.mxu1 %v5701_v54  ;;  %3308 = vmatpush.msrb.mxu2 %v3135_v49 }
 0x44e   : > { %3194 = vmatpush.msra.mxu0 %v5675_v23  ;;  %3351 = vmatpush.msrb.mxu3 %v5677_v2 }
 0x44f   : > { %3249 = vmatpush.msra.mxu1 %v5714_v40  ;;  %3312 = vmatpush.msrb.mxu2 %v3141_v26 }
 0x450   : > { %3197 = vmatpush.msra.mxu0 %v5687_v28  ;;  %3353 = vmatpush.msrb.mxu3 %v5689_v51 }
 0x451   : > { %3251 = vmatpush.msra.mxu1 %v5729_v11  ;;  %3316 = vmatpush.msrb.mxu2 %v3147_v15  ;;  %v2041_v3 = vpop.f32.mrf.mxu0  ;;  %v2196_v36 = vpop.f32.mrf.mxu2 }
 0x452   : > { %3200 = vmatpush.msra.mxu0 %v5699_v1  ;;  %3355 = vmatpush.msrb.mxu3 %v5701_v54  ;;  %v2042_v2 = vadd.f32 %v3669_v22, %v2041_v3  ;;  %v2341_v48 = vpop.f32.mrf.mxu1 }
 0x453   : > { %3253 = vmatpush.msra.mxu1 %v5742_v58  ;;  %3320 = vmatpush.msrb.mxu2 %v3153_v10  ;;  %v2235_v32 = vpop.f32.mrf.mxu3 }
 0x454   : > { %3203 = vmatpush.msra.mxu0 %v5712_v20  ;;  %3357 = vmatpush.msrb.mxu3 %v5714_v40  ;;  %v2143_v44 = vadd.f32 %v2142_v46, %v2042_v2 }
 0x455   : > { %3257 = vmatmul.f32.vlgmr.msra.gmra.mxu1 %v3060_v16  ;;  %3324 = vmatpush.msrb.mxu2 %v3159_v18 }
 0x456   : > { %3206 = vmatpush.msra.mxu0 %v5725_v30  ;;  %3359 = vmatpush.msrb.mxu3 %v5729_v11  ;;  %v2197_v0 = vadd.f32 %v2196_v36, %v2143_v44 }
 0x457   : > { %3326 = vmatmul.f32.vlgmr.msrb.gmra.mxu2 %v5745_v14 }
 0x458   : > { %3209 = vmatpush.msra.mxu0 %v5738_v27  ;;  %3361 = vmatpush.msrb.mxu3 %v5742_v58  ;;  %v2236_v6 = vadd.f32 %v2235_v32, %v2197_v0 }
 0x459   : > { %3363 = vmatmul.f32.vlgmr.msrb.gmra.mxu3 %v5745_v14 }
 0x45a   : > { %3212 = vmatpush.msra.mxu0 %v5756_v4  ;;  %v2382_v23 = vpop.f32.mrf.mxu2 }
 0x45b   : > { %v2304_v17 = vpop.f32.mrf.mxu0 }
 0x45c   : > { %3215 = vmatpush.msra.mxu0 %v5771_v29  ;;  %v2305_v33 = vadd.f32 %v2304_v17, %v2236_v6 }
 0x45d   : > { %3218 = vmatmul.f32.vlgmr.msra.gmra.mxu0 %v5768_v9  ;;  %v2483_v28 = vpop.f32.mrf.mxu3 }
 0x45e   : > { %v2342_v51 = vadd.f32 %v2341_v48, %v2305_v33 }
 0x460   : > { %v2383_v54 = vadd.f32 %v2382_v23, %v2342_v51 }
 0x462   : > { %v2484_v12 = vadd.f32 %v2483_v28, %v2383_v54 }
 0x46c   : > { %v2576_v40 = vpop.f32.mrf.mxu1 }
 0x474   : > { %v2645_v30 = vpop.f32.mrf.mxu2 }
 0x476   : > { %v2537_v1 = vpop.f32.mrf.mxu0 }
 0x477   : > { %v2538_v20 = vadd.f32 %v2537_v1, %v2484_v12  ;;  %v2682_v49 = vpop.f32.mrf.mxu3 }
 0x479   : > { %v2577_v56 = vadd.f32 %v2576_v40, %v2538_v20 }
 0x47b   : > { %v2646_v11 = vadd.f32 %v2645_v30, %v2577_v56 }
 0x47d   : > { %v2683_v58 = vadd.f32 %v2682_v49, %v2646_v11 }
 0x48e   : > { %v2824_v26 = vpop.f32.mrf.mxu1 }
 0x496   : > { %v2878_v15 = vpop.f32.mrf.mxu2 }
 0x498   : > { %v2723_v27 = vpop.f32.mrf.mxu0 }
 0x499   : > { %v2724_v14 = vadd.f32 %v2723_v27, %v2683_v58  ;;  %v2917_v29 = vpop.f32.mrf.mxu3 }
 0x49b   : > { %v2825_v4 = vadd.f32 %v2824_v26, %v2724_v14 }
 0x49d   : > { %v2879_v9 = vadd.f32 %v2878_v15, %v2825_v4 }
 0x49f   : > { %v2918_v42 = vadd.f32 %v2917_v29, %v2879_v9 }
 0x4b0   : > { %v3023_v18 = vpop.f32.mrf.mxu1 }
 0x4b8   : > { %v3064_v13 = vpop.f32.mrf.mxu2 }
 0x4ba   : > { %v2986_v10 = vpop.f32.mrf.mxu0 }
 0x4bb   : > { %v2987_v16 = vadd.f32 %v2986_v10, %v2918_v42  ;;  %v3165_v63 = vpop.f32.mrf.mxu3 }
 0x4bd   : > { %v3024_v60 = vadd.f32 %v3023_v18, %v2987_v16 }
 0x4bf   : > { %v3065_v53 = vadd.f32 %v3064_v13, %v3024_v60 }
 0x4c1   : > { %v3166_v57 = vadd.f32 %v3165_v63, %v3065_v53 }
 0x4d2   : > { %v3258_v38 = vpop.f32.mrf.mxu1 }
 0x4da   : > { %v3219_v31 = vpop.f32.mrf.mxu0  ;;  %v3327_v39 = vpop.f32.mrf.mxu2 }
 0x4db   : > { %v3220_v24 = vadd.f32 %v3219_v31, %v3166_v57 }
 0x4dc   : > { %v3364_v45 = vpop.f32.mrf.mxu3 }
 0x4dd   : > { %v3259_v41 = vadd.f32 %v3258_v38, %v3220_v24 }
 0x4df   : > { %v3328_v37 = vadd.f32 %v3327_v39, %v3259_v41 }
 0x4e1   : > { %v3365_v35 = vadd.f32 %v3364_v45, %v3328_v37 }
 0x4e3   : > { %3367 = vst [vmem:[%s442_s26] sm:$0xff] %v3365_v35 }
 0x4e4   : > { %3927 = shalt.err (!%p3924_p9)
}
 0x4e5   : > { %3565 = dma.vmem_to_hbm [thread:$0]  (%p4140_p4), %s3382_s14, 128, %s3384_s18, %s3369_s16  }
 0x4e6 PF: > { %s3395_s23 = sand.u32 1, %s3966_s30   ;;  %p6097_p10 = scmp.ge.s32.totalorder %s3978_s12, 2 }
 0x4e7   : > { %s3396_s1 = scalar_lea.sflag [#allocation5], %s3395_s23 }
 0x4e8   : > { %p3591_p13 = pnand %p6097_p10, %p4144_p6 }
 0x4ea   : > { %p3592_p11 = pneg %p3591_p13 }
 0x4ec   : > { %3961 = dma.done.wait (%p3592_p11), %s3396_s1, 128  }
 0x4ed   : > { %3963 = vsyncadd (%p3592_p11), %s3396_s1, 4294967168  ;;  %p25_p0 = scmp.ge.s32.totalorder %s4114_s15, 4   ;;  %s6098_s30 = smov %s3970_s10 }
 0x4ee   : > { %s6099_s10 = smov %s3974_s11  ;;  %s6100_s11 = smov %s4125_s29 }
 0x4ef   : > { %s6101_s12 = smov %s4114_s15  ;;  %27 = sbr.rel (!%p25_p0) target bundleno = 13 (0xd), region = 125 }
 0x4f4   :  { %3402 = vsyncpa [#allocation4], 1 }
 0x4f5   :  { %3404 = vsyncpa [#allocation4 + $0x1], 1 }
 0x4f6   :  { %3405 = vsyncpa [#allocation7], 1 }
 0x4f7   :  { %3406 = vsyncpa [#allocation10], 1 }
 0x4f8   :  { %3407 = vsyncpa [#allocation13], 1 }
 0x4f9   :  { %3408 = vsyncpa [#allocation5], 1 }
 0x4fa   :  { %3410 = vsyncpa [#allocation5 + $0x1], 1 }

// kernel: tpu_custom_call.1
= control target key start
LH: loop header
LB: loop body
LE: loop exit
PB: predicated region body
PF: predicated region fallthrough
CT: control target
= control target key end

     0   :  { %s5948_s0 = inlined_call_operand.hbm [shape: f32[16,32], index: 0, kind: input, shape index: {}]   ;;  %s5949_s1 = inlined_call_operand.hbm [shape: f32[32,512], index: 1, kind: input, shape index: {}]   ;;  %s5950_s2 = inlined_call_operand.hbm [shape: f32[1,512], index: 2, kind: input, shape index: {}]   ;;  %s5951_s3 = inlined_call_operand.hbm [shape: f32[1,512], index: 3, kind: input, shape index: {}]   ;;  %s5952_s4 = inlined_call_operand.hbm [shape: f32[1,512], index: 4, kind: input, shape index: {}]   ;;  %s5953_s5 = inlined_call_operand.hbm [shape: f32[128,128], index: 5, kind: input, shape index: {}]   ;;  %s5954_s6 = inlined_call_operand.vmem [shape: f32[1,128], index: 6, kind: input, shape index: {}]   ;;  %s5955_s7 = inlined_call_operand.hbm [shape: f32[512,128], index: 7, kind: input, shape index: {}]   ;;  %s5956_s8 = inlined_call_operand.vmem [shape: f32[1,128], index: 8, kind: input, shape index: {}]   ;;  %s5957_s9 = inlined_call_operand.hbm [shape: f32[16,128], index: 9, kind: output, shape index: {}]  }
   0x1   :  { %6009 = sst [smem:[#allocation24_spill]] %s5949_s1 }
   0x2   :  { %6010 = sst [smem:[#allocation25_spill]] %s5950_s2 }
   0x3   :  { %6011 = sst [smem:[#allocation26_spill]] %s5951_s3 }
   0x4   :  { %6012 = sst [smem:[#allocation27_spill]] %s5952_s4 }
   0x5   :  { %14 = vsyncpa [#allocation4], 0 }
   0x6   :  { %16 = vsyncpa [#allocation4 + $0x1], 0 }
   0x7   :  { %17 = vsyncpa [#allocation7], 0 }
   0x8   :  { %18 = vsyncpa [#allocation10], 0 }
   0x9   :  { %19 = vsyncpa [#allocation13], 0 }
   0xa   :  { %20 = vsyncpa [#allocation5], 0 }
   0xb   :  { %22 = vsyncpa [#allocation5 + $0x1], 0  ;;  %s4043_s30 = smov 0   ;;  %s4045_s10 = smov 0  }
   0xc   :  { %s4047_s11 = smov 0   ;;  %s4049_s12 = smov 0  }
   0xd LB: > { %s6013_s1 = sld [smem:[#allocation24_spill]]  ;;  %s4067_s16 = sadd.s32 4294967295, %s3978_s12   ;;  %s3978_s12 = sphi %s4049_s12, %s6101_s12   ;;  %s3974_s11 = sphi %s4047_s11, %s6100_s11   ;;  %s3970_s10 = sphi %s4045_s10, %s6099_s10   ;;  %s3966_s30 = sphi %s4043_s30, %s6098_s30  }
   0xe   : > { %p3512_p0 = scmp.ge.s32.totalorder %s3978_s12, 1  ;;  %p49_p1 = scmp.eq.s32.totalorder %s4067_s16, 0 }
   0xf   : > { %p253_p2 = scmp.lt.s32.totalorder %s3978_s12, 3  ;;  %s3980_s18 = smov [#allocation6]  }
  0x10   : > { %s266_s19 = sshll.u32 %s3980_s18, 4  ;;  %s6015_s3 = sld [smem:[#allocation26_spill]]  ;;  %s267_s19 = int_to_ptr.vmem [resolvable:$true] %s266_s19 }
  0x11   : > { %p4072_p3 = pnand %p3512_p0, %p253_p2  ;;  %s314_s26 = sshll.u32 %s5953_s5, 4  ;;  %s315_s26 = int_to_ptr.hbm [resolvable:$true] %s314_s26 }
  0x12   : > { %s3981_s27 = smov [#allocation9]   ;;  %s3982_s29 = smov 512  }
  0x13   : > { %s264_s15 = sshll.u32 %s6013_s1, 4  ;;  %p3567_p4 = pneg %p4072_p3  ;;  %s265_s15 = int_to_ptr.hbm [resolvable:$true] %s264_s15 }
  0x14   : > { %s293_s28 = sshll.u32 %s3981_s27, 4  ;;  %s3983_s13 = smov 32   ;;  %s294_s28 = int_to_ptr.vmem [resolvable:$true] %s293_s28 }
  0x15   : > { %p4084_p6 = pnand %p3567_p4, %p49_p1  ;;  %s3984_s14 = smov [#allocation12]  }
  0x16   : > { %s291_s22 = sshll.u32 %s6015_s3, 4  ;;  %s316_s18 = sshll.u32 %s3984_s14, 4  ;;  %s292_s22 = int_to_ptr.hbm [resolvable:$true] %s291_s22  ;;  %s317_s18 = int_to_ptr.vmem [resolvable:$true] %s316_s18 }
  0x17   : > { %3570 = dma.hbm_to_vmem [thread:$0]  (!%p4084_p6), %s265_s15, 2048, %s267_s19, [#allocation7], %s3982_s29, %s3982_s29, %s3983_s13  }
  0x18   : > { %3576 = dma.hbm_to_vmem [thread:$0]  (!%p4084_p6), %s292_s22, 64, %s294_s28, [#allocation10]  }
  0x19   : > { %s6017_s2 = sld [smem:[#allocation25_spill]]  ;;  %s3985_s25 = smov 128  }
  0x1a   : > { %s3986_s1 = smov 8   ;;  %s3987_s15 = smov [#allocation8]  }
  0x1b   : > { %3582 = dma.hbm_to_vmem [thread:$0]  (!%p4084_p6), %s315_s26, 2048, %s317_s18, [#allocation13], %s3985_s25, %s3985_s25, %s3986_s1  }
  0x1c   : > { %s281_s19 = sshll.u32 %s3987_s15, 4  ;;  %s6018_s4 = sld [smem:[#allocation27_spill]]  ;;  %s282_s19 = int_to_ptr.vmem [resolvable:$true] %s281_s19 }
  0x1d   : > { %s331_s26 = sshll.u32 %s5955_s7, 4  ;;  %s3988_s14 = smov [#allocation11]   ;;  %s332_s26 = int_to_ptr.hbm [resolvable:$true] %s331_s26 }
  0x1e   : > { %s305_s18 = sshll.u32 %s3988_s14, 4  ;;  %s3989_s20 = smov [#allocation14]   ;;  %s306_s18 = int_to_ptr.vmem [resolvable:$true] %s305_s18 }
  0x1f   : > { %s279_s24 = sshll.u32 %s6017_s2, 4  ;;  %s333_s21 = sshll.u32 %s3989_s20, 4  ;;  %s280_s24 = int_to_ptr.hbm [resolvable:$true] %s279_s24  ;;  %s334_s21 = int_to_ptr.vmem [resolvable:$true] %s333_s21 }
  0x20   : > { %3573 = dma.hbm_to_vmem [thread:$0]  (!%p4084_p6), %s280_s24, 64, %s282_s19, [#allocation7]  }
  0x21   : > { %3585 = dma.hbm_to_vmem [thread:$0]  (!%p4084_p6), %s332_s26, 8192, %s334_s21, [#allocation13], %s3985_s25, %s3985_s25, %s3986_s1  }
  0x22   : > { %s303_s22 = sshll.u32 %s6018_s4, 4  ;;  %s3511_s24 = sadd.s32 4294967294, %s3978_s12   ;;  %s304_s22 = int_to_ptr.hbm [resolvable:$true] %s303_s22 }
  0x23   : > { %3579 = dma.hbm_to_vmem [thread:$0]  (!%p4084_p6), %s304_s22, 64, %s306_s18, [#allocation10]  }
  0x24   : > { %s4114_s15 = sadd.s32 1, %s3978_s12   ;;  %s35_s27 = sadd.s32 1, %s3974_s11 }
  0x25   : > { %s32_s19 = ssub.s32 %s3978_s12, %s4114_s15  ;;  %p42_p8 = scmp.ne.s32.totalorder %s3974_s11, %s3970_s10 }
  0x26   : > { %p33_p7 = scmp.eq.s32.totalorder %s32_s19, 0  ;;  %p43_p9 = scmp.eq.s32.totalorder %s3978_s12, 0 }
  0x27   : > { %p48_p10 = scmp.ne.s32.totalorder %s3970_s10, %s3966_s30  ;;  %p240_p13 = scmp.eq.s32.totalorder %s4067_s16, 1 }
  0x28   : > { %s4125_s29 = scalar_select %p33_p7, %s3974_s11, %s35_s27  }
  0x29   : > { %p4127_p11 = por %p43_p9, %p42_p8  ;;  %p4133_p12 = por %p49_p1, %p48_p10 }
  0x2a   : > { %p246_p0 = scmp.eq.s32.totalorder %s3511_s24, 1  ;;  %p3600_p2 = scmp.lt.s32.totalorder %s3978_s12, 2 }
  0x2b   : > { %s350_s23 = sand.u32 1, %s3974_s11   ;;  %p4140_p4 = por %p240_p13, %p42_p8 }
  0x2c   : > { %p4144_p6 = por %p246_p0, %p48_p10  ;;  %s3520_s13 = sshll.u32 %s350_s23, 3 }
  0x2d   : > { %s3521_s26 = sshll.u32 %s3978_s12, 3  ;;  %s354_s21 = scalar_lea.vmem [#allocation3], %s3520_s13 }
  0x2e   : > { %s358_s20 = scalar_lea.hbm %s5948_s0, %s3521_s26  ;;  %s362_s19 = sshll.u32 %s354_s21, 4  ;;  %s363_s19 = int_to_ptr.vmem [resolvable:$true] %s362_s19 }
  0x2f   : > { %s360_s27 = sshll.u32 %s358_s20, 4  ;;  %p4154_p7 = pnand %p3600_p2, %p4127_p11  ;;  %s361_s27 = int_to_ptr.hbm [resolvable:$true] %s360_s27 }
  0x30   : > { %s351_s2 = scalar_lea.sflag [#allocation4], %s350_s23  ;;  %s3870_s3 = sshra.s32 %s361_s27, 4  ;;  %s3871_s3 = int_to_ptr.hbm [resolvable:$true] %s3870_s3 }
  0x31   : > { %s3872_s4 = scalar_lea.hbm %s3871_s3, 8  ;;  %p3874_p9 = pneg %p4154_p7 }
  0x32   : > { %p3873_p8 = scmp.ne.s32.totalorder %s3871_s3, %s3872_s4  ;;  %s3877_s14 = scalar_lea.hbm %s5948_s0, 16 }
  0x33   : > { %p3878_p11 = scmp.lt.s32.totalorder %s3871_s3, %s5948_s0  ;;  %p3879_p0 = scmp.lt.s32.totalorder %s3877_s14, %s3872_s4 }
  0x34   : > { %p3875_p10 = pnand %p3874_p9, %p3873_p8 }
  0x35   : > { %p3880_p2 = por %p3879_p0, %p3878_p11 }
  0x36   : > { %p3876_p13 = pneg %p3875_p10 }
  0x38   : > { %p3881_p5 = pnand %p3880_p2, %p3876_p13 }
  0x3a   : > { %3884 = shalt.err (!%p3881_p5)
}
  0x3b   : > { %3589 = dma.hbm_to_vmem [thread:$0]  (!%p4154_p7), %s361_s27, 128, %s363_s19, %s351_s2  }
  0x3c   : > { %371 = sbr.rel (%p4072_p3) target bundleno = 1254 (0x4e6), region = 56 }
  0x41   : > { %s4171_s23 = sand.u32 1, %s3970_s10  }
  0x42   : > { %s3523_s20 = sshll.u32 %s4171_s23, 3  ;;  %s374_s21 = scalar_lea.sflag [#allocation4], %s4171_s23 }
  0x43   : > { %s377_s3 = scalar_lea.vmem [#allocation3], %s3523_s20 }
  0x44   : > { %3945 = dma.done.wait (%p4133_p12), %s374_s21, 128  }
  0x45   : > { %3947 = vsyncadd (%p4133_p12), %s374_s21, 4294967168 }
  0x46   : > { %3949 = dma.done.wait (%p49_p1), [#allocation7], 2112  }
  0x47   : > { %3951 = vsyncadd (%p49_p1), [#allocation7], 4294965184 }
  0x48   : > { %3953 = dma.done.wait (%p49_p1), [#allocation10], 128  }
  0x49   : > { %3955 = vsyncadd (%p49_p1), [#allocation10], 4294967168 }
  0x4a   : > { %3957 = dma.done.wait (%p49_p1), [#allocation13], 10240  }
  0x4b   : > { %3959 = vsyncadd (%p49_p1), [#allocation13], 4294957056  ;;  %vm452_vm0 = vcmask 261120   ;;  %v447_v0 = vld [vmem:[#allocation6 + $0x60] sm:$0xff]  ;;  %v443_v7 = vld [vmem:[%s377_s3] sm:$0xff]  ;;  %s3536_s19 = sshll.u32 %s4067_s16, 3 }
  0x4c   : > { %v446_v1 = vld [vmem:[#allocation6 + $0x40] sm:$0xff]  ;;  %v468_v3 = vand.u32 4294901760, %v447_v0  ;;  %v454_v9 = vsel %vm452_vm0, %v443_v7, 0  ;;  %v731_v52 = vld [vmem:[#allocation12 + $0x68] sm:$0xff]  ;;  %v730_v56 = vld [vmem:[#allocation12 + $0x60] sm:$0xff]  ;;  %s3379_s13 = scalar_lea.hbm %s5957_s9, %s3536_s19  ;;  %s442_s26 = scalar_lea.vmem [#allocation15], %s3523_s20 }
  0x4d   : > { %v445_v2 = vld [vmem:[#allocation6 + $0x20] sm:$0xff]  ;;  %v470_v4 = vand.u32 4294901760, %v446_v1  ;;  %v4193_v13 = vand.u32 4294901760, %v454_v9  ;;  %v4231_v55 = vand.u32 4294901760, %v731_v52  ;;  %v4243_v60 = vand.u32 4294901760, %v730_v56  ;;  %s3381_s14 = sshll.u32 %s442_s26, 4  ;;  %s3382_s14 = int_to_ptr.vmem [resolvable:$true] %s3381_s14 }
  0x4e   : > { %v472_v5 = vand.u32 4294901760, %v445_v2  ;;  %v444_v6 = vld [vmem:[#allocation6] sm:$0xff]  ;;  %v498_v10 = vsub.f32 %v447_v0, %v468_v3  ;;  %469 = vmatpush.msra.mxu0 %v468_v3  ;;  %569 = vmatpush.msra.mxu3 %v468_v3  ;;  %v727_v0 = vld [vmem:[#allocation12 + $0x48] sm:$0xff]  ;;  %s3383_s18 = sshll.u32 %s3379_s13, 4  ;;  %s3369_s16 = scalar_lea.sflag [#allocation5], %s4171_s23  ;;  %s3384_s18 = int_to_ptr.hbm [resolvable:$true] %s3383_s18 }
  0x4f   : > { %v474_v8 = vand.u32 4294901760, %v444_v6  ;;  %v504_v11 = vsub.f32 %v446_v1, %v470_v4  ;;  %v4196_v17 = vsub.f32 %v454_v9, %v4193_v13  ;;  %v3656_v31 = vld [vmem:[#allocation8] ss:$0 sm:$0xff]  ;;  %v733_v45 = vld [vmem:[#allocation12 + $0x78] sm:$0xff]  ;;  %v4241_v59 = vsub.f32 %v731_v52, %v4231_v55  ;;  %s3914_s22 = sshra.s32 %s3384_s18, 4  ;;  %s3920_s20 = scalar_lea.hbm %s5957_s9, 16  ;;  %s3915_s22 = int_to_ptr.hbm [resolvable:$true] %s3914_s22 }
  0x50   : > { %v510_v12 = vsub.f32 %v445_v2, %v472_v5  ;;  %540 = vmatpush.msra.mxu2 %v498_v10  ;;  %471 = vmatpush.msra.mxu0 %v470_v4  ;;  %v499_v15 = vand.u32 4294901760, %v498_v10  ;;  %v4216_v46 = vand.u32 4294901760, %v733_v45  ;;  %v732_v47 = vld [vmem:[#allocation12 + $0x70] sm:$0xff]  ;;  %v729_v62 = vld [vmem:[#allocation12 + $0x58] sm:$0xff]  ;;  %v4263_v9 = vand.u32 4294901760, %v727_v0  ;;  %s3916_s21 = scalar_lea.hbm %s3915_s22, 8  ;;  %p3921_p12 = scmp.lt.s32.totalorder %s3915_s22, %s5957_s9 }
  0x51   : > { %v516_v14 = vsub.f32 %v444_v6, %v474_v8  ;;  %v505_v16 = vand.u32 4294901760, %v504_v11  ;;  %571 = vmatpush.msra.mxu3 %v470_v4  ;;  %v4199_v23 = vand.u32 4294901760, %v4196_v17  ;;  %v4221_v50 = vand.u32 4294901760, %v732_v47  ;;  %v728_v63 = vld [vmem:[#allocation12 + $0x50] sm:$0xff]  ;;  %v725_v6 = vld [vmem:[#allocation12 + $0x38] sm:$0xff]  ;;  %p3917_p1 = scmp.ne.s32.totalorder %s3915_s22, %s3916_s21  ;;  %p3922_p7 = scmp.lt.s32.totalorder %s3920_s20, %s3916_s21 }
  0x52   : > { %v511_v18 = vand.u32 4294901760, %v510_v12  ;;  %543 = vmatpush.msra.mxu2 %v504_v11  ;;  %v500_v20 = vsub.f32 %v498_v10, %v499_v15  ;;  %473 = vmatpush.msra.mxu0 %v472_v5  ;;  %v4219_v49 = vsub.f32 %v733_v45, %v4216_v46  ;;  %v4259_v7 = vand.u32 4294901760, %v729_v62 }
  0x53   : > { %v517_v19 = vand.u32 4294901760, %v516_v14  ;;  %v506_v21 = vsub.f32 %v504_v11, %v505_v16  ;;  %573 = vmatpush.msra.mxu3 %v472_v5  ;;  %v479_v26 = vsub.f32 %v4196_v17, %v4199_v23  ;;  %v4229_v54 = vsub.f32 %v732_v47, %v4221_v50  ;;  %v722_v47 = vld [vmem:[#allocation12 + $0x20] sm:$0xff]  ;;  %p3918_p3 = pnand %p3917_p1, %p4140_p4  ;;  %p3923_p8 = por %p3922_p7, %p3921_p12 }
  0x54   : > { %v512_v22 = vsub.f32 %v510_v12, %v511_v18  ;;  %v501_v24 = vand.u32 4294901760, %v500_v20  ;;  %546 = vmatpush.msra.mxu2 %v510_v12  ;;  %475 = vmatpush.msra.mxu0 %v474_v8  ;;  %v781_v53 = vand.u32 4294901760, %v4219_v49 }
  0x55   : > { %v507_v25 = vand.u32 4294901760, %v506_v21  ;;  %v518_v27 = vsub.f32 %v516_v14, %v517_v19  ;;  %575 = vmatpush.msra.mxu3 %v474_v8  ;;  %v4203_v29 = vand.u32 4294901760, %v479_v26  ;;  %v787_v58 = vand.u32 4294901760, %v4229_v54  ;;  %p3919_p5 = pneg %p3918_p3 }
  0x56   : > { %598 = vmatpush.msrb.mxu0 %v499_v15  ;;  %502 = vmatpush.msra.mxu1 %v501_v24  ;;  %v513_v28 = vand.u32 4294901760, %v512_v22  ;;  %v782_v57 = vsub.f32 %v4219_v49, %v781_v53  ;;  %v4282_v21 = vsub.f32 %v727_v0, %v4263_v9  ;;  %v724_v22 = vld [vmem:[#allocation12 + $0x30] sm:$0xff] }
  0x57   : > { %549 = vmatpush.msra.mxu2 %v516_v14  ;;  %579 = vmatmul.f32.vlgmr.msra.gmra.mxu3 %v4199_v23  ;;  %v519_v30 = vand.u32 4294901760, %v518_v27  ;;  %v788_v2 = vsub.f32 %v4229_v54, %v787_v58  ;;  %p3924_p9 = pnand %p3923_p8, %p3919_p5 }
  0x58   : > { %552 = vmatmul.f32.vlgmr.msra.gmra.mxu2 %v4196_v17  ;;  %508 = vmatpush.msra.mxu1 %v507_v25  ;;  %v783_v1 = vand.u32 4294901760, %v782_v57 }
  0x59   : > { %481 = vmatmul.f32.vlgmr.msra.gmra.mxu0 %v4203_v29  ;;  %739 = vmatpush.msrb.mxu2 %v4216_v46  ;;  %v789_v12 = vand.u32 4294901760, %v788_v2  ;;  %v718_v2 = vld [vmem:[#allocation12] sm:$0xff] }
  0x5a   : > { %602 = vmatpush.msrb.mxu0 %v505_v16  ;;  %514 = vmatpush.msra.mxu1 %v513_v28  ;;  %v4272_v16 = vand.u32 4294901760, %v725_v6 }
  0x5b   : > { %741 = vmatpush.msrb.mxu2 %v4221_v50  ;;  %784 = vmatpush.msrb.mxu3 %v783_v1 }
  0x5c   : > { %606 = vmatpush.msrb.mxu0 %v511_v18  ;;  %520 = vmatpush.msra.mxu1 %v519_v30  ;;  %v4293_v27 = vsub.f32 %v725_v6, %v4272_v16  ;;  %v4338_v6 = vand.u32 4294901760, %v722_v47 }
  0x5d   : > { %522 = vmatmul.f32.vlgmr.msra.gmra.mxu1 %v4193_v13  ;;  %743 = vmatpush.msrb.mxu2 %v4231_v55 }
  0x5e   : > { %610 = vmatpush.msrb.mxu0 %v517_v19  ;;  %629 = vmatpush.msrb.mxu1 %v468_v3  ;;  %v793_v3 = vand.u32 4294901760, %v4241_v59  ;;  %v4276_v19 = vsub.f32 %v729_v62, %v4259_v7  ;;  %v719_v62 = vld [vmem:[#allocation12 + $0x8] sm:$0xff] }
  0x5f   : > { %745 = vmatpush.msrb.mxu2 %v4243_v60  ;;  %790 = vmatpush.msrb.mxu3 %v789_v12 }
  0x60   : > { %631 = vmatpush.msrb.mxu1 %v470_v4  ;;  %882 = vmatpush.msra.mxu0 %v4219_v49  ;;  %v4255_v4 = vsub.f32 %v730_v56, %v4243_v60  ;;  %v794_v14 = vsub.f32 %v4241_v59, %v793_v3  ;;  %v805_v30 = vand.u32 4294901760, %v4276_v19 }
  0x61   : > { %612 = vmatmul.f32.vlgmr.msrb.gmra.mxu0 %v4193_v13  ;;  %747 = vmatpush.msrb.mxu2 %v4259_v7 }
  0x62   : > { %633 = vmatpush.msrb.mxu1 %v472_v5  ;;  %885 = vmatpush.msra.mxu0 %v4229_v54  ;;  %v726_v5 = vld [vmem:[#allocation12 + $0x40] sm:$0xff]  ;;  %v799_v15 = vand.u32 4294901760, %v4255_v4  ;;  %v795_v24 = vand.u32 4294901760, %v794_v14 }
  0x63   : > { %v4265_v10 = vand.u32 4294901760, %v726_v5 }
  0x64   : > { %635 = vmatpush.msrb.mxu1 %v474_v8  ;;  %888 = vmatpush.msra.mxu0 %v4241_v59  ;;  %v4261_v8 = vand.u32 4294901760, %v728_v63  ;;  %v800_v25 = vsub.f32 %v4255_v4, %v799_v15 }
  0x65   : > { %637 = vmatmul.f32.vlgmr.msrb.gmra.mxu1 %v4193_v13  ;;  %v4290_v26 = vsub.f32 %v726_v5, %v4265_v10  ;;  %796 = vmatpush.msrb.mxu3 %v795_v24 }
  0x66   : > { %935 = vmatpush.msra.mxu1 %v4216_v46  ;;  %891 = vmatpush.msra.mxu0 %v4255_v4  ;;  %v4279_v20 = vsub.f32 %v728_v63, %v4261_v8 }
  0x67   : > { %749 = vmatpush.msrb.mxu2 %v4261_v8 }
  0x68   : > { %937 = vmatpush.msra.mxu1 %v4221_v50  ;;  %894 = vmatpush.msra.mxu0 %v4276_v19 }
  0x69   : > { %751 = vmatpush.msrb.mxu2 %v4263_v9 }
  0x6a   : > { %939 = vmatpush.msra.mxu1 %v4231_v55  ;;  %897 = vmatpush.msra.mxu0 %v4279_v20 }
  0x6b   : > { %753 = vmatpush.msrb.mxu2 %v4265_v10 }
  0x6c   : > { %941 = vmatpush.msra.mxu1 %v4243_v60  ;;  %900 = vmatpush.msra.mxu0 %v4282_v21 }
  0x6d   : > { %755 = vmatpush.msrb.mxu2 %v4272_v16 }
  0x6e   : > { %943 = vmatpush.msra.mxu1 %v4259_v7  ;;  %903 = vmatpush.msra.mxu0 %v4290_v26 }
  0x70   : > { %945 = vmatpush.msra.mxu1 %v4261_v8  ;;  %906 = vmatpush.msra.mxu0 %v4293_v27 }
  0x72   : > { %947 = vmatpush.msra.mxu1 %v4263_v9 }
  0x74   : > { %949 = vmatpush.msra.mxu1 %v4265_v10 }
  0x76   : > { %951 = vmatpush.msra.mxu1 %v4272_v16 }
  0xd6   : > { %v482_v32 = vpop.f32.mrf.mxu0 }
  0xd7   : > { %v483_v33 = vadd.f32 %v3656_v31, %v482_v32  ;;  %v811_v31 = vand.u32 4294901760, %v4279_v20  ;;  %v817_v32 = vand.u32 4294901760, %v4282_v21 }
  0xda   : > { %v523_v34 = vpop.f32.mrf.mxu1  ;;  %v580_v37 = vpop.f32.mrf.mxu3 }
  0xdb   : > { %v553_v35 = vpop.f32.mrf.mxu2  ;;  %v524_v36 = vadd.f32 %v523_v34, %v483_v33  ;;  %v723_v33 = vld [vmem:[#allocation12 + $0x28] sm:$0xff]  ;;  %v801_v34 = vand.u32 4294901760, %v800_v25  ;;  %v4354_v25 = vsub.f32 %v722_v47, %v4338_v6 }
  0xdc   : > { %v4322_v45 = vand.u32 4294901760, %v723_v33 }
  0xdd   : > { %v554_v38 = vadd.f32 %v553_v35, %v524_v36  ;;  %v823_v35 = vand.u32 4294901760, %v4290_v26  ;;  %v829_v36 = vand.u32 4294901760, %v4293_v27  ;;  %802 = vmatpush.msrb.mxu3 %v801_v34 }
  0xde   : > { %v613_v39 = vpop.f32.mrf.mxu0  ;;  %v4334_v1 = vsub.f32 %v723_v33, %v4322_v45  ;;  %v4360_v33 = vand.u32 4294901760, %v718_v2 }
  0xdf   : > { %v581_v40 = vadd.f32 %v580_v37, %v554_v38  ;;  %v4302_v37 = vand.u32 4294901760, %v724_v22  ;;  %v830_v63 = vsub.f32 %v4293_v27, %v829_v36 }
  0xe0   : > { %v841_v14 = vand.u32 4294901760, %v4334_v1 }
  0xe1   : > { %v614_v41 = vadd.f32 %v613_v39, %v581_v40  ;;  %v806_v39 = vsub.f32 %v4276_v19, %v805_v30  ;;  %v812_v40 = vsub.f32 %v4279_v20, %v811_v31  ;;  %757 = vmatpush.msrb.mxu2 %v4302_v37  ;;  %v831_v34 = vand.u32 4294901760, %v830_v63  ;;  %953 = vmatpush.msra.mxu1 %v4302_v37 }
  0xe2   : > { %v638_v42 = vpop.f32.mrf.mxu1 }
  0xe3   : > { %v4211_v43 = vadd.f32 %v638_v42, %v614_v41  ;;  %v818_v41 = vsub.f32 %v4282_v21, %v817_v32  ;;  %v824_v42 = vsub.f32 %v4290_v26, %v823_v35  ;;  %v807_v56 = vand.u32 4294901760, %v806_v39  ;;  %759 = vmatpush.msrb.mxu2 %v4322_v45  ;;  %955 = vmatpush.msra.mxu1 %v4322_v45  ;;  %v1105_v21 = vld [vmem:[#allocation6 + $0x68] sm:$0xff] }
  0xe4   : > { %v813_v57 = vand.u32 4294901760, %v812_v40  ;;  %v842_v39 = vsub.f32 %v4334_v1, %v841_v14  ;;  %v847_v40 = vand.u32 4294901760, %v4354_v25  ;;  %v4470_v26 = vand.u32 4294901760, %v1105_v21 }
  0xe5   : > { %641 = vadd.xlane.f32.xlu0 %v4211_v43  ;;  %v644_v44 = vmul.f32 %v4211_v43, %v4211_v43  ;;  %808 = vmatpush.msrb.mxu3 %v807_v56  ;;  %v819_v5 = vand.u32 4294901760, %v818_v41  ;;  %v825_v12 = vand.u32 4294901760, %v824_v42 }
  0xe6   : > { %v848_v56 = vsub.f32 %v4354_v25, %v847_v40  ;;  %761 = vmatpush.msrb.mxu2 %v4338_v6  ;;  %957 = vmatpush.msra.mxu1 %v4338_v6  ;;  %v843_v63 = vand.u32 4294901760, %v842_v39 }
  0xe7   : > { %814 = vmatpush.msrb.mxu3 %v813_v57 }
  0xe9   : > { %820 = vmatpush.msrb.mxu3 %v819_v5 }
  0xeb   : > { %826 = vmatpush.msrb.mxu3 %v825_v12 }
  0xed   : > { %645 = vadd.xlane.f32.xlu0 %v644_v44  ;;  %v4320_v44 = vsub.f32 %v724_v22, %v4302_v37  ;;  %v4346_v22 = vand.u32 4294901760, %v719_v62  ;;  %832 = vmatpush.msrb.mxu3 %v831_v34 }
  0xef   : > { %v835_v0 = vand.u32 4294901760, %v4320_v44  ;;  %v4374_v42 = vsub.f32 %v719_v62, %v4346_v22  ;;  %909 = vmatpush.msra.mxu0 %v4320_v44 }
  0xf1   : > { %v836_v24 = vsub.f32 %v4320_v44, %v835_v0  ;;  %912 = vmatpush.msra.mxu0 %v4334_v1  ;;  %v865_v12 = vand.u32 4294901760, %v4374_v42  ;;  %v1102_v1 = vld [vmem:[#allocation6 + $0x8] sm:$0xff] }
  0xf3   : > { %915 = vmatpush.msra.mxu0 %v4354_v25  ;;  %v4501_v25 = vand.u32 4294901760, %v1102_v1 }
 0x158   : > { %v642_v48 = vpop.xlane.xlu0 %641 }
 0x159   : > { %v4225_v51 = vmul.f32 0.0625, %v642_v48  ;;  %v721_v48 = vld [vmem:[#allocation12 + $0x18] sm:$0xff] }
 0x15b   : > { %v648_v61 = vmul.f32 %v4225_v51, %v4225_v51 }
 0x160   : > { %v646_v11 = vpop.xlane.xlu0 %645 }
 0x161   : > { %v647_v18 = vmul.f32 0.0625, %v646_v11  ;;  %v4341_v11 = vand.u32 4294901760, %v721_v48 }
 0x163   : > { %v649_v28 = vsub.f32 %v647_v18, %v648_v61  ;;  %v720_v61 = vld [vmem:[#allocation12 + $0x10] sm:$0xff]  ;;  %763 = vmatpush.msrb.mxu2 %v4341_v11  ;;  %959 = vmatpush.msra.mxu1 %v4341_v11 }
 0x164   : > { %v4344_v18 = vand.u32 4294901760, %v720_v61 }
 0x165   : > { %v650_v38 = vmax.f32 %v649_v28, 0.0  ;;  %v4357_v28 = vsub.f32 %v721_v48, %v4341_v11  ;;  %v837_v48 = vand.u32 4294901760, %v836_v24 }
 0x166   : > { %765 = vmatpush.msrb.mxu2 %v4344_v18  ;;  %961 = vmatpush.msra.mxu1 %v4344_v18 }
 0x167   : > { %v4325_v52 = vadd.f32 1e-05, %v650_v38  ;;  %v4363_v38 = vsub.f32 %v720_v61, %v4344_v18  ;;  %v5958_v41 = vand.u32 4294901760, %v4357_v28  ;;  %v4384_v61 = vsub.f32 %v718_v2, %v4360_v33  ;;  %838 = vmatpush.msrb.mxu3 %v837_v48  ;;  %918 = vmatpush.msra.mxu0 %v4357_v28 }
 0x168   : > { %v849_v2 = vand.u32 4294901760, %v848_v56  ;;  %v866_v48 = vsub.f32 %v4374_v42, %v865_v12  ;;  %767 = vmatpush.msrb.mxu2 %v4346_v22  ;;  %963 = vmatpush.msra.mxu1 %v4346_v22  ;;  %v6024_v19 = vand.u32 4294901760, %v4357_v28 }
 0x169   : > { %3670 = vrsqrt.f32 %v4325_v52  ;;  %v5959_v57 = vand.u32 4294901760, %v4363_v38  ;;  %v854_v5 = vsub.f32 %v4357_v28, %v5958_v41  ;;  %v871_v39 = vand.u32 4294901760, %v4384_v61  ;;  %844 = vmatpush.msrb.mxu3 %v843_v63  ;;  %921 = vmatpush.msra.mxu0 %v4363_v38 }
 0x16a   : > { %769 = vmatpush.msrb.mxu2 %v4360_v33  ;;  %vm659_vm2 = vweird.f32 %v4325_v52  ;;  %965 = vmatpush.msra.mxu1 %v4360_v33 }
 0x16b   : > { %v860_v34 = vsub.f32 %v4363_v38, %v5959_v57  ;;  %850 = vmatpush.msrb.mxu3 %v849_v2  ;;  %v872_v57 = vsub.f32 %v4384_v61, %v871_v39  ;;  %924 = vmatpush.msra.mxu0 %v4374_v42  ;;  %v867_v2 = vand.u32 4294901760, %v866_v48 }
 0x16c   : > { %976 = vmatpush.msra.mxu2 %v781_v53  ;;  %v3658_v53 = vld [vmem:[#allocation11] ss:$0 sm:$0xff] }
 0x16d   : > { %927 = vmatpush.msra.mxu0 %v4384_v61  ;;  %v873_v49 = vand.u32 4294901760, %v872_v57  ;;  %v4514_v57 = vsub.f32 %v1102_v1, %v4501_v25 }
 0x16e   : > { %980 = vmatpush.msra.mxu2 %v787_v58 }
 0x16f   : > { %v3671_v47 = vpop.eup %3670  ;;  %1123 = vmatpush.msrb.mxu0 %v4470_v26 }
 0x170   : > { %v654_v62 = vmul.f32 %v3671_v47, %v4325_v52  ;;  %vm660_vm1 = vweird.f32 %v3671_v47  ;;  %984 = vmatpush.msra.mxu2 %v793_v3 }
 0x171   : > { %vm661_vm3 = vmor %vm659_vm2, %vm660_vm1 }
 0x172   : > { %v655_v24 = vmul.f32 %v3671_v47, %v654_v62  ;;  %v855_v62 = vand.u32 4294901760, %v854_v5  ;;  %v3657_v5 = vld [vmem:[#allocation9] ss:$0 sm:$0xff]  ;;  %988 = vmatpush.msra.mxu2 %v799_v15 }
 0x174   : > { %v656_v41 = vmul.f32 0.5, %v655_v24  ;;  %v861_v24 = vand.u32 4294901760, %v860_v34  ;;  %856 = vmatpush.msrb.mxu3 %v855_v62  ;;  %992 = vmatpush.msra.mxu2 %v805_v30  ;;  %v1104_v30 = vld [vmem:[#allocation6 + $0x48] sm:$0xff] }
 0x176   : > { %v657_v56 = vsub.f32 1.5, %v656_v41  ;;  %v651_v41 = vsub.f32 %v4211_v43, %v4225_v51  ;;  %862 = vmatpush.msrb.mxu3 %v861_v24  ;;  %996 = vmatpush.msra.mxu2 %v811_v31  ;;  %v4480_v31 = vand.u32 4294901760, %v1104_v30 }
 0x178   : > { %v658_v63 = vmul.f32 %v3671_v47, %v657_v56  ;;  %868 = vmatpush.msrb.mxu3 %v867_v2  ;;  %1000 = vmatpush.msra.mxu2 %v817_v32 }
 0x179   : > { %1125 = vmatpush.msrb.mxu0 %v4480_v31 }
 0x17a   : > { %v662_v34 = vsel %vm661_vm3, %v3671_v47, %v658_v63  ;;  %874 = vmatpush.msrb.mxu3 %v873_v49  ;;  %1004 = vmatpush.msra.mxu2 %v823_v35 }
 0x17b   : > { %v663_v52 = vmul.f32 %v662_v34, %v651_v41 }
 0x17c   : > { %1043 = vmatpush.msra.mxu3 %v4216_v46  ;;  %1008 = vmatpush.msra.mxu2 %v829_v36  ;;  %v1103_v36 = vld [vmem:[#allocation6 + $0x28] sm:$0xff] }
 0x17d   : > { %v668_v43 = vmul.f32 %v3657_v5, %v663_v52  ;;  %v4487_v44 = vand.u32 4294901760, %v1103_v36 }
 0x17e   : > { %1045 = vmatpush.msra.mxu3 %v4221_v50  ;;  %1012 = vmatpush.msra.mxu2 %v835_v0 }
 0x17f   : > { %v4427_v51 = vadd.f32 %v3658_v53, %v668_v43  ;;  %1127 = vmatpush.msrb.mxu0 %v4487_v44  ;;  %v4504_v28 = vsub.f32 %v1103_v36, %v4487_v44 }
 0x180   : > { %1047 = vmatpush.msra.mxu3 %v4231_v55  ;;  %1016 = vmatpush.msra.mxu2 %v841_v14 }
 0x181   : > { %v4433_v54 = vmul.f32 0.70710677, %v4427_v51  ;;  %1129 = vmatpush.msrb.mxu0 %v4501_v25  ;;  %v1165_v47 = vand.u32 4294901760, %v4504_v28 }
 0x182   : > { %1049 = vmatpush.msra.mxu3 %v4243_v60  ;;  %1020 = vmatpush.msra.mxu2 %v847_v40 }
 0x183   : > { %v676_v58 = vmul.f32 %v4433_v54, %v4433_v54 }
 0x184   : > { %1051 = vmatpush.msra.mxu3 %v4259_v7  ;;  %1024 = vmatpush.msra.mxu2 %v6024_v19 }
 0x185   : > { %v4443_v46 = vmin.f32 %v676_v58, 16.0 }
 0x186   : > { %1053 = vmatpush.msra.mxu3 %v4261_v8 }
 0x187   : > { %v678_v50 = vmul.f32 2.1237322e-06, %v4443_v46  ;;  %v689_v59 = vmul.f32 3.8918573e-05, %v4443_v46 }
 0x188   : > { %1055 = vmatpush.msra.mxu3 %v4263_v9 }
 0x189   : > { %v679_v55 = vadd.f32 0.00028619796, %v678_v50  ;;  %v690_v3 = vadd.f32 0.001143296, %v689_v59 }
 0x18a   : > { %1057 = vmatpush.msra.mxu3 %v4265_v10  ;;  %v6025_v10 = vand.u32 4294901760, %v4363_v38 }
 0x18b   : > { %v680_v60 = vmul.f32 %v679_v55, %v4443_v46  ;;  %v691_v4 = vmul.f32 %v690_v3, %v4443_v46 }
 0x18c   : > { %1059 = vmatpush.msra.mxu3 %v4272_v16  ;;  %1028 = vmatpush.msra.mxu2 %v6025_v10  ;;  %v4478_v16 = vsub.f32 %v1105_v21, %v4470_v26  ;;  %v1379_v10 = vld [vmem:[#allocation6 + $0x10] sm:$0xff] }
 0x18d   : > { %v681_v7 = vadd.f32 0.0036580483, %v680_v60  ;;  %v692_v15 = vadd.f32 0.014752088, %v691_v4  ;;  %v1382_v60 = vld [vmem:[#allocation6 + $0x70] sm:$0xff] }
 0x18e   : > { %1061 = vmatpush.msra.mxu3 %v4302_v37  ;;  %1032 = vmatpush.msra.mxu2 %v865_v12  ;;  %v1153_v37 = vand.u32 4294901760, %v4478_v16  ;;  %v1171_v12 = vand.u32 4294901760, %v4514_v57 }
 0x18f   : > { %v693_v8 = vmul.f32 %v692_v15, %v4443_v46  ;;  %v682_v20 = vmul.f32 %v681_v7, %v4443_v46  ;;  %v1381_v7 = vld [vmem:[#allocation6 + $0x50] sm:$0xff]  ;;  %v4528_v15 = vand.u32 4294901760, %v1382_v60 }
 0x190   : > { %1063 = vmatpush.msra.mxu3 %v4322_v45  ;;  %v4490_v45 = vsub.f32 %v1104_v30, %v4480_v31  ;;  %1036 = vmatpush.msra.mxu2 %v871_v39  ;;  %v1172_v48 = vsub.f32 %v4514_v57, %v1171_v12  ;;  %v4530_v19 = vand.u32 4294901760, %v1381_v7 }
 0x191   : > { %v694_v9 = vadd.f32 0.112945676, %v693_v8  ;;  %v683_v32 = vadd.f32 0.05243302, %v682_v20 }
 0x192   : > { %1065 = vmatpush.msra.mxu3 %v4338_v6  ;;  %v1154_v6 = vsub.f32 %v4478_v16, %v1153_v37  ;;  %v1159_v14 = vand.u32 4294901760, %v4490_v45  ;;  %v1173_v56 = vand.u32 4294901760, %v1172_v48  ;;  %v4543_v30 = vsub.f32 %v1381_v7, %v4530_v19 }
 0x193   : > { %v695_v27 = vmul.f32 %v694_v9, %v4443_v46  ;;  %v684_v38 = vmul.f32 %v683_v32, %v4443_v46  ;;  %v4536_v9 = vsub.f32 %v1382_v60, %v4528_v15  ;;  %v4548_v32 = vand.u32 4294901760, %v1379_v10 }
 0x194   : > { %1067 = vmatpush.msra.mxu3 %v4341_v11  ;;  %v1155_v42 = vand.u32 4294901760, %v1154_v6  ;;  %v1160_v11 = vsub.f32 %v4490_v45, %v1159_v14 }
 0x195   : > { %v696_v35 = vadd.f32 0.4994258, %v695_v27  ;;  %v685_v39 = vadd.f32 0.18741608, %v684_v38  ;;  %v4563_v1 = vsub.f32 %v1379_v10, %v4548_v32  ;;  %v1658_v38 = vld [vmem:[#allocation6 + $0x78] sm:$0xff] }
 0x196   : > { %1069 = vmatpush.msra.mxu3 %v4344_v18  ;;  %1156 = vmatpush.msrb.mxu1 %v1155_v42  ;;  %v1161_v61 = vand.u32 4294901760, %v1160_v11  ;;  %v1166_v18 = vsub.f32 %v4504_v28, %v1165_v47  ;;  %v1656_v42 = vld [vmem:[#allocation6 + $0x38] sm:$0xff] }
 0x197   : > { %v697_v0 = vmul.f32 %v696_v35, %v4443_v46  ;;  %v686_v24 = vmul.f32 %v685_v39, %v4443_v46  ;;  %v674_v46 = vmul.f32 0.5, %v4427_v51  ;;  %v1430_v35 = vand.u32 4294901760, %v4536_v9 }
 0x198   : > { %1071 = vmatpush.msra.mxu3 %v4346_v22  ;;  %1162 = vmatpush.msrb.mxu1 %v1161_v61  ;;  %v1167_v62 = vand.u32 4294901760, %v1166_v18  ;;  %v4578_v61 = vand.u32 4294901760, %v1656_v42  ;;  %v1655_v18 = vld [vmem:[#allocation6 + $0x18] sm:$0xff] }
 0x199   : > { %v698_v40 = vadd.f32 1.0, %v697_v0  ;;  %v687_v2 = vadd.f32 1.1283791, %v686_v24  ;;  %v1436_v0 = vand.u32 4294901760, %v4543_v30  ;;  %v1431_v6 = vsub.f32 %v4536_v9, %v1430_v35 }
 0x19a   : > { %1073 = vmatpush.msra.mxu3 %v4360_v33  ;;  %1168 = vmatpush.msrb.mxu1 %v1167_v62  ;;  %v4596_v48 = vsub.f32 %v1656_v42, %v4578_v61 }
 0x19b   : > { %3672 = vrcp.f32 %v698_v40  ;;  %v710_v5 = vand.u32 2147483648, %v698_v40  ;;  %v708_v52 = vand.u32 2147483647, %v698_v40  ;;  %vm704_vm5 = vweird.f32 %v698_v40 }
 0x19c   : > { %1174 = vmatpush.msrb.mxu1 %v1173_v56  ;;  %v688_v53 = vmul.f32 %v687_v2, %v4433_v54  ;;  %v1380_v54 = vld [vmem:[#allocation6 + $0x30] sm:$0xff]  ;;  %v1437_v39 = vsub.f32 %v4543_v30, %v1436_v0  ;;  %v1718_v24 = vand.u32 4294901760, %v4596_v48 }
 0x19d   : > { %v711_v49 = vor.u32 1.1754944e-38, %v710_v5  ;;  %vm709_vm7 = vcmp.eq.f32.partialorder %v708_v52, 8.507059e+37  ;;  %v4538_v21 = vand.u32 4294901760, %v1380_v54 }
 0x19f   : > { %v4554_v36 = vsub.f32 %v1380_v54, %v4538_v21 }
 0x1a1   : > { %v3673_v22 = vpop.eup %3672 }
 0x1a2   : > { %v700_v63 = vmul.f32 %v3673_v22, %v698_v40  ;;  %vm705_vm4 = vweird.f32 %v3673_v22  ;;  %v1657_v40 = vld [vmem:[#allocation6 + $0x58] sm:$0xff] }
 0x1a3   : > { %vm706_vm6 = vmor %vm704_vm5, %vm705_vm4  ;;  %v4576_v11 = vand.u32 4294901760, %v1657_v40 }
 0x1a4   : > { %v701_v41 = vsub.f32 1.0, %v700_v63 }
 0x1a5   : > { %v4593_v62 = vsub.f32 %v1657_v40, %v4576_v11 }
 0x1a6   : > { %v702_v34 = vmul.f32 %v3673_v22, %v701_v41 }
 0x1a8   : > { %v703_v33 = vadd.f32 %v3673_v22, %v702_v34 }
 0x1aa   : > { %v707_v43 = vsel %vm706_vm6, %v3673_v22, %v703_v33  ;;  %v1712_v22 = vand.u32 4294901760, %v4593_v62 }
 0x1ab   : > { %v712_v58 = vsel %vm709_vm7, %v711_v49, %v707_v43 }
 0x1ac   : > { %v713_v50 = vmul.f32 %v712_v58, %v688_v53  ;;  %v1713_v63 = vsub.f32 %v4593_v62, %v1712_v22  ;;  %v3659_v58 = vld [vmem:[#allocation8 + $0x1] ss:$0 sm:$0xff] }
 0x1ae   : > { %v3531_v59 = vclamps-f32 %v713_v50, 1.0  ;;  %v1714_v52 = vand.u32 4294901760, %v1713_v63 }
 0x1b0   : > { %v716_v55 = vadd.f32 1.0, %v3531_v59 }
 0x1b2   : > { %v717_v3 = vmul.f32 %v716_v55, %v674_v46  ;;  %v3660_v46 = vld [vmem:[%s5954_s6] ss:$0 sm:$0xff] }
 0x1b4   : > { %v770_v4 = vand.u32 4294901760, %v717_v3 }
 0x1b6   : > { %876 = vmatmul.f32.vlgmr.msrb.gmra.mxu3 %v770_v4  ;;  %v771_v8 = vsub.f32 %v717_v3, %v770_v4 }
 0x1b7   : > { %1500 = vmatpush.msrb.mxu3 %v4528_v15 }
 0x1b8   : > { %930 = vmatmul.f32.vlgmr.msra.gmra.mxu0 %v771_v8  ;;  %v772_v20 = vand.u32 4294901760, %v771_v8 }
 0x1b9   : > { %1194 = vmatpush.msra.mxu0 %v4478_v16  ;;  %1502 = vmatpush.msrb.mxu3 %v4530_v19  ;;  %v1442_v16 = vand.u32 4294901760, %v4554_v36 }
 0x1ba   : > { %969 = vmatmul.f32.vlgmr.msra.gmra.mxu1 %v772_v20  ;;  %v773_v51 = vsub.f32 %v771_v8, %v772_v20 }
 0x1bb   : > { %1197 = vmatpush.msra.mxu0 %v4490_v45  ;;  %1223 = vmatpush.msra.mxu1 %v4470_v26  ;;  %v4585_v45 = vand.u32 4294901760, %v1655_v18 }
 0x1bc   : > { %v774_v27 = vand.u32 4294901760, %v773_v51  ;;  %1504 = vmatpush.msrb.mxu3 %v4538_v21 }
 0x1bd   : > { %1200 = vmatpush.msra.mxu0 %v4504_v28  ;;  %1225 = vmatpush.msra.mxu1 %v4480_v31  ;;  %v4600_v56 = vsub.f32 %v1655_v18, %v4585_v45  ;;  %v1443_v28 = vsub.f32 %v4554_v36, %v1442_v16 }
 0x1be   : > { %775 = vmatmul.f32.vlgmr.msrb.gmra.mxu2 %v774_v27  ;;  %1075 = vmatmul.f32.vlgmr.msra.gmra.mxu3 %v770_v4 }
 0x1bf   : > { %1203 = vmatpush.msra.mxu0 %v4514_v57  ;;  %1227 = vmatpush.msra.mxu1 %v4487_v44  ;;  %v1438_v57 = vand.u32 4294901760, %v1437_v39  ;;  %v1724_v41 = vand.u32 4294901760, %v4600_v56  ;;  %v1444_v5 = vand.u32 4294901760, %v1443_v28 }
 0x1c0   : > { %1135 = vmatmul.f32.vlgmr.msrb.gmra.mxu0 %v4203_v29  ;;  %1471 = vmatpush.msrb.mxu2 %v4536_v9 }
 0x1c1   : > { %1229 = vmatpush.msra.mxu1 %v4501_v25  ;;  %1252 = vmatpush.msrb.mxu0 %v1153_v37  ;;  %v4574_v37 = vand.u32 4294901760, %v1658_v38  ;;  %v1725_v33 = vsub.f32 %v4600_v56, %v1724_v41 }
 0x1c2   : > { %1176 = vmatmul.f32.vlgmr.msrb.gmra.mxu1 %v4193_v13  ;;  %1474 = vmatpush.msrb.mxu2 %v4543_v30 }
 0x1c3   : > { %1256 = vmatpush.msrb.mxu0 %v1159_v14  ;;  %1283 = vmatpush.msrb.mxu1 %v4470_v26  ;;  %v1448_v26 = vand.u32 4294901760, %v4563_v1  ;;  %v1705_v14 = vsub.f32 %v1658_v38, %v4574_v37  ;;  %v1726_v53 = vand.u32 4294901760, %v1725_v33 }
 0x1c4   : > { %1477 = vmatpush.msrb.mxu2 %v4554_v36  ;;  %1506 = vmatpush.msrb.mxu3 %v4548_v32 }
 0x1c5   : > { %1260 = vmatpush.msrb.mxu0 %v1165_v47  ;;  %1285 = vmatpush.msrb.mxu1 %v4480_v31  ;;  %v1432_v31 = vand.u32 4294901760, %v1431_v6  ;;  %v1706_v47 = vand.u32 4294901760, %v1705_v14 }
 0x1c6   : > { %1038 = vmatmul.f32.vlgmr.msra.gmra.mxu2 %v770_v4  ;;  %1510 = vmatmul.f32.vlgmr.msrb.gmra.mxu3 %v4199_v23 }
 0x1c7   : > { %1264 = vmatpush.msrb.mxu0 %v1171_v12  ;;  %1287 = vmatpush.msrb.mxu1 %v4487_v44  ;;  %v1449_v12 = vsub.f32 %v4563_v1, %v1448_v26  ;;  %v1707_v44 = vsub.f32 %v1705_v14, %v1706_v47 }
 0x1c8   : > { %1206 = vmatmul.f32.vlgmr.msra.gmra.mxu0 %v4196_v17  ;;  %1480 = vmatpush.msrb.mxu2 %v4563_v1 }
 0x1c9   : > { %1289 = vmatpush.msrb.mxu1 %v4501_v25  ;;  %1400 = vmatpush.msra.mxu0 %v4528_v15  ;;  %v1708_v2 = vand.u32 4294901760, %v1707_v44  ;;  %v1719_v25 = vsub.f32 %v4596_v48, %v1718_v24  ;;  %v1450_v34 = vand.u32 4294901760, %v1449_v12 }
 0x1ca   : > { %1233 = vmatmul.f32.vlgmr.msra.gmra.mxu1 %v4199_v23  ;;  %1676 = vmatpush.msra.mxu2 %v4574_v37 }
 0x1cb   : > { %1402 = vmatpush.msra.mxu0 %v4530_v19  ;;  %1433 = vmatpush.msra.mxu1 %v1432_v31  ;;  %v1720_v49 = vand.u32 4294901760, %v1719_v25 }
 0x1cc   : > { %1678 = vmatpush.msra.mxu2 %v4576_v11  ;;  %1709 = vmatpush.msra.mxu3 %v1708_v2 }
 0x1cd   : > { %1404 = vmatpush.msra.mxu0 %v4538_v21  ;;  %1439 = vmatpush.msra.mxu1 %v1438_v57 }
 0x1ce   : > { %1483 = vmatmul.f32.vlgmr.msrb.gmra.mxu2 %v4196_v17  ;;  %1715 = vmatpush.msra.mxu3 %v1714_v52 }
 0x1cf   : > { %1406 = vmatpush.msra.mxu0 %v4548_v32  ;;  %1445 = vmatpush.msra.mxu1 %v1444_v5 }
 0x1d0   : > { %1266 = vmatmul.f32.vlgmr.msrb.gmra.mxu0 %v4193_v13  ;;  %1680 = vmatpush.msra.mxu2 %v4578_v61 }
 0x1d1   : > { %1451 = vmatpush.msra.mxu1 %v1450_v34  ;;  %1529 = vmatpush.msrb.mxu0 %v1430_v35  ;;  %v3661_v35 = vld [vmem:[#allocation8 + $0x2] ss:$0 sm:$0xff] }
 0x1d2   : > { %1291 = vmatmul.f32.vlgmr.msrb.gmra.mxu1 %v4193_v13  ;;  %1682 = vmatpush.msra.mxu2 %v4585_v45 }
 0x1d3   : > { %1533 = vmatpush.msrb.mxu0 %v1436_v0  ;;  %1560 = vmatpush.msrb.mxu1 %v4528_v15 }
 0x1d4   : > { %1721 = vmatpush.msra.mxu3 %v1720_v49  ;;  %1805 = vmatpush.msrb.mxu2 %v1706_v47 }
 0x1d5   : > { %1537 = vmatpush.msrb.mxu0 %v1442_v16  ;;  %1562 = vmatpush.msrb.mxu1 %v4530_v19 }
 0x1d6   : > { %1688 = vmatmul.f32.vlgmr.msra.gmra.mxu2 %v4203_v29  ;;  %1727 = vmatpush.msra.mxu3 %v1726_v53 }
 0x1d7   : > { %1541 = vmatpush.msrb.mxu0 %v1448_v26  ;;  %1564 = vmatpush.msrb.mxu1 %v4538_v21 }
 0x1d8   : > { %1412 = vmatmul.f32.vlgmr.msra.gmra.mxu0 %v4203_v29  ;;  %1729 = vmatmul.f32.vlgmr.msra.gmra.mxu3 %v4193_v13 }
 0x1d9   : > { %1566 = vmatpush.msrb.mxu1 %v4548_v32  ;;  %1747 = vmatpush.msra.mxu0 %v1705_v14 }
 0x1da   : > { %1453 = vmatmul.f32.vlgmr.msra.gmra.mxu1 %v4193_v13  ;;  %1809 = vmatpush.msrb.mxu2 %v1712_v22 }
 0x1db   : > { %1836 = vmatpush.msrb.mxu3 %v4574_v37  ;;  %1750 = vmatpush.msra.mxu0 %v4593_v62 }
 0x1dc   : > { %1776 = vmatpush.msra.mxu1 %v4574_v37  ;;  %1813 = vmatpush.msrb.mxu2 %v1718_v24  ;;  %v3662_v37 = vld [vmem:[#allocation8 + $0x3] ss:$0 sm:$0xff] }
 0x1dd   : > { %1838 = vmatpush.msrb.mxu3 %v4576_v11  ;;  %1753 = vmatpush.msra.mxu0 %v4596_v48 }
 0x1de   : > { %1778 = vmatpush.msra.mxu1 %v4576_v11  ;;  %1817 = vmatpush.msrb.mxu2 %v1724_v41 }
 0x1df   : > { %1840 = vmatpush.msrb.mxu3 %v4578_v61  ;;  %1819 = vmatmul.f32.vlgmr.msrb.gmra.mxu2 %v4193_v13 }
 0x1e0   : > { %1543 = vmatmul.f32.vlgmr.msrb.gmra.mxu0 %v4193_v13  ;;  %1780 = vmatpush.msra.mxu1 %v4578_v61 }
 0x1e1   : > { %1756 = vmatpush.msra.mxu0 %v4600_v56  ;;  %1842 = vmatpush.msrb.mxu3 %v4585_v45 }
 0x1e2   : > { %1568 = vmatmul.f32.vlgmr.msrb.gmra.mxu1 %v4193_v13  ;;  %1844 = vmatmul.f32.vlgmr.msrb.gmra.mxu3 %v4193_v13 }
 0x1e3   : > { %1782 = vmatpush.msra.mxu1 %v4585_v45 }
 0x1e8   : > { %1759 = vmatmul.f32.vlgmr.msra.gmra.mxu0 %v4196_v17 }
 0x1ea   : > { %1786 = vmatmul.f32.vlgmr.msra.gmra.mxu1 %v4199_v23 }
 0x235   : > { %v931_v29 = vpop.f32.mrf.mxu0 }
 0x237   : > { %v970_v43 = vpop.f32.mrf.mxu1 }
 0x239   : > { %v877_v3 = vpop.f32.mrf.mxu3 }
 0x23d   : > { %v1136_v50 = vpop.f32.mrf.mxu0 }
 0x23e   : > { %v1137_v59 = vadd.f32 %v3659_v58, %v1136_v50 }
 0x23f   : > { %v1177_v55 = vpop.f32.mrf.mxu1 }
 0x240   : > { %v1178_v4 = vadd.f32 %v1177_v55, %v1137_v59 }
 0x241   : > { %v776_v60 = vpop.f32.mrf.mxu2  ;;  %v1076_v9 = vpop.f32.mrf.mxu3 }
 0x242   : > { %v777_v13 = vadd.f32 %v3660_v46, %v776_v60 }
 0x244   : > { %v878_v7 = vadd.f32 %v877_v3, %v777_v13 }
 0x245   : > { %v1207_v15 = vpop.f32.mrf.mxu0 }
 0x246   : > { %v1208_v8 = vadd.f32 %v1207_v15, %v1178_v4  ;;  %v932_v17 = vadd.f32 %v931_v29, %v878_v7  ;;  %v3990_v7 = vmov 2   ;;  %v3991_v15 = vmov 1  }
 0x247   : > { %v1234_v19 = vpop.f32.mrf.mxu1  ;;  %3655 = vset.pattern.permute.xlu0 %v3990_v7  ;;  %3654 = vset.pattern.permute.xlu2 %v3991_v15 }
 0x248   : > { %v971_v23 = vadd.f32 %v970_v43, %v932_v17  ;;  %v1235_v20 = vadd.f32 %v1234_v19, %v1208_v8  ;;  %v3992_v8 = vmov 0   ;;  %v1950_v17 = vld [vmem:[#allocation14 + $0x78] sm:$0xff]  ;;  %v1949_v19 = vld [vmem:[#allocation14 + $0x70] sm:$0xff] }
 0x249   : > { %v1039_v54 = vpop.f32.mrf.mxu2  ;;  %v1511_v40 = vpop.f32.mrf.mxu3  ;;  %3653 = vset.pattern.permute.xlu1 %v3992_v8 }
 0x24a   : > { %v1040_v51 = vadd.f32 %v1039_v54, %v971_v23  ;;  %v1948_v23 = vld [vmem:[#allocation14 + $0x68] sm:$0xff] }
 0x24c   : > { %v1077_v21 = vadd.f32 %v1076_v9, %v1040_v51  ;;  %v4696_v51 = vand.u32 4294901760, %v1949_v19  ;;  %v4698_v9 = vand.u32 4294901760, %v1948_v23 }
 0x24d   : > { %v1267_v10 = vpop.f32.mrf.mxu0 }
 0x24e   : > { %v1268_v27 = vadd.f32 %v1267_v10, %v1235_v20  ;;  %1079 = vmax.xlane.f32.xlu1 %v1077_v21  ;;  %v4694_v20 = vand.u32 4294901760, %v1950_v17  ;;  %v1946_v10 = vld [vmem:[#allocation14 + $0x58] sm:$0xff] }
 0x24f   : > { %v1292_v30 = vpop.f32.mrf.mxu1 }
 0x250   : > { %v4660_v32 = vadd.f32 %v1292_v30, %v1268_v27  ;;  %v1945_v27 = vld [vmem:[#allocation14 + $0x50] sm:$0xff]  ;;  %2200 = vmatpush.msra.mxu3 %v4694_v20  ;;  %2004 = vmatpush.msrb.mxu0 %v4694_v20 }
 0x251   : > { %v1484_v0 = vpop.f32.mrf.mxu2 }
 0x252   : > { %v1298_v36 = vmul.f32 %v4660_v32, %v4660_v32  ;;  %2202 = vmatpush.msra.mxu3 %v4696_v51  ;;  %2006 = vmatpush.msrb.mxu0 %v4696_v51 }
 0x254   : > { %1299 = vadd.xlane.f32.xlu2 %v1298_v36  ;;  %v4704_v36 = vand.u32 4294901760, %v1945_v27  ;;  %2204 = vmatpush.msra.mxu3 %v4698_v9 }
 0x255   : > { %v1413_v1 = vpop.f32.mrf.mxu0  ;;  %2008 = vmatpush.msrb.mxu0 %v4698_v9 }
 0x256   : > { %v1414_v6 = vadd.f32 %v3661_v35, %v1413_v1  ;;  %1295 = vadd.xlane.f32.xlu1 %v4660_v32  ;;  %v4702_v35 = vand.u32 4294901760, %v1946_v10  ;;  %v1943_v1 = vld [vmem:[#allocation14 + $0x40] sm:$0xff] }
 0x257   : > { %v1454_v38 = vpop.f32.mrf.mxu1 }
 0x258   : > { %v1455_v42 = vadd.f32 %v1454_v38, %v1414_v6  ;;  %v4709_v38 = vsub.f32 %v1950_v17, %v4694_v20 }
 0x259   : > { %v1689_v11 = vpop.f32.mrf.mxu2 }
 0x25a   : > { %v1485_v16 = vadd.f32 %v1484_v0, %v1455_v42  ;;  %v1690_v45 = vadd.f32 %v3662_v37, %v1689_v11  ;;  %v1944_v0 = vld [vmem:[#allocation14 + $0x48] sm:$0xff]  ;;  %v4715_v42 = vsub.f32 %v1948_v23, %v4698_v9  ;;  %2147 = vmatpush.msra.mxu2 %v4709_v38 }
 0x25b   : > { %v1730_v14 = vpop.f32.mrf.mxu3 }
 0x25c   : > { %v1512_v61 = vadd.f32 %v1511_v40, %v1485_v16  ;;  %v1731_v56 = vadd.f32 %v1730_v14, %v1690_v45  ;;  %v4712_v40 = vsub.f32 %v1949_v19, %v4696_v51  ;;  %v4719_v16 = vand.u32 4294901760, %v1944_v0 }
 0x25d   : > { %v1544_v18 = vpop.f32.mrf.mxu0  ;;  %v4737_v14 = vand.u32 4294901760, %v1943_v1 }
 0x25e   : > { %v1545_v39 = vadd.f32 %v1544_v18, %v1512_v61  ;;  %v4727_v61 = vsub.f32 %v1946_v10, %v4702_v35  ;;  %v4730_v18 = vsub.f32 %v1945_v27, %v4704_v36  ;;  %v2052_v45 = vand.u32 4294901760, %v4712_v40  ;;  %2150 = vmatpush.msra.mxu2 %v4712_v40 }
 0x25f   : > { %v1569_v26 = vpop.f32.mrf.mxu1 }
 0x260   : > { %v4665_v62 = vadd.f32 %v1569_v26, %v1545_v39  ;;  %v2046_v39 = vand.u32 4294901760, %v4709_v38  ;;  %v2058_v26 = vand.u32 4294901760, %v4715_v42  ;;  %2153 = vmatpush.msra.mxu2 %v4715_v42 }
 0x262   : > { %1572 = vadd.xlane.f32.xlu2 %v4665_v62  ;;  %v1575_v48 = vmul.f32 %v4665_v62, %v4665_v62  ;;  %v1820_v22 = vpop.f32.mrf.mxu2 }
 0x264   : > { %1576 = vadd.xlane.f32.xlu0 %v1575_v48 }
 0x265   : > { %v1760_v31 = vpop.f32.mrf.mxu0  ;;  %v1845_v57 = vpop.f32.mrf.mxu3 }
 0x266   : > { %v1761_v28 = vadd.f32 %v1760_v31, %v1731_v56  ;;  %v4744_v31 = vsub.f32 %v1944_v0, %v4719_v16 }
 0x267   : > { %v1787_v47 = vpop.f32.mrf.mxu1 }
 0x268   : > { %v1788_v24 = vadd.f32 %v1787_v47, %v1761_v28  ;;  %v2047_v28 = vsub.f32 %v4709_v38, %v2046_v39  ;;  %v2053_v47 = vsub.f32 %v4712_v40, %v2052_v45  ;;  %v6031_v40 = vand.u32 4294901760, %v4727_v61 }
 0x26a   : > { %v1821_v12 = vadd.f32 %v1820_v22, %v1788_v24  ;;  %v2059_v22 = vsub.f32 %v4715_v42, %v2058_v26  ;;  %v5965_v24 = vand.u32 4294901760, %v4727_v61 }
 0x26c   : > { %v4670_v44 = vadd.f32 %v1845_v57, %v1821_v12  ;;  %v5963_v12 = vand.u32 4294901760, %v4730_v18 }
 0x26e   : > { %1848 = vadd.xlane.f32.xlu2 %v4670_v44  ;;  %v1851_v63 = vmul.f32 %v4670_v44, %v4670_v44  ;;  %v2077_v7 = vsub.f32 %v4730_v18, %v5963_v12 }
 0x270   : > { %1852 = vadd.xlane.f32.xlu0 %v1851_v63  ;;  %v1942_v63 = vld [vmem:[#allocation14 + $0x38] sm:$0xff] }
 0x2c1   : > { %v1080_v41 = vpop.xlane.xlu1 %1079 }
 0x2c2   : > { %v1081_v5 = vsub.f32 %v1077_v21, %v1080_v41  ;;  %v1947_v21 = vld [vmem:[#allocation14 + $0x60] sm:$0xff]  ;;  %v1941_v41 = vld [vmem:[#allocation14 + $0x30] sm:$0xff] }
 0x2c3   : > { %v4700_v30 = vand.u32 4294901760, %v1947_v21 }
 0x2c4   : > { %v1082_v2 = vmul.f32 1.442695, %v1081_v5  ;;  %v2048_v5 = vand.u32 4294901760, %v2047_v28 }
 0x2c5   : > { %v4724_v11 = vsub.f32 %v1947_v21, %v4700_v30  ;;  %2206 = vmatpush.msra.mxu3 %v4700_v30  ;;  %2010 = vmatpush.msrb.mxu0 %v4700_v30  ;;  %v1938_v21 = vld [vmem:[#allocation14 + $0x18] sm:$0xff] }
 0x2c6   : > { %3674 = vpow2.f32 %v1082_v2  ;;  %v2054_v2 = vand.u32 4294901760, %v2053_v47  ;;  %2049 = vmatpush.msrb.mxu1 %v2048_v5  ;;  %v4814_v47 = vand.u32 4294901760, %v1938_v21  ;;  %v1936_v5 = vld [vmem:[#allocation14 + $0x8] sm:$0xff] }
 0x2c7   : > { %v1300_v34 = vpop.xlane.xlu2 %1299  ;;  %v5967_v56 = vand.u32 4294901760, %v4724_v11  ;;  %2156 = vmatpush.msra.mxu2 %v4724_v11  ;;  %2208 = vmatpush.msra.mxu3 %v4702_v35 }
 0x2c8   : > { %v1301_v59 = vmul.f32 0.0625, %v1300_v34  ;;  %2012 = vmatpush.msrb.mxu0 %v4702_v35  ;;  %2055 = vmatpush.msrb.mxu1 %v2054_v2 }
 0x2c9   : > { %v1296_v33 = vpop.xlane.xlu1 %1295  ;;  %v2065_v34 = vsub.f32 %v4724_v11, %v5967_v56  ;;  %2159 = vmatpush.msra.mxu2 %v4727_v61  ;;  %2210 = vmatpush.msra.mxu3 %v4704_v36 }
 0x2ca   : > { %v4680_v29 = vmul.f32 0.0625, %v1296_v33  ;;  %v1940_v33 = vld [vmem:[#allocation14 + $0x28] sm:$0xff]  ;;  %2014 = vmatpush.msrb.mxu0 %v4704_v36 }
 0x2cb   : > { %v4788_v15 = vand.u32 4294901760, %v1940_v33  ;;  %v2066_v8 = vand.u32 4294901760, %v2065_v34  ;;  %2162 = vmatpush.msra.mxu2 %v4730_v18  ;;  %2212 = vmatpush.msra.mxu3 %v4719_v16 }
 0x2cc   : > { %v4675_v25 = vpop.eup %3674  ;;  %v1302_v50 = vmul.f32 %v4680_v29, %v4680_v29  ;;  %2016 = vmatpush.msrb.mxu0 %v4719_v16 }
 0x2cd   : > { %1084 = vadd.xlane.f32.xlu1 %v4675_v25  ;;  %v4812_v28 = vsub.f32 %v1940_v33, %v4788_v15  ;;  %2165 = vmatpush.msra.mxu2 %v4744_v31 }
 0x2ce   : > { %v1303_v55 = vsub.f32 %v1301_v59, %v1302_v50  ;;  %v2060_v50 = vand.u32 4294901760, %v2059_v22  ;;  %v2071_v59 = vsub.f32 %v4727_v61, %v5965_v24  ;;  %2214 = vmatpush.msra.mxu3 %v4737_v14  ;;  %2018 = vmatpush.msrb.mxu0 %v4737_v14 }
 0x2d0   : > { %v1304_v60 = vmax.f32 %v1303_v55, 0.0  ;;  %v4780_v55 = vand.u32 4294901760, %v1941_v41  ;;  %2061 = vmatpush.msrb.mxu1 %v2060_v50  ;;  %v2072_v0 = vand.u32 4294901760, %v2071_v59 }
 0x2d2   : > { %v4688_v13 = vadd.f32 1e-05, %v1304_v60  ;;  %v4796_v23 = vsub.f32 %v1941_v41, %v4780_v55  ;;  %2067 = vmatpush.msrb.mxu1 %v2066_v8  ;;  %v4844_v8 = vsub.f32 %v1938_v21, %v4814_v47 }
 0x2d4   : > { %v5964_v41 = vand.u32 4294901760, %v4796_v23  ;;  %vm1313_vm8 = vweird.f32 %v4688_v13  ;;  %2073 = vmatpush.msrb.mxu1 %v2072_v0 }
 0x2d5   : > { %v1573_v52 = vpop.xlane.xlu2 %1572 }
 0x2d6   : > { %v4678_v49 = vmul.f32 0.0625, %v1573_v52  ;;  %v4767_v52 = vsub.f32 %v1943_v1, %v4737_v14 }
 0x2d7   : > { %v1577_v53 = vpop.xlane.xlu0 %1576 }
 0x2d8   : > { %v1579_v43 = vmul.f32 %v4678_v49, %v4678_v49  ;;  %v1578_v58 = vmul.f32 0.0625, %v1577_v53  ;;  %v5961_v17 = vand.u32 4294901760, %v4767_v52  ;;  %2168 = vmatpush.msra.mxu2 %v4767_v52 }
 0x2da   : > { %v1580_v46 = vsub.f32 %v1578_v58, %v1579_v43  ;;  %v5962_v43 = vand.u32 4294901760, %v4744_v31 }
 0x2dc   : > { %v1581_v3 = vmax.f32 %v1580_v46, 0.0  ;;  %v4778_v46 = vand.u32 4294901760, %v1942_v63  ;;  %v2083_v1 = vsub.f32 %v4744_v31, %v5962_v43 }
 0x2de   : > { %v4686_v4 = vadd.f32 1e-05, %v1581_v3  ;;  %v1939_v3 = vld [vmem:[#allocation14 + $0x20] sm:$0xff]  ;;  %v4793_v19 = vsub.f32 %v1942_v63, %v4778_v46  ;;  %v2089_v63 = vsub.f32 %v4767_v52, %v5961_v17  ;;  %v2084_v59 = vand.u32 4294901760, %v2083_v1  ;;  %2216 = vmatpush.msra.mxu3 %v4778_v46  ;;  %2020 = vmatpush.msrb.mxu0 %v4778_v46 }
 0x2df   : > { %v4800_v10 = vand.u32 4294901760, %v1939_v3  ;;  %v2101_v17 = vsub.f32 %v4796_v23, %v5964_v41  ;;  %v2118_v41 = vand.u32 4294901760, %v4844_v8 }
 0x2e0   : > { %3676 = vrsqrt.f32 %v4686_v4  ;;  %vm1590_vm9 = vweird.f32 %v4686_v4  ;;  %2171 = vmatpush.msra.mxu2 %v4793_v19  ;;  %2218 = vmatpush.msra.mxu3 %v4780_v55 }
 0x2e1   : > { %3678 = vrsqrt.f32 %v4688_v13  ;;  %v4828_v34 = vsub.f32 %v1939_v3, %v4800_v10  ;;  %v5966_v3 = vand.u32 4294901760, %v4812_v28  ;;  %2022 = vmatpush.msrb.mxu0 %v4780_v55  ;;  %v2102_v24 = vand.u32 4294901760, %v2101_v17 }
 0x2e2   : > { %2174 = vmatpush.msra.mxu2 %v4796_v23  ;;  %2220 = vmatpush.msra.mxu3 %v4788_v15 }
 0x2e3   : > { %v5968_v12 = vand.u32 4294901760, %v4828_v34  ;;  %2024 = vmatpush.msrb.mxu0 %v4788_v15 }
 0x2e4   : > { %2177 = vmatpush.msra.mxu2 %v4812_v28  ;;  %2222 = vmatpush.msra.mxu3 %v4800_v10 }
 0x2e5   : > { %v2113_v56 = vsub.f32 %v4828_v34, %v5968_v12  ;;  %2026 = vmatpush.msrb.mxu0 %v4800_v10 }
 0x2e6   : > { %v4692_v54 = vpop.eup %3676  ;;  %2180 = vmatpush.msra.mxu2 %v4828_v34  ;;  %2224 = vmatpush.msra.mxu3 %v4814_v47 }
 0x2e7   : > { %v4706_v6 = vpop.eup %3678  ;;  %v1585_v37 = vmul.f32 %v4692_v54, %v4686_v4  ;;  %vm1591_vm10 = vweird.f32 %v4692_v54  ;;  %2028 = vmatpush.msrb.mxu0 %v4814_v47 }
 0x2e8   : > { %v1308_v48 = vmul.f32 %v4706_v6, %v4688_v13  ;;  %vm1314_vm12 = vweird.f32 %v4706_v6  ;;  %vm4873_vm13 = vmor %vm1590_vm9, %vm1591_vm10  ;;  %2183 = vmatpush.msra.mxu2 %v4844_v8 }
 0x2e9   : > { %v1586_v57 = vmul.f32 %v4692_v54, %v1585_v37  ;;  %v5960_v37 = vand.u32 4294901760, %v4793_v19  ;;  %vm4905_vm0 = vmor %vm1313_vm8, %vm1314_vm12 }
 0x2ea   : > { %v1309_v53 = vmul.f32 %v4706_v6, %v1308_v48  ;;  %v1937_v48 = vld [vmem:[#allocation14 + $0x10] sm:$0xff] }
 0x2eb   : > { %v1587_v60 = vmul.f32 0.5, %v1586_v57  ;;  %v2078_v57 = vand.u32 4294901760, %v2077_v7  ;;  %v4830_v33 = vand.u32 4294901760, %v1937_v48  ;;  %v1935_v7 = vld [vmem:[#allocation14] sm:$0xff] }
 0x2ec   : > { %v4802_v27 = vmul.f32 0.5, %v1309_v53 }
 0x2ed   : > { %v1588_v22 = vsub.f32 1.5, %v1587_v60  ;;  %v2095_v60 = vsub.f32 %v4793_v19, %v5960_v37  ;;  %2079 = vmatpush.msrb.mxu1 %v2078_v57  ;;  %v2090_v37 = vand.u32 4294901760, %v2089_v63  ;;  %v4860_v21 = vsub.f32 %v1937_v48, %v4830_v33  ;;  %2226 = vmatpush.msra.mxu3 %v4830_v33 }
 0x2ee   : > { %v1311_v53 = vsub.f32 1.5, %v4802_v27  ;;  %v4846_v27 = vand.u32 4294901760, %v1936_v5  ;;  %2030 = vmatpush.msrb.mxu0 %v4830_v33 }
 0x2ef   : > { %v4849_v0 = vmul.f32 %v4692_v54, %v1588_v22  ;;  %v4862_v22 = vand.u32 4294901760, %v1935_v7  ;;  %2085 = vmatpush.msrb.mxu1 %v2084_v59  ;;  %2186 = vmatpush.msra.mxu2 %v4860_v21 }
 0x2f0   : > { %v4884_v59 = vsub.f32 %v1936_v5, %v4846_v27  ;;  %v2124_v5 = vand.u32 4294901760, %v4860_v21  ;;  %2228 = vmatpush.msra.mxu3 %v4846_v27  ;;  %2032 = vmatpush.msrb.mxu0 %v4846_v27 }
 0x2f1   : > { %2091 = vmatpush.msrb.mxu1 %v2090_v37  ;;  %v1593_v37 = vsel %vm4873_vm13, %v4692_v54, %v4849_v0  ;;  %v2114_v54 = vand.u32 4294901760, %v2113_v56 }
 0x2f2   : > { %v2130_v12 = vand.u32 4294901760, %v4884_v59  ;;  %2189 = vmatpush.msra.mxu2 %v4884_v59  ;;  %2230 = vmatpush.msra.mxu3 %v4862_v22 }
 0x2f3   : > { %2034 = vmatpush.msrb.mxu0 %v4862_v22 }
 0x2f4   : > { %v2131_v0 = vsub.f32 %v4884_v59, %v2130_v12 }
 0x2f5   : > { %2241 = vmatpush.msra.mxu0 %v2046_v39  ;;  %v1853_v39 = vpop.xlane.xlu0 %1852 }
 0x2f7   : > { %2245 = vmatpush.msra.mxu0 %v2052_v45 }
 0x2f9   : > { %2249 = vmatpush.msra.mxu0 %v2058_v26  ;;  %v1854_v26 = vmul.f32 0.0625, %v1853_v39 }
 0x340   : > { %v4772_v58 = vpop.xlane.xlu1 %1084 }
 0x341   : > { %3680 = vrcp.f32 %v4772_v58  ;;  %v1097_v43 = vand.u32 2147483648, %v4772_v58  ;;  %v1095_v63 = vand.u32 2147483647, %v4772_v58  ;;  %vm1091_vm14 = vweird.f32 %v4772_v58 }
 0x343   : > { %vm1096_vm1 = vcmp.eq.f32.partialorder %v1095_v63, 8.507059e+37  ;;  %v4946_v63 = vld [vmem:[#allocation14 + $0xf8] sm:$0xff] }
 0x344   : > { %v4955_v17 = vand.u32 4294901760, %v4946_v63 }
 0x347   : > { %v4821_v2 = vpop.eup %3680 }
 0x348   : > { %v1087_v50 = vmul.f32 %v4821_v2, %v4772_v58  ;;  %vm1092_vm11 = vweird.f32 %v4821_v2  ;;  %v4899_v58 = vsub.f32 %v1935_v7, %v4862_v22 }
 0x349   : > { %vm1093_vm15 = vmor %vm1091_vm14, %vm1092_vm11 }
 0x34a   : > { %v1088_v1 = vsub.f32 1.0, %v1087_v50  ;;  %v2096_v50 = vand.u32 4294901760, %v2095_v60  ;;  %v1312_v60 = vmul.f32 %v4706_v6, %v1311_v53  ;;  %2192 = vmatpush.msra.mxu2 %v4899_v58 }
 0x34c   : > { %v1089_v57 = vmul.f32 %v4821_v2, %v1088_v1  ;;  %v2107_v1 = vsub.f32 %v4812_v28, %v5966_v3  ;;  %v1098_v3 = vor.u32 1.1754944e-38, %v1097_v43  ;;  %v1582_v43 = vsub.f32 %v4665_v62, %v4678_v49  ;;  %2097 = vmatpush.msrb.mxu1 %v2096_v50  ;;  %2345 = vmatpush.msrb.mxu2 %v4955_v17 }
 0x34d   : > { %v1316_v49 = vsel %vm4905_vm0, %v4706_v6, %v1312_v60  ;;  %v3663_v6 = vld [vmem:[#allocation9 + $0x2] ss:$0 sm:$0xff]  ;;  %v3664_v60 = vld [vmem:[#allocation11 + $0x2] ss:$0 sm:$0xff] }
 0x34e   : > { %v1090_v4 = vadd.f32 %v4821_v2, %v1089_v57  ;;  %v2108_v13 = vand.u32 4294901760, %v2107_v1  ;;  %v2119_v57 = vsub.f32 %v4844_v8, %v2118_v41  ;;  %2103 = vmatpush.msrb.mxu1 %v2102_v24  ;;  %v1594_v24 = vmul.f32 %v1593_v37, %v1582_v43  ;;  %v3668_v37 = vld [vmem:[#allocation11 + $0x1] ss:$0 sm:$0xff] }
 0x350   : > { %v1094_v53 = vsel %vm1093_vm15, %v4821_v2, %v1090_v4  ;;  %v2125_v2 = vsub.f32 %v4860_v21, %v2124_v5  ;;  %2109 = vmatpush.msrb.mxu1 %v2108_v13  ;;  %v2120_v56 = vand.u32 4294901760, %v2119_v57  ;;  %v1599_v1 = vmul.f32 %v3663_v6, %v1594_v24 }
 0x351   : > { %v1099_v7 = vsel %vm1096_vm1, %v1098_v3, %v1094_v53  ;;  %v2136_v3 = vand.u32 4294901760, %v4899_v58  ;;  %v2132_v4 = vand.u32 4294901760, %v2131_v0  ;;  %v6034_v24 = vand.u32 4294901760, %v4767_v52  ;;  %v1965_v0 = vld [vmem:[#allocation14 + $0xf0] sm:$0xff] }
 0x352   : > { %v4924_v62 = vmul.f32 %v4675_v25, %v1099_v7  ;;  %v1305_v25 = vsub.f32 %v4660_v32, %v4680_v29  ;;  %v3667_v29 = vld [vmem:[#allocation9 + $0x1] ss:$0 sm:$0xff]  ;;  %2115 = vmatpush.msrb.mxu1 %v2114_v54  ;;  %v2126_v50 = vand.u32 4294901760, %v2125_v2  ;;  %v1849_v7 = vpop.xlane.xlu2 %1848  ;;  %v4962_v13 = vadd.f32 %v3664_v60, %v1599_v1 }
 0x353   : > { %v2137_v48 = vsub.f32 %v4899_v58, %v2136_v3  ;;  %v4970_v38 = vmul.f32 0.0625, %v1849_v7  ;;  %v6030_v54 = vand.u32 4294901760, %v4724_v11  ;;  %v6032_v11 = vand.u32 4294901760, %v4730_v18 }
 0x354   : > { %1926 = vperm.xlu0 %3655, %v4924_v62   ;;  %1650 = vperm.xlu2 %3654, %v4924_v62   ;;  %v1317_v32 = vmul.f32 %v1316_v49, %v1305_v25  ;;  %v4974_v49 = vmul.f32 0.70710677, %v4962_v13  ;;  %v6036_v6 = vand.u32 4294901760, %v4796_v23  ;;  %v6037_v52 = vand.u32 4294901760, %v4812_v28 }
 0x355   : > { %1374 = vperm.xlu1 %3653, %v4924_v62   ;;  %2121 = vmatpush.msrb.mxu1 %v2120_v56  ;;  %v2138_v53 = vand.u32 4294901760, %v2137_v48  ;;  %v1855_v45 = vmul.f32 %v4970_v38, %v4970_v38  ;;  %v6038_v56 = vand.u32 4294901760, %v4828_v34  ;;  %v5045_v58 = vsub.f32 %v4946_v63, %v4955_v17 }
 0x356   : > { %v1322_v43 = vmul.f32 %v3667_v29, %v1317_v32  ;;  %2253 = vmatpush.msra.mxu0 %v6030_v54  ;;  %v1964_v29 = vld [vmem:[#allocation14 + $0xe8] sm:$0xff] }
 0x357   : > { %2127 = vmatpush.msrb.mxu1 %v2126_v50  ;;  %v1856_v2 = vsub.f32 %v1854_v26, %v1855_v45  ;;  %v2387_v1 = vand.u32 4294901760, %v5045_v58  ;;  %v5054_v63 = vand.u32 4294901760, %v1964_v29  ;;  %v1962_v26 = vld [vmem:[#allocation14 + $0xd8] sm:$0xff] }
 0x358   : > { %v4968_v57 = vadd.f32 %v3668_v37, %v1322_v43  ;;  %2257 = vmatpush.msra.mxu0 %v6031_v40  ;;  %v1963_v37 = vld [vmem:[#allocation14 + $0xe0] sm:$0xff] }
 0x359   : > { %2133 = vmatpush.msrb.mxu1 %v2132_v4  ;;  %v1857_v18 = vmax.f32 %v1856_v2, 0.0  ;;  %v2388_v7 = vsub.f32 %v5045_v58, %v2387_v1  ;;  %v5070_v54 = vand.u32 4294901760, %v1963_v37  ;;  %v5073_v40 = vsub.f32 %v1964_v29, %v5054_v63 }
 0x35a   : > { %v4982_v42 = vmul.f32 0.70710677, %v4968_v57  ;;  %2261 = vmatpush.msra.mxu0 %v6032_v11 }
 0x35b   : > { %2139 = vmatpush.msrb.mxu1 %v2138_v53  ;;  %v5980_v2 = vand.u32 4294901760, %v5073_v40 }
 0x35c   : > { %v1330_v61 = vmul.f32 %v4982_v42, %v4982_v42 }
 0x35d   : > { %2308 = vmatpush.msra.mxu1 %v4694_v20  ;;  %v1607_v20 = vmul.f32 %v4974_v49, %v4974_v49 }
 0x35f   : > { %2310 = vmatpush.msra.mxu1 %v4696_v51  ;;  %v6033_v51 = vand.u32 4294901760, %v4744_v31  ;;  %v4996_v25 = vmin.f32 %v1607_v20, 16.0 }
 0x361   : > { %2312 = vmatpush.msra.mxu1 %v4698_v9  ;;  %2265 = vmatpush.msra.mxu0 %v6033_v51  ;;  %v6035_v9 = vand.u32 4294901760, %v4793_v19  ;;  %v1620_v31 = vmul.f32 3.8918573e-05, %v4996_v25  ;;  %v1609_v34 = vmul.f32 2.1237322e-06, %v4996_v25  ;;  %v2389_v51 = vand.u32 4294901760, %v2388_v7 }
 0x363   : > { %2314 = vmatpush.msra.mxu1 %v4700_v30  ;;  %2269 = vmatpush.msra.mxu0 %v6034_v24  ;;  %v5004_v30 = vmin.f32 %v1330_v61, 16.0  ;;  %v1621_v19 = vadd.f32 0.001143296, %v1620_v31  ;;  %v1610_v59 = vadd.f32 0.00028619796, %v1609_v34  ;;  %v5081_v24 = vand.u32 4294901760, %v1962_v26 }
 0x364   : > { %2390 = vmatpush.msrb.mxu3 %v2389_v51 }
 0x365   : > { %2316 = vmatpush.msra.mxu1 %v4702_v35  ;;  %2273 = vmatpush.msra.mxu0 %v6035_v9  ;;  %v1343_v35 = vmul.f32 3.8918573e-05, %v5004_v30  ;;  %v1611_v32 = vmul.f32 %v1610_v59, %v4996_v25  ;;  %v1332_v50 = vmul.f32 2.1237322e-06, %v5004_v30  ;;  %v1858_v9 = vsub.f32 %v4670_v44, %v4970_v38 }
 0x366   : > { %v5100_v44 = vsub.f32 %v1962_v26, %v5081_v24 }
 0x367   : > { %2318 = vmatpush.msra.mxu1 %v4704_v36  ;;  %2277 = vmatpush.msra.mxu0 %v6036_v6  ;;  %v1859_v36 = vadd.f32 1e-05, %v1857_v18  ;;  %v1612_v45 = vadd.f32 0.0036580483, %v1611_v32  ;;  %v1333_v20 = vadd.f32 0.00028619796, %v1332_v50  ;;  %v5091_v6 = vsub.f32 %v1963_v37, %v5070_v54 }
 0x369   : > { %2320 = vmatpush.msra.mxu1 %v4719_v16  ;;  %2281 = vmatpush.msra.mxu0 %v6037_v52  ;;  %v1344_v16 = vadd.f32 0.001143296, %v1343_v35  ;;  %3682 = vrsqrt.f32 %v1859_v36  ;;  %vm1866_vm2 = vweird.f32 %v1859_v36  ;;  %v1961_v35 = vld [vmem:[#allocation14 + $0xd0] sm:$0xff]  ;;  %v1613_v38 = vmul.f32 %v1612_v45, %v4996_v25 }
 0x36b   : > { %2322 = vmatpush.msra.mxu1 %v4737_v14  ;;  %2285 = vmatpush.msra.mxu0 %v6038_v56  ;;  %v1622_v14 = vmul.f32 %v1621_v19, %v4996_v25  ;;  %v5097_v19 = vand.u32 4294901760, %v1961_v35  ;;  %v5978_v56 = vand.u32 4294901760, %v5091_v6  ;;  %v1614_v59 = vadd.f32 0.05243302, %v1613_v38 }
 0x36d   : > { %2324 = vmatpush.msra.mxu1 %v4778_v46  ;;  %2289 = vmatpush.msra.mxu0 %v2118_v41  ;;  %v1345_v46 = vmul.f32 %v1344_v16, %v5004_v30  ;;  %v1960_v16 = vld [vmem:[#allocation14 + $0xc8] sm:$0xff] }
 0x36f   : > { %2326 = vmatpush.msra.mxu1 %v4780_v55  ;;  %2293 = vmatpush.msra.mxu0 %v2124_v5  ;;  %v1623_v55 = vadd.f32 0.014752088, %v1622_v14  ;;  %v5031_v23 = vpop.eup %3682  ;;  %v1334_v14 = vmul.f32 %v1333_v20, %v5004_v30 }
 0x370   : > { %v1861_v28 = vmul.f32 %v5031_v23, %v1859_v36  ;;  %vm1867_vm3 = vweird.f32 %v5031_v23  ;;  %v2400_v36 = vsub.f32 %v5073_v40, %v5980_v2 }
 0x371   : > { %2328 = vmatpush.msra.mxu1 %v4788_v15  ;;  %2297 = vmatpush.msra.mxu0 %v2130_v12  ;;  %v1346_v15 = vadd.f32 0.014752088, %v1345_v46  ;;  %vm5061_vm4 = vmor %vm1866_vm2, %vm1867_vm3 }
 0x372   : > { %v1862_v12 = vmul.f32 %v5031_v23, %v1861_v28  ;;  %v5112_v28 = vsub.f32 %v1961_v35, %v5097_v19 }
 0x373   : > { %2330 = vmatpush.msra.mxu1 %v4800_v10  ;;  %2301 = vmatpush.msra.mxu0 %v2136_v3  ;;  %v1624_v10 = vmul.f32 %v1623_v55, %v4996_v25  ;;  %v1347_v41 = vmul.f32 %v1346_v15, %v5004_v30  ;;  %v2401_v55 = vand.u32 4294901760, %v2400_v36  ;;  %v5109_v15 = vand.u32 4294901760, %v1960_v16 }
 0x374   : > { %v1863_v21 = vmul.f32 0.5, %v1862_v12  ;;  %v5976_v34 = vand.u32 4294901760, %v5112_v28 }
 0x375   : > { %2332 = vmatpush.msra.mxu1 %v4814_v47  ;;  %v1625_v47 = vadd.f32 0.112945676, %v1624_v10  ;;  %v1348_v8 = vadd.f32 0.112945676, %v1347_v41  ;;  %v2406_v10 = vsub.f32 %v5091_v6, %v5978_v56  ;;  %v1959_v41 = vld [vmem:[#allocation14 + $0xc0] sm:$0xff] }
 0x376   : > { %v2418_v32 = vsub.f32 %v5112_v28, %v5976_v34 }
 0x377   : > { %2334 = vmatpush.msra.mxu1 %v4830_v33  ;;  %v1626_v33 = vmul.f32 %v1625_v47, %v4996_v25  ;;  %v1349_v5 = vmul.f32 %v1348_v8, %v5004_v30  ;;  %v5123_v8 = vand.u32 4294901760, %v1959_v41 }
 0x378   : > { %v2419_v26 = vand.u32 4294901760, %v2418_v32 }
 0x379   : > { %2336 = vmatpush.msra.mxu1 %v4846_v27  ;;  %v1864_v27 = vsub.f32 1.5, %v1863_v21  ;;  %v1627_v3 = vadd.f32 0.4994258, %v1626_v33  ;;  %v1350_v48 = vadd.f32 0.4994258, %v1349_v5  ;;  %v5126_v21 = vsub.f32 %v1960_v16, %v5109_v15 }
 0x37a   : > { %v3665_v33 = vld [vmem:[#allocation9 + $0x3] ss:$0 sm:$0xff]  ;;  %v2407_v5 = vand.u32 4294901760, %v2406_v10  ;;  %v5137_v37 = vsub.f32 %v1959_v41, %v5123_v8 }
 0x37b   : > { %2338 = vmatpush.msra.mxu1 %v4862_v22  ;;  %v5047_v22 = vand.u32 4294901760, %v1965_v0  ;;  %v1865_v4 = vmul.f32 %v5031_v23, %v1864_v27  ;;  %v1628_v43 = vmul.f32 %v1627_v3, %v4996_v25  ;;  %v1351_v11 = vmul.f32 %v1350_v48, %v5004_v30  ;;  %v1958_v27 = vld [vmem:[#allocation14 + $0xb8] sm:$0xff]  ;;  %v1957_v48 = vld [vmem:[#allocation14 + $0xb0] sm:$0xff] }
 0x37c   : > { %v1335_v3 = vadd.f32 0.0036580483, %v1334_v14  ;;  %v5974_v29 = vand.u32 4294901760, %v5126_v21  ;;  %v5134_v50 = vand.u32 4294901760, %v1958_v27  ;;  %v5139_v53 = vand.u32 4294901760, %v1957_v48  ;;  %v1954_v14 = vld [vmem:[#allocation14 + $0x98] sm:$0xff] }
 0x37d   : > { %2347 = vmatpush.msrb.mxu2 %v5047_v22  ;;  %v5057_v60 = vsub.f32 %v1965_v0, %v5047_v22  ;;  %v1869_v18 = vsel %vm5061_vm4, %v5031_v23, %v1865_v4  ;;  %v5088_v31 = vadd.f32 1.0, %v1628_v43  ;;  %v5105_v46 = vadd.f32 1.0, %v1351_v11  ;;  %v1956_v4 = vld [vmem:[#allocation14 + $0xa8] sm:$0xff]  ;;  %v1955_v43 = vld [vmem:[#allocation14 + $0xa0] sm:$0xff] }
 0x37e   : > { %v5977_v23 = vand.u32 4294901760, %v5100_v44  ;;  %v1870_v12 = vmul.f32 %v1869_v18, %v1858_v9  ;;  %v5141_v7 = vand.u32 4294901760, %v1956_v4  ;;  %v5143_v45 = vand.u32 4294901760, %v1955_v43 }
 0x37f   : > { %2349 = vmatpush.msrb.mxu2 %v5054_v63  ;;  %v5981_v39 = vand.u32 4294901760, %v5057_v60  ;;  %3684 = vrcp.f32 %v5088_v31  ;;  %v2424_v20 = vsub.f32 %v5126_v21, %v5974_v29  ;;  %v5150_v11 = vsub.f32 %v1958_v27, %v5134_v50 }
 0x380   : > { %v2412_v47 = vsub.f32 %v5100_v44, %v5977_v23  ;;  %3686 = vrcp.f32 %v5105_v46  ;;  %v1875_v51 = vmul.f32 %v3665_v33, %v1870_v12  ;;  %v5973_v18 = vand.u32 4294901760, %v5137_v37 }
 0x381   : > { %v2394_v61 = vsub.f32 %v5057_v60, %v5981_v39  ;;  %2351 = vmatpush.msrb.mxu2 %v5070_v54  ;;  %v5156_v35 = vsub.f32 %v1957_v48, %v5139_v53  ;;  %v5162_v36 = vsub.f32 %v1955_v43, %v5143_v45  ;;  %v2425_v38 = vand.u32 4294901760, %v2424_v20 }
 0x382   : > { %v2413_v0 = vand.u32 4294901760, %v2412_v47  ;;  %v5972_v16 = vand.u32 4294901760, %v5150_v11  ;;  %v2430_v41 = vsub.f32 %v5137_v37, %v5973_v18  ;;  %vm1635_vm5 = vweird.f32 %v5088_v31 }
 0x383   : > { %v2395_v52 = vand.u32 4294901760, %v2394_v61  ;;  %2353 = vmatpush.msrb.mxu2 %v5081_v24  ;;  %v3666_v61 = vld [vmem:[#allocation11 + $0x3] ss:$0 sm:$0xff]  ;;  %v5970_v12 = vand.u32 4294901760, %v5156_v35  ;;  %v5971_v33 = vand.u32 4294901760, %v5162_v36  ;;  %vm1358_vm10 = vweird.f32 %v5105_v46 }
 0x384   : > { %v2431_v32 = vand.u32 4294901760, %v2430_v41  ;;  %v1639_v23 = vand.u32 2147483647, %v5088_v31  ;;  %v1362_v56 = vand.u32 2147483647, %v5105_v46 }
 0x385   : > { %2396 = vmatpush.msrb.mxu3 %v2395_v52  ;;  %2355 = vmatpush.msrb.mxu2 %v5097_v19  ;;  %v5152_v9 = vpop.eup %3684  ;;  %v5159_v52 = vsub.f32 %v1956_v4, %v5141_v7  ;;  %v2442_v48 = vsub.f32 %v5156_v35, %v5970_v12  ;;  %v5190_v4 = vand.u32 4294901760, %v1954_v14  ;;  %v2454_v20 = vsub.f32 %v5162_v36, %v5971_v33  ;;  %v1952_v33 = vld [vmem:[#allocation14 + $0x88] sm:$0xff] }
 0x386   : > { %v5167_v10 = vpop.eup %3686  ;;  %v1631_v27 = vmul.f32 %v5152_v9, %v5088_v31  ;;  %vm1636_vm6 = vweird.f32 %v5152_v9  ;;  %vm1640_vm8 = vcmp.eq.f32.partialorder %v1639_v23, 8.507059e+37  ;;  %vm1363_vm12 = vcmp.eq.f32.partialorder %v1362_v56, 8.507059e+37 }
 0x387   : > { %2402 = vmatpush.msrb.mxu3 %v2401_v55  ;;  %2357 = vmatpush.msrb.mxu2 %v5109_v15  ;;  %v1336_v55 = vmul.f32 %v1335_v3, %v5004_v30  ;;  %v5969_v47 = vand.u32 4294901760, %v5159_v52  ;;  %v2436_v3 = vsub.f32 %v5150_v11, %v5972_v16  ;;  %vm5242_vm7 = vmor %vm1635_vm5, %vm1636_vm6  ;;  %vm1359_vm9 = vweird.f32 %v5167_v10 }
 0x388   : > { %vm1360_vm11 = vmor %vm1358_vm10, %vm1359_vm9 }
 0x389   : > { %2359 = vmatpush.msrb.mxu2 %v5123_v8  ;;  %2408 = vmatpush.msrb.mxu3 %v2407_v5  ;;  %v1615_v5 = vmul.f32 %v1614_v59, %v4996_v25  ;;  %v2448_v59 = vsub.f32 %v5159_v52, %v5969_v47  ;;  %v2437_v43 = vand.u32 4294901760, %v2436_v3  ;;  %v1953_v47 = vld [vmem:[#allocation14 + $0x90] sm:$0xff] }
 0x38a   : > { %v5200_v3 = vand.u32 4294901760, %v1953_v47 }
 0x38b   : > { %2361 = vmatpush.msrb.mxu2 %v5134_v50  ;;  %2414 = vmatpush.msrb.mxu3 %v2413_v0  ;;  %v5182_v0 = vadd.f32 %v3666_v61, %v1875_v51  ;;  %v1337_v51 = vadd.f32 0.05243302, %v1336_v55  ;;  %v1616_v61 = vadd.f32 0.18741608, %v1615_v5  ;;  %v2449_v12 = vand.u32 4294901760, %v2448_v59 }
 0x38c   : > { %v2455_v55 = vand.u32 4294901760, %v2454_v20 }
 0x38d   : > { %2363 = vmatpush.msrb.mxu2 %v5139_v53  ;;  %2420 = vmatpush.msrb.mxu3 %v2419_v26  ;;  %v2443_v26 = vand.u32 4294901760, %v2442_v48  ;;  %v5198_v41 = vmul.f32 0.70710677, %v5182_v0  ;;  %v1354_v48 = vmul.f32 %v5167_v10, %v5105_v46  ;;  %v1617_v59 = vmul.f32 %v1616_v61, %v4996_v25 }
 0x38e   : > { %v1338_v18 = vmul.f32 %v1337_v51, %v5004_v30  ;;  %v1641_v51 = vand.u32 2147483648, %v5088_v31 }
 0x38f   : > { %2365 = vmatpush.msrb.mxu2 %v5141_v7  ;;  %2426 = vmatpush.msrb.mxu3 %v2425_v38  ;;  %v1632_v38 = vsub.f32 1.0, %v1631_v27  ;;  %v5209_v27 = vand.u32 4294901760, %v1952_v33  ;;  %v1883_v16 = vmul.f32 %v5198_v41, %v5198_v41 }
 0x390   : > { %v1339_v2 = vadd.f32 0.18741608, %v1338_v18  ;;  %v1642_v39 = vor.u32 1.1754944e-38, %v1641_v51 }
 0x391   : > { %2367 = vmatpush.msrb.mxu2 %v5143_v45  ;;  %2432 = vmatpush.msrb.mxu3 %v2431_v32  ;;  %v5203_v32 = vsub.f32 %v1954_v14, %v5190_v4  ;;  %v1633_v14 = vmul.f32 %v5152_v9, %v1632_v38  ;;  %v5227_v25 = vsub.f32 %v1952_v33, %v5209_v27 }
 0x392   : > { %v1340_v51 = vmul.f32 %v1339_v2, %v5004_v30 }
 0x393   : > { %2369 = vmatpush.msrb.mxu2 %v5190_v4  ;;  %2438 = vmatpush.msrb.mxu3 %v2437_v43  ;;  %v5975_v5 = vand.u32 4294901760, %v5203_v32  ;;  %v5212_v43 = vsub.f32 %v1953_v47, %v5200_v3  ;;  %v1634_v34 = vadd.f32 %v5152_v9, %v1633_v14 }
 0x395   : > { %2444 = vmatpush.msrb.mxu3 %v2443_v26  ;;  %2371 = vmatpush.msrb.mxu2 %v5200_v3  ;;  %v1951_v26 = vld [vmem:[#allocation14 + $0x80] sm:$0xff]  ;;  %v2460_v20 = vsub.f32 %v5203_v32, %v5975_v5  ;;  %v5979_v47 = vand.u32 4294901760, %v5212_v43  ;;  %v5982_v5 = vand.u32 4294901760, %v5227_v25 }
 0x396   : > { %v5224_v29 = vand.u32 4294901760, %v1951_v26 }
 0x397   : > { %2450 = vmatpush.msrb.mxu3 %v2449_v12  ;;  %2373 = vmatpush.msrb.mxu2 %v5209_v27  ;;  %v1355_v12 = vsub.f32 1.0, %v1354_v48  ;;  %v2461_v61 = vand.u32 4294901760, %v2460_v20  ;;  %v2466_v38 = vsub.f32 %v5212_v43, %v5979_v47  ;;  %v5246_v48 = vmin.f32 %v1883_v16, 16.0 }
 0x398   : > { %v5238_v33 = vsub.f32 %v1951_v26, %v5224_v29  ;;  %v2472_v20 = vsub.f32 %v5227_v25, %v5982_v5  ;;  %v1618_v26 = vadd.f32 1.1283791, %v1617_v59 }
 0x399   : > { %2456 = vmatpush.msrb.mxu3 %v2455_v55  ;;  %2375 = vmatpush.msrb.mxu2 %v5224_v29  ;;  %v2467_v55 = vand.u32 4294901760, %v2466_v38  ;;  %v1356_v14 = vmul.f32 %v5167_v10, %v1355_v12  ;;  %v1896_v38 = vmul.f32 3.8918573e-05, %v5246_v48 }
 0x39a   : > { %v2477_v47 = vand.u32 4294901760, %v5238_v33  ;;  %v2473_v31 = vand.u32 4294901760, %v2472_v20  ;;  %v1619_v18 = vmul.f32 %v1618_v26, %v4974_v49 }
 0x39b   : > { %2462 = vmatpush.msrb.mxu3 %v2461_v61  ;;  %v1638_v61 = vsel %vm5242_vm7, %v5152_v9, %v1634_v34  ;;  %v1357_v12 = vadd.f32 %v5167_v10, %v1356_v14  ;;  %v1897_v20 = vadd.f32 0.001143296, %v1896_v38  ;;  %v1341_v34 = vadd.f32 1.1283791, %v1340_v51 }
 0x39c   : > { %v2478_v16 = vsub.f32 %v5238_v33, %v2477_v47  ;;  %v1643_v59 = vsel %vm1640_vm8, %v1642_v39, %v1638_v61 }
 0x39d   : > { %2468 = vmatpush.msrb.mxu3 %v2467_v55  ;;  %v1364_v55 = vand.u32 2147483648, %v5105_v46  ;;  %v1644_v23 = vmul.f32 %v1643_v59, %v1619_v18  ;;  %v1361_v49 = vsel %vm1360_vm11, %v5167_v10, %v1357_v12  ;;  %v1898_v30 = vmul.f32 %v1897_v20, %v5246_v48 }
 0x39e   : > { %v2479_v5 = vand.u32 4294901760, %v2478_v16  ;;  %v1605_v16 = vmul.f32 0.5, %v4962_v13  ;;  %v1328_v12 = vmul.f32 0.5, %v4968_v57  ;;  %v1885_v13 = vmul.f32 2.1237322e-06, %v5246_v48 }
 0x39f   : > { %2474 = vmatpush.msrb.mxu3 %v2473_v31  ;;  %v1365_v39 = vor.u32 1.1754944e-38, %v1364_v55  ;;  %v3533_v2 = vclamps-f32 %v1644_v23, 1.0  ;;  %v1899_v26 = vadd.f32 0.014752088, %v1898_v30 }
 0x3a0   : > { %v1886_v57 = vadd.f32 0.00028619796, %v1885_v13  ;;  %v6050_v13 = vand.u32 4294901760, %v5150_v11 }
 0x3a1   : > { %2480 = vmatpush.msrb.mxu3 %v2479_v5  ;;  %v1366_v9 = vsel %vm1363_vm12, %v1365_v39, %v1361_v49  ;;  %v1342_v5 = vmul.f32 %v1341_v34, %v4982_v42  ;;  %v1647_v31 = vadd.f32 1.0, %v3533_v2  ;;  %v1900_v46 = vmul.f32 %v1899_v26, %v5246_v48 }
 0x3a3   : > { %v1367_v14 = vmul.f32 %v1366_v9, %v1342_v5  ;;  %v1648_v18 = vmul.f32 %v1647_v31, %v1605_v16  ;;  %v1901_v10 = vadd.f32 0.112945676, %v1900_v46  ;;  %v6043_v31 = vand.u32 4294901760, %v5057_v60 }
 0x3a4   : > { %v1887_v16 = vmul.f32 %v1886_v57, %v5246_v48 }
 0x3a5   : > { %v3532_v38 = vclamps-f32 %v1367_v14, 1.0  ;;  %v1902_v20 = vmul.f32 %v1901_v10, %v5246_v48 }
 0x3a7   : > { %v1370_v51 = vadd.f32 1.0, %v3532_v38  ;;  %v1903_v49 = vadd.f32 0.4994258, %v1902_v20 }
 0x3a9   : > { %v1371_v42 = vmul.f32 %v1370_v51, %v1328_v12  ;;  %v1904_v9 = vmul.f32 %v1903_v49, %v5246_v48  ;;  %v6048_v51 = vand.u32 4294901760, %v5126_v21 }
 0x3ae   : > { %v1651_v61 = vpop.permute.xlu2 %1650 }
 0x3af   : > { %v1653_v59 = vmul.f32 %v1651_v61, %v1648_v18  ;;  %v5293_v61 = vadd.f32 1.0, %v1904_v9  ;;  %v1888_v18 = vadd.f32 0.0036580483, %v1887_v16  ;;  %v1977_v9 = vld [vmem:[#allocation14 + $0x150] sm:$0xff]  ;;  %v1975_v16 = vld [vmem:[#allocation14 + $0x140] sm:$0xff] }
 0x3b1   : > { %v5273_v55 = vand.u32 4294901760, %v1653_v59  ;;  %3688 = vrcp.f32 %v5293_v61  ;;  %vm1911_vm13 = vweird.f32 %v5293_v61 }
 0x3b3   : > { %v5277_v34 = vsub.f32 %v1653_v59, %v5273_v55  ;;  %v1889_v59 = vmul.f32 %v1888_v18, %v5246_v48  ;;  %v6054_v18 = vand.u32 4294901760, %v5203_v32 }
 0x3b5   : > { %v2378_v2 = vand.u32 4294901760, %v5277_v34  ;;  %v1890_v12 = vadd.f32 0.05243302, %v1889_v59  ;;  %v1974_v59 = vld [vmem:[#allocation14 + $0x138] sm:$0xff] }
 0x3b7   : > { %v2379_v14 = vsub.f32 %v5277_v34, %v2378_v2  ;;  %v5317_v10 = vpop.eup %3688 }
 0x3b8   : > { %vm1912_vm14 = vweird.f32 %v5317_v10 }
 0x3b9   : > { %v2380_v38 = vand.u32 4294901760, %v2379_v14  ;;  %vm5425_vm15 = vmor %vm1911_vm13, %vm1912_vm14 }
 0x3c7   : > { %v1375_v56 = vpop.permute.xlu1 %1374 }
 0x3c8   : > { %v1377_v23 = vmul.f32 %v1375_v56, %v1371_v42  ;;  %v1907_v42 = vmul.f32 %v5317_v10, %v5293_v61 }
 0x3ca   : > { %v2035_v39 = vand.u32 4294901760, %v1377_v23 }
 0x3cc   : > { %v2036_v30 = vsub.f32 %v1377_v23, %v2035_v39  ;;  %2141 = vmatmul.f32.vlgmr.msrb.gmra.mxu1 %v2035_v39  ;;  %v1978_v23 = vld [vmem:[#allocation14 + $0x158] sm:$0xff] }
 0x3cd   : > { %2541 = vmatpush.msrb.mxu1 %v4955_v17 }
 0x3ce   : > { %v2037_v5 = vand.u32 4294901760, %v2036_v30  ;;  %2195 = vmatmul.f32.vlgmr.msra.gmra.mxu2 %v2036_v30 }
 0x3cf   : > { %2543 = vmatpush.msrb.mxu1 %v5047_v22  ;;  %2582 = vmatpush.msra.mxu2 %v2387_v1  ;;  %v6044_v1 = vand.u32 4294901760, %v5073_v40 }
 0x3d0   : > { %v2038_v26 = vsub.f32 %v2036_v30, %v2037_v5  ;;  %2234 = vmatmul.f32.vlgmr.msra.gmra.mxu3 %v2037_v5 }
 0x3d1   : > { %2545 = vmatpush.msrb.mxu1 %v5054_v63  ;;  %2586 = vmatpush.msra.mxu2 %v6043_v31 }
 0x3d2   : > { %2649 = vmatpush.msra.mxu3 %v4955_v17  ;;  %v2039_v46 = vand.u32 4294901760, %v2038_v26  ;;  %v6045_v17 = vand.u32 4294901760, %v5091_v6  ;;  %v6052_v26 = vand.u32 4294901760, %v5159_v52 }
 0x3d3   : > { %2547 = vmatpush.msrb.mxu1 %v5070_v54  ;;  %2590 = vmatpush.msra.mxu2 %v6044_v1 }
 0x3d4   : > { %2651 = vmatpush.msra.mxu3 %v5047_v22  ;;  %2040 = vmatmul.f32.vlgmr.msrb.gmra.mxu0 %v2039_v46  ;;  %v6046_v22 = vand.u32 4294901760, %v5100_v44  ;;  %v6053_v46 = vand.u32 4294901760, %v5162_v36 }
 0x3d5   : > { %2340 = vmatmul.f32.vlgmr.msra.gmra.mxu1 %v2035_v39  ;;  %2488 = vmatpush.msrb.mxu0 %v5045_v58  ;;  %v1982_v58 = vld [vmem:[#allocation14 + $0x178] sm:$0xff] }
 0x3d6   : > { %2549 = vmatpush.msrb.mxu1 %v5081_v24  ;;  %2594 = vmatpush.msra.mxu2 %v6045_v17 }
 0x3d7   : > { %2653 = vmatpush.msra.mxu3 %v5054_v63  ;;  %2381 = vmatmul.f32.vlgmr.msrb.gmra.mxu2 %v2380_v38  ;;  %v6047_v63 = vand.u32 4294901760, %v5112_v28 }
 0x3d8   : > { %2491 = vmatpush.msrb.mxu0 %v5057_v60  ;;  %2551 = vmatpush.msrb.mxu1 %v5097_v19  ;;  %v1981_v60 = vld [vmem:[#allocation14 + $0x170] sm:$0xff] }
 0x3d9   : > { %2598 = vmatpush.msra.mxu2 %v6046_v22  ;;  %2655 = vmatpush.msra.mxu3 %v5070_v54  ;;  %v5321_v54 = vand.u32 4294901760, %v1982_v58  ;;  %v5327_v20 = vand.u32 4294901760, %v1981_v60 }
 0x3da   : > { %2482 = vmatmul.f32.vlgmr.msrb.gmra.mxu3 %v5273_v55  ;;  %2494 = vmatpush.msrb.mxu0 %v5073_v40  ;;  %v1980_v40 = vld [vmem:[#allocation14 + $0x168] sm:$0xff] }
 0x3db   : > { %2553 = vmatpush.msrb.mxu1 %v5109_v15  ;;  %2602 = vmatpush.msra.mxu2 %v6047_v63  ;;  %v5337_v56 = vsub.f32 %v1982_v58, %v5321_v54  ;;  %v5348_v49 = vsub.f32 %v1981_v60, %v5327_v20  ;;  %v5401_v58 = vand.u32 4294901760, %v1975_v16  ;;  %v1915_v63 = vand.u32 2147483647, %v5293_v61 }
 0x3dc   : > { %2657 = vmatpush.msra.mxu3 %v5081_v24  ;;  %2497 = vmatpush.msrb.mxu0 %v5091_v6  ;;  %v1979_v24 = vld [vmem:[#allocation14 + $0x160] sm:$0xff]  ;;  %v6049_v6 = vand.u32 4294901760, %v5137_v37  ;;  %v6055_v60 = vand.u32 4294901760, %v5212_v43 }
 0x3dd   : > { %2555 = vmatpush.msrb.mxu1 %v5123_v8  ;;  %2606 = vmatpush.msra.mxu2 %v6048_v51  ;;  %v6000_v30 = vand.u32 4294901760, %v5337_v56  ;;  %vm5442_vm0 = vcmp.eq.f32.partialorder %v1915_v63, 8.507059e+37 }
 0x3de   : > { %2659 = vmatpush.msra.mxu3 %v5097_v19  ;;  %2303 = vmatmul.f32.vlgmr.msra.gmra.mxu0 %v2035_v39  ;;  %v5339_v19 = vand.u32 4294901760, %v1980_v40  ;;  %v1908_v39 = vsub.f32 1.0, %v1907_v42 }
 0x3df   : > { %2500 = vmatpush.msrb.mxu0 %v5100_v44  ;;  %2557 = vmatpush.msrb.mxu1 %v5134_v50  ;;  %v1891_v44 = vmul.f32 %v1890_v12, %v5246_v48 }
 0x3e0   : > { %2610 = vmatpush.msra.mxu2 %v6049_v6  ;;  %2661 = vmatpush.msra.mxu3 %v5109_v15  ;;  %v5350_v15 = vand.u32 4294901760, %v1979_v24  ;;  %v5359_v57 = vsub.f32 %v1980_v40, %v5339_v19  ;;  %v1909_v31 = vmul.f32 %v5317_v10, %v1908_v39  ;;  %v1972_v39 = vld [vmem:[#allocation14 + $0x128] sm:$0xff] }
 0x3e1   : > { %2503 = vmatpush.msrb.mxu0 %v5112_v28  ;;  %2559 = vmatpush.msrb.mxu1 %v5139_v53  ;;  %v6051_v28 = vand.u32 4294901760, %v5156_v35  ;;  %v1892_v5 = vadd.f32 0.18741608, %v1891_v44 }
 0x3e2   : > { %2614 = vmatpush.msra.mxu2 %v6050_v13  ;;  %2663 = vmatpush.msra.mxu3 %v5123_v8  ;;  %v5361_v8 = vand.u32 4294901760, %v1978_v23  ;;  %v5370_v14 = vsub.f32 %v1979_v24, %v5350_v15  ;;  %v5997_v1 = vand.u32 4294901760, %v5359_v57  ;;  %v5440_v13 = vsub.f32 %v1975_v16, %v5401_v58 }
 0x3e3   : > { %2506 = vmatpush.msrb.mxu0 %v5126_v21  ;;  %2561 = vmatpush.msrb.mxu1 %v5141_v7  ;;  %v1976_v21 = vld [vmem:[#allocation14 + $0x148] sm:$0xff] }
 0x3e4   : > { %2618 = vmatpush.msra.mxu2 %v6051_v28  ;;  %2665 = vmatpush.msra.mxu3 %v5134_v50  ;;  %v5999_v50 = vand.u32 4294901760, %v5348_v49  ;;  %v5385_v38 = vsub.f32 %v1978_v23, %v5361_v8  ;;  %v5996_v22 = vand.u32 4294901760, %v5370_v14  ;;  %v2741_v40 = vsub.f32 %v5359_v57, %v5997_v1  ;;  %v1989_v1 = vld [vmem:[#allocation14 + $0x1b0] sm:$0xff] }
 0x3e5   : > { %2509 = vmatpush.msrb.mxu0 %v5137_v37  ;;  %2563 = vmatpush.msrb.mxu1 %v5143_v45  ;;  %v5375_v37 = vand.u32 4294901760, %v1977_v9  ;;  %v6058_v23 = vand.u32 4294901760, %v5227_v25 }
 0x3e6   : > { %2622 = vmatpush.msra.mxu2 %v6052_v26  ;;  %2667 = vmatpush.msra.mxu3 %v5139_v53  ;;  %v2729_v53 = vsub.f32 %v5337_v56, %v6000_v30  ;;  %v2735_v17 = vsub.f32 %v5348_v49, %v5999_v50  ;;  %v5995_v12 = vand.u32 4294901760, %v5385_v38  ;;  %v1987_v30 = vld [vmem:[#allocation14 + $0x1a0] sm:$0xff] }
 0x3e7   : > { %2512 = vmatpush.msrb.mxu0 %v5150_v11  ;;  %2565 = vmatpush.msrb.mxu1 %v5190_v4  ;;  %v5387_v11 = vand.u32 4294901760, %v1976_v21 }
 0x3e8   : > { %2626 = vmatpush.msra.mxu2 %v6053_v46  ;;  %2669 = vmatpush.msra.mxu3 %v5141_v7  ;;  %v1893_v7 = vmul.f32 %v1892_v5, %v5246_v48  ;;  %v1917_v48 = vand.u32 2147483648, %v5293_v61  ;;  %v2730_v51 = vand.u32 4294901760, %v2729_v53  ;;  %v2736_v44 = vand.u32 4294901760, %v2735_v17  ;;  %v1970_v53 = vld [vmem:[#allocation14 + $0x118] sm:$0xff] }
 0x3e9   : > { %2515 = vmatpush.msrb.mxu0 %v5156_v35  ;;  %2567 = vmatpush.msrb.mxu1 %v5200_v3  ;;  %v1910_v35 = vadd.f32 %v5317_v10, %v1909_v31  ;;  %v5419_v42 = vsub.f32 %v1976_v21, %v5387_v11  ;;  %v2747_v61 = vsub.f32 %v5370_v14, %v5996_v22  ;;  %v2742_v5 = vand.u32 4294901760, %v2741_v40 }
 0x3ea   : > { %2630 = vmatpush.msra.mxu2 %v6054_v18  ;;  %2671 = vmatpush.msra.mxu3 %v5143_v45  ;;  %v5409_v45 = vsub.f32 %v1977_v9, %v5375_v37  ;;  %v1894_v6 = vadd.f32 1.1283791, %v1893_v7  ;;  %v1918_v28 = vor.u32 1.1754944e-38, %v1917_v48  ;;  %v2753_v26 = vsub.f32 %v5385_v38, %v5995_v12 }
 0x3eb   : > { %2518 = vmatpush.msrb.mxu0 %v5159_v52  ;;  %2569 = vmatpush.msrb.mxu1 %v5209_v27  ;;  %v1973_v52 = vld [vmem:[#allocation14 + $0x130] sm:$0xff]  ;;  %v1914_v21 = vsel %vm5425_vm15, %v5317_v10, %v1910_v35  ;;  %v5466_v10 = vand.u32 4294901760, %v1972_v39  ;;  %v5991_v46 = vand.u32 4294901760, %v5440_v13  ;;  %v5493_v63 = vand.u32 4294901760, %v1970_v53 }
 0x3ec   : > { %2634 = vmatpush.msra.mxu2 %v6055_v60  ;;  %2673 = vmatpush.msra.mxu3 %v5190_v4  ;;  %v5431_v4 = vand.u32 4294901760, %v1974_v59  ;;  %v5450_v9 = vand.u32 4294901760, %v1973_v52  ;;  %v1895_v16 = vmul.f32 %v1894_v6, %v5198_v41  ;;  %v1919_v7 = vsel %vm5442_vm0, %v1918_v28, %v1914_v21  ;;  %v1968_v60 = vld [vmem:[#allocation14 + $0x108] sm:$0xff]  ;;  %v1967_v6 = vld [vmem:[#allocation14 + $0x100] sm:$0xff] }
 0x3ed   : > { %2521 = vmatpush.msrb.mxu0 %v5162_v36  ;;  %2571 = vmatpush.msrb.mxu1 %v5224_v29  ;;  %v2754_v17 = vand.u32 4294901760, %v2753_v26  ;;  %v5491_v35 = vsub.f32 %v1972_v39, %v5466_v10  ;;  %v5517_v39 = vand.u32 4294901760, %v1968_v60  ;;  %v5665_v22 = vand.u32 4294901760, %v1989_v1 }
 0x3ee   : > { %2638 = vmatpush.msra.mxu2 %v6058_v23  ;;  %2675 = vmatpush.msra.mxu3 %v5200_v3  ;;  %v5994_v3 = vand.u32 4294901760, %v5409_v45  ;;  %v5464_v31 = vsub.f32 %v1974_v59, %v5431_v4  ;;  %v5479_v41 = vsub.f32 %v1973_v52, %v5450_v9  ;;  %v1920_v48 = vmul.f32 %v1919_v7, %v1895_v16 }
 0x3ef   : > { %2575 = vmatmul.f32.vlgmr.msrb.gmra.mxu1 %v2378_v2  ;;  %2524 = vmatpush.msrb.mxu0 %v5203_v32  ;;  %v5993_v2 = vand.u32 4294901760, %v5419_v42  ;;  %v1971_v32 = vld [vmem:[#allocation14 + $0x120] sm:$0xff] }
 0x3f0   : > { %2731 = vmatpush.msra.mxu1 %v2730_v51  ;;  %2642 = vmatpush.msra.mxu2 %v2477_v47  ;;  %v2748_v47 = vand.u32 4294901760, %v2747_v61  ;;  %v5481_v18 = vand.u32 4294901760, %v1971_v32  ;;  %v5989_v40 = vand.u32 4294901760, %v5479_v41  ;;  %v5515_v61 = vsub.f32 %v1970_v53, %v5493_v63 }
 0x3f1   : > { %2677 = vmatpush.msra.mxu3 %v5209_v27  ;;  %2644 = vmatmul.f32.vlgmr.msra.gmra.mxu2 %v5273_v55  ;;  %v2759_v27 = vsub.f32 %v5409_v45, %v5994_v3  ;;  %v2765_v59 = vsub.f32 %v5419_v42, %v5993_v2  ;;  %v3534_v36 = vclamps-f32 %v1920_v48, 1.0  ;;  %v1881_v53 = vmul.f32 0.5, %v5182_v0  ;;  %v1998_v0 = vld [vmem:[#allocation14 + $0x1f8] sm:$0xff] }
 0x3f2   : > { %2737 = vmatpush.msra.mxu1 %v2736_v44  ;;  %2829 = vmatpush.msrb.mxu2 %v5337_v56  ;;  %v5503_v52 = vsub.f32 %v1971_v32, %v5481_v18  ;;  %v5988_v44 = vand.u32 4294901760, %v5491_v35  ;;  %v5986_v16 = vand.u32 4294901760, %v5515_v61 }
 0x3f3   : > { %2527 = vmatpush.msrb.mxu0 %v5212_v43  ;;  %2679 = vmatpush.msra.mxu3 %v5224_v29  ;;  %v1969_v43 = vld [vmem:[#allocation14 + $0x110] sm:$0xff]  ;;  %v5990_v29 = vand.u32 4294901760, %v5464_v31  ;;  %v2760_v51 = vand.u32 4294901760, %v2759_v27  ;;  %v1923_v7 = vadd.f32 1.0, %v3534_v36 }
 0x3f4   : > { %2681 = vmatmul.f32.vlgmr.msra.gmra.mxu3 %v5273_v55  ;;  %2743 = vmatpush.msra.mxu1 %v2742_v5  ;;  %v2771_v55 = vsub.f32 %v5440_v13, %v5991_v46  ;;  %v5505_v24 = vand.u32 4294901760, %v1969_v43  ;;  %v5987_v28 = vand.u32 4294901760, %v5503_v52  ;;  %v5529_v5 = vand.u32 4294901760, %v1967_v6 }
 0x3f5   : > { %2832 = vmatpush.msrb.mxu2 %v5348_v49  ;;  %2882 = vmatpush.msrb.mxu3 %v5321_v54  ;;  %v2777_v23 = vsub.f32 %v5464_v31, %v5990_v29  ;;  %v2789_v32 = vsub.f32 %v5491_v35, %v5988_v44 }
 0x3f6   : > { %2530 = vmatpush.msrb.mxu0 %v5227_v25  ;;  %2749 = vmatpush.msra.mxu1 %v2748_v47  ;;  %v2766_v25 = vand.u32 4294901760, %v2765_v59  ;;  %v5527_v21 = vsub.f32 %v1969_v43, %v5505_v24  ;;  %v5539_v47 = vsub.f32 %v1968_v60, %v5517_v39  ;;  %v5550_v43 = vsub.f32 %v1967_v6, %v5529_v5  ;;  %v1997_v6 = vld [vmem:[#allocation14 + $0x1f0] sm:$0xff] }
 0x3f7   : > { %2835 = vmatpush.msrb.mxu2 %v5359_v57  ;;  %2884 = vmatpush.msrb.mxu3 %v5327_v20  ;;  %v2778_v26 = vand.u32 4294901760, %v2777_v23  ;;  %v2790_v48 = vand.u32 4294901760, %v2789_v32 }
 0x3f8   : > { %2533 = vmatpush.msrb.mxu0 %v5238_v33  ;;  %2755 = vmatpush.msra.mxu1 %v2754_v17  ;;  %v2772_v33 = vand.u32 4294901760, %v2771_v55  ;;  %v2795_v17 = vsub.f32 %v5503_v52, %v5987_v28  ;;  %v5984_v59 = vand.u32 4294901760, %v5527_v21  ;;  %v2801_v55 = vsub.f32 %v5515_v61, %v5986_v16 }
 0x3f9   : > { %2536 = vmatmul.f32.vlgmr.msrb.gmra.mxu0 %v5277_v34  ;;  %2838 = vmatpush.msrb.mxu2 %v5370_v14  ;;  %v2783_v34 = vsub.f32 %v5479_v41, %v5989_v40  ;;  %v5983_v60 = vand.u32 4294901760, %v5539_v47 }
 0x3fa   : > { %2686 = vmatpush.msra.mxu0 %v5321_v54  ;;  %2886 = vmatpush.msrb.mxu3 %v5339_v19  ;;  %v2796_v23 = vand.u32 4294901760, %v2795_v17  ;;  %v2807_v36 = vsub.f32 %v5527_v21, %v5984_v59  ;;  %v2802_v32 = vand.u32 4294901760, %v2801_v55 }
 0x3fb   : > { %2761 = vmatpush.msra.mxu1 %v2760_v51  ;;  %2841 = vmatpush.msrb.mxu2 %v5385_v38  ;;  %v2784_v27 = vand.u32 4294901760, %v2783_v34  ;;  %v1924_v51 = vmul.f32 %v1923_v7, %v1881_v53  ;;  %v5566_v34 = vand.u32 4294901760, %v1998_v0  ;;  %v2813_v53 = vsub.f32 %v5539_v47, %v5983_v60  ;;  %v1994_v60 = vld [vmem:[#allocation14 + $0x1d8] sm:$0xff] }
 0x3fc   : > { %2688 = vmatpush.msra.mxu0 %v5327_v20  ;;  %2888 = vmatpush.msrb.mxu3 %v5350_v15  ;;  %v5574_v7 = vand.u32 4294901760, %v1997_v6  ;;  %v2808_v17 = vand.u32 4294901760, %v2807_v36 }
 0x3fd   : > { %2767 = vmatpush.msra.mxu1 %v2766_v25  ;;  %2844 = vmatpush.msrb.mxu2 %v5409_v45  ;;  %v1927_v25 = vpop.permute.xlu0 %1926  ;;  %v5583_v55 = vsub.f32 %v1998_v0, %v5566_v34 }
 0x3fe   : > { %2690 = vmatpush.msra.mxu0 %v5339_v19  ;;  %2890 = vmatpush.msrb.mxu3 %v5361_v8  ;;  %v5593_v36 = vsub.f32 %v1997_v6, %v5574_v7 }
 0x3ff   : > { %2773 = vmatpush.msra.mxu1 %v2772_v33  ;;  %2847 = vmatpush.msrb.mxu2 %v5419_v42  ;;  %v5985_v33 = vand.u32 4294901760, %v5550_v43  ;;  %v5992_v28 = vand.u32 4294901760, %v5583_v55 }
 0x400   : > { %2692 = vmatpush.msra.mxu0 %v5350_v15  ;;  %2892 = vmatpush.msrb.mxu3 %v5375_v37 }
 0x401   : > { %2779 = vmatpush.msra.mxu1 %v2778_v26  ;;  %2850 = vmatpush.msrb.mxu2 %v5440_v13  ;;  %v1929_v26 = vmul.f32 %v1927_v25, %v1924_v51  ;;  %v1995_v51 = vld [vmem:[#allocation14 + $0x1e0] sm:$0xff] }
 0x402   : > { %2694 = vmatpush.msra.mxu0 %v5361_v8  ;;  %2894 = vmatpush.msrb.mxu3 %v5387_v11  ;;  %v5597_v0 = vand.u32 4294901760, %v1995_v51 }
 0x403   : > { %2785 = vmatpush.msra.mxu1 %v2784_v27  ;;  %2853 = vmatpush.msrb.mxu2 %v5464_v31  ;;  %v1996_v27 = vld [vmem:[#allocation14 + $0x1e8] sm:$0xff]  ;;  %v5589_v59 = vand.u32 4294901760, %v1929_v26 }
 0x404   : > { %2696 = vmatpush.msra.mxu0 %v5375_v37  ;;  %2896 = vmatpush.msrb.mxu3 %v5401_v58  ;;  %v5587_v25 = vand.u32 4294901760, %v1996_v27  ;;  %v5616_v40 = vsub.f32 %v1995_v51, %v5597_v0 }
 0x405   : > { %2791 = vmatpush.msra.mxu1 %v2790_v48  ;;  %2856 = vmatpush.msrb.mxu2 %v5479_v41  ;;  %v2819_v48 = vsub.f32 %v5550_v43, %v5985_v33  ;;  %v1993_v33 = vld [vmem:[#allocation14 + $0x1d0] sm:$0xff] }
 0x406   : > { %2698 = vmatpush.msra.mxu0 %v5387_v11  ;;  %2898 = vmatpush.msrb.mxu3 %v5431_v4  ;;  %v5606_v6 = vsub.f32 %v1996_v27, %v5587_v25  ;;  %v5611_v44 = vand.u32 4294901760, %v1993_v33  ;;  %6061 = vst [vmem:[#allocation21_spill] sm:$0xff] %v5616_v40  ;;  %v6002_v2 = vand.u32 4294901760, %v5616_v40 }
 0x407   : > { %2797 = vmatpush.msra.mxu1 %v2796_v23  ;;  %2859 = vmatpush.msrb.mxu2 %v5491_v35  ;;  %v2814_v23 = vand.u32 4294901760, %v2813_v53  ;;  %v2820_v16 = vand.u32 4294901760, %v2819_v48  ;;  %v2718_v53 = vsub.f32 %v1929_v26, %v5589_v59  ;;  %v1992_v48 = vld [vmem:[#allocation14 + $0x1c8] sm:$0xff]  ;;  %v3070_v26 = vsub.f32 %v5583_v55, %v5992_v28  ;;  %v1990_v28 = vld [vmem:[#allocation14 + $0x1b8] sm:$0xff] }
 0x408   : > { %2700 = vmatpush.msra.mxu0 %v5401_v58  ;;  %2900 = vmatpush.msrb.mxu3 %v5450_v9  ;;  %v6001_v29 = vand.u32 4294901760, %v5606_v6  ;;  %v5628_v46 = vand.u32 4294901760, %v1992_v48 }
 0x409   : > { %2803 = vmatpush.msra.mxu1 %v2802_v32  ;;  %2862 = vmatpush.msrb.mxu2 %v5503_v52  ;;  %v5601_v32 = vand.u32 4294901760, %v1994_v60  ;;  %v2719_v51 = vand.u32 4294901760, %v2718_v53  ;;  %v3071_v12 = vand.u32 4294901760, %v3070_v26 }
 0x40a   : > { %2702 = vmatpush.msra.mxu0 %v5431_v4  ;;  %2902 = vmatpush.msrb.mxu3 %v5466_v10 }
 0x40b   : > { %2809 = vmatpush.msra.mxu1 %v2808_v17  ;;  %2865 = vmatpush.msrb.mxu2 %v5515_v61  ;;  %v5998_v17 = vand.u32 4294901760, %v5593_v36  ;;  %v5623_v27 = vsub.f32 %v1994_v60, %v5601_v32  ;;  %v5636_v60 = vsub.f32 %v1993_v33, %v5611_v44  ;;  %v5651_v33 = vsub.f32 %v1992_v48, %v5628_v46 }
 0x40c   : > { %2704 = vmatpush.msra.mxu0 %v5450_v9  ;;  %2904 = vmatpush.msrb.mxu3 %v5481_v18  ;;  %v2720_v50 = vsub.f32 %v2718_v53, %v2719_v51 }
 0x40d   : > { %2815 = vmatpush.msra.mxu1 %v2814_v23  ;;  %2868 = vmatpush.msrb.mxu2 %v5527_v21  ;;  %6062 = vst [vmem:[#allocation22_spill] sm:$0xff] %v5623_v27  ;;  %v1991_v23 = vld [vmem:[#allocation14 + $0x1c0] sm:$0xff] }
 0x40e   : > { %2706 = vmatpush.msra.mxu0 %v5466_v10  ;;  %2906 = vmatpush.msrb.mxu3 %v5493_v63  ;;  %6063 = vst [vmem:[#allocation23_spill] sm:$0xff] %v5636_v60  ;;  %v5641_v3 = vand.u32 4294901760, %v1991_v23 }
 0x40f   : > { %2821 = vmatpush.msra.mxu1 %v2820_v16  ;;  %2871 = vmatpush.msrb.mxu2 %v5539_v47  ;;  %v3076_v16 = vsub.f32 %v5593_v36, %v5998_v17  ;;  %v5653_v17 = vand.u32 4294901760, %v1990_v28 }
 0x410   : > { %2708 = vmatpush.msra.mxu0 %v5481_v18  ;;  %2908 = vmatpush.msrb.mxu3 %v5505_v24  ;;  %v5663_v48 = vsub.f32 %v1991_v23, %v5641_v3 }
 0x411   : > { %2823 = vmatmul.f32.vlgmr.msra.gmra.mxu1 %v5589_v59  ;;  %2874 = vmatpush.msrb.mxu2 %v5550_v43  ;;  %v3077_v26 = vand.u32 4294901760, %v3076_v16  ;;  %v5675_v23 = vsub.f32 %v1990_v28, %v5653_v17  ;;  %v5687_v28 = vsub.f32 %v1989_v1, %v5665_v22 }
 0x412   : > { %2990 = vmatpush.msrb.mxu1 %v5321_v54  ;;  %2710 = vmatpush.msra.mxu0 %v5493_v63  ;;  %v3082_v54 = vsub.f32 %v5606_v6, %v6001_v29  ;;  %v3088_v29 = vsub.f32 %v5616_v40, %v6002_v2  ;;  %v6065_v40 = vand.u32 4294901760, %v5636_v60 }
 0x413   : > { %2910 = vmatpush.msrb.mxu3 %v5517_v39  ;;  %2877 = vmatmul.f32.vlgmr.msrb.gmra.mxu2 %v2718_v53  ;;  %v6064_v53 = vand.u32 4294901760, %v5623_v27 }
 0x414   : > { %2992 = vmatpush.msrb.mxu1 %v5327_v20  ;;  %3027 = vmatpush.msra.mxu2 %v5566_v34  ;;  %v1988_v20 = vld [vmem:[#allocation14 + $0x1a8] sm:$0xff] }
 0x415   : > { %2712 = vmatpush.msra.mxu0 %v5505_v24  ;;  %2912 = vmatpush.msrb.mxu3 %v5529_v5  ;;  %v3094_v16 = vsub.f32 %v5623_v27, %v6064_v53  ;;  %v5677_v2 = vand.u32 4294901760, %v1988_v20  ;;  %v3100_v53 = vsub.f32 %v5636_v60, %v6065_v40  ;;  %v1986_v27 = vld [vmem:[#allocation14 + $0x198] sm:$0xff]  ;;  %v6066_v40 = vand.u32 4294901760, %v5337_v56 }
 0x416   : > { %2916 = vmatmul.f32.vlgmr.msrb.gmra.mxu3 %v2719_v51  ;;  %2994 = vmatpush.msrb.mxu1 %v5339_v19  ;;  %v3083_v19 = vand.u32 4294901760, %v3082_v54  ;;  %v5689_v51 = vand.u32 4294901760, %v1987_v30  ;;  %v6067_v60 = vand.u32 4294901760, %v5651_v33  ;;  %v5701_v54 = vand.u32 4294901760, %v1986_v27 }
 0x417   : > { %3029 = vmatpush.msra.mxu2 %v5574_v7  ;;  %3072 = vmatpush.msra.mxu3 %v3071_v12  ;;  %v2721_v12 = vand.u32 4294901760, %v2720_v50  ;;  %v3095_v50 = vand.u32 4294901760, %v3094_v16  ;;  %v5699_v1 = vsub.f32 %v1988_v20, %v5677_v2  ;;  %v3101_v16 = vand.u32 4294901760, %v3100_v53 }
 0x418   : > { %2714 = vmatpush.msra.mxu0 %v5517_v39  ;;  %2996 = vmatpush.msrb.mxu1 %v5350_v15  ;;  %v3089_v15 = vand.u32 4294901760, %v3088_v29  ;;  %v6068_v56 = vand.u32 4294901760, %v5348_v49  ;;  %v5712_v20 = vsub.f32 %v1987_v30, %v5689_v51  ;;  %v1984_v29 = vld [vmem:[#allocation14 + $0x188] sm:$0xff]  ;;  %v6070_v49 = vand.u32 4294901760, %v5359_v57 }
 0x419   : > { %3031 = vmatpush.msra.mxu2 %v5587_v25  ;;  %3078 = vmatpush.msra.mxu3 %v3077_v26  ;;  %v1985_v26 = vld [vmem:[#allocation14 + $0x190] sm:$0xff]  ;;  %v6071_v53 = vand.u32 4294901760, %v5675_v23  ;;  %v5725_v30 = vsub.f32 %v1986_v27, %v5701_v54  ;;  %v6072_v57 = vand.u32 4294901760, %v5370_v14  ;;  %v5745_v14 = vand.u32 4294901760, %v4924_v62 }
 0x41a   : > { %2716 = vmatpush.msra.mxu0 %v5529_v5  ;;  %2998 = vmatpush.msrb.mxu1 %v5361_v8  ;;  %v3106_v8 = vsub.f32 %v5651_v33, %v6067_v60 }
 0x41b   : > { %2722 = vmatmul.f32.vlgmr.msra.gmra.mxu0 %v2721_v12  ;;  %3033 = vmatpush.msra.mxu2 %v5597_v0  ;;  %v3123_v12 = vand.u32 4294901760, %v5687_v28 }
 0x41c   : > { %2923 = vmatpush.msrb.mxu0 %v6066_v40  ;;  %3084 = vmatpush.msra.mxu3 %v3083_v19  ;;  %v6069_v19 = vand.u32 4294901760, %v5663_v48  ;;  %v5714_v40 = vand.u32 4294901760, %v1985_v26 }
 0x41d   : > { %3000 = vmatpush.msrb.mxu1 %v5375_v37  ;;  %3035 = vmatpush.msra.mxu2 %v5601_v32  ;;  %v3107_v37 = vand.u32 4294901760, %v3106_v8  ;;  %v3124_v8 = vsub.f32 %v5687_v28, %v3123_v12 }
 0x41e   : > { %2927 = vmatpush.msrb.mxu0 %v6068_v56  ;;  %3090 = vmatpush.msra.mxu3 %v3089_v15  ;;  %v3112_v60 = vsub.f32 %v5663_v48, %v6069_v19  ;;  %v3118_v15 = vsub.f32 %v5675_v23, %v6071_v53  ;;  %v3129_v56 = vand.u32 4294901760, %v5699_v1  ;;  %v1983_v19 = vld [vmem:[#allocation14 + $0x180] sm:$0xff]  ;;  %v5738_v27 = vsub.f32 %v1985_v26, %v5714_v40 }
 0x41f   : > { %3002 = vmatpush.msrb.mxu1 %v5387_v11  ;;  %3037 = vmatpush.msra.mxu2 %v5611_v44  ;;  %v5729_v11 = vand.u32 4294901760, %v1984_v29  ;;  %v3141_v26 = vand.u32 4294901760, %v5725_v30 }
 0x420   : > { %2931 = vmatpush.msrb.mxu0 %v6070_v49  ;;  %3096 = vmatpush.msra.mxu3 %v3095_v50  ;;  %v3113_v50 = vand.u32 4294901760, %v3112_v60  ;;  %v3135_v49 = vand.u32 4294901760, %v5712_v20  ;;  %v3119_v60 = vand.u32 4294901760, %v3118_v15  ;;  %v3130_v53 = vsub.f32 %v5699_v1, %v3129_v56 }
 0x421   : > { %3004 = vmatpush.msrb.mxu1 %v5401_v58  ;;  %3039 = vmatpush.msra.mxu2 %v5628_v46  ;;  %v5742_v58 = vand.u32 4294901760, %v1983_v19  ;;  %v3147_v15 = vand.u32 4294901760, %v5738_v27 }
 0x422   : > { %2935 = vmatpush.msrb.mxu0 %v6072_v57  ;;  %3102 = vmatpush.msra.mxu3 %v3101_v16  ;;  %v6073_v16 = vand.u32 4294901760, %v5385_v38  ;;  %v6074_v57 = vand.u32 4294901760, %v5409_v45  ;;  %v3125_v38 = vand.u32 4294901760, %v3124_v8  ;;  %v6075_v45 = vand.u32 4294901760, %v5419_v42 }
 0x423   : > { %3006 = vmatpush.msrb.mxu1 %v5431_v4  ;;  %3041 = vmatpush.msra.mxu2 %v5641_v3  ;;  %v5756_v4 = vsub.f32 %v1984_v29, %v5729_v11  ;;  %v5771_v29 = vsub.f32 %v1983_v19, %v5742_v58  ;;  %v3142_v8 = vsub.f32 %v5725_v30, %v3141_v26 }
 0x424   : > { %2939 = vmatpush.msrb.mxu0 %v6073_v16  ;;  %3108 = vmatpush.msra.mxu3 %v3107_v37  ;;  %v3136_v37 = vsub.f32 %v5712_v20, %v3135_v49  ;;  %v3148_v42 = vsub.f32 %v5738_v27, %v3147_v15 }
 0x425   : > { %3008 = vmatpush.msrb.mxu1 %v5450_v9  ;;  %3043 = vmatpush.msra.mxu2 %v5653_v17  ;;  %v5768_v9 = vsub.f32 %v4924_v62, %v5745_v14  ;;  %v6076_v62 = vand.u32 4294901760, %v5440_v13  ;;  %v3143_v13 = vand.u32 4294901760, %v3142_v8  ;;  %v6086_v8 = vand.u32 4294901760, %v5606_v6 }
 0x426   : > { %2943 = vmatpush.msrb.mxu0 %v6074_v57  ;;  %3114 = vmatpush.msra.mxu3 %v3113_v50  ;;  %v3131_v50 = vand.u32 4294901760, %v3130_v53  ;;  %v3137_v19 = vand.u32 4294901760, %v3136_v37  ;;  %v3149_v57 = vand.u32 4294901760, %v3148_v42 }
 0x427   : > { %3010 = vmatpush.msrb.mxu1 %v5466_v10  ;;  %3045 = vmatpush.msra.mxu2 %v5665_v22  ;;  %v3153_v10 = vand.u32 4294901760, %v5756_v4  ;;  %v3060_v16 = vand.u32 4294901760, %v5768_v9 }
 0x428   : > { %2947 = vmatpush.msrb.mxu0 %v6075_v45  ;;  %3120 = vmatpush.msra.mxu3 %v3119_v60  ;;  %v6077_v60 = vand.u32 4294901760, %v5464_v31 }
 0x429   : > { %3012 = vmatpush.msrb.mxu1 %v5481_v18  ;;  %3047 = vmatpush.msra.mxu2 %v5677_v2  ;;  %v3159_v18 = vand.u32 4294901760, %v5771_v29  ;;  %v3154_v53 = vsub.f32 %v5756_v4, %v3153_v10  ;;  %v3061_v31 = vsub.f32 %v5768_v9, %v3060_v16 }
 0x42a   : > { %2951 = vmatpush.msrb.mxu0 %v6076_v62  ;;  %3126 = vmatpush.msra.mxu3 %v3125_v38  ;;  %v6079_v38 = vand.u32 4294901760, %v5491_v35  ;;  %v6081_v35 = vand.u32 4294901760, %v5515_v61  ;;  %v6085_v61 = vand.u32 4294901760, %v5539_v47  ;;  %v6088_v62 = vld [vmem:[#allocation21_spill] sm:$0xff]  ;;  %v6090_v47 = vld [vmem:[#allocation22_spill] sm:$0xff] }
 0x42b   : > { %3014 = vmatpush.msrb.mxu1 %v5493_v63  ;;  %3049 = vmatpush.msra.mxu2 %v5689_v51  ;;  %v6078_v63 = vand.u32 4294901760, %v5479_v41  ;;  %v3155_v41 = vand.u32 4294901760, %v3154_v53  ;;  %v3062_v37 = vand.u32 4294901760, %v3061_v31 }
 0x42c   : > { %2955 = vmatpush.msrb.mxu0 %v6077_v60  ;;  %3132 = vmatpush.msra.mxu3 %v3131_v50  ;;  %v6084_v50 = vand.u32 4294901760, %v5593_v36 }
 0x42d   : > { %3016 = vmatpush.msrb.mxu1 %v5505_v24  ;;  %3051 = vmatpush.msra.mxu2 %v5701_v54  ;;  %v3160_v24 = vsub.f32 %v5771_v29, %v3159_v18 }
 0x42e   : > { %2959 = vmatpush.msrb.mxu0 %v6078_v63  ;;  %3138 = vmatpush.msra.mxu3 %v3137_v19  ;;  %v6089_v19 = vand.u32 4294901760, %v6088_v62 }
 0x42f   : > { %3018 = vmatpush.msrb.mxu1 %v5517_v39  ;;  %3053 = vmatpush.msra.mxu2 %v5714_v40  ;;  %v6080_v39 = vand.u32 4294901760, %v5503_v52  ;;  %v3161_v45 = vand.u32 4294901760, %v3160_v24  ;;  %v6083_v52 = vand.u32 4294901760, %v5527_v21  ;;  %v6087_v21 = vand.u32 4294901760, %v5550_v43  ;;  %v6092_v43 = vld [vmem:[#allocation23_spill] sm:$0xff] }
 0x430   : > { %2963 = vmatpush.msrb.mxu0 %v6079_v38  ;;  %3144 = vmatpush.msra.mxu3 %v3143_v13 }
 0x431   : > { %3020 = vmatpush.msrb.mxu1 %v5529_v5  ;;  %3055 = vmatpush.msra.mxu2 %v5729_v11  ;;  %v6082_v5 = vand.u32 4294901760, %v5583_v55 }
 0x432   : > { %2967 = vmatpush.msrb.mxu0 %v6080_v39  ;;  %3150 = vmatpush.msra.mxu3 %v3149_v57 }
 0x433   : > { %3022 = vmatmul.f32.vlgmr.msrb.gmra.mxu1 %v5589_v59  ;;  %3057 = vmatpush.msra.mxu2 %v5742_v58 }
 0x434   : > { %3223 = vmatpush.msra.mxu1 %v5566_v34  ;;  %2971 = vmatpush.msrb.mxu0 %v6081_v35 }
 0x435   : > { %3156 = vmatpush.msra.mxu3 %v3155_v41  ;;  %3063 = vmatmul.f32.vlgmr.msra.gmra.mxu2 %v3062_v37 }
 0x436   : > { %3225 = vmatpush.msra.mxu1 %v5574_v7  ;;  %3264 = vmatpush.msrb.mxu2 %v6082_v5 }
 0x437   : > { %2975 = vmatpush.msrb.mxu0 %v6083_v52  ;;  %3162 = vmatpush.msra.mxu3 %v3161_v45 }
 0x438   : > { %3164 = vmatmul.f32.vlgmr.msra.gmra.mxu3 %v5745_v14  ;;  %3227 = vmatpush.msra.mxu1 %v5587_v25 }
 0x439   : > { %3268 = vmatpush.msrb.mxu2 %v6084_v50  ;;  %3331 = vmatpush.msrb.mxu3 %v5566_v34  ;;  %v6091_v34 = vand.u32 4294901760, %v6090_v47 }
 0x43a   : > { %2979 = vmatpush.msrb.mxu0 %v6085_v61  ;;  %3229 = vmatpush.msra.mxu1 %v5597_v0 }
 0x43b   : > { %3272 = vmatpush.msrb.mxu2 %v6086_v8  ;;  %3333 = vmatpush.msrb.mxu3 %v5574_v7  ;;  %v6094_v7 = vand.u32 4294901760, %v5651_v33 }
 0x43c   : > { %2983 = vmatpush.msrb.mxu0 %v6087_v21  ;;  %3231 = vmatpush.msra.mxu1 %v5601_v32 }
 0x43d   : > { %2985 = vmatmul.f32.vlgmr.msrb.gmra.mxu0 %v5589_v59  ;;  %3276 = vmatpush.msrb.mxu2 %v6089_v19  ;;  %v6093_v59 = vand.u32 4294901760, %v6092_v43 }
 0x43e   : > { %3170 = vmatpush.msra.mxu0 %v5583_v55  ;;  %3335 = vmatpush.msrb.mxu3 %v5587_v25  ;;  %v6095_v55 = vand.u32 4294901760, %v5663_v48  ;;  %v6096_v25 = vand.u32 4294901760, %v5675_v23 }
 0x43f   : > { %3233 = vmatpush.msra.mxu1 %v5611_v44  ;;  %3280 = vmatpush.msrb.mxu2 %v6091_v34 }
 0x440   : > { %3173 = vmatpush.msra.mxu0 %v5593_v36  ;;  %3337 = vmatpush.msrb.mxu3 %v5597_v0 }
 0x441   : > { %3235 = vmatpush.msra.mxu1 %v5628_v46  ;;  %3284 = vmatpush.msrb.mxu2 %v6093_v59 }
 0x442   : > { %3176 = vmatpush.msra.mxu0 %v5606_v6  ;;  %3339 = vmatpush.msrb.mxu3 %v5601_v32 }
 0x443   : > { %3237 = vmatpush.msra.mxu1 %v5641_v3  ;;  %3288 = vmatpush.msrb.mxu2 %v6094_v7 }
 0x444   : > { %3179 = vmatpush.msra.mxu0 %v6088_v62  ;;  %3341 = vmatpush.msrb.mxu3 %v5611_v44 }
 0x445   : > { %3239 = vmatpush.msra.mxu1 %v5653_v17  ;;  %3292 = vmatpush.msrb.mxu2 %v6095_v55 }
 0x446   : > { %3182 = vmatpush.msra.mxu0 %v6090_v47  ;;  %3343 = vmatpush.msrb.mxu3 %v5628_v46 }
 0x447   : > { %3241 = vmatpush.msra.mxu1 %v5665_v22  ;;  %3296 = vmatpush.msrb.mxu2 %v6096_v25 }
 0x448   : > { %3185 = vmatpush.msra.mxu0 %v6092_v43  ;;  %3345 = vmatpush.msrb.mxu3 %v5641_v3 }
 0x449   : > { %3243 = vmatpush.msra.mxu1 %v5677_v2  ;;  %3300 = vmatpush.msrb.mxu2 %v3123_v12  ;;  %v2142_v46 = vpop.f32.mrf.mxu1 }
 0x44a   : > { %3188 = vmatpush.msra.mxu0 %v5651_v33  ;;  %3347 = vmatpush.msrb.mxu3 %v5653_v17 }
 0x44b   : > { %3245 = vmatpush.msra.mxu1 %v5689_v51  ;;  %3304 = vmatpush.msrb.mxu2 %v3129_v56 }
 0x44c   : > { %3191 = vmatpush.msra.mxu0 %v5663_v48  ;;  %3349 = vmatpush.msrb.mxu3 %v5665_v22  ;;  %v3669_v22 = vld [vmem:[%s5956_s8] ss:$0 sm:$0xff] }
 0x44d   : > { %3247 = vmatpush.msra.mxu1 %v5701_v54  ;;  %3308 = vmatpush.msrb.mxu2 %v3135_v49 }
 0x44e   : > { %3194 = vmatpush.msra.mxu0 %v5675_v23  ;;  %3351 = vmatpush.msrb.mxu3 %v5677_v2 }
 0x44f   : > { %3249 = vmatpush.msra.mxu1 %v5714_v40  ;;  %3312 = vmatpush.msrb.mxu2 %v3141_v26 }
 0x450   : > { %3197 = vmatpush.msra.mxu0 %v5687_v28  ;;  %3353 = vmatpush.msrb.mxu3 %v5689_v51 }
 0x451   : > { %3251 = vmatpush.msra.mxu1 %v5729_v11  ;;  %3316 = vmatpush.msrb.mxu2 %v3147_v15  ;;  %v2041_v3 = vpop.f32.mrf.mxu0  ;;  %v2196_v36 = vpop.f32.mrf.mxu2 }
 0x452   : > { %3200 = vmatpush.msra.mxu0 %v5699_v1  ;;  %3355 = vmatpush.msrb.mxu3 %v5701_v54  ;;  %v2042_v2 = vadd.f32 %v3669_v22, %v2041_v3  ;;  %v2341_v48 = vpop.f32.mrf.mxu1 }
 0x453   : > { %3253 = vmatpush.msra.mxu1 %v5742_v58  ;;  %3320 = vmatpush.msrb.mxu2 %v3153_v10  ;;  %v2235_v32 = vpop.f32.mrf.mxu3 }
 0x454   : > { %3203 = vmatpush.msra.mxu0 %v5712_v20  ;;  %3357 = vmatpush.msrb.mxu3 %v5714_v40  ;;  %v2143_v44 = vadd.f32 %v2142_v46, %v2042_v2 }
 0x455   : > { %3257 = vmatmul.f32.vlgmr.msra.gmra.mxu1 %v3060_v16  ;;  %3324 = vmatpush.msrb.mxu2 %v3159_v18 }
 0x456   : > { %3206 = vmatpush.msra.mxu0 %v5725_v30  ;;  %3359 = vmatpush.msrb.mxu3 %v5729_v11  ;;  %v2197_v0 = vadd.f32 %v2196_v36, %v2143_v44 }
 0x457   : > { %3326 = vmatmul.f32.vlgmr.msrb.gmra.mxu2 %v5745_v14 }
 0x458   : > { %3209 = vmatpush.msra.mxu0 %v5738_v27  ;;  %3361 = vmatpush.msrb.mxu3 %v5742_v58  ;;  %v2236_v6 = vadd.f32 %v2235_v32, %v2197_v0 }
 0x459   : > { %3363 = vmatmul.f32.vlgmr.msrb.gmra.mxu3 %v5745_v14 }
 0x45a   : > { %3212 = vmatpush.msra.mxu0 %v5756_v4  ;;  %v2382_v23 = vpop.f32.mrf.mxu2 }
 0x45b   : > { %v2304_v17 = vpop.f32.mrf.mxu0 }
 0x45c   : > { %3215 = vmatpush.msra.mxu0 %v5771_v29  ;;  %v2305_v33 = vadd.f32 %v2304_v17, %v2236_v6 }
 0x45d   : > { %3218 = vmatmul.f32.vlgmr.msra.gmra.mxu0 %v5768_v9  ;;  %v2483_v28 = vpop.f32.mrf.mxu3 }
 0x45e   : > { %v2342_v51 = vadd.f32 %v2341_v48, %v2305_v33 }
 0x460   : > { %v2383_v54 = vadd.f32 %v2382_v23, %v2342_v51 }
 0x462   : > { %v2484_v12 = vadd.f32 %v2483_v28, %v2383_v54 }
 0x46c   : > { %v2576_v40 = vpop.f32.mrf.mxu1 }
 0x474   : > { %v2645_v30 = vpop.f32.mrf.mxu2 }
 0x476   : > { %v2537_v1 = vpop.f32.mrf.mxu0 }
 0x477   : > { %v2538_v20 = vadd.f32 %v2537_v1, %v2484_v12  ;;  %v2682_v49 = vpop.f32.mrf.mxu3 }
 0x479   : > { %v2577_v56 = vadd.f32 %v2576_v40, %v2538_v20 }
 0x47b   : > { %v2646_v11 = vadd.f32 %v2645_v30, %v2577_v56 }
 0x47d   : > { %v2683_v58 = vadd.f32 %v2682_v49, %v2646_v11 }
 0x48e   : > { %v2824_v26 = vpop.f32.mrf.mxu1 }
 0x496   : > { %v2878_v15 = vpop.f32.mrf.mxu2 }
 0x498   : > { %v2723_v27 = vpop.f32.mrf.mxu0 }
 0x499   : > { %v2724_v14 = vadd.f32 %v2723_v27, %v2683_v58  ;;  %v2917_v29 = vpop.f32.mrf.mxu3 }
 0x49b   : > { %v2825_v4 = vadd.f32 %v2824_v26, %v2724_v14 }
 0x49d   : > { %v2879_v9 = vadd.f32 %v2878_v15, %v2825_v4 }
 0x49f   : > { %v2918_v42 = vadd.f32 %v2917_v29, %v2879_v9 }
 0x4b0   : > { %v3023_v18 = vpop.f32.mrf.mxu1 }
 0x4b8   : > { %v3064_v13 = vpop.f32.mrf.mxu2 }
 0x4ba   : > { %v2986_v10 = vpop.f32.mrf.mxu0 }
 0x4bb   : > { %v2987_v16 = vadd.f32 %v2986_v10, %v2918_v42  ;;  %v3165_v63 = vpop.f32.mrf.mxu3 }
 0x4bd   : > { %v3024_v60 = vadd.f32 %v3023_v18, %v2987_v16 }
 0x4bf   : > { %v3065_v53 = vadd.f32 %v3064_v13, %v3024_v60 }
 0x4c1   : > { %v3166_v57 = vadd.f32 %v3165_v63, %v3065_v53 }
 0x4d2   : > { %v3258_v38 = vpop.f32.mrf.mxu1 }
 0x4da   : > { %v3219_v31 = vpop.f32.mrf.mxu0  ;;  %v3327_v39 = vpop.f32.mrf.mxu2 }
 0x4db   : > { %v3220_v24 = vadd.f32 %v3219_v31, %v3166_v57 }
 0x4dc   : > { %v3364_v45 = vpop.f32.mrf.mxu3 }
 0x4dd   : > { %v3259_v41 = vadd.f32 %v3258_v38, %v3220_v24 }
 0x4df   : > { %v3328_v37 = vadd.f32 %v3327_v39, %v3259_v41 }
 0x4e1   : > { %v3365_v35 = vadd.f32 %v3364_v45, %v3328_v37 }
 0x4e3   : > { %3367 = vst [vmem:[%s442_s26] sm:$0xff] %v3365_v35 }
 0x4e4   : > { %3927 = shalt.err (!%p3924_p9)
}
 0x4e5   : > { %3565 = dma.vmem_to_hbm [thread:$0]  (%p4140_p4), %s3382_s14, 128, %s3384_s18, %s3369_s16  }
 0x4e6 PF: > { %s3395_s23 = sand.u32 1, %s3966_s30   ;;  %p6097_p10 = scmp.ge.s32.totalorder %s3978_s12, 2 }
 0x4e7   : > { %s3396_s1 = scalar_lea.sflag [#allocation5], %s3395_s23 }
 0x4e8   : > { %p3591_p13 = pnand %p6097_p10, %p4144_p6 }
 0x4ea   : > { %p3592_p11 = pneg %p3591_p13 }
 0x4ec   : > { %3961 = dma.done.wait (%p3592_p11), %s3396_s1, 128  }
 0x4ed   : > { %3963 = vsyncadd (%p3592_p11), %s3396_s1, 4294967168  ;;  %p25_p0 = scmp.ge.s32.totalorder %s4114_s15, 4   ;;  %s6098_s30 = smov %s3970_s10 }
 0x4ee   : > { %s6099_s10 = smov %s3974_s11  ;;  %s6100_s11 = smov %s4125_s29 }
 0x4ef   : > { %s6101_s12 = smov %s4114_s15  ;;  %27 = sbr.rel (!%p25_p0) target bundleno = 13 (0xd), region = 125 }
 0x4f4   :  { %3402 = vsyncpa [#allocation4], 1 }
 0x4f5   :  { %3404 = vsyncpa [#allocation4 + $0x1], 1 }
 0x4f6   :  { %3405 = vsyncpa [#allocation7], 1 }
 0x4f7   :  { %3406 = vsyncpa [#allocation10], 1 }
 0x4f8   :  { %3407 = vsyncpa [#allocation13], 1 }
 0x4f9   :  { %3408 = vsyncpa [#allocation5], 1 }
 0x4fa   :  { %3410 = vsyncpa [#allocation5 + $0x1], 1 }

</bundles_post_ra>
